<compile_context>
chip_gen: v7x
topology: tpu7x:2x2x1
jax: 0.10.0
libtpu: 0.0.40
codegen_flags: <defaults>
</compile_context>

<pallas_src>
import jax
import jax.numpy as jnp
from jax import lax
from jax.experimental import pallas as pl
from jax.experimental.pallas import tpu as pltpu


def _cdiv(a, b):
    return -(-a // b)


# ---------------------------------------------------------------------------
# Kernel 1: conv1 as transposed im2col GEMM + bias + relu + 2x2 maxpool
# ---------------------------------------------------------------------------
def conv1_pool_kernel(p_ref, w_ref, b_ref, o_ref):
    # p_ref: (4, P_pad, TN)   4 pool-window shifts, P_pad padded patch features,
    #                         TN pooled pixels (lanes)
    # w_ref: (C_pad, P_pad)   resident conv weight (zero padded rows/cols)
    # b_ref: (C_pad, 1)       resident bias
    # o_ref: (C_pad, TN)      lane-dense output tile
    w = w_ref[...]
    acc = jnp.dot(w, p_ref[0], preferred_element_type=jnp.float32)
    for k in range(1, 4):  # static unroll over the 2x2 pooling window
        acc = jnp.maximum(
            acc, jnp.dot(w, p_ref[k], preferred_element_type=jnp.float32))
    # bias + relu hoisted out of the pool loop (relu(x+b) is monotone in x,
    # so it commutes with the max over pool shifts).
    o_ref[...] = jnp.maximum(acc + b_ref[...], 0.0)


def conv1_relu_pool(patches_t, w_g, b_g, *, tn):
    # patches_t: (4, P_pad, N_pad), w_g: (C_pad, P_pad), b_g: (C_pad, 1)
    _, p_pad, n_pad = patches_t.shape
    c_pad = w_g.shape[0]
    grid = (n_pad // tn,)
    return pl.pallas_call(
        conv1_pool_kernel,
        out_shape=jax.ShapeDtypeStruct((c_pad, n_pad), jnp.float32),
        grid_spec=pltpu.PrefetchScalarGridSpec(
            num_scalar_prefetch=0,
            grid=grid,
            in_specs=[
                pl.BlockSpec((4, p_pad, tn), lambda i: (0, 0, i)),   # streamed
                pl.BlockSpec((c_pad, p_pad), lambda i: (0, 0)),      # resident
                pl.BlockSpec((c_pad, 1), lambda i: (0, 0)),          # resident
            ],
            out_specs=pl.BlockSpec((c_pad, tn), lambda i: (0, i)),
        ),
        compiler_params=pltpu.CompilerParams(
            dimension_semantics=("parallel",),
            vmem_limit_bytes=32 * 1024 * 1024),
    )(patches_t, w_g, b_g)


# ---------------------------------------------------------------------------
# Kernel 2: fused conv2 + bias + relu + maxpool + flatten + fc1/relu/fc2/relu/fc3
# ---------------------------------------------------------------------------
def tail_kernel(p2_ref, w2_ref, b2_ref, w1r_ref, fb1_ref,
                wf2_ref, fb2_ref, wf3_ref, fb3_ref, o_ref):
    # p2_ref : (100, TB, 256)  -- 100 = 4 pool shifts x 25 pooled pixels,
    #                             feature dim padded 150 -> 256
    # w2_ref : (256, 16)  b2_ref: (1, 16)          conv2 GEMM weight / bias
    # w1r_ref: (25, 16, 128)                       fc1 weight, flatten folded in
    # fb1/fb2/fb3: (1, 128)   wf2/wf3: (128, 128)  fc weights padded to 128
    # o_ref  : (TB, 128)                           logits (first 10 cols valid)
    tb = o_ref.shape[0]
    w2 = w2_ref[...]
    b2 = b2_ref[...]
    h1 = jnp.zeros((tb, 128), dtype=jnp.float32)
    for p in range(25):  # static unroll over the 5x5 pooled conv2 pixels
        acc = jnp.dot(p2_ref[p], w2, preferred_element_type=jnp.float32)
        for k in range(1, 4):  # max over the 2x2 pool window
            acc = jnp.maximum(
                acc, jnp.dot(p2_ref[k * 25 + p], w2,
                             preferred_element_type=jnp.float32))
        y2p = jnp.maximum(acc + b2, 0.0)                       # (TB, 16)
        # accumulate fc1 directly -- this *is* the NCHW flatten, folded into w1r
        h1 = h1 + jnp.dot(y2p, w1r_ref[p], preferred_element_type=jnp.float32)
    h1 = jnp.maximum(h1 + fb1_ref[...], 0.0)
    h2 = jnp.maximum(
        jnp.dot(h1, wf2_ref[...], preferred_element_type=jnp.float32) + fb2_ref[...],
        0.0)
    o_ref[...] = (jnp.dot(h2, wf3_ref[...], preferred_element_type=jnp.float32)
                  + fb3_ref[...])


def conv2_mlp_tail(p2, w2g, b2, w1r, fb1, wf2, fb2, wf3, fb3, *, tb):
    _, b_pad, p_pad = p2.shape
    grid = (b_pad // tb,)

    def _resident(shape):
        zeros = (0,) * len(shape)
        return pl.BlockSpec(shape, lambda i, _z=zeros: _z)

    return pl.pallas_call(
        tail_kernel,
        out_shape=jax.ShapeDtypeStruct((b_pad, 128), jnp.float32),
        grid_spec=pltpu.PrefetchScalarGridSpec(
            num_scalar_prefetch=0,
            grid=grid,
            in_specs=[
                pl.BlockSpec((100, tb, p_pad), lambda i: (0, i, 0)),  # streamed
                _resident((256, 16)),
                _resident((1, 16)),
                _resident((25, 16, 128)),
                _resident((1, 128)),
                _resident((128, 128)),
                _resident((1, 128)),
                _resident((128, 128)),
                _resident((1, 128)),
            ],
            out_specs=pl.BlockSpec((tb, 128), lambda i: (i, 0)),
        ),
        compiler_params=pltpu.CompilerParams(
            dimension_semantics=("parallel",),
            vmem_limit_bytes=32 * 1024 * 1024),
    )(p2, w2g, b2, w1r, fb1, wf2, fb2, wf3, fb3)


# ---------------------------------------------------------------------------
# Plain-JAX glue: im2col (pool-grouped), weight re-layout + padding
# ---------------------------------------------------------------------------
def _im2col_conv1(x_nhwc, *, k=5, pool=2, p_pad=128, tn=512):
    """-> (4, P_pad, N_pad) transposed patches for conv1 (pixels in lanes)."""
    b, h, w, c = x_nhwc.shape
    oh, ow = h - k + 1, w - k + 1
    ph, pw = oh // pool, ow // pool
    cols = [x_nhwc[:, ki:ki + oh, kj:kj + ow, :]
            for ki in range(k) for kj in range(k)]
    pat = jnp.concatenate(cols, axis=-1)                 # (B, OH, OW, k*k*C)
    groups = []
    for di in range(pool):
        for dj in range(pool):
            g = pat[:, di::pool, dj::pool, :]            # (B, PH, PW, k*k*C)
            groups.append(g.reshape(b * ph * pw, k * k * c))
    p4 = jnp.transpose(jnp.stack(groups, axis=0), (0, 2, 1))   # (4, P, N)
    n = b * ph * pw
    n_pad = tn * _cdiv(n, tn)
    p4 = jnp.pad(p4, ((0, 0), (0, p_pad - k * k * c), (0, n_pad - n)))
    return p4, (ph, pw)


def _conv2_patches(y1_nhwc, *, b_pad, k=5, pool=2, p_pad=256):
    """-> (100, B_pad, P_pad): 4 pool shifts x 25 pooled pixels, batch in rows."""
    b, h, w, c = y1_nhwc.shape                           # (B, 14, 14, 6)
    oh, ow = h - k + 1, w - k + 1                        # 10, 10
    ph, pw = oh // pool, ow // pool                      # 5, 5
    cols = [y1_nhwc[:, ki:ki + oh, kj:kj + ow, :]
            for ki in range(k) for kj in range(k)]
    pat = jnp.concatenate(cols, axis=-1)                 # (B, 10, 10, 150)
    groups = []
    for di in range(pool):
        for dj in range(pool):
            g = pat[:, di::pool, dj::pool, :]            # (B, 5, 5, 150)
            groups.append(g.reshape(b, ph * pw, k * k * c))
    p2 = jnp.stack(groups, axis=0)                       # (4, B, 25, 150)
    p2 = jnp.transpose(p2, (0, 2, 1, 3))                 # (4, 25, B, 150)
    p2 = jnp.pad(p2, ((0, 0), (0, 0), (0, b_pad - b), (0, p_pad - k * k * c)))
    return p2.reshape(4 * ph * pw, b_pad, p_pad)         # (100, B_pad, 256)


def _prep_params(params):
    # conv1: OIHW (6,3,5,5) -> (C_pad=8, P_pad=128), feature order (ki,kj,cin)
    w1 = params["w1"]
    co1, ci1, k1, _ = w1.shape
    w1g = jnp.transpose(w1, (0, 2, 3, 1)).reshape(co1, k1 * k1 * ci1)
    w1g = jnp.pad(w1g, ((0, 8 - co1), (0, 128 - k1 * k1 * ci1)))
    b1g = jnp.pad(params["b1"], (0, 8 - co1)).reshape(8, 1)

    # conv2: OIHW (16,6,5,5) -> (P_pad=256, 16)
    w2 = params["w2"]
    co2, ci2, k2, _ = w2.shape
    w2g = jnp.transpose(w2, (2, 3, 1, 0)).reshape(k2 * k2 * ci2, co2)
    w2g = jnp.pad(w2g, ((0, 256 - k2 * k2 * ci2), (0, 0)))
    b2g = params["b2"].reshape(1, co2)

    # fc1: (120, 400) with torch-NCHW input index c*25 + p -> (25, 16, 128)
    w1r = jnp.transpose(params["fw1"].reshape(120, 16, 25), (2, 1, 0))  # (25,16,120)
    w1r = jnp.pad(w1r, ((0, 0), (0, 0), (0, 8)))
    fb1 = jnp.pad(params["fb1"], (0, 8)).reshape(1, 128)

    # fc2: (84,120) -> (128,128); fc3: (10,84) -> (128,128)  (zero padded, exact)
    wf2 = jnp.pad(params["fw2"].T, ((0, 8), (0, 44)))
    fb2 = jnp.pad(params["fb2"], (0, 44)).reshape(1, 128)
    wf3 = jnp.pad(params["fw3"].T, ((0, 44), (0, 118)))
    fb3 = jnp.pad(params["fb3"], (0, 118)).reshape(1, 128)
    return dict(w1g=w1g, b1g=b1g, w2g=w2g, b2g=b2g, w1r=w1r, fb1=fb1,
                wf2=wf2, fb2=fb2, wf3=wf3, fb3=fb3)


# ---------------------------------------------------------------------------
# Forward pass
# ---------------------------------------------------------------------------
def net_forward(x_nchw, params, *, tn=512, tb_max=64):
    b = x_nchw.shape[0]
    pp = _prep_params(params)
    x = jnp.transpose(x_nchw, (0, 2, 3, 1)).astype(jnp.float32)   # NCHW -> NHWC

    # conv1 + relu + pool : (B,32,32,3) -> (B,14,14,6)
    p1, (ph, pw) = _im2col_conv1(x, tn=tn)                        # (4,128,N_pad)
    n1 = b * ph * pw
    y1_t = conv1_relu_pool(p1, pp["w1g"], pp["b1g"], tn=tn)       # (8, N_pad)
    y1 = jnp.transpose(y1_t[:6, :n1], (1, 0)).reshape(b, ph, pw, 6)

    # conv2 + relu + pool + flatten + fc1/fc2/fc3 : one fused kernel over batch
    tb = min(tb_max, 8 * _cdiv(b, 8))
    b_pad = tb * _cdiv(b, tb)
    p2 = _conv2_patches(y1, b_pad=b_pad)                          # (100,B_pad,256)
    out = conv2_mlp_tail(p2, pp["w2g"], pp["b2g"], pp["w1r"], pp["fb1"],
                         pp["wf2"], pp["fb2"], pp["wf3"], pp["fb3"], tb=tb)
    return out[:b, :10]


# ---------------------------------------------------------------------------
# Pure-JAX reference (lax.conv / reduce_window) for correctness check
# ---------------------------------------------------------------------------
def net_reference(x_nchw, params):
    def conv(x, w, bias):
        y = lax.conv_general_dilated(x, w, (1, 1), "VALID",
                                     dimension_numbers=("NCHW", "OIHW", "NCHW"))
        return y + bias[None, :, None, None]

    def pool(x):
        return lax.reduce_window(x, -jnp.inf, lax.max,
                                 (1, 1, 2, 2), (1, 1, 2, 2), "VALID")

    x = pool(jax.nn.relu(conv(x_nchw, params["w1"], params["b1"])))
    x = pool(jax.nn.relu(conv(x, params["w2"], params["b2"])))
    x = x.reshape(x.shape[0], -1)
    x = jax.nn.relu(x @ params["fw1"].T + params["fb1"])
    x = jax.nn.relu(x @ params["fw2"].T + params["fb2"])
    return x @ params["fw3"].T + params["fb3"]


# ---------------------------------------------------------------------------
# Deterministic parameter init (shapes from Net.__init__)
# ---------------------------------------------------------------------------
def init_params(key):
    ks = jax.random.split(key, 10)
    n = lambda k, shape, s=0.05: (s * jax.random.normal(k, shape)).astype(jnp.float32)
    return {
        "w1": n(ks[0], (6, 3, 5, 5)),    "b1": n(ks[1], (6,)),
        "w2": n(ks[2], (16, 6, 5, 5)),   "b2": n(ks[3], (16,)),
        "fw1": n(ks[4], (120, 400)),     "fb1": n(ks[5], (120,)),
        "fw2": n(ks[6], (84, 120)),      "fb2": n(ks[7], (84,)),
        "fw3": n(ks[8], (10, 84)),       "fb3": n(ks[9], (10,)),
    }


if __name__ == "__main__":
    key = jax.random.PRNGKey(0)
    x = jax.random.normal(key, (2, 3, 32, 32), dtype=jnp.float32)  # NCHW, like PyTorch
    params = init_params(jax.random.PRNGKey(42))

    fwd = jax.jit(net_forward)
    out = jax.block_until_ready(fwd(x, params))
    assert out.shape == (2, 10) and out.dtype == jnp.float32

    ref = jax.block_until_ready(net_reference(x, params))
    max_err = float(jnp.max(jnp.abs(out - ref)))
    if max_err > 5e-3:
        raise AssertionError(f"mismatch vs reference: max abs err = {max_err}")

    print("KERNEL_OK")
</pallas_src>

<mosaic_0001>
module attributes {stable_mosaic.version = 11 : i64} {
  func.func @conv1_pool_kernel(%arg0: i32, %arg1: memref<4x128x512xf32, #tpu.memory_space<vmem>>, %arg2: memref<8x128xf32, #tpu.memory_space<vmem>>, %arg3: memref<8x1xf32, #tpu.memory_space<vmem>>, %arg4: memref<8x512xf32, #tpu.memory_space<vmem>>) attributes {dimension_semantics = [#tpu.dimension_semantics<parallel>], iteration_bounds = array<i64: 1>, scalar_prefetch = 0 : i64, scratch_operands = 0 : i64, tpu.core_type = #tpu.core_type<tc>, window_params = [{transform_indices = @transform_0, window_bounds = array<i64: 4, 128, 512>}, {pipeline_mode = #tpu.pipeline_mode<synchronous>, transform_indices = @transform_1, window_bounds = array<i64: 8, 128>}, {pipeline_mode = #tpu.pipeline_mode<synchronous>, transform_indices = @transform_2, window_bounds = array<i64: 8, 1>}, {transform_indices = @transform_3, window_bounds = array<i64: 8, 512>}]} {
    %c0 = arith.constant 0 : index
    %c0_0 = arith.constant 0 : index
    %0 = vector.load %arg2[%c0, %c0_0] : memref<8x128xf32, #tpu.memory_space<vmem>>, vector<8x128xf32>
    %c0_1 = arith.constant 0 : index
    %c0_2 = arith.constant 0 : index
    %c0_3 = arith.constant 0 : index
    %1 = vector.load %arg1[%c0_1, %c0_2, %c0_3] : memref<4x128x512xf32, #tpu.memory_space<vmem>>, vector<1x128x512xf32>
    %2 = vector.shape_cast %1 : vector<1x128x512xf32> to vector<128x512xf32>
    %cst = arith.constant dense<0.000000e+00> : vector<8x512xf32>
    %3 = tpu.matmul %0, %2, %cst {dimension_numbers = #tpu.dot_dimension_numbers<[1], [0], [0], [1], [0, 0, 1, 1], [], []>} : vector<8x128xf32>, vector<128x512xf32>, vector<8x512xf32> -> vector<8x512xf32>
    %c1 = arith.constant 1 : index
    %c0_4 = arith.constant 0 : index
    %c0_5 = arith.constant 0 : index
    %4 = vector.load %arg1[%c1, %c0_4, %c0_5] : memref<4x128x512xf32, #tpu.memory_space<vmem>>, vector<1x128x512xf32>
    %5 = vector.shape_cast %4 : vector<1x128x512xf32> to vector<128x512xf32>
    %cst_6 = arith.constant dense<0.000000e+00> : vector<8x512xf32>
    %6 = tpu.matmul %0, %5, %cst_6 {dimension_numbers = #tpu.dot_dimension_numbers<[1], [0], [0], [1], [0, 0, 1, 1], [], []>} : vector<8x128xf32>, vector<128x512xf32>, vector<8x512xf32> -> vector<8x512xf32>
    %7 = arith.maximumf %3, %6 : vector<8x512xf32>
    %c2 = arith.constant 2 : index
    %c0_7 = arith.constant 0 : index
    %c0_8 = arith.constant 0 : index
    %8 = vector.load %arg1[%c2, %c0_7, %c0_8] : memref<4x128x512xf32, #tpu.memory_space<vmem>>, vector<1x128x512xf32>
    %9 = vector.shape_cast %8 : vector<1x128x512xf32> to vector<128x512xf32>
    %cst_9 = arith.constant dense<0.000000e+00> : vector<8x512xf32>
    %10 = tpu.matmul %0, %9, %cst_9 {dimension_numbers = #tpu.dot_dimension_numbers<[1], [0], [0], [1], [0, 0, 1, 1], [], []>} : vector<8x128xf32>, vector<128x512xf32>, vector<8x512xf32> -> vector<8x512xf32>
    %11 = arith.maximumf %7, %10 : vector<8x512xf32>
    %c3 = arith.constant 3 : index
    %c0_10 = arith.constant 0 : index
    %c0_11 = arith.constant 0 : index
    %12 = vector.load %arg1[%c3, %c0_10, %c0_11] : memref<4x128x512xf32, #tpu.memory_space<vmem>>, vector<1x128x512xf32>
    %13 = vector.shape_cast %12 : vector<1x128x512xf32> to vector<128x512xf32>
    %cst_12 = arith.constant dense<0.000000e+00> : vector<8x512xf32>
    %14 = tpu.matmul %0, %13, %cst_12 {dimension_numbers = #tpu.dot_dimension_numbers<[1], [0], [0], [1], [0, 0, 1, 1], [], []>} : vector<8x128xf32>, vector<128x512xf32>, vector<8x512xf32> -> vector<8x512xf32>
    %15 = arith.maximumf %11, %14 : vector<8x512xf32>
    %c0_13 = arith.constant 0 : index
    %c0_14 = arith.constant 0 : index
    %16 = vector.load %arg3[%c0_13, %c0_14] : memref<8x1xf32, #tpu.memory_space<vmem>>, vector<8x1xf32>
    %17 = vector.broadcast %16 : vector<8x1xf32> to vector<8x512xf32>
    %18 = arith.addf %15, %17 : vector<8x512xf32>
    %cst_15 = arith.constant 0.000000e+00 : f32
    %19 = vector.broadcast %cst_15 : f32 to vector<8x512xf32>
    %20 = arith.maximumf %18, %19 : vector<8x512xf32>
    %c0_16 = arith.constant 0 : index
    %c0_17 = arith.constant 0 : index
    %21 = vector.load %arg4[%c0_16, %c0_17] : memref<8x512xf32, #tpu.memory_space<vmem>>, vector<8x512xf32>
    tpu.vector_store %arg4[%c0_16, %c0_17], %20 {strides = array<i32>} : memref<8x512xf32, #tpu.memory_space<vmem>>, vector<8x512xf32>,
    return
  }
  func.func @transform_0(%arg0: i32) -> (i32, i32, i32) {
    %c0_i32 = arith.constant 0 : i32
    %c0_i32_0 = arith.constant 0 : i32
    %c0_i32_1 = arith.constant 0 : i32
    return %c0_i32, %c0_i32_0, %arg0 : i32, i32, i32
  }
  func.func @transform_1(%arg0: i32) -> (i32, i32) {
    %c0_i32 = arith.constant 0 : i32
    %c0_i32_0 = arith.constant 0 : i32
    %c0_i32_1 = arith.constant 0 : i32
    return %c0_i32, %c0_i32_0 : i32, i32
  }
  func.func @transform_2(%arg0: i32) -> (i32, i32) {
    %c0_i32 = arith.constant 0 : i32
    %c0_i32_0 = arith.constant 0 : i32
    %c0_i32_1 = arith.constant 0 : i32
    return %c0_i32, %c0_i32_0 : i32, i32
  }
  func.func @transform_3(%arg0: i32) -> (i32, i32) {
    %c0_i32 = arith.constant 0 : i32
    %c0_i32_0 = arith.constant 0 : i32
    return %c0_i32, %arg0 : i32, i32
  }
}

module attributes {stable_mosaic.version = 11 : i64} {
  func.func @tail_kernel(%arg0: i32, %arg1: memref<100x8x256xf32, #tpu.memory_space<vmem>>, %arg2: memref<256x16xf32, #tpu.memory_space<vmem>>, %arg3: memref<1x16xf32, #tpu.memory_space<vmem>>, %arg4: memref<25x16x128xf32, #tpu.memory_space<vmem>>, %arg5: memref<1x128xf32, #tpu.memory_space<vmem>>, %arg6: memref<128x128xf32, #tpu.memory_space<vmem>>, %arg7: memref<1x128xf32, #tpu.memory_space<vmem>>, %arg8: memref<128x128xf32, #tpu.memory_space<vmem>>, %arg9: memref<1x128xf32, #tpu.memory_space<vmem>>, %arg10: memref<8x128xf32, #tpu.memory_space<vmem>>) attributes {dimension_semantics = [#tpu.dimension_semantics<parallel>], iteration_bounds = array<i64: 1>, scalar_prefetch = 0 : i64, scratch_operands = 0 : i64, tpu.core_type = #tpu.core_type<tc>, window_params = [{transform_indices = @transform_0, window_bounds = array<i64: 100, 8, 256>}, {pipeline_mode = #tpu.pipeline_mode<synchronous>, transform_indices = @transform_1, window_bounds = array<i64: 256, 16>}, {pipeline_mode = #tpu.pipeline_mode<synchronous>, transform_indices = @transform_2, window_bounds = array<i64: 1, 16>}, {pipeline_mode = #tpu.pipeline_mode<synchronous>, transform_indices = @transform_3, window_bounds = array<i64: 25, 16, 128>}, {pipeline_mode = #tpu.pipeline_mode<synchronous>, transform_indices = @transform_4, window_bounds = array<i64: 1, 128>}, {pipeline_mode = #tpu.pipeline_mode<synchronous>, transform_indices = @transform_5, window_bounds = array<i64: 128, 128>}, {pipeline_mode = #tpu.pipeline_mode<synchronous>, transform_indices = @transform_6, window_bounds = array<i64: 1, 128>}, {pipeline_mode = #tpu.pipeline_mode<synchronous>, transform_indices = @transform_7, window_bounds = array<i64: 128, 128>}, {pipeline_mode = #tpu.pipeline_mode<synchronous>, transform_indices = @transform_8, window_bounds = array<i64: 1, 128>}, {transform_indices = @transform_9, window_bounds = array<i64: 8, 128>}]} {
    %c0 = arith.constant 0 : index
    %c0_0 = arith.constant 0 : index
    %0 = vector.load %arg2[%c0, %c0_0] : memref<256x16xf32, #tpu.memory_space<vmem>>, vector<256x16xf32>
    %c0_1 = arith.constant 0 : index
    %c0_2 = arith.constant 0 : index
    %1 = vector.load %arg3[%c0_1, %c0_2] : memref<1x16xf32, #tpu.memory_space<vmem>>, vector<1x16xf32>
    %cst = arith.constant 0.000000e+00 : f32
    %2 = vector.broadcast %cst : f32 to vector<8x128xf32>
    %c0_3 = arith.constant 0 : index
    %c0_4 = arith.constant 0 : index
    %c0_5 = arith.constant 0 : index
    %3 = vector.load %arg1[%c0_3, %c0_4, %c0_5] : memref<100x8x256xf32, #tpu.memory_space<vmem>>, vector<1x8x256xf32>
    %4 = vector.shape_cast %3 : vector<1x8x256xf32> to vector<8x256xf32>
    %cst_6 = arith.constant dense<0.000000e+00> : vector<8x16xf32>
    %5 = tpu.matmul %4, %0, %cst_6 {dimension_numbers = #tpu.dot_dimension_numbers<[1], [0], [0], [1], [0, 0, 1, 1], [], []>} : vector<8x256xf32>, vector<256x16xf32>, vector<8x16xf32> -> vector<8x16xf32>
    %c25 = arith.constant 25 : index
    %c0_7 = arith.constant 0 : index
    %c0_8 = arith.constant 0 : index
    %6 = vector.load %arg1[%c25, %c0_7, %c0_8] : memref<100x8x256xf32, #tpu.memory_space<vmem>>, vector<1x8x256xf32>
    %7 = vector.shape_cast %6 : vector<1x8x256xf32> to vector<8x256xf32>
    %cst_9 = arith.constant dense<0.000000e+00> : vector<8x16xf32>
    %8 = tpu.matmul %7, %0, %cst_9 {dimension_numbers = #tpu.dot_dimension_numbers<[1], [0], [0], [1], [0, 0, 1, 1], [], []>} : vector<8x256xf32>, vector<256x16xf32>, vector<8x16xf32> -> vector<8x16xf32>
    %9 = arith.maximumf %5, %8 : vector<8x16xf32>
    %c50 = arith.constant 50 : index
    %c0_10 = arith.constant 0 : index
    %c0_11 = arith.constant 0 : index
    %10 = vector.load %arg1[%c50, %c0_10, %c0_11] : memref<100x8x256xf32, #tpu.memory_space<vmem>>, vector<1x8x256xf32>
    %11 = vector.shape_cast %10 : vector<1x8x256xf32> to vector<8x256xf32>
    %cst_12 = arith.constant dense<0.000000e+00> : vector<8x16xf32>
    %12 = tpu.matmul %11, %0, %cst_12 {dimension_numbers = #tpu.dot_dimension_numbers<[1], [0], [0], [1], [0, 0, 1, 1], [], []>} : vector<8x256xf32>, vector<256x16xf32>, vector<8x16xf32> -> vector<8x16xf32>
    %13 = arith.maximumf %9, %12 : vector<8x16xf32>
    %c75 = arith.constant 75 : index
    %c0_13 = arith.constant 0 : index
    %c0_14 = arith.constant 0 : index
    %14 = vector.load %arg1[%c75, %c0_13, %c0_14] : memref<100x8x256xf32, #tpu.memory_space<vmem>>, vector<1x8x256xf32>
    %15 = vector.shape_cast %14 : vector<1x8x256xf32> to vector<8x256xf32>
    %cst_15 = arith.constant dense<0.000000e+00> : vector<8x16xf32>
    %16 = tpu.matmul %15, %0, %cst_15 {dimension_numbers = #tpu.dot_dimension_numbers<[1], [0], [0], [1], [0, 0, 1, 1], [], []>} : vector<8x256xf32>, vector<256x16xf32>, vector<8x16xf32> -> vector<8x16xf32>
    %17 = arith.maximumf %13, %16 : vector<8x16xf32>
    %18 = vector.broadcast %1 : vector<1x16xf32> to vector<8x16xf32>
    %19 = arith.addf %17, %18 : vector<8x16xf32>
    %cst_16 = arith.constant 0.000000e+00 : f32
    %20 = vector.broadcast %cst_16 : f32 to vector<8x16xf32>
    %21 = arith.maximumf %19, %20 : vector<8x16xf32>
    %c0_17 = arith.constant 0 : index
    %c0_18 = arith.constant 0 : index
    %c0_19 = arith.constant 0 : index
    %22 = vector.load %arg4[%c0_17, %c0_18, %c0_19] : memref<25x16x128xf32, #tpu.memory_space<vmem>>, vector<1x16x128xf32>
    %23 = vector.shape_cast %22 : vector<1x16x128xf32> to vector<16x128xf32>
    %cst_20 = arith.constant dense<0.000000e+00> : vector<8x128xf32>
    %24 = tpu.matmul %21, %23, %cst_20 {dimension_numbers = #tpu.dot_dimension_numbers<[1], [0], [0], [1], [0, 0, 1, 1], [], []>} : vector<8x16xf32>, vector<16x128xf32>, vector<8x128xf32> -> vector<8x128xf32>
    %25 = arith.addf %2, %24 : vector<8x128xf32>
    %c1 = arith.constant 1 : index
    %c0_21 = arith.constant 0 : index
    %c0_22 = arith.constant 0 : index
    %26 = vector.load %arg1[%c1, %c0_21, %c0_22] : memref<100x8x256xf32, #tpu.memory_space<vmem>>, vector<1x8x256xf32>
    %27 = vector.shape_cast %26 : vector<1x8x256xf32> to vector<8x256xf32>
    %cst_23 = arith.constant dense<0.000000e+00> : vector<8x16xf32>
    %28 = tpu.matmul %27, %0, %cst_23 {dimension_numbers = #tpu.dot_dimension_numbers<[1], [0], [0], [1], [0, 0, 1, 1], [], []>} : vector<8x256xf32>, vector<256x16xf32>, vector<8x16xf32> -> vector<8x16xf32>
    %c26 = arith.constant 26 : index
    %c0_24 = arith.constant 0 : index
    %c0_25 = arith.constant 0 : index
    %29 = vector.load %arg1[%c26, %c0_24, %c0_25] : memref<100x8x256xf32, #tpu.memory_space<vmem>>, vector<1x8x256xf32>
    %30 = vector.shape_cast %29 : vector<1x8x256xf32> to vector<8x256xf32>
    %cst_26 = arith.constant dense<0.000000e+00> : vector<8x16xf32>
    %31 = tpu.matmul %30, %0, %cst_26 {dimension_numbers = #tpu.dot_dimension_numbers<[1], [0], [0], [1], [0, 0, 1, 1], [], []>} : vector<8x256xf32>, vector<256x16xf32>, vector<8x16xf32> -> vector<8x16xf32>
    %32 = arith.maximumf %28, %31 : vector<8x16xf32>
    %c51 = arith.constant 51 : index
    %c0_27 = arith.constant 0 : index
    %c0_28 = arith.constant 0 : index
    %33 = vector.load %arg1[%c51, %c0_27, %c0_28] : memref<100x8x256xf32, #tpu.memory_space<vmem>>, vector<1x8x256xf32>
    %34 = vector.shape_cast %33 : vector<1x8x256xf32> to vector<8x256xf32>
    %cst_29 = arith.constant dense<0.000000e+00> : vector<8x16xf32>
    %35 = tpu.matmul %34, %0, %cst_29 {dimension_numbers = #tpu.dot_dimension_numbers<[1], [0], [0], [1], [0, 0, 1, 1], [], []>} : vector<8x256xf32>, vector<256x16xf32>, vector<8x16xf32> -> vector<8x16xf32>
    %36 = arith.maximumf %32, %35 : vector<8x16xf32>
    %c76 = arith.constant 76 : index
    %c0_30 = arith.constant 0 : index
    %c0_31 = arith.constant 0 : index
    %37 = vector.load %arg1[%c76, %c0_30, %c0_31] : memref<100x8x256xf32, #tpu.memory_space<vmem>>, vector<1x8x256xf32>
    %38 = vector.shape_cast %37 : vector<1x8x256xf32> to vector<8x256xf32>
    %cst_32 = arith.constant dense<0.000000e+00> : vector<8x16xf32>
    %39 = tpu.matmul %38, %0, %cst_32 {dimension_numbers = #tpu.dot_dimension_numbers<[1], [0], [0], [1], [0, 0, 1, 1], [], []>} : vector<8x256xf32>, vector<256x16xf32>, vector<8x16xf32> -> vector<8x16xf32>
    %40 = arith.maximumf %36, %39 : vector<8x16xf32>
    %41 = vector.broadcast %1 : vector<1x16xf32> to vector<8x16xf32>
    %42 = arith.addf %40, %41 : vector<8x16xf32>
    %cst_33 = arith.constant 0.000000e+00 : f32
    %43 = vector.broadcast %cst_33 : f32 to vector<8x16xf32>
    %44 = arith.maximumf %42, %43 : vector<8x16xf32>
    %c1_34 = arith.constant 1 : index
    %c0_35 = arith.constant 0 : index
    %c0_36 = arith.constant 0 : index
    %45 = vector.load %arg4[%c1_34, %c0_35, %c0_36] : memref<25x16x128xf32, #tpu.memory_space<vmem>>, vector<1x16x128xf32>
    %46 = vector.shape_cast %45 : vector<1x16x128xf32> to vector<16x128xf32>
    %cst_37 = arith.constant dense<0.000000e+00> : vector<8x128xf32>
    %47 = tpu.matmul %44, %46, %cst_37 {dimension_numbers = #tpu.dot_dimension_numbers<[1], [0], [0], [1], [0, 0, 1, 1], [], []>} : vector<8x16xf32>, vector<16x128xf32>, vector<8x128xf32> -> vector<8x128xf32>
    %48 = arith.addf %25, %47 : vector<8x128xf32>
    %c2 = arith.constant 2 : index
    %c0_38 = arith.constant 0 : index
    %c0_39 = arith.constant 0 : index
    %49 = vector.load %arg1[%c2, %c0_38, %c0_39] : memref<100x8x256xf32, #tpu.memory_space<vmem>>, vector<1x8x256xf32>
    %50 = vector.shape_cast %49 : vector<1x8x256xf32> to vector<8x256xf32>
    %cst_40 = arith.constant dense<0.000000e+00> : vector<8x16xf32>
    %51 = tpu.matmul %50, %0, %cst_40 {dimension_numbers = #tpu.dot_dimension_numbers<[1], [0], [0], [1], [0, 0, 1, 1], [], []>} : vector<8x256xf32>, vector<256x16xf32>, vector<8x16xf32> -> vector<8x16xf32>
    %c27 = arith.constant 27 : index
    %c0_41 = arith.constant 0 : index
    %c0_42 = arith.constant 0 : index
    %52 = vector.load %arg1[%c27, %c0_41, %c0_42] : memref<100x8x256xf32, #tpu.memory_space<vmem>>, vector<1x8x256xf32>
    %53 = vector.shape_cast %52 : vector<1x8x256xf32> to vector<8x256xf32>
    %cst_43 = arith.constant dense<0.000000e+00> : vector<8x16xf32>
    %54 = tpu.matmul %53, %0, %cst_43 {dimension_numbers = #tpu.dot_dimension_numbers<[1], [0], [0], [1], [0, 0, 1, 1], [], []>} : vector<8x256xf32>, vector<256x16xf32>, vector<8x16xf32> -> vector<8x16xf32>
    %55 = arith.maximumf %51, %54 : vector<8x16xf32>
    %c52 = arith.constant 52 : index
    %c0_44 = arith.constant 0 : index
    %c0_45 = arith.constant 0 : index
    %56 = vector.load %arg1[%c52, %c0_44, %c0_45] : memref<100x8x256xf32, #tpu.memory_space<vmem>>, vector<1x8x256xf32>
    %57 = vector.shape_cast %56 : vector<1x8x256xf32> to vector<8x256xf32>
    %cst_46 = arith.constant dense<0.000000e+00> : vector<8x16xf32>
    %58 = tpu.matmul %57, %0, %cst_46 {dimension_numbers = #tpu.dot_dimension_numbers<[1], [0], [0], [1], [0, 0, 1, 1], [], []>} : vector<8x256xf32>, vector<256x16xf32>, vector<8x16xf32> -> vector<8x16xf32>
    %59 = arith.maximumf %55, %58 : vector<8x16xf32>
    %c77 = arith.constant 77 : index
    %c0_47 = arith.constant 0 : index
    %c0_48 = arith.constant 0 : index
    %60 = vector.load %arg1[%c77, %c0_47, %c0_48] : memref<100x8x256xf32, #tpu.memory_space<vmem>>, vector<1x8x256xf32>
    %61 = vector.shape_cast %60 : vector<1x8x256xf32> to vector<8x256xf32>
    %cst_49 = arith.constant dense<0.000000e+00> : vector<8x16xf32>
    %62 = tpu.matmul %61, %0, %cst_49 {dimension_numbers = #tpu.dot_dimension_numbers<[1], [0], [0], [1], [0, 0, 1, 1], [], []>} : vector<8x256xf32>, vector<256x16xf32>, vector<8x16xf32> -> vector<8x16xf32>
    %63 = arith.maximumf %59, %62 : vector<8x16xf32>
    %64 = vector.broadcast %1 : vector<1x16xf32> to vector<8x16xf32>
    %65 = arith.addf %63, %64 : vector<8x16xf32>
    %cst_50 = arith.constant 0.000000e+00 : f32
    %66 = vector.broadcast %cst_50 : f32 to vector<8x16xf32>
    %67 = arith.maximumf %65, %66 : vector<8x16xf32>
    %c2_51 = arith.constant 2 : index
    %c0_52 = arith.constant 0 : index
    %c0_53 = arith.constant 0 : index
    %68 = vector.load %arg4[%c2_51, %c0_52, %c0_53] : memref<25x16x128xf32, #tpu.memory_space<vmem>>, vector<1x16x128xf32>
    %69 = vector.shape_cast %68 : vector<1x16x128xf32> to vector<16x128xf32>
    %cst_54 = arith.constant dense<0.000000e+00> : vector<8x128xf32>
    %70 = tpu.matmul %67, %69, %cst_54 {dimension_numbers = #tpu.dot_dimension_numbers<[1], [0], [0], [1], [0, 0, 1, 1], [], []>} : vector<8x16xf32>, vector<16x128xf32>, vector<8x128xf32> -> vector<8x128xf32>
    %71 = arith.addf %48, %70 : vector<8x128xf32>
    %c3 = arith.constant 3 : index
    %c0_55 = arith.constant 0 : index
    %c0_56 = arith.constant 0 : index
    %72 = vector.load %arg1[%c3, %c0_55, %c0_56] : memref<100x8x256xf32, #tpu.memory_space<vmem>>, vector<1x8x256xf32>
    %73 = vector.shape_cast %72 : vector<1x8x256xf32> to vector<8x256xf32>
    %cst_57 = arith.constant dense<0.000000e+00> : vector<8x16xf32>
    %74 = tpu.matmul %73, %0, %cst_57 {dimension_numbers = #tpu.dot_dimension_numbers<[1], [0], [0], [1], [0, 0, 1, 1], [], []>} : vector<8x256xf32>, vector<256x16xf32>, vector<8x16xf32> -> vector<8x16xf32>
    %c28 = arith.constant 28 : index
    %c0_58 = arith.constant 0 : index
    %c0_59 = arith.constant 0 : index
    %75 = vector.load %arg1[%c28, %c0_58, %c0_59] : memref<100x8x256xf32, #tpu.memory_space<vmem>>, vector<1x8x256xf32>
    %76 = vector.shape_cast %75 : vector<1x8x256xf32> to vector<8x256xf32>
    %cst_60 = arith.constant dense<0.000000e+00> : vector<8x16xf32>
    %77 = tpu.matmul %76, %0, %cst_60 {dimension_numbers = #tpu.dot_dimension_numbers<[1], [0], [0], [1], [0, 0, 1, 1], [], []>} : vector<8x256xf32>, vector<256x16xf32>, vector<8x16xf32> -> vector<8x16xf32>
    %78 = arith.maximumf %74, %77 : vector<8x16xf32>
    %c53 = arith.constant 53 : index
    %c0_61 = arith.constant 0 : index
    %c0_62 = arith.constant 0 : index
    %79 = vector.load %arg1[%c53, %c0_61, %c0_62] : memref<100x8x256xf32, #tpu.memory_space<vmem>>, vector<1x8x256xf32>
    %80 = vector.shape_cast %79 : vector<1x8x256xf32> to vector<8x256xf32>
    %cst_63 = arith.constant dense<0.000000e+00> : vector<8x16xf32>
    %81 = tpu.matmul %80, %0, %cst_63 {dimension_numbers = #tpu.dot_dimension_numbers<[1], [0], [0], [1], [0, 0, 1, 1], [], []>} : vector<8x256xf32>, vector<256x16xf32>, vector<8x16xf32> -> vector<8x16xf32>
    %82 = arith.maximumf %78, %81 : vector<8x16xf32>
    %c78 = arith.constant 78 : index
    %c0_64 = arith.constant 0 : index
    %c0_65 = arith.constant 0 : index
    %83 = vector.load %arg1[%c78, %c0_64, %c0_65] : memref<100x8x256xf32, #tpu.memory_space<vmem>>, vector<1x8x256xf32>
    %84 = vector.shape_cast %83 : vector<1x8x256xf32> to vector<8x256xf32>
    %cst_66 = arith.constant dense<0.000000e+00> : vector<8x16xf32>
    %85 = tpu.matmul %84, %0, %cst_66 {dimension_numbers = #tpu.dot_dimension_numbers<[1], [0], [0], [1], [0, 0, 1, 1], [], []>} : vector<8x256xf32>, vector<256x16xf32>, vector<8x16xf32> -> vector<8x16xf32>
    %86 = arith.maximumf %82, %85 : vector<8x16xf32>
    %87 = vector.broadcast %1 : vector<1x16xf32> to vector<8x16xf32>
    %88 = arith.addf %86, %87 : vector<8x16xf32>
    %cst_67 = arith.constant 0.000000e+00 : f32
    %89 = vector.broadcast %cst_67 : f32 to vector<8x16xf32>
    %90 = arith.maximumf %88, %89 : vector<8x16xf32>
    %c3_68 = arith.constant 3 : index
    %c0_69 = arith.constant 0 : index
    %c0_70 = arith.constant 0 : index
    %91 = vector.load %arg4[%c3_68, %c0_69, %c0_70] : memref<25x16x128xf32, #tpu.memory_space<vmem>>, vector<1x16x128xf32>
    %92 = vector.shape_cast %91 : vector<1x16x128xf32> to vector<16x128xf32>
    %cst_71 = arith.constant dense<0.000000e+00> : vector<8x128xf32>
    %93 = tpu.matmul %90, %92, %cst_71 {dimension_numbers = #tpu.dot_dimension_numbers<[1], [0], [0], [1], [0, 0, 1, 1], [], []>} : vector<8x16xf32>, vector<16x128xf32>, vector<8x128xf32> -> vector<8x128xf32>
    %94 = arith.addf %71, %93 : vector<8x128xf32>
    %c4 = arith.constant 4 : index
    %c0_72 = arith.constant 0 : index
    %c0_73 = arith.constant 0 : index
    %95 = vector.load %arg1[%c4, %c0_72, %c0_73] : memref<100x8x256xf32, #tpu.memory_space<vmem>>, vector<1x8x256xf32>
    %96 = vector.shape_cast %95 : vector<1x8x256xf32> to vector<8x256xf32>
    %cst_74 = arith.constant dense<0.000000e+00> : vector<8x16xf32>
    %97 = tpu.matmul %96, %0, %cst_74 {dimension_numbers = #tpu.dot_dimension_numbers<[1], [0], [0], [1], [0, 0, 1, 1], [], []>} : vector<8x256xf32>, vector<256x16xf32>, vector<8x16xf32> -> vector<8x16xf32>
    %c29 = arith.constant 29 : index
    %c0_75 = arith.constant 0 : index
    %c0_76 = arith.constant 0 : index
    %98 = vector.load %arg1[%c29, %c0_75, %c0_76] : memref<100x8x256xf32, #tpu.memory_space<vmem>>, vector<1x8x256xf32>
    %99 = vector.shape_cast %98 : vector<1x8x256xf32> to vector<8x256xf32>
    %cst_77 = arith.constant dense<0.000000e+00> : vector<8x16xf32>
    %100 = tpu.matmul %99, %0, %cst_77 {dimension_numbers = #tpu.dot_dimension_numbers<[1], [0], [0], [1], [0, 0, 1, 1], [], []>} : vector<8x256xf32>, vector<256x16xf32>, vector<8x16xf32> -> vector<8x16xf32>
    %101 = arith.maximumf %97, %100 : vector<8x16xf32>
    %c54 = arith.constant 54 : index
    %c0_78 = arith.constant 0 : index
    %c0_79 = arith.constant 0 : index
    %102 = vector.load %arg1[%c54, %c0_78, %c0_79] : memref<100x8x256xf32, #tpu.memory_space<vmem>>, vector<1x8x256xf32>
    %103 = vector.shape_cast %102 : vector<1x8x256xf32> to vector<8x256xf32>
    %cst_80 = arith.constant dense<0.000000e+00> : vector<8x16xf32>
    %104 = tpu.matmul %103, %0, %cst_80 {dimension_numbers = #tpu.dot_dimension_numbers<[1], [0], [0], [1], [0, 0, 1, 1], [], []>} : vector<8x256xf32>, vector<256x16xf32>, vector<8x16xf32> -> vector<8x16xf32>
    %105 = arith.maximumf %101, %104 : vector<8x16xf32>
    %c79 = arith.constant 79 : index
    %c0_81 = arith.constant 0 : index
    %c0_82 = arith.constant 0 : index
    %106 = vector.load %arg1[%c79, %c0_81, %c0_82] : memref<100x8x256xf32, #tpu.memory_space<vmem>>, vector<1x8x256xf32>
    %107 = vector.shape_cast %106 : vector<1x8x256xf32> to vector<8x256xf32>
    %cst_83 = arith.constant dense<0.000000e+00> : vector<8x16xf32>
    %108 = tpu.matmul %107, %0, %cst_83 {dimension_numbers = #tpu.dot_dimension_numbers<[1], [0], [0], [1], [0, 0, 1, 1], [], []>} : vector<8x256xf32>, vector<256x16xf32>, vector<8x16xf32> -> vector<8x16xf32>
    %109 = arith.maximumf %105, %108 : vector<8x16xf32>
    %110 = vector.broadcast %1 : vector<1x16xf32> to vector<8x16xf32>
    %111 = arith.addf %109, %110 : vector<8x16xf32>
    %cst_84 = arith.constant 0.000000e+00 : f32
    %112 = vector.broadcast %cst_84 : f32 to vector<8x16xf32>
    %113 = arith.maximumf %111, %112 : vector<8x16xf32>
    %c4_85 = arith.constant 4 : index
    %c0_86 = arith.constant 0 : index
    %c0_87 = arith.constant 0 : index
    %114 = vector.load %arg4[%c4_85, %c0_86, %c0_87] : memref<25x16x128xf32, #tpu.memory_space<vmem>>, vector<1x16x128xf32>
    %115 = vector.shape_cast %114 : vector<1x16x128xf32> to vector<16x128xf32>
    %cst_88 = arith.constant dense<0.000000e+00> : vector<8x128xf32>
    %116 = tpu.matmul %113, %115, %cst_88 {dimension_numbers = #tpu.dot_dimension_numbers<[1], [0], [0], [1], [0, 0, 1, 1], [], []>} : vector<8x16xf32>, vector<16x128xf32>, vector<8x128xf32> -> vector<8x128xf32>
    %117 = arith.addf %94, %116 : vector<8x128xf32>
    %c5 = arith.constant 5 : index
    %c0_89 = arith.constant 0 : index
    %c0_90 = arith.constant 0 : index
    %118 = vector.load %arg1[%c5, %c0_89, %c0_90] : memref<100x8x256xf32, #tpu.memory_space<vmem>>, vector<1x8x256xf32>
    %119 = vector.shape_cast %118 : vector<1x8x256xf32> to vector<8x256xf32>
    %cst_91 = arith.constant dense<0.000000e+00> : vector<8x16xf32>
    %120 = tpu.matmul %119, %0, %cst_91 {dimension_numbers = #tpu.dot_dimension_numbers<[1], [0], [0], [1], [0, 0, 1, 1], [], []>} : vector<8x256xf32>, vector<256x16xf32>, vector<8x16xf32> -> vector<8x16xf32>
    %c30 = arith.constant 30 : index
    %c0_92 = arith.constant 0 : index
    %c0_93 = arith.constant 0 : index
    %121 = vector.load %arg1[%c30, %c0_92, %c0_93] : memref<100x8x256xf32, #tpu.memory_space<vmem>>, vector<1x8x256xf32>
    %122 = vector.shape_cast %121 : vector<1x8x256xf32> to vector<8x256xf32>
    %cst_94 = arith.constant dense<0.000000e+00> : vector<8x16xf32>
    %123 = tpu.matmul %122, %0, %cst_94 {dimension_numbers = #tpu.dot_dimension_numbers<[1], [0], [0], [1], [0, 0, 1, 1], [], []>} : vector<8x256xf32>, vector<256x16xf32>, vector<8x16xf32> -> vector<8x16xf32>
    %124 = arith.maximumf %120, %123 : vector<8x16xf32>
    %c55 = arith.constant 55 : index
    %c0_95 = arith.constant 0 : index
    %c0_96 = arith.constant 0 : index
    %125 = vector.load %arg1[%c55, %c0_95, %c0_96] : memref<100x8x256xf32, #tpu.memory_space<vmem>>, vector<1x8x256xf32>
    %126 = vector.shape_cast %125 : vector<1x8x256xf32> to vector<8x256xf32>
    %cst_97 = arith.constant dense<0.000000e+00> : vector<8x16xf32>
    %127 = tpu.matmul %126, %0, %cst_97 {dimension_numbers = #tpu.dot_dimension_numbers<[1], [0], [0], [1], [0, 0, 1, 1], [], []>} : vector<8x256xf32>, vector<256x16xf32>, vector<8x16xf32> -> vector<8x16xf32>
    %128 = arith.maximumf %124, %127 : vector<8x16xf32>
    %c80 = arith.constant 80 : index
    %c0_98 = arith.constant 0 : index
    %c0_99 = arith.constant 0 : index
    %129 = vector.load %arg1[%c80, %c0_98, %c0_99] : memref<100x8x256xf32, #tpu.memory_space<vmem>>, vector<1x8x256xf32>
    %130 = vector.shape_cast %129 : vector<1x8x256xf32> to vector<8x256xf32>
    %cst_100 = arith.constant dense<0.000000e+00> : vector<8x16xf32>
    %131 = tpu.matmul %130, %0, %cst_100 {dimension_numbers = #tpu.dot_dimension_numbers<[1], [0], [0], [1], [0, 0, 1, 1], [], []>} : vector<8x256xf32>, vector<256x16xf32>, vector<8x16xf32> -> vector<8x16xf32>
    %132 = arith.maximumf %128, %131 : vector<8x16xf32>
    %133 = vector.broadcast %1 : vector<1x16xf32> to vector<8x16xf32>
    %134 = arith.addf %132, %133 : vector<8x16xf32>
    %cst_101 = arith.constant 0.000000e+00 : f32
    %135 = vector.broadcast %cst_101 : f32 to vector<8x16xf32>
    %136 = arith.maximumf %134, %135 : vector<8x16xf32>
    %c5_102 = arith.constant 5 : index
    %c0_103 = arith.constant 0 : index
    %c0_104 = arith.constant 0 : index
    %137 = vector.load %arg4[%c5_102, %c0_103, %c0_104] : memref<25x16x128xf32, #tpu.memory_space<vmem>>, vector<1x16x128xf32>
    %138 = vector.shape_cast %137 : vector<1x16x128xf32> to vector<16x128xf32>
    %cst_105 = arith.constant dense<0.000000e+00> : vector<8x128xf32>
    %139 = tpu.matmul %136, %138, %cst_105 {dimension_numbers = #tpu.dot_dimension_numbers<[1], [0], [0], [1], [0, 0, 1, 1], [], []>} : vector<8x16xf32>, vector<16x128xf32>, vector<8x128xf32> -> vector<8x128xf32>
    %140 = arith.addf %117, %139 : vector<8x128xf32>
    %c6 = arith.constant 6 : index
    %c0_106 = arith.constant 0 : index
    %c0_107 = arith.constant 0 : index
    %141 = vector.load %arg1[%c6, %c0_106, %c0_107] : memref<100x8x256xf32, #tpu.memory_space<vmem>>, vector<1x8x256xf32>
    %142 = vector.shape_cast %141 : vector<1x8x256xf32> to vector<8x256xf32>
    %cst_108 = arith.constant dense<0.000000e+00> : vector<8x16xf32>
    %143 = tpu.matmul %142, %0, %cst_108 {dimension_numbers = #tpu.dot_dimension_numbers<[1], [0], [0], [1], [0, 0, 1, 1], [], []>} : vector<8x256xf32>, vector<256x16xf32>, vector<8x16xf32> -> vector<8x16xf32>
    %c31 = arith.constant 31 : index
    %c0_109 = arith.constant 0 : index
    %c0_110 = arith.constant 0 : index
    %144 = vector.load %arg1[%c31, %c0_109, %c0_110] : memref<100x8x256xf32, #tpu.memory_space<vmem>>, vector<1x8x256xf32>
    %145 = vector.shape_cast %144 : vector<1x8x256xf32> to vector<8x256xf32>
    %cst_111 = arith.constant dense<0.000000e+00> : vector<8x16xf32>
    %146 = tpu.matmul %145, %0, %cst_111 {dimension_numbers = #tpu.dot_dimension_numbers<[1], [0], [0], [1], [0, 0, 1, 1], [], []>} : vector<8x256xf32>, vector<256x16xf32>, vector<8x16xf32> -> vector<8x16xf32>
    %147 = arith.maximumf %143, %146 : vector<8x16xf32>
    %c56 = arith.constant 56 : index
    %c0_112 = arith.constant 0 : index
    %c0_113 = arith.constant 0 : index
    %148 = vector.load %arg1[%c56, %c0_112, %c0_113] : memref<100x8x256xf32, #tpu.memory_space<vmem>>, vector<1x8x256xf32>
    %149 = vector.shape_cast %148 : vector<1x8x256xf32> to vector<8x256xf32>
    %cst_114 = arith.constant dense<0.000000e+00> : vector<8x16xf32>
    %150 = tpu.matmul %149, %0, %cst_114 {dimension_numbers = #tpu.dot_dimension_numbers<[1], [0], [0], [1], [0, 0, 1, 1], [], []>} : vector<8x256xf32>, vector<256x16xf32>, vector<8x16xf32> -> vector<8x16xf32>
    %151 = arith.maximumf %147, %150 : vector<8x16xf32>
    %c81 = arith.constant 81 : index
    %c0_115 = arith.constant 0 : index
    %c0_116 = arith.constant 0 : index
    %152 = vector.load %arg1[%c81, %c0_115, %c0_116] : memref<100x8x256xf32, #tpu.memory_space<vmem>>, vector<1x8x256xf32>
    %153 = vector.shape_cast %152 : vector<1x8x256xf32> to vector<8x256xf32>
    %cst_117 = arith.constant dense<0.000000e+00> : vector<8x16xf32>
    %154 = tpu.matmul %153, %0, %cst_117 {dimension_numbers = #tpu.dot_dimension_numbers<[1], [0], [0], [1], [0, 0, 1, 1], [], []>} : vector<8x256xf32>, vector<256x16xf32>, vector<8x16xf32> -> vector<8x16xf32>
    %155 = arith.maximumf %151, %154 : vector<8x16xf32>
    %156 = vector.broadcast %1 : vector<1x16xf32> to vector<8x16xf32>
    %157 = arith.addf %155, %156 : vector<8x16xf32>
    %cst_118 = arith.constant 0.000000e+00 : f32
    %158 = vector.broadcast %cst_118 : f32 to vector<8x16xf32>
    %159 = arith.maximumf %157, %158 : vector<8x16xf32>
    %c6_119 = arith.constant 6 : index
    %c0_120 = arith.constant 0 : index
    %c0_121 = arith.constant 0 : index
    %160 = vector.load %arg4[%c6_119, %c0_120, %c0_121] : memref<25x16x128xf32, #tpu.memory_space<vmem>>, vector<1x16x128xf32>
    %161 = vector.shape_cast %160 : vector<1x16x128xf32> to vector<16x128xf32>
    %cst_122 = arith.constant dense<0.000000e+00> : vector<8x128xf32>
    %162 = tpu.matmul %159, %161, %cst_122 {dimension_numbers = #tpu.dot_dimension_numbers<[1], [0], [0], [1], [0, 0, 1, 1], [], []>} : vector<8x16xf32>, vector<16x128xf32>, vector<8x128xf32> -> vector<8x128xf32>
    %163 = arith.addf %140, %162 : vector<8x128xf32>
    %c7 = arith.constant 7 : index
    %c0_123 = arith.constant 0 : index
    %c0_124 = arith.constant 0 : index
    %164 = vector.load %arg1[%c7, %c0_123, %c0_124] : memref<100x8x256xf32, #tpu.memory_space<vmem>>, vector<1x8x256xf32>
    %165 = vector.shape_cast %164 : vector<1x8x256xf32> to vector<8x256xf32>
    %cst_125 = arith.constant dense<0.000000e+00> : vector<8x16xf32>
    %166 = tpu.matmul %165, %0, %cst_125 {dimension_numbers = #tpu.dot_dimension_numbers<[1], [0], [0], [1], [0, 0, 1, 1], [], []>} : vector<8x256xf32>, vector<256x16xf32>, vector<8x16xf32> -> vector<8x16xf32>
    %c32 = arith.constant 32 : index
    %c0_126 = arith.constant 0 : index
    %c0_127 = arith.constant 0 : index
    %167 = vector.load %arg1[%c32, %c0_126, %c0_127] : memref<100x8x256xf32, #tpu.memory_space<vmem>>, vector<1x8x256xf32>
    %168 = vector.shape_cast %167 : vector<1x8x256xf32> to vector<8x256xf32>
    %cst_128 = arith.constant dense<0.000000e+00> : vector<8x16xf32>
    %169 = tpu.matmul %168, %0, %cst_128 {dimension_numbers = #tpu.dot_dimension_numbers<[1], [0], [0], [1], [0, 0, 1, 1], [], []>} : vector<8x256xf32>, vector<256x16xf32>, vector<8x16xf32> -> vector<8x16xf32>
    %170 = arith.maximumf %166, %169 : vector<8x16xf32>
    %c57 = arith.constant 57 : index
    %c0_129 = arith.constant 0 : index
    %c0_130 = arith.constant 0 : index
    %171 = vector.load %arg1[%c57, %c0_129, %c0_130] : memref<100x8x256xf32, #tpu.memory_space<vmem>>, vector<1x8x256xf32>
    %172 = vector.shape_cast %171 : vector<1x8x256xf32> to vector<8x256xf32>
    %cst_131 = arith.constant dense<0.000000e+00> : vector<8x16xf32>
    %173 = tpu.matmul %172, %0, %cst_131 {dimension_numbers = #tpu.dot_dimension_numbers<[1], [0], [0], [1], [0, 0, 1, 1], [], []>} : vector<8x256xf32>, vector<256x16xf32>, vector<8x16xf32> -> vector<8x16xf32>
    %174 = arith.maximumf %170, %173 : vector<8x16xf32>
    %c82 = arith.constant 82 : index
    %c0_132 = arith.constant 0 : index
    %c0_133 = arith.constant 0 : index
    %175 = vector.load %arg1[%c82, %c0_132, %c0_133] : memref<100x8x256xf32, #tpu.memory_space<vmem>>, vector<1x8x256xf32>
    %176 = vector.shape_cast %175 : vector<1x8x256xf32> to vector<8x256xf32>
    %cst_134 = arith.constant dense<0.000000e+00> : vector<8x16xf32>
    %177 = tpu.matmul %176, %0, %cst_134 {dimension_numbers = #tpu.dot_dimension_numbers<[1], [0], [0], [1], [0, 0, 1, 1], [], []>} : vector<8x256xf32>, vector<256x16xf32>, vector<8x16xf32> -> vector<8x16xf32>
    %178 = arith.maximumf %174, %177 : vector<8x16xf32>
    %179 = vector.broadcast %1 : vector<1x16xf32> to vector<8x16xf32>
    %180 = arith.addf %178, %179 : vector<8x16xf32>
    %cst_135 = arith.constant 0.000000e+00 : f32
    %181 = vector.broadcast %cst_135 : f32 to vector<8x16xf32>
    %182 = arith.maximumf %180, %181 : vector<8x16xf32>
    %c7_136 = arith.constant 7 : index
    %c0_137 = arith.constant 0 : index
    %c0_138 = arith.constant 0 : index
    %183 = vector.load %arg4[%c7_136, %c0_137, %c0_138] : memref<25x16x128xf32, #tpu.memory_space<vmem>>, vector<1x16x128xf32>
    %184 = vector.shape_cast %183 : vector<1x16x128xf32> to vector<16x128xf32>
    %cst_139 = arith.constant dense<0.000000e+00> : vector<8x128xf32>
    %185 = tpu.matmul %182, %184, %cst_139 {dimension_numbers = #tpu.dot_dimension_numbers<[1], [0], [0], [1], [0, 0, 1, 1], [], []>} : vector<8x16xf32>, vector<16x128xf32>, vector<8x128xf32> -> vector<8x128xf32>
    %186 = arith.addf %163, %185 : vector<8x128xf32>
    %c8 = arith.constant 8 : index
    %c0_140 = arith.constant 0 : index
    %c0_141 = arith.constant 0 : index
    %187 = vector.load %arg1[%c8, %c0_140, %c0_141] : memref<100x8x256xf32, #tpu.memory_space<vmem>>, vector<1x8x256xf32>
    %188 = vector.shape_cast %187 : vector<1x8x256xf32> to vector<8x256xf32>
    %cst_142 = arith.constant dense<0.000000e+00> : vector<8x16xf32>
    %189 = tpu.matmul %188, %0, %cst_142 {dimension_numbers = #tpu.dot_dimension_numbers<[1], [0], [0], [1], [0, 0, 1, 1], [], []>} : vector<8x256xf32>, vector<256x16xf32>, vector<8x16xf32> -> vector<8x16xf32>
    %c33 = arith.constant 33 : index
    %c0_143 = arith.constant 0 : index
    %c0_144 = arith.constant 0 : index
    %190 = vector.load %arg1[%c33, %c0_143, %c0_144] : memref<100x8x256xf32, #tpu.memory_space<vmem>>, vector<1x8x256xf32>
    %191 = vector.shape_cast %190 : vector<1x8x256xf32> to vector<8x256xf32>
    %cst_145 = arith.constant dense<0.000000e+00> : vector<8x16xf32>
    %192 = tpu.matmul %191, %0, %cst_145 {dimension_numbers = #tpu.dot_dimension_numbers<[1], [0], [0], [1], [0, 0, 1, 1], [], []>} : vector<8x256xf32>, vector<256x16xf32>, vector<8x16xf32> -> vector<8x16xf32>
    %193 = arith.maximumf %189, %192 : vector<8x16xf32>
    %c58 = arith.constant 58 : index
    %c0_146 = arith.constant 0 : index
    %c0_147 = arith.constant 0 : index
    %194 = vector.load %arg1[%c58, %c0_146, %c0_147] : memref<100x8x256xf32, #tpu.memory_space<vmem>>, vector<1x8x256xf32>
    %195 = vector.shape_cast %194 : vector<1x8x256xf32> to vector<8x256xf32>
    %cst_148 = arith.constant dense<0.000000e+00> : vector<8x16xf32>
    %196 = tpu.matmul %195, %0, %cst_148 {dimension_numbers = #tpu.dot_dimension_numbers<[1], [0], [0], [1], [0, 0, 1, 1], [], []>} : vector<8x256xf32>, vector<256x16xf32>, vector<8x16xf32> -> vector<8x16xf32>
    %197 = arith.maximumf %193, %196 : vector<8x16xf32>
    %c83 = arith.constant 83 : index
    %c0_149 = arith.constant 0 : index
    %c0_150 = arith.constant 0 : index
    %198 = vector.load %arg1[%c83, %c0_149, %c0_150] : memref<100x8x256xf32, #tpu.memory_space<vmem>>, vector<1x8x256xf32>
    %199 = vector.shape_cast %198 : vector<1x8x256xf32> to vector<8x256xf32>
    %cst_151 = arith.constant dense<0.000000e+00> : vector<8x16xf32>
    %200 = tpu.matmul %199, %0, %cst_151 {dimension_numbers = #tpu.dot_dimension_numbers<[1], [0], [0], [1], [0, 0, 1, 1], [], []>} : vector<8x256xf32>, vector<256x16xf32>, vector<8x16xf32> -> vector<8x16xf32>
    %201 = arith.maximumf %197, %200 : vector<8x16xf32>
    %202 = vector.broadcast %1 : vector<1x16xf32> to vector<8x16xf32>
    %203 = arith.addf %201, %202 : vector<8x16xf32>
    %cst_152 = arith.constant 0.000000e+00 : f32
    %204 = vector.broadcast %cst_152 : f32 to vector<8x16xf32>
    %205 = arith.maximumf %203, %204 : vector<8x16xf32>
    %c8_153 = arith.constant 8 : index
    %c0_154 = arith.constant 0 : index
    %c0_155 = arith.constant 0 : index
    %206 = vector.load %arg4[%c8_153, %c0_154, %c0_155] : memref<25x16x128xf32, #tpu.memory_space<vmem>>, vector<1x16x128xf32>
    %207 = vector.shape_cast %206 : vector<1x16x128xf32> to vector<16x128xf32>
    %cst_156 = arith.constant dense<0.000000e+00> : vector<8x128xf32>
    %208 = tpu.matmul %205, %207, %cst_156 {dimension_numbers = #tpu.dot_dimension_numbers<[1], [0], [0], [1], [0, 0, 1, 1], [], []>} : vector<8x16xf32>, vector<16x128xf32>, vector<8x128xf32> -> vector<8x128xf32>
    %209 = arith.addf %186, %208 : vector<8x128xf32>
    %c9 = arith.constant 9 : index
    %c0_157 = arith.constant 0 : index
    %c0_158 = arith.constant 0 : index
    %210 = vector.load %arg1[%c9, %c0_157, %c0_158] : memref<100x8x256xf32, #tpu.memory_space<vmem>>, vector<1x8x256xf32>
    %211 = vector.shape_cast %210 : vector<1x8x256xf32> to vector<8x256xf32>
    %cst_159 = arith.constant dense<0.000000e+00> : vector<8x16xf32>
    %212 = tpu.matmul %211, %0, %cst_159 {dimension_numbers = #tpu.dot_dimension_numbers<[1], [0], [0], [1], [0, 0, 1, 1], [], []>} : vector<8x256xf32>, vector<256x16xf32>, vector<8x16xf32> -> vector<8x16xf32>
    %c34 = arith.constant 34 : index
    %c0_160 = arith.constant 0 : index
    %c0_161 = arith.constant 0 : index
    %213 = vector.load %arg1[%c34, %c0_160, %c0_161] : memref<100x8x256xf32, #tpu.memory_space<vmem>>, vector<1x8x256xf32>
    %214 = vector.shape_cast %213 : vector<1x8x256xf32> to vector<8x256xf32>
    %cst_162 = arith.constant dense<0.000000e+00> : vector<8x16xf32>
    %215 = tpu.matmul %214, %0, %cst_162 {dimension_numbers = #tpu.dot_dimension_numbers<[1], [0], [0], [1], [0, 0, 1, 1], [], []>} : vector<8x256xf32>, vector<256x16xf32>, vector<8x16xf32> -> vector<8x16xf32>
    %216 = arith.maximumf %212, %215 : vector<8x16xf32>
    %c59 = arith.constant 59 : index
    %c0_163 = arith.constant 0 : index
    %c0_164 = arith.constant 0 : index
    %217 = vector.load %arg1[%c59, %c0_163, %c0_164] : memref<100x8x256xf32, #tpu.memory_space<vmem>>, vector<1x8x256xf32>
    %218 = vector.shape_cast %217 : vector<1x8x256xf32> to vector<8x256xf32>
    %cst_165 = arith.constant dense<0.000000e+00> : vector<8x16xf32>
    %219 = tpu.matmul %218, %0, %cst_165 {dimension_numbers = #tpu.dot_dimension_numbers<[1], [0], [0], [1], [0, 0, 1, 1], [], []>} : vector<8x256xf32>, vector<256x16xf32>, vector<8x16xf32> -> vector<8x16xf32>
    %220 = arith.maximumf %216, %219 : vector<8x16xf32>
    %c84 = arith.constant 84 : index
    %c0_166 = arith.constant 0 : index
    %c0_167 = arith.constant 0 : index
    %221 = vector.load %arg1[%c84, %c0_166, %c0_167] : memref<100x8x256xf32, #tpu.memory_space<vmem>>, vector<1x8x256xf32>
    %222 = vector.shape_cast %221 : vector<1x8x256xf32> to vector<8x256xf32>
    %cst_168 = arith.constant dense<0.000000e+00> : vector<8x16xf32>
    %223 = tpu.matmul %222, %0, %cst_168 {dimension_numbers = #tpu.dot_dimension_numbers<[1], [0], [0], [1], [0, 0, 1, 1], [], []>} : vector<8x256xf32>, vector<256x16xf32>, vector<8x16xf32> -> vector<8x16xf32>
    %224 = arith.maximumf %220, %223 : vector<8x16xf32>
    %225 = vector.broadcast %1 : vector<1x16xf32> to vector<8x16xf32>
    %226 = arith.addf %224, %225 : vector<8x16xf32>
    %cst_169 = arith.constant 0.000000e+00 : f32
    %227 = vector.broadcast %cst_169 : f32 to vector<8x16xf32>
    %228 = arith.maximumf %226, %227 : vector<8x16xf32>
    %c9_170 = arith.constant 9 : index
    %c0_171 = arith.constant 0 : index
    %c0_172 = arith.constant 0 : index
    %229 = vector.load %arg4[%c9_170, %c0_171, %c0_172] : memref<25x16x128xf32, #tpu.memory_space<vmem>>, vector<1x16x128xf32>
    %230 = vector.shape_cast %229 : vector<1x16x128xf32> to vector<16x128xf32>
    %cst_173 = arith.constant dense<0.000000e+00> : vector<8x128xf32>
    %231 = tpu.matmul %228, %230, %cst_173 {dimension_numbers = #tpu.dot_dimension_numbers<[1], [0], [0], [1], [0, 0, 1, 1], [], []>} : vector<8x16xf32>, vector<16x128xf32>, vector<8x128xf32> -> vector<8x128xf32>
    %232 = arith.addf %209, %231 : vector<8x128xf32>
    %c10 = arith.constant 10 : index
    %c0_174 = arith.constant 0 : index
    %c0_175 = arith.constant 0 : index
    %233 = vector.load %arg1[%c10, %c0_174, %c0_175] : memref<100x8x256xf32, #tpu.memory_space<vmem>>, vector<1x8x256xf32>
    %234 = vector.shape_cast %233 : vector<1x8x256xf32> to vector<8x256xf32>
    %cst_176 = arith.constant dense<0.000000e+00> : vector<8x16xf32>
    %235 = tpu.matmul %234, %0, %cst_176 {dimension_numbers = #tpu.dot_dimension_numbers<[1], [0], [0], [1], [0, 0, 1, 1], [], []>} : vector<8x256xf32>, vector<256x16xf32>, vector<8x16xf32> -> vector<8x16xf32>
    %c35 = arith.constant 35 : index
    %c0_177 = arith.constant 0 : index
    %c0_178 = arith.constant 0 : index
    %236 = vector.load %arg1[%c35, %c0_177, %c0_178] : memref<100x8x256xf32, #tpu.memory_space<vmem>>, vector<1x8x256xf32>
    %237 = vector.shape_cast %236 : vector<1x8x256xf32> to vector<8x256xf32>
    %cst_179 = arith.constant dense<0.000000e+00> : vector<8x16xf32>
    %238 = tpu.matmul %237, %0, %cst_179 {dimension_numbers = #tpu.dot_dimension_numbers<[1], [0], [0], [1], [0, 0, 1, 1], [], []>} : vector<8x256xf32>, vector<256x16xf32>, vector<8x16xf32> -> vector<8x16xf32>
    %239 = arith.maximumf %235, %238 : vector<8x16xf32>
    %c60 = arith.constant 60 : index
    %c0_180 = arith.constant 0 : index
    %c0_181 = arith.constant 0 : index
    %240 = vector.load %arg1[%c60, %c0_180, %c0_181] : memref<100x8x256xf32, #tpu.memory_space<vmem>>, vector<1x8x256xf32>
    %241 = vector.shape_cast %240 : vector<1x8x256xf32> to vector<8x256xf32>
    %cst_182 = arith.constant dense<0.000000e+00> : vector<8x16xf32>
    %242 = tpu.matmul %241, %0, %cst_182 {dimension_numbers = #tpu.dot_dimension_numbers<[1], [0], [0], [1], [0, 0, 1, 1], [], []>} : vector<8x256xf32>, vector<256x16xf32>, vector<8x16xf32> -> vector<8x16xf32>
    %243 = arith.maximumf %239, %242 : vector<8x16xf32>
    %c85 = arith.constant 85 : index
    %c0_183 = arith.constant 0 : index
    %c0_184 = arith.constant 0 : index
    %244 = vector.load %arg1[%c85, %c0_183, %c0_184] : memref<100x8x256xf32, #tpu.memory_space<vmem>>, vector<1x8x256xf32>
    %245 = vector.shape_cast %244 : vector<1x8x256xf32> to vector<8x256xf32>
    %cst_185 = arith.constant dense<0.000000e+00> : vector<8x16xf32>
    %246 = tpu.matmul %245, %0, %cst_185 {dimension_numbers = #tpu.dot_dimension_numbers<[1], [0], [0], [1], [0, 0, 1, 1], [], []>} : vector<8x256xf32>, vector<256x16xf32>, vector<8x16xf32> -> vector<8x16xf32>
    %247 = arith.maximumf %243, %246 : vector<8x16xf32>
    %248 = vector.broadcast %1 : vector<1x16xf32> to vector<8x16xf32>
    %249 = arith.addf %247, %248 : vector<8x16xf32>
    %cst_186 = arith.constant 0.000000e+00 : f32
    %250 = vector.broadcast %cst_186 : f32 to vector<8x16xf32>
    %251 = arith.maximumf %249, %250 : vector<8x16xf32>
    %c10_187 = arith.constant 10 : index
    %c0_188 = arith.constant 0 : index
    %c0_189 = arith.constant 0 : index
    %252 = vector.load %arg4[%c10_187, %c0_188, %c0_189] : memref<25x16x128xf32, #tpu.memory_space<vmem>>, vector<1x16x128xf32>
    %253 = vector.shape_cast %252 : vector<1x16x128xf32> to vector<16x128xf32>
    %cst_190 = arith.constant dense<0.000000e+00> : vector<8x128xf32>
    %254 = tpu.matmul %251, %253, %cst_190 {dimension_numbers = #tpu.dot_dimension_numbers<[1], [0], [0], [1], [0, 0, 1, 1], [], []>} : vector<8x16xf32>, vector<16x128xf32>, vector<8x128xf32> -> vector<8x128xf32>
    %255 = arith.addf %232, %254 : vector<8x128xf32>
    %c11 = arith.constant 11 : index
    %c0_191 = arith.constant 0 : index
    %c0_192 = arith.constant 0 : index
    %256 = vector.load %arg1[%c11, %c0_191, %c0_192] : memref<100x8x256xf32, #tpu.memory_space<vmem>>, vector<1x8x256xf32>
    %257 = vector.shape_cast %256 : vector<1x8x256xf32> to vector<8x256xf32>
    %cst_193 = arith.constant dense<0.000000e+00> : vector<8x16xf32>
    %258 = tpu.matmul %257, %0, %cst_193 {dimension_numbers = #tpu.dot_dimension_numbers<[1], [0], [0], [1], [0, 0, 1, 1], [], []>} : vector<8x256xf32>, vector<256x16xf32>, vector<8x16xf32> -> vector<8x16xf32>
    %c36 = arith.constant 36 : index
    %c0_194 = arith.constant 0 : index
    %c0_195 = arith.constant 0 : index
    %259 = vector.load %arg1[%c36, %c0_194, %c0_195] : memref<100x8x256xf32, #tpu.memory_space<vmem>>, vector<1x8x256xf32>
    %260 = vector.shape_cast %259 : vector<1x8x256xf32> to vector<8x256xf32>
    %cst_196 = arith.constant dense<0.000000e+00> : vector<8x16xf32>
    %261 = tpu.matmul %260, %0, %cst_196 {dimension_numbers = #tpu.dot_dimension_numbers<[1], [0], [0], [1], [0, 0, 1, 1], [], []>} : vector<8x256xf32>, vector<256x16xf32>, vector<8x16xf32> -> vector<8x16xf32>
    %262 = arith.maximumf %258, %261 : vector<8x16xf32>
    %c61 = arith.constant 61 : index
    %c0_197 = arith.constant 0 : index
    %c0_198 = arith.constant 0 : index
    %263 = vector.load %arg1[%c61, %c0_197, %c0_198] : memref<100x8x256xf32, #tpu.memory_space<vmem>>, vector<1x8x256xf32>
    %264 = vector.shape_cast %263 : vector<1x8x256xf32> to vector<8x256xf32>
    %cst_199 = arith.constant dense<0.000000e+00> : vector<8x16xf32>
    %265 = tpu.matmul %264, %0, %cst_199 {dimension_numbers = #tpu.dot_dimension_numbers<[1], [0], [0], [1], [0, 0, 1, 1], [], []>} : vector<8x256xf32>, vector<256x16xf32>, vector<8x16xf32> -> vector<8x16xf32>
    %266 = arith.maximumf %262, %265 : vector<8x16xf32>
    %c86 = arith.constant 86 : index
    %c0_200 = arith.constant 0 : index
    %c0_201 = arith.constant 0 : index
    %267 = vector.load %arg1[%c86, %c0_200, %c0_201] : memref<100x8x256xf32, #tpu.memory_space<vmem>>, vector<1x8x256xf32>
    %268 = vector.shape_cast %267 : vector<1x8x256xf32> to vector<8x256xf32>
    %cst_202 = arith.constant dense<0.000000e+00> : vector<8x16xf32>
    %269 = tpu.matmul %268, %0, %cst_202 {dimension_numbers = #tpu.dot_dimension_numbers<[1], [0], [0], [1], [0, 0, 1, 1], [], []>} : vector<8x256xf32>, vector<256x16xf32>, vector<8x16xf32> -> vector<8x16xf32>
    %270 = arith.maximumf %266, %269 : vector<8x16xf32>
    %271 = vector.broadcast %1 : vector<1x16xf32> to vector<8x16xf32>
    %272 = arith.addf %270, %271 : vector<8x16xf32>
    %cst_203 = arith.constant 0.000000e+00 : f32
    %273 = vector.broadcast %cst_203 : f32 to vector<8x16xf32>
    %274 = arith.maximumf %272, %273 : vector<8x16xf32>
    %c11_204 = arith.constant 11 : index
    %c0_205 = arith.constant 0 : index
    %c0_206 = arith.constant 0 : index
    %275 = vector.load %arg4[%c11_204, %c0_205, %c0_206] : memref<25x16x128xf32, #tpu.memory_space<vmem>>, vector<1x16x128xf32>
    %276 = vector.shape_cast %275 : vector<1x16x128xf32> to vector<16x128xf32>
    %cst_207 = arith.constant dense<0.000000e+00> : vector<8x128xf32>
    %277 = tpu.matmul %274, %276, %cst_207 {dimension_numbers = #tpu.dot_dimension_numbers<[1], [0], [0], [1], [0, 0, 1, 1], [], []>} : vector<8x16xf32>, vector<16x128xf32>, vector<8x128xf32> -> vector<8x128xf32>
    %278 = arith.addf %255, %277 : vector<8x128xf32>
    %c12 = arith.constant 12 : index
    %c0_208 = arith.constant 0 : index
    %c0_209 = arith.constant 0 : index
    %279 = vector.load %arg1[%c12, %c0_208, %c0_209] : memref<100x8x256xf32, #tpu.memory_space<vmem>>, vector<1x8x256xf32>
    %280 = vector.shape_cast %279 : vector<1x8x256xf32> to vector<8x256xf32>
    %cst_210 = arith.constant dense<0.000000e+00> : vector<8x16xf32>
    %281 = tpu.matmul %280, %0, %cst_210 {dimension_numbers = #tpu.dot_dimension_numbers<[1], [0], [0], [1], [0, 0, 1, 1], [], []>} : vector<8x256xf32>, vector<256x16xf32>, vector<8x16xf32> -> vector<8x16xf32>
    %c37 = arith.constant 37 : index
    %c0_211 = arith.constant 0 : index
    %c0_212 = arith.constant 0 : index
    %282 = vector.load %arg1[%c37, %c0_211, %c0_212] : memref<100x8x256xf32, #tpu.memory_space<vmem>>, vector<1x8x256xf32>
    %283 = vector.shape_cast %282 : vector<1x8x256xf32> to vector<8x256xf32>
    %cst_213 = arith.constant dense<0.000000e+00> : vector<8x16xf32>
    %284 = tpu.matmul %283, %0, %cst_213 {dimension_numbers = #tpu.dot_dimension_numbers<[1], [0], [0], [1], [0, 0, 1, 1], [], []>} : vector<8x256xf32>, vector<256x16xf32>, vector<8x16xf32> -> vector<8x16xf32>
    %285 = arith.maximumf %281, %284 : vector<8x16xf32>
    %c62 = arith.constant 62 : index
    %c0_214 = arith.constant 0 : index
    %c0_215 = arith.constant 0 : index
    %286 = vector.load %arg1[%c62, %c0_214, %c0_215] : memref<100x8x256xf32, #tpu.memory_space<vmem>>, vector<1x8x256xf32>
    %287 = vector.shape_cast %286 : vector<1x8x256xf32> to vector<8x256xf32>
    %cst_216 = arith.constant dense<0.000000e+00> : vector<8x16xf32>
    %288 = tpu.matmul %287, %0, %cst_216 {dimension_numbers = #tpu.dot_dimension_numbers<[1], [0], [0], [1], [0, 0, 1, 1], [], []>} : vector<8x256xf32>, vector<256x16xf32>, vector<8x16xf32> -> vector<8x16xf32>
    %289 = arith.maximumf %285, %288 : vector<8x16xf32>
    %c87 = arith.constant 87 : index
    %c0_217 = arith.constant 0 : index
    %c0_218 = arith.constant 0 : index
    %290 = vector.load %arg1[%c87, %c0_217, %c0_218] : memref<100x8x256xf32, #tpu.memory_space<vmem>>, vector<1x8x256xf32>
    %291 = vector.shape_cast %290 : vector<1x8x256xf32> to vector<8x256xf32>
    %cst_219 = arith.constant dense<0.000000e+00> : vector<8x16xf32>
    %292 = tpu.matmul %291, %0, %cst_219 {dimension_numbers = #tpu.dot_dimension_numbers<[1], [0], [0], [1], [0, 0, 1, 1], [], []>} : vector<8x256xf32>, vector<256x16xf32>, vector<8x16xf32> -> vector<8x16xf32>
    %293 = arith.maximumf %289, %292 : vector<8x16xf32>
    %294 = vector.broadcast %1 : vector<1x16xf32> to vector<8x16xf32>
    %295 = arith.addf %293, %294 : vector<8x16xf32>
    %cst_220 = arith.constant 0.000000e+00 : f32
    %296 = vector.broadcast %cst_220 : f32 to vector<8x16xf32>
    %297 = arith.maximumf %295, %296 : vector<8x16xf32>
    %c12_221 = arith.constant 12 : index
    %c0_222 = arith.constant 0 : index
    %c0_223 = arith.constant 0 : index
    %298 = vector.load %arg4[%c12_221, %c0_222, %c0_223] : memref<25x16x128xf32, #tpu.memory_space<vmem>>, vector<1x16x128xf32>
    %299 = vector.shape_cast %298 : vector<1x16x128xf32> to vector<16x128xf32>
    %cst_224 = arith.constant dense<0.000000e+00> : vector<8x128xf32>
    %300 = tpu.matmul %297, %299, %cst_224 {dimension_numbers = #tpu.dot_dimension_numbers<[1], [0], [0], [1], [0, 0, 1, 1], [], []>} : vector<8x16xf32>, vector<16x128xf32>, vector<8x128xf32> -> vector<8x128xf32>
    %301 = arith.addf %278, %300 : vector<8x128xf32>
    %c13 = arith.constant 13 : index
    %c0_225 = arith.constant 0 : index
    %c0_226 = arith.constant 0 : index
    %302 = vector.load %arg1[%c13, %c0_225, %c0_226] : memref<100x8x256xf32, #tpu.memory_space<vmem>>, vector<1x8x256xf32>
    %303 = vector.shape_cast %302 : vector<1x8x256xf32> to vector<8x256xf32>
    %cst_227 = arith.constant dense<0.000000e+00> : vector<8x16xf32>
    %304 = tpu.matmul %303, %0, %cst_227 {dimension_numbers = #tpu.dot_dimension_numbers<[1], [0], [0], [1], [0, 0, 1, 1], [], []>} : vector<8x256xf32>, vector<256x16xf32>, vector<8x16xf32> -> vector<8x16xf32>
    %c38 = arith.constant 38 : index
    %c0_228 = arith.constant 0 : index
    %c0_229 = arith.constant 0 : index
    %305 = vector.load %arg1[%c38, %c0_228, %c0_229] : memref<100x8x256xf32, #tpu.memory_space<vmem>>, vector<1x8x256xf32>
    %306 = vector.shape_cast %305 : vector<1x8x256xf32> to vector<8x256xf32>
    %cst_230 = arith.constant dense<0.000000e+00> : vector<8x16xf32>
    %307 = tpu.matmul %306, %0, %cst_230 {dimension_numbers = #tpu.dot_dimension_numbers<[1], [0], [0], [1], [0, 0, 1, 1], [], []>} : vector<8x256xf32>, vector<256x16xf32>, vector<8x16xf32> -> vector<8x16xf32>
    %308 = arith.maximumf %304, %307 : vector<8x16xf32>
    %c63 = arith.constant 63 : index
    %c0_231 = arith.constant 0 : index
    %c0_232 = arith.constant 0 : index
    %309 = vector.load %arg1[%c63, %c0_231, %c0_232] : memref<100x8x256xf32, #tpu.memory_space<vmem>>, vector<1x8x256xf32>
    %310 = vector.shape_cast %309 : vector<1x8x256xf32> to vector<8x256xf32>
    %cst_233 = arith.constant dense<0.000000e+00> : vector<8x16xf32>
    %311 = tpu.matmul %310, %0, %cst_233 {dimension_numbers = #tpu.dot_dimension_numbers<[1], [0], [0], [1], [0, 0, 1, 1], [], []>} : vector<8x256xf32>, vector<256x16xf32>, vector<8x16xf32> -> vector<8x16xf32>
    %312 = arith.maximumf %308, %311 : vector<8x16xf32>
    %c88 = arith.constant 88 : index
    %c0_234 = arith.constant 0 : index
    %c0_235 = arith.constant 0 : index
    %313 = vector.load %arg1[%c88, %c0_234, %c0_235] : memref<100x8x256xf32, #tpu.memory_space<vmem>>, vector<1x8x256xf32>
    %314 = vector.shape_cast %313 : vector<1x8x256xf32> to vector<8x256xf32>
    %cst_236 = arith.constant dense<0.000000e+00> : vector<8x16xf32>
    %315 = tpu.matmul %314, %0, %cst_236 {dimension_numbers = #tpu.dot_dimension_numbers<[1], [0], [0], [1], [0, 0, 1, 1], [], []>} : vector<8x256xf32>, vector<256x16xf32>, vector<8x16xf32> -> vector<8x16xf32>
    %316 = arith.maximumf %312, %315 : vector<8x16xf32>
    %317 = vector.broadcast %1 : vector<1x16xf32> to vector<8x16xf32>
    %318 = arith.addf %316, %317 : vector<8x16xf32>
    %cst_237 = arith.constant 0.000000e+00 : f32
    %319 = vector.broadcast %cst_237 : f32 to vector<8x16xf32>
    %320 = arith.maximumf %318, %319 : vector<8x16xf32>
    %c13_238 = arith.constant 13 : index
    %c0_239 = arith.constant 0 : index
    %c0_240 = arith.constant 0 : index
    %321 = vector.load %arg4[%c13_238, %c0_239, %c0_240] : memref<25x16x128xf32, #tpu.memory_space<vmem>>, vector<1x16x128xf32>
    %322 = vector.shape_cast %321 : vector<1x16x128xf32> to vector<16x128xf32>
    %cst_241 = arith.constant dense<0.000000e+00> : vector<8x128xf32>
    %323 = tpu.matmul %320, %322, %cst_241 {dimension_numbers = #tpu.dot_dimension_numbers<[1], [0], [0], [1], [0, 0, 1, 1], [], []>} : vector<8x16xf32>, vector<16x128xf32>, vector<8x128xf32> -> vector<8x128xf32>
    %324 = arith.addf %301, %323 : vector<8x128xf32>
    %c14 = arith.constant 14 : index
    %c0_242 = arith.constant 0 : index
    %c0_243 = arith.constant 0 : index
    %325 = vector.load %arg1[%c14, %c0_242, %c0_243] : memref<100x8x256xf32, #tpu.memory_space<vmem>>, vector<1x8x256xf32>
    %326 = vector.shape_cast %325 : vector<1x8x256xf32> to vector<8x256xf32>
    %cst_244 = arith.constant dense<0.000000e+00> : vector<8x16xf32>
    %327 = tpu.matmul %326, %0, %cst_244 {dimension_numbers = #tpu.dot_dimension_numbers<[1], [0], [0], [1], [0, 0, 1, 1], [], []>} : vector<8x256xf32>, vector<256x16xf32>, vector<8x16xf32> -> vector<8x16xf32>
    %c39 = arith.constant 39 : index
    %c0_245 = arith.constant 0 : index
    %c0_246 = arith.constant 0 : index
    %328 = vector.load %arg1[%c39, %c0_245, %c0_246] : memref<100x8x256xf32, #tpu.memory_space<vmem>>, vector<1x8x256xf32>
    %329 = vector.shape_cast %328 : vector<1x8x256xf32> to vector<8x256xf32>
    %cst_247 = arith.constant dense<0.000000e+00> : vector<8x16xf32>
    %330 = tpu.matmul %329, %0, %cst_247 {dimension_numbers = #tpu.dot_dimension_numbers<[1], [0], [0], [1], [0, 0, 1, 1], [], []>} : vector<8x256xf32>, vector<256x16xf32>, vector<8x16xf32> -> vector<8x16xf32>
    %331 = arith.maximumf %327, %330 : vector<8x16xf32>
    %c64 = arith.constant 64 : index
    %c0_248 = arith.constant 0 : index
    %c0_249 = arith.constant 0 : index
    %332 = vector.load %arg1[%c64, %c0_248, %c0_249] : memref<100x8x256xf32, #tpu.memory_space<vmem>>, vector<1x8x256xf32>
    %333 = vector.shape_cast %332 : vector<1x8x256xf32> to vector<8x256xf32>
    %cst_250 = arith.constant dense<0.000000e+00> : vector<8x16xf32>
    %334 = tpu.matmul %333, %0, %cst_250 {dimension_numbers = #tpu.dot_dimension_numbers<[1], [0], [0], [1], [0, 0, 1, 1], [], []>} : vector<8x256xf32>, vector<256x16xf32>, vector<8x16xf32> -> vector<8x16xf32>
    %335 = arith.maximumf %331, %334 : vector<8x16xf32>
    %c89 = arith.constant 89 : index
    %c0_251 = arith.constant 0 : index
    %c0_252 = arith.constant 0 : index
    %336 = vector.load %arg1[%c89, %c0_251, %c0_252] : memref<100x8x256xf32, #tpu.memory_space<vmem>>, vector<1x8x256xf32>
    %337 = vector.shape_cast %336 : vector<1x8x256xf32> to vector<8x256xf32>
    %cst_253 = arith.constant dense<0.000000e+00> : vector<8x16xf32>
    %338 = tpu.matmul %337, %0, %cst_253 {dimension_numbers = #tpu.dot_dimension_numbers<[1], [0], [0], [1], [0, 0, 1, 1], [], []>} : vector<8x256xf32>, vector<256x16xf32>, vector<8x16xf32> -> vector<8x16xf32>
    %339 = arith.maximumf %335, %338 : vector<8x16xf32>
    %340 = vector.broadcast %1 : vector<1x16xf32> to vector<8x16xf32>
    %341 = arith.addf %339, %340 : vector<8x16xf32>
    %cst_254 = arith.constant 0.000000e+00 : f32
    %342 = vector.broadcast %cst_254 : f32 to vector<8x16xf32>
    %343 = arith.maximumf %341, %342 : vector<8x16xf32>
    %c14_255 = arith.constant 14 : index
    %c0_256 = arith.constant 0 : index
    %c0_257 = arith.constant 0 : index
    %344 = vector.load %arg4[%c14_255, %c0_256, %c0_257] : memref<25x16x128xf32, #tpu.memory_space<vmem>>, vector<1x16x128xf32>
    %345 = vector.shape_cast %344 : vector<1x16x128xf32> to vector<16x128xf32>
    %cst_258 = arith.constant dense<0.000000e+00> : vector<8x128xf32>
    %346 = tpu.matmul %343, %345, %cst_258 {dimension_numbers = #tpu.dot_dimension_numbers<[1], [0], [0], [1], [0, 0, 1, 1], [], []>} : vector<8x16xf32>, vector<16x128xf32>, vector<8x128xf32> -> vector<8x128xf32>
    %347 = arith.addf %324, %346 : vector<8x128xf32>
    %c15 = arith.constant 15 : index
    %c0_259 = arith.constant 0 : index
    %c0_260 = arith.constant 0 : index
    %348 = vector.load %arg1[%c15, %c0_259, %c0_260] : memref<100x8x256xf32, #tpu.memory_space<vmem>>, vector<1x8x256xf32>
    %349 = vector.shape_cast %348 : vector<1x8x256xf32> to vector<8x256xf32>
    %cst_261 = arith.constant dense<0.000000e+00> : vector<8x16xf32>
    %350 = tpu.matmul %349, %0, %cst_261 {dimension_numbers = #tpu.dot_dimension_numbers<[1], [0], [0], [1], [0, 0, 1, 1], [], []>} : vector<8x256xf32>, vector<256x16xf32>, vector<8x16xf32> -> vector<8x16xf32>
    %c40 = arith.constant 40 : index
    %c0_262 = arith.constant 0 : index
    %c0_263 = arith.constant 0 : index
    %351 = vector.load %arg1[%c40, %c0_262, %c0_263] : memref<100x8x256xf32, #tpu.memory_space<vmem>>, vector<1x8x256xf32>
    %352 = vector.shape_cast %351 : vector<1x8x256xf32> to vector<8x256xf32>
    %cst_264 = arith.constant dense<0.000000e+00> : vector<8x16xf32>
    %353 = tpu.matmul %352, %0, %cst_264 {dimension_numbers = #tpu.dot_dimension_numbers<[1], [0], [0], [1], [0, 0, 1, 1], [], []>} : vector<8x256xf32>, vector<256x16xf32>, vector<8x16xf32> -> vector<8x16xf32>
    %354 = arith.maximumf %350, %353 : vector<8x16xf32>
    %c65 = arith.constant 65 : index
    %c0_265 = arith.constant 0 : index
    %c0_266 = arith.constant 0 : index
    %355 = vector.load %arg1[%c65, %c0_265, %c0_266] : memref<100x8x256xf32, #tpu.memory_space<vmem>>, vector<1x8x256xf32>
    %356 = vector.shape_cast %355 : vector<1x8x256xf32> to vector<8x256xf32>
    %cst_267 = arith.constant dense<0.000000e+00> : vector<8x16xf32>
    %357 = tpu.matmul %356, %0, %cst_267 {dimension_numbers = #tpu.dot_dimension_numbers<[1], [0], [0], [1], [0, 0, 1, 1], [], []>} : vector<8x256xf32>, vector<256x16xf32>, vector<8x16xf32> -> vector<8x16xf32>
    %358 = arith.maximumf %354, %357 : vector<8x16xf32>
    %c90 = arith.constant 90 : index
    %c0_268 = arith.constant 0 : index
    %c0_269 = arith.constant 0 : index
    %359 = vector.load %arg1[%c90, %c0_268, %c0_269] : memref<100x8x256xf32, #tpu.memory_space<vmem>>, vector<1x8x256xf32>
    %360 = vector.shape_cast %359 : vector<1x8x256xf32> to vector<8x256xf32>
    %cst_270 = arith.constant dense<0.000000e+00> : vector<8x16xf32>
    %361 = tpu.matmul %360, %0, %cst_270 {dimension_numbers = #tpu.dot_dimension_numbers<[1], [0], [0], [1], [0, 0, 1, 1], [], []>} : vector<8x256xf32>, vector<256x16xf32>, vector<8x16xf32> -> vector<8x16xf32>
    %362 = arith.maximumf %358, %361 : vector<8x16xf32>
    %363 = vector.broadcast %1 : vector<1x16xf32> to vector<8x16xf32>
    %364 = arith.addf %362, %363 : vector<8x16xf32>
    %cst_271 = arith.constant 0.000000e+00 : f32
    %365 = vector.broadcast %cst_271 : f32 to vector<8x16xf32>
    %366 = arith.maximumf %364, %365 : vector<8x16xf32>
    %c15_272 = arith.constant 15 : index
    %c0_273 = arith.constant 0 : index
    %c0_274 = arith.constant 0 : index
    %367 = vector.load %arg4[%c15_272, %c0_273, %c0_274] : memref<25x16x128xf32, #tpu.memory_space<vmem>>, vector<1x16x128xf32>
    %368 = vector.shape_cast %367 : vector<1x16x128xf32> to vector<16x128xf32>
    %cst_275 = arith.constant dense<0.000000e+00> : vector<8x128xf32>
    %369 = tpu.matmul %366, %368, %cst_275 {dimension_numbers = #tpu.dot_dimension_numbers<[1], [0], [0], [1], [0, 0, 1, 1], [], []>} : vector<8x16xf32>, vector<16x128xf32>, vector<8x128xf32> -> vector<8x128xf32>
    %370 = arith.addf %347, %369 : vector<8x128xf32>
    %c16 = arith.constant 16 : index
    %c0_276 = arith.constant 0 : index
    %c0_277 = arith.constant 0 : index
    %371 = vector.load %arg1[%c16, %c0_276, %c0_277] : memref<100x8x256xf32, #tpu.memory_space<vmem>>, vector<1x8x256xf32>
    %372 = vector.shape_cast %371 : vector<1x8x256xf32> to vector<8x256xf32>
    %cst_278 = arith.constant dense<0.000000e+00> : vector<8x16xf32>
    %373 = tpu.matmul %372, %0, %cst_278 {dimension_numbers = #tpu.dot_dimension_numbers<[1], [0], [0], [1], [0, 0, 1, 1], [], []>} : vector<8x256xf32>, vector<256x16xf32>, vector<8x16xf32> -> vector<8x16xf32>
    %c41 = arith.constant 41 : index
    %c0_279 = arith.constant 0 : index
    %c0_280 = arith.constant 0 : index
    %374 = vector.load %arg1[%c41, %c0_279, %c0_280] : memref<100x8x256xf32, #tpu.memory_space<vmem>>, vector<1x8x256xf32>
    %375 = vector.shape_cast %374 : vector<1x8x256xf32> to vector<8x256xf32>
    %cst_281 = arith.constant dense<0.000000e+00> : vector<8x16xf32>
    %376 = tpu.matmul %375, %0, %cst_281 {dimension_numbers = #tpu.dot_dimension_numbers<[1], [0], [0], [1], [0, 0, 1, 1], [], []>} : vector<8x256xf32>, vector<256x16xf32>, vector<8x16xf32> -> vector<8x16xf32>
    %377 = arith.maximumf %373, %376 : vector<8x16xf32>
    %c66 = arith.constant 66 : index
    %c0_282 = arith.constant 0 : index
    %c0_283 = arith.constant 0 : index
    %378 = vector.load %arg1[%c66, %c0_282, %c0_283] : memref<100x8x256xf32, #tpu.memory_space<vmem>>, vector<1x8x256xf32>
    %379 = vector.shape_cast %378 : vector<1x8x256xf32> to vector<8x256xf32>
    %cst_284 = arith.constant dense<0.000000e+00> : vector<8x16xf32>
    %380 = tpu.matmul %379, %0, %cst_284 {dimension_numbers = #tpu.dot_dimension_numbers<[1], [0], [0], [1], [0, 0, 1, 1], [], []>} : vector<8x256xf32>, vector<256x16xf32>, vector<8x16xf32> -> vector<8x16xf32>
    %381 = arith.maximumf %377, %380 : vector<8x16xf32>
    %c91 = arith.constant 91 : index
    %c0_285 = arith.constant 0 : index
    %c0_286 = arith.constant 0 : index
    %382 = vector.load %arg1[%c91, %c0_285, %c0_286] : memref<100x8x256xf32, #tpu.memory_space<vmem>>, vector<1x8x256xf32>
    %383 = vector.shape_cast %382 : vector<1x8x256xf32> to vector<8x256xf32>
    %cst_287 = arith.constant dense<0.000000e+00> : vector<8x16xf32>
    %384 = tpu.matmul %383, %0, %cst_287 {dimension_numbers = #tpu.dot_dimension_numbers<[1], [0], [0], [1], [0, 0, 1, 1], [], []>} : vector<8x256xf32>, vector<256x16xf32>, vector<8x16xf32> -> vector<8x16xf32>
    %385 = arith.maximumf %381, %384 : vector<8x16xf32>
    %386 = vector.broadcast %1 : vector<1x16xf32> to vector<8x16xf32>
    %387 = arith.addf %385, %386 : vector<8x16xf32>
    %cst_288 = arith.constant 0.000000e+00 : f32
    %388 = vector.broadcast %cst_288 : f32 to vector<8x16xf32>
    %389 = arith.maximumf %387, %388 : vector<8x16xf32>
    %c16_289 = arith.constant 16 : index
    %c0_290 = arith.constant 0 : index
    %c0_291 = arith.constant 0 : index
    %390 = vector.load %arg4[%c16_289, %c0_290, %c0_291] : memref<25x16x128xf32, #tpu.memory_space<vmem>>, vector<1x16x128xf32>
    %391 = vector.shape_cast %390 : vector<1x16x128xf32> to vector<16x128xf32>
    %cst_292 = arith.constant dense<0.000000e+00> : vector<8x128xf32>
    %392 = tpu.matmul %389, %391, %cst_292 {dimension_numbers = #tpu.dot_dimension_numbers<[1], [0], [0], [1], [0, 0, 1, 1], [], []>} : vector<8x16xf32>, vector<16x128xf32>, vector<8x128xf32> -> vector<8x128xf32>
    %393 = arith.addf %370, %392 : vector<8x128xf32>
    %c17 = arith.constant 17 : index
    %c0_293 = arith.constant 0 : index
    %c0_294 = arith.constant 0 : index
    %394 = vector.load %arg1[%c17, %c0_293, %c0_294] : memref<100x8x256xf32, #tpu.memory_space<vmem>>, vector<1x8x256xf32>
    %395 = vector.shape_cast %394 : vector<1x8x256xf32> to vector<8x256xf32>
    %cst_295 = arith.constant dense<0.000000e+00> : vector<8x16xf32>
    %396 = tpu.matmul %395, %0, %cst_295 {dimension_numbers = #tpu.dot_dimension_numbers<[1], [0], [0], [1], [0, 0, 1, 1], [], []>} : vector<8x256xf32>, vector<256x16xf32>, vector<8x16xf32> -> vector<8x16xf32>
    %c42 = arith.constant 42 : index
    %c0_296 = arith.constant 0 : index
    %c0_297 = arith.constant 0 : index
    %397 = vector.load %arg1[%c42, %c0_296, %c0_297] : memref<100x8x256xf32, #tpu.memory_space<vmem>>, vector<1x8x256xf32>
    %398 = vector.shape_cast %397 : vector<1x8x256xf32> to vector<8x256xf32>
    %cst_298 = arith.constant dense<0.000000e+00> : vector<8x16xf32>
    %399 = tpu.matmul %398, %0, %cst_298 {dimension_numbers = #tpu.dot_dimension_numbers<[1], [0], [0], [1], [0, 0, 1, 1], [], []>} : vector<8x256xf32>, vector<256x16xf32>, vector<8x16xf32> -> vector<8x16xf32>
    %400 = arith.maximumf %396, %399 : vector<8x16xf32>
    %c67 = arith.constant 67 : index
    %c0_299 = arith.constant 0 : index
    %c0_300 = arith.constant 0 : index
    %401 = vector.load %arg1[%c67, %c0_299, %c0_300] : memref<100x8x256xf32, #tpu.memory_space<vmem>>, vector<1x8x256xf32>
    %402 = vector.shape_cast %401 : vector<1x8x256xf32> to vector<8x256xf32>
    %cst_301 = arith.constant dense<0.000000e+00> : vector<8x16xf32>
    %403 = tpu.matmul %402, %0, %cst_301 {dimension_numbers = #tpu.dot_dimension_numbers<[1], [0], [0], [1], [0, 0, 1, 1], [], []>} : vector<8x256xf32>, vector<256x16xf32>, vector<8x16xf32> -> vector<8x16xf32>
    %404 = arith.maximumf %400, %403 : vector<8x16xf32>
    %c92 = arith.constant 92 : index
    %c0_302 = arith.constant 0 : index
    %c0_303 = arith.constant 0 : index
    %405 = vector.load %arg1[%c92, %c0_302, %c0_303] : memref<100x8x256xf32, #tpu.memory_space<vmem>>, vector<1x8x256xf32>
    %406 = vector.shape_cast %405 : vector<1x8x256xf32> to vector<8x256xf32>
    %cst_304 = arith.constant dense<0.000000e+00> : vector<8x16xf32>
    %407 = tpu.matmul %406, %0, %cst_304 {dimension_numbers = #tpu.dot_dimension_numbers<[1], [0], [0], [1], [0, 0, 1, 1], [], []>} : vector<8x256xf32>, vector<256x16xf32>, vector<8x16xf32> -> vector<8x16xf32>
    %408 = arith.maximumf %404, %407 : vector<8x16xf32>
    %409 = vector.broadcast %1 : vector<1x16xf32> to vector<8x16xf32>
    %410 = arith.addf %408, %409 : vector<8x16xf32>
    %cst_305 = arith.constant 0.000000e+00 : f32
    %411 = vector.broadcast %cst_305 : f32 to vector<8x16xf32>
    %412 = arith.maximumf %410, %411 : vector<8x16xf32>
    %c17_306 = arith.constant 17 : index
    %c0_307 = arith.constant 0 : index
    %c0_308 = arith.constant 0 : index
    %413 = vector.load %arg4[%c17_306, %c0_307, %c0_308] : memref<25x16x128xf32, #tpu.memory_space<vmem>>, vector<1x16x128xf32>
    %414 = vector.shape_cast %413 : vector<1x16x128xf32> to vector<16x128xf32>
    %cst_309 = arith.constant dense<0.000000e+00> : vector<8x128xf32>
    %415 = tpu.matmul %412, %414, %cst_309 {dimension_numbers = #tpu.dot_dimension_numbers<[1], [0], [0], [1], [0, 0, 1, 1], [], []>} : vector<8x16xf32>, vector<16x128xf32>, vector<8x128xf32> -> vector<8x128xf32>
    %416 = arith.addf %393, %415 : vector<8x128xf32>
    %c18 = arith.constant 18 : index
    %c0_310 = arith.constant 0 : index
    %c0_311 = arith.constant 0 : index
    %417 = vector.load %arg1[%c18, %c0_310, %c0_311] : memref<100x8x256xf32, #tpu.memory_space<vmem>>, vector<1x8x256xf32>
    %418 = vector.shape_cast %417 : vector<1x8x256xf32> to vector<8x256xf32>
    %cst_312 = arith.constant dense<0.000000e+00> : vector<8x16xf32>
    %419 = tpu.matmul %418, %0, %cst_312 {dimension_numbers = #tpu.dot_dimension_numbers<[1], [0], [0], [1], [0, 0, 1, 1], [], []>} : vector<8x256xf32>, vector<256x16xf32>, vector<8x16xf32> -> vector<8x16xf32>
    %c43 = arith.constant 43 : index
    %c0_313 = arith.constant 0 : index
    %c0_314 = arith.constant 0 : index
    %420 = vector.load %arg1[%c43, %c0_313, %c0_314] : memref<100x8x256xf32, #tpu.memory_space<vmem>>, vector<1x8x256xf32>
    %421 = vector.shape_cast %420 : vector<1x8x256xf32> to vector<8x256xf32>
    %cst_315 = arith.constant dense<0.000000e+00> : vector<8x16xf32>
    %422 = tpu.matmul %421, %0, %cst_315 {dimension_numbers = #tpu.dot_dimension_numbers<[1], [0], [0], [1], [0, 0, 1, 1], [], []>} : vector<8x256xf32>, vector<256x16xf32>, vector<8x16xf32> -> vector<8x16xf32>
    %423 = arith.maximumf %419, %422 : vector<8x16xf32>
    %c68 = arith.constant 68 : index
    %c0_316 = arith.constant 0 : index
    %c0_317 = arith.constant 0 : index
    %424 = vector.load %arg1[%c68, %c0_316, %c0_317] : memref<100x8x256xf32, #tpu.memory_space<vmem>>, vector<1x8x256xf32>
    %425 = vector.shape_cast %424 : vector<1x8x256xf32> to vector<8x256xf32>
    %cst_318 = arith.constant dense<0.000000e+00> : vector<8x16xf32>
    %426 = tpu.matmul %425, %0, %cst_318 {dimension_numbers = #tpu.dot_dimension_numbers<[1], [0], [0], [1], [0, 0, 1, 1], [], []>} : vector<8x256xf32>, vector<256x16xf32>, vector<8x16xf32> -> vector<8x16xf32>
    %427 = arith.maximumf %423, %426 : vector<8x16xf32>
    %c93 = arith.constant 93 : index
    %c0_319 = arith.constant 0 : index
    %c0_320 = arith.constant 0 : index
    %428 = vector.load %arg1[%c93, %c0_319, %c0_320] : memref<100x8x256xf32, #tpu.memory_space<vmem>>, vector<1x8x256xf32>
    %429 = vector.shape_cast %428 : vector<1x8x256xf32> to vector<8x256xf32>
    %cst_321 = arith.constant dense<0.000000e+00> : vector<8x16xf32>
    %430 = tpu.matmul %429, %0, %cst_321 {dimension_numbers = #tpu.dot_dimension_numbers<[1], [0], [0], [1], [0, 0, 1, 1], [], []>} : vector<8x256xf32>, vector<256x16xf32>, vector<8x16xf32> -> vector<8x16xf32>
    %431 = arith.maximumf %427, %430 : vector<8x16xf32>
    %432 = vector.broadcast %1 : vector<1x16xf32> to vector<8x16xf32>
    %433 = arith.addf %431, %432 : vector<8x16xf32>
    %cst_322 = arith.constant 0.000000e+00 : f32
    %434 = vector.broadcast %cst_322 : f32 to vector<8x16xf32>
    %435 = arith.maximumf %433, %434 : vector<8x16xf32>
    %c18_323 = arith.constant 18 : index
    %c0_324 = arith.constant 0 : index
    %c0_325 = arith.constant 0 : index
    %436 = vector.load %arg4[%c18_323, %c0_324, %c0_325] : memref<25x16x128xf32, #tpu.memory_space<vmem>>, vector<1x16x128xf32>
    %437 = vector.shape_cast %436 : vector<1x16x128xf32> to vector<16x128xf32>
    %cst_326 = arith.constant dense<0.000000e+00> : vector<8x128xf32>
    %438 = tpu.matmul %435, %437, %cst_326 {dimension_numbers = #tpu.dot_dimension_numbers<[1], [0], [0], [1], [0, 0, 1, 1], [], []>} : vector<8x16xf32>, vector<16x128xf32>, vector<8x128xf32> -> vector<8x128xf32>
    %439 = arith.addf %416, %438 : vector<8x128xf32>
    %c19 = arith.constant 19 : index
    %c0_327 = arith.constant 0 : index
    %c0_328 = arith.constant 0 : index
    %440 = vector.load %arg1[%c19, %c0_327, %c0_328] : memref<100x8x256xf32, #tpu.memory_space<vmem>>, vector<1x8x256xf32>
    %441 = vector.shape_cast %440 : vector<1x8x256xf32> to vector<8x256xf32>
    %cst_329 = arith.constant dense<0.000000e+00> : vector<8x16xf32>
    %442 = tpu.matmul %441, %0, %cst_329 {dimension_numbers = #tpu.dot_dimension_numbers<[1], [0], [0], [1], [0, 0, 1, 1], [], []>} : vector<8x256xf32>, vector<256x16xf32>, vector<8x16xf32> -> vector<8x16xf32>
    %c44 = arith.constant 44 : index
    %c0_330 = arith.constant 0 : index
    %c0_331 = arith.constant 0 : index
    %443 = vector.load %arg1[%c44, %c0_330, %c0_331] : memref<100x8x256xf32, #tpu.memory_space<vmem>>, vector<1x8x256xf32>
    %444 = vector.shape_cast %443 : vector<1x8x256xf32> to vector<8x256xf32>
    %cst_332 = arith.constant dense<0.000000e+00> : vector<8x16xf32>
    %445 = tpu.matmul %444, %0, %cst_332 {dimension_numbers = #tpu.dot_dimension_numbers<[1], [0], [0], [1], [0, 0, 1, 1], [], []>} : vector<8x256xf32>, vector<256x16xf32>, vector<8x16xf32> -> vector<8x16xf32>
    %446 = arith.maximumf %442, %445 : vector<8x16xf32>
    %c69 = arith.constant 69 : index
    %c0_333 = arith.constant 0 : index
    %c0_334 = arith.constant 0 : index
    %447 = vector.load %arg1[%c69, %c0_333, %c0_334] : memref<100x8x256xf32, #tpu.memory_space<vmem>>, vector<1x8x256xf32>
    %448 = vector.shape_cast %447 : vector<1x8x256xf32> to vector<8x256xf32>
    %cst_335 = arith.constant dense<0.000000e+00> : vector<8x16xf32>
    %449 = tpu.matmul %448, %0, %cst_335 {dimension_numbers = #tpu.dot_dimension_numbers<[1], [0], [0], [1], [0, 0, 1, 1], [], []>} : vector<8x256xf32>, vector<256x16xf32>, vector<8x16xf32> -> vector<8x16xf32>
    %450 = arith.maximumf %446, %449 : vector<8x16xf32>
    %c94 = arith.constant 94 : index
    %c0_336 = arith.constant 0 : index
    %c0_337 = arith.constant 0 : index
    %451 = vector.load %arg1[%c94, %c0_336, %c0_337] : memref<100x8x256xf32, #tpu.memory_space<vmem>>, vector<1x8x256xf32>
    %452 = vector.shape_cast %451 : vector<1x8x256xf32> to vector<8x256xf32>
    %cst_338 = arith.constant dense<0.000000e+00> : vector<8x16xf32>
    %453 = tpu.matmul %452, %0, %cst_338 {dimension_numbers = #tpu.dot_dimension_numbers<[1], [0], [0], [1], [0, 0, 1, 1], [], []>} : vector<8x256xf32>, vector<256x16xf32>, vector<8x16xf32> -> vector<8x16xf32>
    %454 = arith.maximumf %450, %453 : vector<8x16xf32>
    %455 = vector.broadcast %1 : vector<1x16xf32> to vector<8x16xf32>
    %456 = arith.addf %454, %455 : vector<8x16xf32>
    %cst_339 = arith.constant 0.000000e+00 : f32
    %457 = vector.broadcast %cst_339 : f32 to vector<8x16xf32>
    %458 = arith.maximumf %456, %457 : vector<8x16xf32>
    %c19_340 = arith.constant 19 : index
    %c0_341 = arith.constant 0 : index
    %c0_342 = arith.constant 0 : index
    %459 = vector.load %arg4[%c19_340, %c0_341, %c0_342] : memref<25x16x128xf32, #tpu.memory_space<vmem>>, vector<1x16x128xf32>
    %460 = vector.shape_cast %459 : vector<1x16x128xf32> to vector<16x128xf32>
    %cst_343 = arith.constant dense<0.000000e+00> : vector<8x128xf32>
    %461 = tpu.matmul %458, %460, %cst_343 {dimension_numbers = #tpu.dot_dimension_numbers<[1], [0], [0], [1], [0, 0, 1, 1], [], []>} : vector<8x16xf32>, vector<16x128xf32>, vector<8x128xf32> -> vector<8x128xf32>
    %462 = arith.addf %439, %461 : vector<8x128xf32>
    %c20 = arith.constant 20 : index
    %c0_344 = arith.constant 0 : index
    %c0_345 = arith.constant 0 : index
    %463 = vector.load %arg1[%c20, %c0_344, %c0_345] : memref<100x8x256xf32, #tpu.memory_space<vmem>>, vector<1x8x256xf32>
    %464 = vector.shape_cast %463 : vector<1x8x256xf32> to vector<8x256xf32>
    %cst_346 = arith.constant dense<0.000000e+00> : vector<8x16xf32>
    %465 = tpu.matmul %464, %0, %cst_346 {dimension_numbers = #tpu.dot_dimension_numbers<[1], [0], [0], [1], [0, 0, 1, 1], [], []>} : vector<8x256xf32>, vector<256x16xf32>, vector<8x16xf32> -> vector<8x16xf32>
    %c45 = arith.constant 45 : index
    %c0_347 = arith.constant 0 : index
    %c0_348 = arith.constant 0 : index
    %466 = vector.load %arg1[%c45, %c0_347, %c0_348] : memref<100x8x256xf32, #tpu.memory_space<vmem>>, vector<1x8x256xf32>
    %467 = vector.shape_cast %466 : vector<1x8x256xf32> to vector<8x256xf32>
    %cst_349 = arith.constant dense<0.000000e+00> : vector<8x16xf32>
    %468 = tpu.matmul %467, %0, %cst_349 {dimension_numbers = #tpu.dot_dimension_numbers<[1], [0], [0], [1], [0, 0, 1, 1], [], []>} : vector<8x256xf32>, vector<256x16xf32>, vector<8x16xf32> -> vector<8x16xf32>
    %469 = arith.maximumf %465, %468 : vector<8x16xf32>
    %c70 = arith.constant 70 : index
    %c0_350 = arith.constant 0 : index
    %c0_351 = arith.constant 0 : index
    %470 = vector.load %arg1[%c70, %c0_350, %c0_351] : memref<100x8x256xf32, #tpu.memory_space<vmem>>, vector<1x8x256xf32>
    %471 = vector.shape_cast %470 : vector<1x8x256xf32> to vector<8x256xf32>
    %cst_352 = arith.constant dense<0.000000e+00> : vector<8x16xf32>
    %472 = tpu.matmul %471, %0, %cst_352 {dimension_numbers = #tpu.dot_dimension_numbers<[1], [0], [0], [1], [0, 0, 1, 1], [], []>} : vector<8x256xf32>, vector<256x16xf32>, vector<8x16xf32> -> vector<8x16xf32>
    %473 = arith.maximumf %469, %472 : vector<8x16xf32>
    %c95 = arith.constant 95 : index
    %c0_353 = arith.constant 0 : index
    %c0_354 = arith.constant 0 : index
    %474 = vector.load %arg1[%c95, %c0_353, %c0_354] : memref<100x8x256xf32, #tpu.memory_space<vmem>>, vector<1x8x256xf32>
    %475 = vector.shape_cast %474 : vector<1x8x256xf32> to vector<8x256xf32>
    %cst_355 = arith.constant dense<0.000000e+00> : vector<8x16xf32>
    %476 = tpu.matmul %475, %0, %cst_355 {dimension_numbers = #tpu.dot_dimension_numbers<[1], [0], [0], [1], [0, 0, 1, 1], [], []>} : vector<8x256xf32>, vector<256x16xf32>, vector<8x16xf32> -> vector<8x16xf32>
    %477 = arith.maximumf %473, %476 : vector<8x16xf32>
    %478 = vector.broadcast %1 : vector<1x16xf32> to vector<8x16xf32>
    %479 = arith.addf %477, %478 : vector<8x16xf32>
    %cst_356 = arith.constant 0.000000e+00 : f32
    %480 = vector.broadcast %cst_356 : f32 to vector<8x16xf32>
    %481 = arith.maximumf %479, %480 : vector<8x16xf32>
    %c20_357 = arith.constant 20 : index
    %c0_358 = arith.constant 0 : index
    %c0_359 = arith.constant 0 : index
    %482 = vector.load %arg4[%c20_357, %c0_358, %c0_359] : memref<25x16x128xf32, #tpu.memory_space<vmem>>, vector<1x16x128xf32>
    %483 = vector.shape_cast %482 : vector<1x16x128xf32> to vector<16x128xf32>
    %cst_360 = arith.constant dense<0.000000e+00> : vector<8x128xf32>
    %484 = tpu.matmul %481, %483, %cst_360 {dimension_numbers = #tpu.dot_dimension_numbers<[1], [0], [0], [1], [0, 0, 1, 1], [], []>} : vector<8x16xf32>, vector<16x128xf32>, vector<8x128xf32> -> vector<8x128xf32>
    %485 = arith.addf %462, %484 : vector<8x128xf32>
    %c21 = arith.constant 21 : index
    %c0_361 = arith.constant 0 : index
    %c0_362 = arith.constant 0 : index
    %486 = vector.load %arg1[%c21, %c0_361, %c0_362] : memref<100x8x256xf32, #tpu.memory_space<vmem>>, vector<1x8x256xf32>
    %487 = vector.shape_cast %486 : vector<1x8x256xf32> to vector<8x256xf32>
    %cst_363 = arith.constant dense<0.000000e+00> : vector<8x16xf32>
    %488 = tpu.matmul %487, %0, %cst_363 {dimension_numbers = #tpu.dot_dimension_numbers<[1], [0], [0], [1], [0, 0, 1, 1], [], []>} : vector<8x256xf32>, vector<256x16xf32>, vector<8x16xf32> -> vector<8x16xf32>
    %c46 = arith.constant 46 : index
    %c0_364 = arith.constant 0 : index
    %c0_365 = arith.constant 0 : index
    %489 = vector.load %arg1[%c46, %c0_364, %c0_365] : memref<100x8x256xf32, #tpu.memory_space<vmem>>, vector<1x8x256xf32>
    %490 = vector.shape_cast %489 : vector<1x8x256xf32> to vector<8x256xf32>
    %cst_366 = arith.constant dense<0.000000e+00> : vector<8x16xf32>
    %491 = tpu.matmul %490, %0, %cst_366 {dimension_numbers = #tpu.dot_dimension_numbers<[1], [0], [0], [1], [0, 0, 1, 1], [], []>} : vector<8x256xf32>, vector<256x16xf32>, vector<8x16xf32> -> vector<8x16xf32>
    %492 = arith.maximumf %488, %491 : vector<8x16xf32>
    %c71 = arith.constant 71 : index
    %c0_367 = arith.constant 0 : index
    %c0_368 = arith.constant 0 : index
    %493 = vector.load %arg1[%c71, %c0_367, %c0_368] : memref<100x8x256xf32, #tpu.memory_space<vmem>>, vector<1x8x256xf32>
    %494 = vector.shape_cast %493 : vector<1x8x256xf32> to vector<8x256xf32>
    %cst_369 = arith.constant dense<0.000000e+00> : vector<8x16xf32>
    %495 = tpu.matmul %494, %0, %cst_369 {dimension_numbers = #tpu.dot_dimension_numbers<[1], [0], [0], [1], [0, 0, 1, 1], [], []>} : vector<8x256xf32>, vector<256x16xf32>, vector<8x16xf32> -> vector<8x16xf32>
    %496 = arith.maximumf %492, %495 : vector<8x16xf32>
    %c96 = arith.constant 96 : index
    %c0_370 = arith.constant 0 : index
    %c0_371 = arith.constant 0 : index
    %497 = vector.load %arg1[%c96, %c0_370, %c0_371] : memref<100x8x256xf32, #tpu.memory_space<vmem>>, vector<1x8x256xf32>
    %498 = vector.shape_cast %497 : vector<1x8x256xf32> to vector<8x256xf32>
    %cst_372 = arith.constant dense<0.000000e+00> : vector<8x16xf32>
    %499 = tpu.matmul %498, %0, %cst_372 {dimension_numbers = #tpu.dot_dimension_numbers<[1], [0], [0], [1], [0, 0, 1, 1], [], []>} : vector<8x256xf32>, vector<256x16xf32>, vector<8x16xf32> -> vector<8x16xf32>
    %500 = arith.maximumf %496, %499 : vector<8x16xf32>
    %501 = vector.broadcast %1 : vector<1x16xf32> to vector<8x16xf32>
    %502 = arith.addf %500, %501 : vector<8x16xf32>
    %cst_373 = arith.constant 0.000000e+00 : f32
    %503 = vector.broadcast %cst_373 : f32 to vector<8x16xf32>
    %504 = arith.maximumf %502, %503 : vector<8x16xf32>
    %c21_374 = arith.constant 21 : index
    %c0_375 = arith.constant 0 : index
    %c0_376 = arith.constant 0 : index
    %505 = vector.load %arg4[%c21_374, %c0_375, %c0_376] : memref<25x16x128xf32, #tpu.memory_space<vmem>>, vector<1x16x128xf32>
    %506 = vector.shape_cast %505 : vector<1x16x128xf32> to vector<16x128xf32>
    %cst_377 = arith.constant dense<0.000000e+00> : vector<8x128xf32>
    %507 = tpu.matmul %504, %506, %cst_377 {dimension_numbers = #tpu.dot_dimension_numbers<[1], [0], [0], [1], [0, 0, 1, 1], [], []>} : vector<8x16xf32>, vector<16x128xf32>, vector<8x128xf32> -> vector<8x128xf32>
    %508 = arith.addf %485, %507 : vector<8x128xf32>
    %c22 = arith.constant 22 : index
    %c0_378 = arith.constant 0 : index
    %c0_379 = arith.constant 0 : index
    %509 = vector.load %arg1[%c22, %c0_378, %c0_379] : memref<100x8x256xf32, #tpu.memory_space<vmem>>, vector<1x8x256xf32>
    %510 = vector.shape_cast %509 : vector<1x8x256xf32> to vector<8x256xf32>
    %cst_380 = arith.constant dense<0.000000e+00> : vector<8x16xf32>
    %511 = tpu.matmul %510, %0, %cst_380 {dimension_numbers = #tpu.dot_dimension_numbers<[1], [0], [0], [1], [0, 0, 1, 1], [], []>} : vector<8x256xf32>, vector<256x16xf32>, vector<8x16xf32> -> vector<8x16xf32>
    %c47 = arith.constant 47 : index
    %c0_381 = arith.constant 0 : index
    %c0_382 = arith.constant 0 : index
    %512 = vector.load %arg1[%c47, %c0_381, %c0_382] : memref<100x8x256xf32, #tpu.memory_space<vmem>>, vector<1x8x256xf32>
    %513 = vector.shape_cast %512 : vector<1x8x256xf32> to vector<8x256xf32>
    %cst_383 = arith.constant dense<0.000000e+00> : vector<8x16xf32>
    %514 = tpu.matmul %513, %0, %cst_383 {dimension_numbers = #tpu.dot_dimension_numbers<[1], [0], [0], [1], [0, 0, 1, 1], [], []>} : vector<8x256xf32>, vector<256x16xf32>, vector<8x16xf32> -> vector<8x16xf32>
    %515 = arith.maximumf %511, %514 : vector<8x16xf32>
    %c72 = arith.constant 72 : index
    %c0_384 = arith.constant 0 : index
    %c0_385 = arith.constant 0 : index
    %516 = vector.load %arg1[%c72, %c0_384, %c0_385] : memref<100x8x256xf32, #tpu.memory_space<vmem>>, vector<1x8x256xf32>
    %517 = vector.shape_cast %516 : vector<1x8x256xf32> to vector<8x256xf32>
    %cst_386 = arith.constant dense<0.000000e+00> : vector<8x16xf32>
    %518 = tpu.matmul %517, %0, %cst_386 {dimension_numbers = #tpu.dot_dimension_numbers<[1], [0], [0], [1], [0, 0, 1, 1], [], []>} : vector<8x256xf32>, vector<256x16xf32>, vector<8x16xf32> -> vector<8x16xf32>
    %519 = arith.maximumf %515, %518 : vector<8x16xf32>
    %c97 = arith.constant 97 : index
    %c0_387 = arith.constant 0 : index
    %c0_388 = arith.constant 0 : index
    %520 = vector.load %arg1[%c97, %c0_387, %c0_388] : memref<100x8x256xf32, #tpu.memory_space<vmem>>, vector<1x8x256xf32>
    %521 = vector.shape_cast %520 : vector<1x8x256xf32> to vector<8x256xf32>
    %cst_389 = arith.constant dense<0.000000e+00> : vector<8x16xf32>
    %522 = tpu.matmul %521, %0, %cst_389 {dimension_numbers = #tpu.dot_dimension_numbers<[1], [0], [0], [1], [0, 0, 1, 1], [], []>} : vector<8x256xf32>, vector<256x16xf32>, vector<8x16xf32> -> vector<8x16xf32>
    %523 = arith.maximumf %519, %522 : vector<8x16xf32>
    %524 = vector.broadcast %1 : vector<1x16xf32> to vector<8x16xf32>
    %525 = arith.addf %523, %524 : vector<8x16xf32>
    %cst_390 = arith.constant 0.000000e+00 : f32
    %526 = vector.broadcast %cst_390 : f32 to vector<8x16xf32>
    %527 = arith.maximumf %525, %526 : vector<8x16xf32>
    %c22_391 = arith.constant 22 : index
    %c0_392 = arith.constant 0 : index
    %c0_393 = arith.constant 0 : index
    %528 = vector.load %arg4[%c22_391, %c0_392, %c0_393] : memref<25x16x128xf32, #tpu.memory_space<vmem>>, vector<1x16x128xf32>
    %529 = vector.shape_cast %528 : vector<1x16x128xf32> to vector<16x128xf32>
    %cst_394 = arith.constant dense<0.000000e+00> : vector<8x128xf32>
    %530 = tpu.matmul %527, %529, %cst_394 {dimension_numbers = #tpu.dot_dimension_numbers<[1], [0], [0], [1], [0, 0, 1, 1], [], []>} : vector<8x16xf32>, vector<16x128xf32>, vector<8x128xf32> -> vector<8x128xf32>
    %531 = arith.addf %508, %530 : vector<8x128xf32>
    %c23 = arith.constant 23 : index
    %c0_395 = arith.constant 0 : index
    %c0_396 = arith.constant 0 : index
    %532 = vector.load %arg1[%c23, %c0_395, %c0_396] : memref<100x8x256xf32, #tpu.memory_space<vmem>>, vector<1x8x256xf32>
    %533 = vector.shape_cast %532 : vector<1x8x256xf32> to vector<8x256xf32>
    %cst_397 = arith.constant dense<0.000000e+00> : vector<8x16xf32>
    %534 = tpu.matmul %533, %0, %cst_397 {dimension_numbers = #tpu.dot_dimension_numbers<[1], [0], [0], [1], [0, 0, 1, 1], [], []>} : vector<8x256xf32>, vector<256x16xf32>, vector<8x16xf32> -> vector<8x16xf32>
    %c48 = arith.constant 48 : index
    %c0_398 = arith.constant 0 : index
    %c0_399 = arith.constant 0 : index
    %535 = vector.load %arg1[%c48, %c0_398, %c0_399] : memref<100x8x256xf32, #tpu.memory_space<vmem>>, vector<1x8x256xf32>
    %536 = vector.shape_cast %535 : vector<1x8x256xf32> to vector<8x256xf32>
    %cst_400 = arith.constant dense<0.000000e+00> : vector<8x16xf32>
    %537 = tpu.matmul %536, %0, %cst_400 {dimension_numbers = #tpu.dot_dimension_numbers<[1], [0], [0], [1], [0, 0, 1, 1], [], []>} : vector<8x256xf32>, vector<256x16xf32>, vector<8x16xf32> -> vector<8x16xf32>
    %538 = arith.maximumf %534, %537 : vector<8x16xf32>
    %c73 = arith.constant 73 : index
    %c0_401 = arith.constant 0 : index
    %c0_402 = arith.constant 0 : index
    %539 = vector.load %arg1[%c73, %c0_401, %c0_402] : memref<100x8x256xf32, #tpu.memory_space<vmem>>, vector<1x8x256xf32>
    %540 = vector.shape_cast %539 : vector<1x8x256xf32> to vector<8x256xf32>
    %cst_403 = arith.constant dense<0.000000e+00> : vector<8x16xf32>
    %541 = tpu.matmul %540, %0, %cst_403 {dimension_numbers = #tpu.dot_dimension_numbers<[1], [0], [0], [1], [0, 0, 1, 1], [], []>} : vector<8x256xf32>, vector<256x16xf32>, vector<8x16xf32> -> vector<8x16xf32>
    %542 = arith.maximumf %538, %541 : vector<8x16xf32>
    %c98 = arith.constant 98 : index
    %c0_404 = arith.constant 0 : index
    %c0_405 = arith.constant 0 : index
    %543 = vector.load %arg1[%c98, %c0_404, %c0_405] : memref<100x8x256xf32, #tpu.memory_space<vmem>>, vector<1x8x256xf32>
    %544 = vector.shape_cast %543 : vector<1x8x256xf32> to vector<8x256xf32>
    %cst_406 = arith.constant dense<0.000000e+00> : vector<8x16xf32>
    %545 = tpu.matmul %544, %0, %cst_406 {dimension_numbers = #tpu.dot_dimension_numbers<[1], [0], [0], [1], [0, 0, 1, 1], [], []>} : vector<8x256xf32>, vector<256x16xf32>, vector<8x16xf32> -> vector<8x16xf32>
    %546 = arith.maximumf %542, %545 : vector<8x16xf32>
    %547 = vector.broadcast %1 : vector<1x16xf32> to vector<8x16xf32>
    %548 = arith.addf %546, %547 : vector<8x16xf32>
    %cst_407 = arith.constant 0.000000e+00 : f32
    %549 = vector.broadcast %cst_407 : f32 to vector<8x16xf32>
    %550 = arith.maximumf %548, %549 : vector<8x16xf32>
    %c23_408 = arith.constant 23 : index
    %c0_409 = arith.constant 0 : index
    %c0_410 = arith.constant 0 : index
    %551 = vector.load %arg4[%c23_408, %c0_409, %c0_410] : memref<25x16x128xf32, #tpu.memory_space<vmem>>, vector<1x16x128xf32>
    %552 = vector.shape_cast %551 : vector<1x16x128xf32> to vector<16x128xf32>
    %cst_411 = arith.constant dense<0.000000e+00> : vector<8x128xf32>
    %553 = tpu.matmul %550, %552, %cst_411 {dimension_numbers = #tpu.dot_dimension_numbers<[1], [0], [0], [1], [0, 0, 1, 1], [], []>} : vector<8x16xf32>, vector<16x128xf32>, vector<8x128xf32> -> vector<8x128xf32>
    %554 = arith.addf %531, %553 : vector<8x128xf32>
    %c24 = arith.constant 24 : index
    %c0_412 = arith.constant 0 : index
    %c0_413 = arith.constant 0 : index
    %555 = vector.load %arg1[%c24, %c0_412, %c0_413] : memref<100x8x256xf32, #tpu.memory_space<vmem>>, vector<1x8x256xf32>
    %556 = vector.shape_cast %555 : vector<1x8x256xf32> to vector<8x256xf32>
    %cst_414 = arith.constant dense<0.000000e+00> : vector<8x16xf32>
    %557 = tpu.matmul %556, %0, %cst_414 {dimension_numbers = #tpu.dot_dimension_numbers<[1], [0], [0], [1], [0, 0, 1, 1], [], []>} : vector<8x256xf32>, vector<256x16xf32>, vector<8x16xf32> -> vector<8x16xf32>
    %c49 = arith.constant 49 : index
    %c0_415 = arith.constant 0 : index
    %c0_416 = arith.constant 0 : index
    %558 = vector.load %arg1[%c49, %c0_415, %c0_416] : memref<100x8x256xf32, #tpu.memory_space<vmem>>, vector<1x8x256xf32>
    %559 = vector.shape_cast %558 : vector<1x8x256xf32> to vector<8x256xf32>
    %cst_417 = arith.constant dense<0.000000e+00> : vector<8x16xf32>
    %560 = tpu.matmul %559, %0, %cst_417 {dimension_numbers = #tpu.dot_dimension_numbers<[1], [0], [0], [1], [0, 0, 1, 1], [], []>} : vector<8x256xf32>, vector<256x16xf32>, vector<8x16xf32> -> vector<8x16xf32>
    %561 = arith.maximumf %557, %560 : vector<8x16xf32>
    %c74 = arith.constant 74 : index
    %c0_418 = arith.constant 0 : index
    %c0_419 = arith.constant 0 : index
    %562 = vector.load %arg1[%c74, %c0_418, %c0_419] : memref<100x8x256xf32, #tpu.memory_space<vmem>>, vector<1x8x256xf32>
    %563 = vector.shape_cast %562 : vector<1x8x256xf32> to vector<8x256xf32>
    %cst_420 = arith.constant dense<0.000000e+00> : vector<8x16xf32>
    %564 = tpu.matmul %563, %0, %cst_420 {dimension_numbers = #tpu.dot_dimension_numbers<[1], [0], [0], [1], [0, 0, 1, 1], [], []>} : vector<8x256xf32>, vector<256x16xf32>, vector<8x16xf32> -> vector<8x16xf32>
    %565 = arith.maximumf %561, %564 : vector<8x16xf32>
    %c99 = arith.constant 99 : index
    %c0_421 = arith.constant 0 : index
    %c0_422 = arith.constant 0 : index
    %566 = vector.load %arg1[%c99, %c0_421, %c0_422] : memref<100x8x256xf32, #tpu.memory_space<vmem>>, vector<1x8x256xf32>
    %567 = vector.shape_cast %566 : vector<1x8x256xf32> to vector<8x256xf32>
    %cst_423 = arith.constant dense<0.000000e+00> : vector<8x16xf32>
    %568 = tpu.matmul %567, %0, %cst_423 {dimension_numbers = #tpu.dot_dimension_numbers<[1], [0], [0], [1], [0, 0, 1, 1], [], []>} : vector<8x256xf32>, vector<256x16xf32>, vector<8x16xf32> -> vector<8x16xf32>
    %569 = arith.maximumf %565, %568 : vector<8x16xf32>
    %570 = vector.broadcast %1 : vector<1x16xf32> to vector<8x16xf32>
    %571 = arith.addf %569, %570 : vector<8x16xf32>
    %cst_424 = arith.constant 0.000000e+00 : f32
    %572 = vector.broadcast %cst_424 : f32 to vector<8x16xf32>
    %573 = arith.maximumf %571, %572 : vector<8x16xf32>
    %c24_425 = arith.constant 24 : index
    %c0_426 = arith.constant 0 : index
    %c0_427 = arith.constant 0 : index
    %574 = vector.load %arg4[%c24_425, %c0_426, %c0_427] : memref<25x16x128xf32, #tpu.memory_space<vmem>>, vector<1x16x128xf32>
    %575 = vector.shape_cast %574 : vector<1x16x128xf32> to vector<16x128xf32>
    %cst_428 = arith.constant dense<0.000000e+00> : vector<8x128xf32>
    %576 = tpu.matmul %573, %575, %cst_428 {dimension_numbers = #tpu.dot_dimension_numbers<[1], [0], [0], [1], [0, 0, 1, 1], [], []>} : vector<8x16xf32>, vector<16x128xf32>, vector<8x128xf32> -> vector<8x128xf32>
    %577 = arith.addf %554, %576 : vector<8x128xf32>
    %c0_429 = arith.constant 0 : index
    %c0_430 = arith.constant 0 : index
    %578 = vector.load %arg5[%c0_429, %c0_430] : memref<1x128xf32, #tpu.memory_space<vmem>>, vector<1x128xf32>
    %579 = vector.broadcast %578 : vector<1x128xf32> to vector<8x128xf32>
    %580 = arith.addf %577, %579 : vector<8x128xf32>
    %cst_431 = arith.constant 0.000000e+00 : f32
    %581 = vector.broadcast %cst_431 : f32 to vector<8x128xf32>
    %582 = arith.maximumf %580, %581 : vector<8x128xf32>
    %c0_432 = arith.constant 0 : index
    %c0_433 = arith.constant 0 : index
    %583 = vector.load %arg6[%c0_432, %c0_433] : memref<128x128xf32, #tpu.memory_space<vmem>>, vector<128x128xf32>
    %cst_434 = arith.constant dense<0.000000e+00> : vector<8x128xf32>
    %584 = tpu.matmul %582, %583, %cst_434 {dimension_numbers = #tpu.dot_dimension_numbers<[1], [0], [0], [1], [0, 0, 1, 1], [], []>} : vector<8x128xf32>, vector<128x128xf32>, vector<8x128xf32> -> vector<8x128xf32>
    %c0_435 = arith.constant 0 : index
    %c0_436 = arith.constant 0 : index
    %585 = vector.load %arg7[%c0_435, %c0_436] : memref<1x128xf32, #tpu.memory_space<vmem>>, vector<1x128xf32>
    %586 = vector.broadcast %585 : vector<1x128xf32> to vector<8x128xf32>
    %587 = arith.addf %584, %586 : vector<8x128xf32>
    %cst_437 = arith.constant 0.000000e+00 : f32
    %588 = vector.broadcast %cst_437 : f32 to vector<8x128xf32>
    %589 = arith.maximumf %587, %588 : vector<8x128xf32>
    %c0_438 = arith.constant 0 : index
    %c0_439 = arith.constant 0 : index
    %590 = vector.load %arg8[%c0_438, %c0_439] : memref<128x128xf32, #tpu.memory_space<vmem>>, vector<128x128xf32>
    %cst_440 = arith.constant dense<0.000000e+00> : vector<8x128xf32>
    %591 = tpu.matmul %589, %590, %cst_440 {dimension_numbers = #tpu.dot_dimension_numbers<[1], [0], [0], [1], [0, 0, 1, 1], [], []>} : vector<8x128xf32>, vector<128x128xf32>, vector<8x128xf32> -> vector<8x128xf32>
    %c0_441 = arith.constant 0 : index
    %c0_442 = arith.constant 0 : index
    %592 = vector.load %arg9[%c0_441, %c0_442] : memref<1x128xf32, #tpu.memory_space<vmem>>, vector<1x128xf32>
    %593 = vector.broadcast %592 : vector<1x128xf32> to vector<8x128xf32>
    %594 = arith.addf %591, %593 : vector<8x128xf32>
    %c0_443 = arith.constant 0 : index
    %c0_444 = arith.constant 0 : index
    %595 = vector.load %arg10[%c0_443, %c0_444] : memref<8x128xf32, #tpu.memory_space<vmem>>, vector<8x128xf32>
    tpu.vector_store %arg10[%c0_443, %c0_444], %594 {strides = array<i32>} : memref<8x128xf32, #tpu.memory_space<vmem>>, vector<8x128xf32>,
    return
  }
  func.func @transform_0(%arg0: i32) -> (i32, i32, i32) {
    %c0_i32 = arith.constant 0 : i32
    %c0_i32_0 = arith.constant 0 : i32
    %c0_i32_1 = arith.constant 0 : i32
    return %c0_i32, %arg0, %c0_i32_0 : i32, i32, i32
  }
  func.func @transform_1(%arg0: i32) -> (i32, i32) {
    %c0_i32 = arith.constant 0 : i32
    %c0_i32_0 = arith.constant 0 : i32
    %c0_i32_1 = arith.constant 0 : i32
    return %c0_i32, %c0_i32_0 : i32, i32
  }
  func.func @transform_2(%arg0: i32) -> (i32, i32) {
    %c0_i32 = arith.constant 0 : i32
    %c0_i32_0 = arith.constant 0 : i32
    %c0_i32_1 = arith.constant 0 : i32
    return %c0_i32, %c0_i32_0 : i32, i32
  }
  func.func @transform_3(%arg0: i32) -> (i32, i32, i32) {
    %c0_i32 = arith.constant 0 : i32
    %c0_i32_0 = arith.constant 0 : i32
    %c0_i32_1 = arith.constant 0 : i32
    %c0_i32_2 = arith.constant 0 : i32
    return %c0_i32, %c0_i32_0, %c0_i32_1 : i32, i32, i32
  }
  func.func @transform_4(%arg0: i32) -> (i32, i32) {
    %c0_i32 = arith.constant 0 : i32
    %c0_i32_0 = arith.constant 0 : i32
    %c0_i32_1 = arith.constant 0 : i32
    return %c0_i32, %c0_i32_0 : i32, i32
  }
  func.func @transform_5(%arg0: i32) -> (i32, i32) {
    %c0_i32 = arith.constant 0 : i32
    %c0_i32_0 = arith.constant 0 : i32
    %c0_i32_1 = arith.constant 0 : i32
    return %c0_i32, %c0_i32_0 : i32, i32
  }
  func.func @transform_6(%arg0: i32) -> (i32, i32) {
    %c0_i32 = arith.constant 0 : i32
    %c0_i32_0 = arith.constant 0 : i32
    %c0_i32_1 = arith.constant 0 : i32
    return %c0_i32, %c0_i32_0 : i32, i32
  }
  func.func @transform_7(%arg0: i32) -> (i32, i32) {
    %c0_i32 = arith.constant 0 : i32
    %c0_i32_0 = arith.constant 0 : i32
    %c0_i32_1 = arith.constant 0 : i32
    return %c0_i32, %c0_i32_0 : i32, i32
  }
  func.func @transform_8(%arg0: i32) -> (i32, i32) {
    %c0_i32 = arith.constant 0 : i32
    %c0_i32_0 = arith.constant 0 : i32
    %c0_i32_1 = arith.constant 0 : i32
    return %c0_i32, %c0_i32_0 : i32, i32
  }
  func.func @transform_9(%arg0: i32) -> (i32, i32) {
    %c0_i32 = arith.constant 0 : i32
    %c0_i32_0 = arith.constant 0 : i32
    return %arg0, %c0_i32 : i32, i32
  }
}

</mosaic_0001>

<bundles_post_ra>
// kernel: net_forward.2
= control target key start
LH: loop header
LB: loop body
LE: loop exit
PB: predicated region body
PF: predicated region fallthrough
CT: control target
= control target key end

     0   :  { %v1327_v3 = vmov 0.0   ;;  %v1328_v26 = vmov 0   ;;  %s2153_s0 = inlined_call_operand.vmem [shape: f32[4,128,512], index: 0, kind: input, shape index: {}]   ;;  %s2154_s1 = inlined_call_operand.vmem [shape: f32[8,128], index: 1, kind: input, shape index: {}]   ;;  %s2155_s2 = inlined_call_operand.vmem [shape: f32[8,1], index: 2, kind: input, shape index: {}]   ;;  %s2156_s3 = inlined_call_operand.vmem [shape: f32[8,512], index: 3, kind: output, shape index: {}]  }
   0x1   :  { %v16_v0 = vld [vmem:[%s2153_s0 + $0x8] sm:$0xff]  ;;  %v18_v2 = vld [vmem:[%s2153_s0 + $0x18] sm:$0xff]  ;;  %143 = vmatprep.mubr.f32.mxu0 %v1327_v3  ;;  %214 = vmatprep.mubr.f32.mxu1 %v1327_v3  ;;  %v15_v6 = vld [vmem:[%s2153_s0] sm:$0xff] }
   0x2   :  { %v20_v1 = vld [vmem:[%s2153_s0 + $0x28] sm:$0xff]  ;;  %v22_v5 = vld [vmem:[%s2153_s0 + $0x38] sm:$0xff]  ;;  %v19_v7 = vld [vmem:[%s2153_s0 + $0x20] sm:$0xff]  ;;  %1326 = vset.pattern.permute.xlu0 %v1328_v26 }
   0x3   :  { %v1068_v4 = vpack.c.bf16 %v20_v1, %v16_v0  ;;  %v1100_v8 = vpack.c.bf16 %v22_v5, %v18_v2  ;;  %v1070_v9 = vpack.c.bf16 %v19_v7, %v15_v6  ;;  %v17_v10 = vld [vmem:[%s2153_s0 + $0x10] sm:$0xff]  ;;  %v24_v12 = vld [vmem:[%s2153_s0 + $0x48] sm:$0xff]  ;;  %v26_v15 = vld [vmem:[%s2153_s0 + $0x58] sm:$0xff] }
   0x4   :  { %v21_v11 = vld [vmem:[%s2153_s0 + $0x30] sm:$0xff]  ;;  %v28_v14 = vld [vmem:[%s2153_s0 + $0x68] sm:$0xff]  ;;  %v30_v16 = vld [vmem:[%s2153_s0 + $0x78] sm:$0xff] }
   0x5   :  { %1069 = vmatprep.subr.bf16.mxu0 %v1068_v4  ;;  %v1102_v13 = vpack.c.bf16 %v21_v11, %v17_v10  ;;  %1101 = vmatprep.subr.bf16.mxu1 %v1100_v8  ;;  %v1072_v17 = vpack.c.bf16 %v28_v14, %v24_v12  ;;  %v1104_v18 = vpack.c.bf16 %v30_v16, %v26_v15  ;;  %v23_v19 = vld [vmem:[%s2153_s0 + $0x40] sm:$0xff]  ;;  %v25_v21 = vld [vmem:[%s2153_s0 + $0x50] sm:$0xff]  ;;  %v32_v24 = vld [vmem:[%s2153_s0 + $0x88] sm:$0xff] }
   0x6   :  { %1071 = vmatpush1.bf16.msra.mxu0 %v1070_v9  ;;  %v27_v20 = vld [vmem:[%s2153_s0 + $0x60] sm:$0xff]  ;;  %v29_v23 = vld [vmem:[%s2153_s0 + $0x70] sm:$0xff]  ;;  %v36_v25 = vld [vmem:[%s2153_s0 + $0xa8] sm:$0xff] }
   0x7   :  { %1103 = vmatpush1.bf16.msra.mxu1 %v1102_v13  ;;  %v1074_v22 = vpack.c.bf16 %v27_v20, %v23_v19  ;;  %1073 = vmatprep.subr.bf16.mxu0 %v1072_v17  ;;  %v1106_v27 = vpack.c.bf16 %v29_v23, %v25_v21  ;;  %v1076_v28 = vpack.c.bf16 %v36_v25, %v32_v24  ;;  %v34_v29 = vld [vmem:[%s2153_s0 + $0x98] sm:$0xff]  ;;  %v31_v31 = vld [vmem:[%s2153_s0 + $0x80] sm:$0xff]  ;;  %v33_v34 = vld [vmem:[%s2153_s0 + $0x90] sm:$0xff] }
   0x8   :  { %1105 = vmatprep.subr.bf16.mxu1 %v1104_v18  ;;  %v38_v30 = vld [vmem:[%s2153_s0 + $0xb8] sm:$0xff]  ;;  %v35_v33 = vld [vmem:[%s2153_s0 + $0xa0] sm:$0xff]  ;;  %v37_v35 = vld [vmem:[%s2153_s0 + $0xb0] sm:$0xff] }
   0x9   :  { %v1108_v32 = vpack.c.bf16 %v38_v30, %v34_v29  ;;  %v1078_v36 = vpack.c.bf16 %v35_v33, %v31_v31  ;;  %v40_v37 = vld [vmem:[%s2153_s0 + $0xc8] sm:$0xff]  ;;  %v42_v39 = vld [vmem:[%s2153_s0 + $0xd8] sm:$0xff]  ;;  %v1110_v40 = vpack.c.bf16 %v37_v35, %v33_v34  ;;  %v39_v43 = vld [vmem:[%s2153_s0 + $0xc0] sm:$0xff] }
   0xa   :  { %1075 = vmatpush1.bf16.msra.mxu0 %v1074_v22  ;;  %v44_v38 = vld [vmem:[%s2153_s0 + $0xe8] sm:$0xff]  ;;  %v46_v42 = vld [vmem:[%s2153_s0 + $0xf8] sm:$0xff]  ;;  %v43_v44 = vld [vmem:[%s2153_s0 + $0xe0] sm:$0xff] }
   0xb   :  { %1107 = vmatpush1.bf16.msra.mxu1 %v1106_v27  ;;  %1077 = vmatprep.subr.bf16.mxu0 %v1076_v28  ;;  %v1080_v41 = vpack.c.bf16 %v44_v38, %v40_v37  ;;  %v1112_v45 = vpack.c.bf16 %v46_v42, %v42_v39  ;;  %v41_v46 = vld [vmem:[%s2153_s0 + $0xd0] sm:$0xff]  ;;  %v48_v48 = vld [vmem:[%s2153_s0 + $0x108] sm:$0xff]  ;;  %v50_v50 = vld [vmem:[%s2153_s0 + $0x118] sm:$0xff]  ;;  %v1082_v52 = vpack.c.bf16 %v43_v44, %v39_v43 }
   0xc   :  { %1109 = vmatprep.subr.bf16.mxu1 %v1108_v32  ;;  %v45_v47 = vld [vmem:[%s2153_s0 + $0xf0] sm:$0xff]  ;;  %v52_v49 = vld [vmem:[%s2153_s0 + $0x128] sm:$0xff]  ;;  %v54_v51 = vld [vmem:[%s2153_s0 + $0x138] sm:$0xff] }
   0xd   :  { %v1114_v53 = vpack.c.bf16 %v45_v47, %v41_v46  ;;  %v1084_v54 = vpack.c.bf16 %v52_v49, %v48_v48  ;;  %v47_v55 = vld [vmem:[%s2153_s0 + $0x100] sm:$0xff]  ;;  %v49_v57 = vld [vmem:[%s2153_s0 + $0x110] sm:$0xff]  ;;  %v1116_v58 = vpack.c.bf16 %v54_v51, %v50_v50  ;;  %v56_v60 = vld [vmem:[%s2153_s0 + $0x148] sm:$0xff] }
   0xe   :  { %1079 = vmatpush1.bf16.msra.mxu0 %v1078_v36  ;;  %v51_v56 = vld [vmem:[%s2153_s0 + $0x120] sm:$0xff]  ;;  %v53_v59 = vld [vmem:[%s2153_s0 + $0x130] sm:$0xff]  ;;  %v60_v61 = vld [vmem:[%s2153_s0 + $0x168] sm:$0xff] }
   0xf   :  { %1111 = vmatpush1.bf16.msra.mxu1 %v1110_v40  ;;  %1081 = vmatprep.subr.bf16.mxu0 %v1080_v41  ;;  %v58_v62 = vld [vmem:[%s2153_s0 + $0x158] sm:$0xff]  ;;  %v1086_v0 = vpack.c.bf16 %v51_v56, %v47_v55  ;;  %v1118_v1 = vpack.c.bf16 %v53_v59, %v49_v57  ;;  %v1088_v2 = vpack.c.bf16 %v60_v61, %v56_v60  ;;  %v55_v4 = vld [vmem:[%s2153_s0 + $0x140] sm:$0xff]  ;;  %v57_v6 = vld [vmem:[%s2153_s0 + $0x150] sm:$0xff] }
  0x10   :  { %1113 = vmatprep.subr.bf16.mxu1 %v1112_v45  ;;  %v62_v63 = vld [vmem:[%s2153_s0 + $0x178] sm:$0xff]  ;;  %v59_v5 = vld [vmem:[%s2153_s0 + $0x160] sm:$0xff]  ;;  %v61_v8 = vld [vmem:[%s2153_s0 + $0x170] sm:$0xff] }
  0x11   :  { %v1120_v7 = vpack.c.bf16 %v62_v63, %v58_v62  ;;  %v64_v9 = vld [vmem:[%s2153_s0 + $0x188] sm:$0xff]  ;;  %v66_v11 = vld [vmem:[%s2153_s0 + $0x198] sm:$0xff]  ;;  %v1090_v13 = vpack.c.bf16 %v59_v5, %v55_v4  ;;  %v1122_v14 = vpack.c.bf16 %v61_v8, %v57_v6  ;;  %v63_v16 = vld [vmem:[%s2153_s0 + $0x180] sm:$0xff] }
  0x12   :  { %1083 = vmatpush1.bf16.msra.mxu0 %v1082_v52  ;;  %v68_v10 = vld [vmem:[%s2153_s0 + $0x1a8] sm:$0xff]  ;;  %v70_v12 = vld [vmem:[%s2153_s0 + $0x1b8] sm:$0xff]  ;;  %v67_v17 = vld [vmem:[%s2153_s0 + $0x1a0] sm:$0xff] }
  0x13   :  { %1115 = vmatpush1.bf16.msra.mxu1 %v1114_v53  ;;  %1085 = vmatprep.subr.bf16.mxu0 %v1084_v54  ;;  %v1092_v15 = vpack.c.bf16 %v68_v10, %v64_v9  ;;  %v65_v18 = vld [vmem:[%s2153_s0 + $0x190] sm:$0xff]  ;;  %v1124_v19 = vpack.c.bf16 %v70_v12, %v66_v11  ;;  %v72_v21 = vld [vmem:[%s2153_s0 + $0x1c8] sm:$0xff]  ;;  %v74_v23 = vld [vmem:[%s2153_s0 + $0x1d8] sm:$0xff]  ;;  %v1094_v25 = vpack.c.bf16 %v67_v17, %v63_v16 }
  0x14   :  { %1117 = vmatprep.subr.bf16.mxu1 %v1116_v58  ;;  %v69_v20 = vld [vmem:[%s2153_s0 + $0x1b0] sm:$0xff]  ;;  %v76_v22 = vld [vmem:[%s2153_s0 + $0x1e8] sm:$0xff]  ;;  %v78_v24 = vld [vmem:[%s2153_s0 + $0x1f8] sm:$0xff] }
  0x15   :  { %v1126_v26 = vpack.c.bf16 %v69_v20, %v65_v18  ;;  %v1096_v27 = vpack.c.bf16 %v76_v22, %v72_v21  ;;  %v71_v28 = vld [vmem:[%s2153_s0 + $0x1c0] sm:$0xff]  ;;  %v73_v30 = vld [vmem:[%s2153_s0 + $0x1d0] sm:$0xff]  ;;  %v1128_v31 = vpack.c.bf16 %v78_v24, %v74_v23  ;;  %v877_v33 = vld [vmem:[%s2153_s0 + $0x208] sm:$0xff] }
  0x16   :  { %1087 = vmatpush1.bf16.msra.mxu0 %v1086_v0  ;;  %v75_v29 = vld [vmem:[%s2153_s0 + $0x1e0] sm:$0xff]  ;;  %v77_v32 = vld [vmem:[%s2153_s0 + $0x1f0] sm:$0xff]  ;;  %v881_v34 = vld [vmem:[%s2153_s0 + $0x228] sm:$0xff] }
  0x17   :  { %1119 = vmatpush1.bf16.msra.mxu1 %v1118_v1  ;;  %1089 = vmatprep.subr.bf16.mxu0 %v1088_v2  ;;  %v879_v35 = vld [vmem:[%s2153_s0 + $0x218] sm:$0xff]  ;;  %v1098_v37 = vpack.c.bf16 %v75_v29, %v71_v28  ;;  %v1130_v38 = vpack.c.bf16 %v77_v32, %v73_v30  ;;  %v1132_v39 = vpack.c.bf16 %v881_v34, %v877_v33  ;;  %v876_v40 = vld [vmem:[%s2153_s0 + $0x200] sm:$0xff]  ;;  %v878_v42 = vld [vmem:[%s2153_s0 + $0x210] sm:$0xff] }
  0x18   :  { %1121 = vmatprep.subr.bf16.mxu1 %v1120_v7  ;;  %v883_v36 = vld [vmem:[%s2153_s0 + $0x238] sm:$0xff]  ;;  %v880_v41 = vld [vmem:[%s2153_s0 + $0x220] sm:$0xff]  ;;  %v882_v44 = vld [vmem:[%s2153_s0 + $0x230] sm:$0xff] }
  0x19   :  { %v1164_v43 = vpack.c.bf16 %v883_v36, %v879_v35  ;;  %v885_v45 = vld [vmem:[%s2153_s0 + $0x248] sm:$0xff]  ;;  %v887_v47 = vld [vmem:[%s2153_s0 + $0x258] sm:$0xff]  ;;  %v1582_v49 = vld [vmem:[%s2154_s1] sm:$0xff]  ;;  %v1134_v50 = vpack.c.bf16 %v880_v41, %v876_v40  ;;  %v1166_v51 = vpack.c.bf16 %v882_v44, %v878_v42 }
  0x1a   :  { %1091 = vmatpush1.bf16.msra.mxu0 %v1090_v13  ;;  %v889_v46 = vld [vmem:[%s2153_s0 + $0x268] sm:$0xff]  ;;  %v891_v48 = vld [vmem:[%s2153_s0 + $0x278] sm:$0xff]  ;;  %v884_v53 = vld [vmem:[%s2153_s0 + $0x240] sm:$0xff] }
  0x1b   :  { %1123 = vmatpush1.bf16.msra.mxu1 %v1122_v14  ;;  %1093 = vmatprep.subr.bf16.mxu0 %v1092_v15  ;;  %v1136_v52 = vpack.c.bf16 %v889_v46, %v885_v45  ;;  %v888_v54 = vld [vmem:[%s2153_s0 + $0x260] sm:$0xff]  ;;  %v886_v55 = vld [vmem:[%s2153_s0 + $0x250] sm:$0xff]  ;;  %v1168_v56 = vpack.c.bf16 %v891_v48, %v887_v47  ;;  %v893_v58 = vld [vmem:[%s2153_s0 + $0x288] sm:$0xff] }
  0x1c   :  { %1125 = vmatprep.subr.bf16.mxu1 %v1124_v19  ;;  %v890_v57 = vld [vmem:[%s2153_s0 + $0x270] sm:$0xff]  ;;  %v897_v59 = vld [vmem:[%s2153_s0 + $0x2a8] sm:$0xff]  ;;  %v895_v60 = vld [vmem:[%s2153_s0 + $0x298] sm:$0xff]  ;;  %v1138_v62 = vpack.c.bf16 %v888_v54, %v884_v53 }
  0x1d   :  { %v899_v61 = vld [vmem:[%s2153_s0 + $0x2b8] sm:$0xff]  ;;  %v1170_v63 = vpack.c.bf16 %v890_v57, %v886_v55  ;;  %v1140_v0 = vpack.c.bf16 %v897_v59, %v893_v58  ;;  %v892_v1 = vld [vmem:[%s2153_s0 + $0x280] sm:$0xff]  ;;  %v894_v4 = vld [vmem:[%s2153_s0 + $0x290] sm:$0xff] }
  0x1e   :  { %1095 = vmatpush1.bf16.msra.mxu0 %v1094_v25  ;;  %v896_v2 = vld [vmem:[%s2153_s0 + $0x2a0] sm:$0xff]  ;;  %v1172_v5 = vpack.c.bf16 %v899_v61, %v895_v60  ;;  %v898_v6 = vld [vmem:[%s2153_s0 + $0x2b0] sm:$0xff]  ;;  %v901_v7 = vld [vmem:[%s2153_s0 + $0x2c8] sm:$0xff] }
  0x1f   :  { %1127 = vmatpush1.bf16.msra.mxu1 %v1126_v26  ;;  %1097 = vmatprep.subr.bf16.mxu0 %v1096_v27  ;;  %v905_v8 = vld [vmem:[%s2153_s0 + $0x2e8] sm:$0xff]  ;;  %v903_v9 = vld [vmem:[%s2153_s0 + $0x2d8] sm:$0xff]  ;;  %v1142_v11 = vpack.c.bf16 %v896_v2, %v892_v1  ;;  %v1174_v12 = vpack.c.bf16 %v898_v6, %v894_v4  ;;  %v900_v14 = vld [vmem:[%s2153_s0 + $0x2c0] sm:$0xff] }
  0x20   :  { %1129 = vmatprep.subr.bf16.mxu1 %v1128_v31  ;;  %v907_v10 = vld [vmem:[%s2153_s0 + $0x2f8] sm:$0xff]  ;;  %v1144_v13 = vpack.c.bf16 %v905_v8, %v901_v7  ;;  %v904_v15 = vld [vmem:[%s2153_s0 + $0x2e0] sm:$0xff]  ;;  %v902_v16 = vld [vmem:[%s2153_s0 + $0x2d0] sm:$0xff] }
  0x21   :  { %v1176_v17 = vpack.c.bf16 %v907_v10, %v903_v9  ;;  %v906_v18 = vld [vmem:[%s2153_s0 + $0x2f0] sm:$0xff]  ;;  %v909_v19 = vld [vmem:[%s2153_s0 + $0x308] sm:$0xff]  ;;  %v911_v21 = vld [vmem:[%s2153_s0 + $0x318] sm:$0xff]  ;;  %v1146_v23 = vpack.c.bf16 %v904_v15, %v900_v14 }
  0x22   :  { %1099 = vmatpush1.bf16.msra.mxu0 %v1098_v37  ;;  %v913_v20 = vld [vmem:[%s2153_s0 + $0x328] sm:$0xff]  ;;  %v915_v22 = vld [vmem:[%s2153_s0 + $0x338] sm:$0xff]  ;;  %v1178_v24 = vpack.c.bf16 %v906_v18, %v902_v16  ;;  %v908_v26 = vld [vmem:[%s2153_s0 + $0x300] sm:$0xff] }
  0x23   :  { %1131 = vmatpush1.bf16.msra.mxu1 %v1130_v38  ;;  %1133 = vmatprep.subr.bf16.mxu0 %v1132_v39  ;;  %v1148_v25 = vpack.c.bf16 %v913_v20, %v909_v19  ;;  %v912_v27 = vld [vmem:[%s2153_s0 + $0x320] sm:$0xff]  ;;  %v910_v28 = vld [vmem:[%s2153_s0 + $0x310] sm:$0xff]  ;;  %v1180_v29 = vpack.c.bf16 %v915_v22, %v911_v21  ;;  %v917_v31 = vld [vmem:[%s2153_s0 + $0x348] sm:$0xff] }
  0x24   :  { %1165 = vmatprep.subr.bf16.mxu1 %v1164_v43  ;;  %v914_v30 = vld [vmem:[%s2153_s0 + $0x330] sm:$0xff]  ;;  %v921_v32 = vld [vmem:[%s2153_s0 + $0x368] sm:$0xff]  ;;  %v919_v33 = vld [vmem:[%s2153_s0 + $0x358] sm:$0xff]  ;;  %v1150_v35 = vpack.c.bf16 %v912_v27, %v908_v26 }
  0x25   :  { %144 = vmatmul.mubr.f32.vlgmr.msra.gmra.mrb[0].mxu0 %v1582_v49  ;;  %v923_v34 = vld [vmem:[%s2153_s0 + $0x378] sm:$0xff]  ;;  %v1182_v36 = vpack.c.bf16 %v914_v30, %v910_v28  ;;  %v1152_v37 = vpack.c.bf16 %v921_v32, %v917_v31  ;;  %v916_v38 = vld [vmem:[%s2153_s0 + $0x340] sm:$0xff]  ;;  %v918_v40 = vld [vmem:[%s2153_s0 + $0x350] sm:$0xff] }
  0x26   :  { %215 = vmatmul.mubr.f32.vlgmr.msra.gmra.mrb[0].mxu1 %v1582_v49  ;;  %1135 = vmatpush1.bf16.msra.mxu0 %v1134_v50  ;;  %v920_v39 = vld [vmem:[%s2153_s0 + $0x360] sm:$0xff]  ;;  %v1184_v41 = vpack.c.bf16 %v923_v34, %v919_v33  ;;  %v922_v42 = vld [vmem:[%s2153_s0 + $0x370] sm:$0xff]  ;;  %v925_v43 = vld [vmem:[%s2153_s0 + $0x388] sm:$0xff] }
  0x27   :  { %1167 = vmatpush1.bf16.msra.mxu1 %v1166_v51  ;;  %1137 = vmatprep.subr.bf16.mxu0 %v1136_v52  ;;  %v929_v44 = vld [vmem:[%s2153_s0 + $0x3a8] sm:$0xff]  ;;  %v927_v45 = vld [vmem:[%s2153_s0 + $0x398] sm:$0xff]  ;;  %v1154_v47 = vpack.c.bf16 %v920_v39, %v916_v38  ;;  %v1186_v48 = vpack.c.bf16 %v922_v42, %v918_v40  ;;  %v924_v51 = vld [vmem:[%s2153_s0 + $0x380] sm:$0xff] }
  0x28   :  { %1169 = vmatprep.subr.bf16.mxu1 %v1168_v56  ;;  %350 = vmatprep.mubr.f32.mxu0 %v1327_v3  ;;  %v931_v46 = vld [vmem:[%s2153_s0 + $0x3b8] sm:$0xff]  ;;  %v1156_v50 = vpack.c.bf16 %v929_v44, %v925_v43  ;;  %v928_v52 = vld [vmem:[%s2153_s0 + $0x3a0] sm:$0xff]  ;;  %v926_v53 = vld [vmem:[%s2153_s0 + $0x390] sm:$0xff] }
  0x29   :  { %421 = vmatprep.mubr.f32.mxu1 %v1327_v3  ;;  %v1188_v54 = vpack.c.bf16 %v931_v46, %v927_v45  ;;  %v930_v55 = vld [vmem:[%s2153_s0 + $0x3b0] sm:$0xff]  ;;  %v933_v56 = vld [vmem:[%s2153_s0 + $0x3c8] sm:$0xff]  ;;  %v935_v58 = vld [vmem:[%s2153_s0 + $0x3d8] sm:$0xff]  ;;  %v1158_v60 = vpack.c.bf16 %v928_v52, %v924_v51 }
  0x2a   :  { %1139 = vmatpush1.bf16.msra.mxu0 %v1138_v62  ;;  %v937_v57 = vld [vmem:[%s2153_s0 + $0x3e8] sm:$0xff]  ;;  %v939_v59 = vld [vmem:[%s2153_s0 + $0x3f8] sm:$0xff]  ;;  %v1190_v61 = vpack.c.bf16 %v930_v55, %v926_v53  ;;  %v934_v1 = vld [vmem:[%s2153_s0 + $0x3d0] sm:$0xff] }
  0x2b   :  { %1171 = vmatpush1.bf16.msra.mxu1 %v1170_v63  ;;  %1141 = vmatprep.subr.bf16.mxu0 %v1140_v0  ;;  %v1160_v62 = vpack.c.bf16 %v937_v57, %v933_v56  ;;  %v932_v63 = vld [vmem:[%s2153_s0 + $0x3c0] sm:$0xff]  ;;  %v1192_v2 = vpack.c.bf16 %v939_v59, %v935_v58  ;;  %v938_v4 = vld [vmem:[%s2153_s0 + $0x3f0] sm:$0xff]  ;;  %v945_v6 = vld [vmem:[%s2153_s0 + $0x428] sm:$0xff] }
  0x2c   :  { %1173 = vmatprep.subr.bf16.mxu1 %v1172_v5  ;;  %v936_v0 = vld [vmem:[%s2153_s0 + $0x3e0] sm:$0xff]  ;;  %v941_v5 = vld [vmem:[%s2153_s0 + $0x408] sm:$0xff]  ;;  %v943_v7 = vld [vmem:[%s2153_s0 + $0x418] sm:$0xff]  ;;  %v1194_v10 = vpack.c.bf16 %v938_v4, %v934_v1 }
  0x2d   :  { %v947_v8 = vld [vmem:[%s2153_s0 + $0x438] sm:$0xff]  ;;  %v1162_v9 = vpack.c.bf16 %v936_v0, %v932_v63  ;;  %v942_v14 = vld [vmem:[%s2153_s0 + $0x410] sm:$0xff]  ;;  %v953_v18 = vld [vmem:[%s2153_s0 + $0x468] sm:$0xff] }
  0x2e   :  { %1143 = vmatpush1.bf16.msra.mxu0 %v1142_v11  ;;  %v1196_v11 = vpack.c.bf16 %v945_v6, %v941_v5  ;;  %v1228_v15 = vpack.c.bf16 %v947_v8, %v943_v7  ;;  %v946_v16 = vld [vmem:[%s2153_s0 + $0x430] sm:$0xff]  ;;  %v951_v19 = vld [vmem:[%s2153_s0 + $0x458] sm:$0xff]  ;;  %v961_v30 = vld [vmem:[%s2153_s0 + $0x4a8] sm:$0xff] }
  0x2f   :  { %1175 = vmatpush1.bf16.msra.mxu1 %v1174_v12  ;;  %1145 = vmatprep.subr.bf16.mxu0 %v1144_v13  ;;  %v940_v12 = vld [vmem:[%s2153_s0 + $0x400] sm:$0xff]  ;;  %v955_v20 = vld [vmem:[%s2153_s0 + $0x478] sm:$0xff]  ;;  %v1230_v22 = vpack.c.bf16 %v946_v16, %v942_v14  ;;  %v950_v26 = vld [vmem:[%s2153_s0 + $0x450] sm:$0xff] }
  0x30   :  { %1177 = vmatprep.subr.bf16.mxu1 %v1176_v17  ;;  %v944_v13 = vld [vmem:[%s2153_s0 + $0x420] sm:$0xff]  ;;  %v949_v17 = vld [vmem:[%s2153_s0 + $0x448] sm:$0xff]  ;;  %v1232_v27 = vpack.c.bf16 %v955_v20, %v951_v19  ;;  %v954_v28 = vld [vmem:[%s2153_s0 + $0x470] sm:$0xff] }
  0x31   :  { %v1198_v21 = vpack.c.bf16 %v944_v13, %v940_v12  ;;  %v959_v31 = vld [vmem:[%s2153_s0 + $0x498] sm:$0xff]  ;;  %v1234_v34 = vpack.c.bf16 %v954_v28, %v950_v26  ;;  %v958_v38 = vld [vmem:[%s2153_s0 + $0x490] sm:$0xff]  ;;  %v969_v42 = vld [vmem:[%s2153_s0 + $0x4e8] sm:$0xff] }
  0x32   :  { %1147 = vmatpush1.bf16.msra.mxu0 %v1146_v23  ;;  %v1200_v23 = vpack.c.bf16 %v953_v18, %v949_v17  ;;  %v963_v32 = vld [vmem:[%s2153_s0 + $0x4b8] sm:$0xff]  ;;  %v962_v40 = vld [vmem:[%s2153_s0 + $0x4b0] sm:$0xff]  ;;  %v977_v55 = vld [vmem:[%s2153_s0 + $0x528] sm:$0xff] }
  0x33   :  { %1179 = vmatpush1.bf16.msra.mxu1 %v1178_v24  ;;  %1149 = vmatprep.subr.bf16.mxu0 %v1148_v25  ;;  %v948_v24 = vld [vmem:[%s2153_s0 + $0x440] sm:$0xff]  ;;  %v1236_v39 = vpack.c.bf16 %v963_v32, %v959_v31  ;;  %v967_v43 = vld [vmem:[%s2153_s0 + $0x4d8] sm:$0xff]  ;;  %v1238_v46 = vpack.c.bf16 %v962_v40, %v958_v38  ;;  %v966_v51 = vld [vmem:[%s2153_s0 + $0x4d0] sm:$0xff] }
  0x34   :  { %1181 = vmatprep.subr.bf16.mxu1 %v1180_v29  ;;  %v952_v25 = vld [vmem:[%s2153_s0 + $0x460] sm:$0xff]  ;;  %v957_v29 = vld [vmem:[%s2153_s0 + $0x488] sm:$0xff]  ;;  %v971_v44 = vld [vmem:[%s2153_s0 + $0x4f8] sm:$0xff] }
  0x35   :  { %v1202_v33 = vpack.c.bf16 %v952_v25, %v948_v24  ;;  %v1240_v52 = vpack.c.bf16 %v971_v44, %v967_v43  ;;  %v970_v53 = vld [vmem:[%s2153_s0 + $0x4f0] sm:$0xff]  ;;  %v975_v56 = vld [vmem:[%s2153_s0 + $0x518] sm:$0xff]  ;;  %v985_v4 = vld [vmem:[%s2153_s0 + $0x568] sm:$0xff] }
  0x36   :  { %1151 = vmatpush1.bf16.msra.mxu0 %v1150_v35  ;;  %v1204_v35 = vpack.c.bf16 %v961_v30, %v957_v29  ;;  %v979_v57 = vld [vmem:[%s2153_s0 + $0x538] sm:$0xff]  ;;  %v1242_v59 = vpack.c.bf16 %v970_v53, %v966_v51  ;;  %v974_v63 = vld [vmem:[%s2153_s0 + $0x510] sm:$0xff]  ;;  %v993_v16 = vld [vmem:[%s2153_s0 + $0x5a8] sm:$0xff] }
  0x37   :  { %1183 = vmatpush1.bf16.msra.mxu1 %v1182_v36  ;;  %1153 = vmatprep.subr.bf16.mxu0 %v1152_v37  ;;  %v956_v36 = vld [vmem:[%s2153_s0 + $0x480] sm:$0xff]  ;;  %v1244_v0 = vpack.c.bf16 %v979_v57, %v975_v56  ;;  %v978_v1 = vld [vmem:[%s2153_s0 + $0x530] sm:$0xff]  ;;  %v983_v5 = vld [vmem:[%s2153_s0 + $0x558] sm:$0xff] }
  0x38   :  { %1185 = vmatprep.subr.bf16.mxu1 %v1184_v41  ;;  %v960_v37 = vld [vmem:[%s2153_s0 + $0x4a0] sm:$0xff]  ;;  %v965_v41 = vld [vmem:[%s2153_s0 + $0x4c8] sm:$0xff]  ;;  %v987_v6 = vld [vmem:[%s2153_s0 + $0x578] sm:$0xff]  ;;  %v1246_v8 = vpack.c.bf16 %v978_v1, %v974_v63 }
  0x39   :  { %v1206_v45 = vpack.c.bf16 %v960_v37, %v956_v36  ;;  %v982_v12 = vld [vmem:[%s2153_s0 + $0x550] sm:$0xff]  ;;  %v1248_v13 = vpack.c.bf16 %v987_v6, %v983_v5  ;;  %v991_v17 = vld [vmem:[%s2153_s0 + $0x598] sm:$0xff]  ;;  %v988_v20 = vld [vmem:[%s2153_s0 + $0x580] sm:$0xff] }
  0x3a   :  { %1155 = vmatpush1.bf16.msra.mxu0 %v1154_v47  ;;  %v1208_v47 = vpack.c.bf16 %v969_v42, %v965_v41  ;;  %v986_v14 = vld [vmem:[%s2153_s0 + $0x570] sm:$0xff]  ;;  %v995_v18 = vld [vmem:[%s2153_s0 + $0x5b8] sm:$0xff]  ;;  %v854_v25 = vld [vmem:[%s2155_s2] sm:$0xff] }
  0x3b   :  { %1187 = vmatpush1.bf16.msra.mxu1 %v1186_v48  ;;  %1157 = vmatprep.subr.bf16.mxu0 %v1156_v50  ;;  %v964_v48 = vld [vmem:[%s2153_s0 + $0x4c0] sm:$0xff]  ;;  %v990_v24 = vld [vmem:[%s2153_s0 + $0x590] sm:$0xff]  ;;  %v1252_v26 = vpack.c.bf16 %v995_v18, %v991_v17  ;;  %v997_v28 = vld [vmem:[%s2153_s0 + $0x5c8] sm:$0xff] }
  0x3c   :  { %1189 = vmatprep.subr.bf16.mxu1 %v1188_v54  ;;  %v968_v50 = vld [vmem:[%s2153_s0 + $0x4e0] sm:$0xff]  ;;  %v973_v54 = vld [vmem:[%s2153_s0 + $0x508] sm:$0xff]  ;;  %857 = vperm.xlu0 %1326, %v854_v25   ;;  %v999_v30 = vld [vmem:[%s2153_s0 + $0x5d8] sm:$0xff] }
  0x3d   :  { %v1210_v58 = vpack.c.bf16 %v968_v50, %v964_v48  ;;  %v1001_v29 = vld [vmem:[%s2153_s0 + $0x5e8] sm:$0xff]  ;;  %v1003_v31 = vld [vmem:[%s2153_s0 + $0x5f8] sm:$0xff]  ;;  %v1000_v36 = vld [vmem:[%s2153_s0 + $0x5e0] sm:$0xff] }
  0x3e   :  { %1159 = vmatpush1.bf16.msra.mxu0 %v1158_v60  ;;  %v1212_v60 = vpack.c.bf16 %v977_v55, %v973_v54  ;;  %v998_v37 = vld [vmem:[%s2153_s0 + $0x5d0] sm:$0xff]  ;;  %v1256_v38 = vpack.c.bf16 %v1003_v31, %v999_v30  ;;  %v1005_v40 = vld [vmem:[%s2153_s0 + $0x608] sm:$0xff]  ;;  %v1007_v42 = vld [vmem:[%s2153_s0 + $0x618] sm:$0xff] }
  0x3f   :  { %1191 = vmatpush1.bf16.msra.mxu1 %v1190_v61  ;;  %1161 = vmatprep.subr.bf16.mxu0 %v1160_v62  ;;  %v972_v61 = vld [vmem:[%s2153_s0 + $0x500] sm:$0xff]  ;;  %v1009_v41 = vld [vmem:[%s2153_s0 + $0x628] sm:$0xff]  ;;  %v1011_v43 = vld [vmem:[%s2153_s0 + $0x638] sm:$0xff] }
  0x40   :  { %1193 = vmatprep.subr.bf16.mxu1 %v1192_v2  ;;  %v976_v62 = vld [vmem:[%s2153_s0 + $0x520] sm:$0xff]  ;;  %v981_v2 = vld [vmem:[%s2153_s0 + $0x548] sm:$0xff]  ;;  %v1006_v50 = vld [vmem:[%s2153_s0 + $0x610] sm:$0xff]  ;;  %v1292_v51 = vpack.c.bf16 %v1011_v43, %v1007_v42 }
  0x41   :  { %v1214_v7 = vpack.c.bf16 %v976_v62, %v972_v61  ;;  %v1008_v48 = vld [vmem:[%s2153_s0 + $0x620] sm:$0xff]  ;;  %v1013_v53 = vld [vmem:[%s2153_s0 + $0x648] sm:$0xff]  ;;  %v1015_v55 = vld [vmem:[%s2153_s0 + $0x658] sm:$0xff] }
  0x42   :  { %1163 = vmatpush1.bf16.msra.mxu0 %v1162_v9  ;;  %v1216_v9 = vpack.c.bf16 %v985_v4, %v981_v2  ;;  %v1017_v54 = vld [vmem:[%s2153_s0 + $0x668] sm:$0xff]  ;;  %v1019_v56 = vld [vmem:[%s2153_s0 + $0x678] sm:$0xff]  ;;  %v1016_v61 = vld [vmem:[%s2153_s0 + $0x660] sm:$0xff] }
  0x43   :  { %1195 = vmatpush1.bf16.msra.mxu1 %v1194_v10  ;;  %1197 = vmatprep.subr.bf16.mxu0 %v1196_v11  ;;  %v980_v10 = vld [vmem:[%s2153_s0 + $0x540] sm:$0xff]  ;;  %v1014_v62 = vld [vmem:[%s2153_s0 + $0x650] sm:$0xff]  ;;  %v1296_v63 = vpack.c.bf16 %v1019_v56, %v1015_v55  ;;  %v1021_v1 = vld [vmem:[%s2153_s0 + $0x688] sm:$0xff] }
  0x44   :  { %1229 = vmatprep.subr.bf16.mxu1 %v1228_v15  ;;  %v984_v11 = vld [vmem:[%s2153_s0 + $0x560] sm:$0xff]  ;;  %v989_v15 = vld [vmem:[%s2153_s0 + $0x588] sm:$0xff]  ;;  %v1023_v4 = vld [vmem:[%s2153_s0 + $0x698] sm:$0xff] }
  0x45   :  { %351 = vmatmul.mubr.f32.vlgmr.msra.gmra.mrb[2].mxu0 %v1582_v49  ;;  %v1218_v19 = vpack.c.bf16 %v984_v11, %v980_v10  ;;  %v1025_v2 = vld [vmem:[%s2153_s0 + $0x6a8] sm:$0xff]  ;;  %v1027_v5 = vld [vmem:[%s2153_s0 + $0x6b8] sm:$0xff]  ;;  %v1024_v10 = vld [vmem:[%s2153_s0 + $0x6a0] sm:$0xff] }
  0x46   :  { %422 = vmatmul.mubr.f32.vlgmr.msra.gmra.mrb[2].mxu1 %v1582_v49  ;;  %1199 = vmatpush1.bf16.msra.mxu0 %v1198_v21  ;;  %v1250_v21 = vpack.c.bf16 %v986_v14, %v982_v12  ;;  %v1022_v11 = vld [vmem:[%s2153_s0 + $0x690] sm:$0xff]  ;;  %v1300_v12 = vpack.c.bf16 %v1027_v5, %v1023_v4  ;;  %v1029_v14 = vld [vmem:[%s2153_s0 + $0x6c8] sm:$0xff]  ;;  %v1035_v17 = vld [vmem:[%s2153_s0 + $0x6f8] sm:$0xff] }
  0x47   :  { %1231 = vmatpush1.bf16.msra.mxu1 %v1230_v22  ;;  %1201 = vmatprep.subr.bf16.mxu0 %v1200_v23  ;;  %v1220_v22 = vpack.c.bf16 %v993_v16, %v989_v15  ;;  %v992_v23 = vld [vmem:[%s2153_s0 + $0x5a0] sm:$0xff]  ;;  %v1033_v15 = vld [vmem:[%s2153_s0 + $0x6e8] sm:$0xff]  ;;  %v1031_v16 = vld [vmem:[%s2153_s0 + $0x6d8] sm:$0xff] }
  0x48   :  { %1233 = vmatprep.subr.bf16.mxu1 %v1232_v27  ;;  %561 = vmatprep.mubr.f32.mxu0 %v1327_v3  ;;  %v994_v27 = vld [vmem:[%s2153_s0 + $0x5b0] sm:$0xff]  ;;  %v1222_v32 = vpack.c.bf16 %v992_v23, %v988_v20  ;;  %v1272_v20 = vpack.c.bf16 %v1033_v15, %v1029_v14  ;;  %v1037_v25 = vld [vmem:[%s2153_s0 + $0x708] sm:$0xff] }
  0x49   :  { %632 = vmatprep.mubr.f32.mxu1 %v1327_v3  ;;  %v1030_v23 = vld [vmem:[%s2153_s0 + $0x6d0] sm:$0xff] }
  0x4a   :  { %1203 = vmatpush1.bf16.msra.mxu0 %v1202_v33  ;;  %v1254_v33 = vpack.c.bf16 %v994_v27, %v990_v24  ;;  %v1034_v24 = vld [vmem:[%s2153_s0 + $0x6f0] sm:$0xff]  ;;  %v1039_v27 = vld [vmem:[%s2153_s0 + $0x718] sm:$0xff] }
  0x4b   :  { %1235 = vmatpush1.bf16.msra.mxu1 %v1234_v34  ;;  %1205 = vmatprep.subr.bf16.mxu0 %v1204_v35  ;;  %v1224_v34 = vpack.c.bf16 %v1001_v29, %v997_v28  ;;  %v996_v35 = vld [vmem:[%s2153_s0 + $0x5c0] sm:$0xff]  ;;  %v1043_v28 = vld [vmem:[%s2153_s0 + $0x738] sm:$0xff]  ;;  %v1306_v30 = vpack.c.bf16 %v1034_v24, %v1030_v23 }
  0x4c   :  { %1237 = vmatprep.subr.bf16.mxu1 %v1236_v39  ;;  %v1002_v39 = vld [vmem:[%s2153_s0 + $0x5f0] sm:$0xff]  ;;  %v1226_v44 = vpack.c.bf16 %v1000_v36, %v996_v35  ;;  %v1308_v35 = vpack.c.bf16 %v1043_v28, %v1039_v27 }
  0x4d   :  { %v1042_v36 = vld [vmem:[%s2153_s0 + $0x730] sm:$0xff] }
  0x4e   :  { %1207 = vmatpush1.bf16.msra.mxu0 %v1206_v45  ;;  %v1258_v45 = vpack.c.bf16 %v1002_v39, %v998_v37  ;;  %v1045_v37 = vld [vmem:[%s2153_s0 + $0x748] sm:$0xff]  ;;  %v1047_v39 = vld [vmem:[%s2153_s0 + $0x758] sm:$0xff] }
  0x4f   :  { %1239 = vmatpush1.bf16.msra.mxu1 %v1238_v46  ;;  %1209 = vmatprep.subr.bf16.mxu0 %v1208_v47  ;;  %v1260_v46 = vpack.c.bf16 %v1009_v41, %v1005_v40  ;;  %v1004_v47 = vld [vmem:[%s2153_s0 + $0x600] sm:$0xff]  ;;  %v1051_v40 = vld [vmem:[%s2153_s0 + $0x778] sm:$0xff] }
  0x50   :  { %1241 = vmatprep.subr.bf16.mxu1 %v1240_v52  ;;  %v1010_v52 = vld [vmem:[%s2153_s0 + $0x630] sm:$0xff]  ;;  %v1262_v57 = vpack.c.bf16 %v1008_v48, %v1004_v47  ;;  %v1312_v47 = vpack.c.bf16 %v1051_v40, %v1047_v39 }
  0x51   :  { %v1050_v48 = vld [vmem:[%s2153_s0 + $0x770] sm:$0xff] }
  0x52   :  { %1211 = vmatpush1.bf16.msra.mxu0 %v1210_v58  ;;  %v1294_v58 = vpack.c.bf16 %v1010_v52, %v1006_v50  ;;  %v1053_v50 = vld [vmem:[%s2153_s0 + $0x788] sm:$0xff]  ;;  %v1055_v52 = vld [vmem:[%s2153_s0 + $0x798] sm:$0xff] }
  0x53   :  { %1243 = vmatpush1.bf16.msra.mxu1 %v1242_v59  ;;  %1213 = vmatprep.subr.bf16.mxu0 %v1212_v60  ;;  %v1264_v59 = vpack.c.bf16 %v1017_v54, %v1013_v53  ;;  %v1012_v60 = vld [vmem:[%s2153_s0 + $0x640] sm:$0xff]  ;;  %v1059_v53 = vld [vmem:[%s2153_s0 + $0x7b8] sm:$0xff] }
  0x54   :  { %1245 = vmatprep.subr.bf16.mxu1 %v1244_v0  ;;  %v1018_v0 = vld [vmem:[%s2153_s0 + $0x670] sm:$0xff]  ;;  %v1266_v6 = vpack.c.bf16 %v1016_v61, %v1012_v60  ;;  %v1316_v60 = vpack.c.bf16 %v1059_v53, %v1055_v52 }
  0x55   :  { %v1058_v61 = vld [vmem:[%s2153_s0 + $0x7b0] sm:$0xff] }
  0x56   :  { %1215 = vmatpush1.bf16.msra.mxu0 %v1214_v7  ;;  %v1298_v7 = vpack.c.bf16 %v1018_v0, %v1014_v62  ;;  %v1061_v62 = vld [vmem:[%s2153_s0 + $0x7c8] sm:$0xff]  ;;  %v1063_v0 = vld [vmem:[%s2153_s0 + $0x7d8] sm:$0xff] }
  0x57   :  { %1247 = vmatpush1.bf16.msra.mxu1 %v1246_v8  ;;  %1217 = vmatprep.subr.bf16.mxu0 %v1216_v9  ;;  %v1268_v8 = vpack.c.bf16 %v1025_v2, %v1021_v1  ;;  %v1020_v9 = vld [vmem:[%s2153_s0 + $0x680] sm:$0xff]  ;;  %v1067_v1 = vld [vmem:[%s2153_s0 + $0x7f8] sm:$0xff] }
  0x58   :  { %1249 = vmatprep.subr.bf16.mxu1 %v1248_v13  ;;  %v1026_v13 = vld [vmem:[%s2153_s0 + $0x6b0] sm:$0xff]  ;;  %v1270_v18 = vpack.c.bf16 %v1024_v10, %v1020_v9 }
  0x59   :  { %v1062_v9 = vld [vmem:[%s2153_s0 + $0x7d0] sm:$0xff] }
  0x5a   :  { %1219 = vmatpush1.bf16.msra.mxu0 %v1218_v19  ;;  %v1302_v19 = vpack.c.bf16 %v1026_v13, %v1022_v11  ;;  %v1066_v10 = vld [vmem:[%s2153_s0 + $0x7f0] sm:$0xff] }
  0x5b   :  { %1251 = vmatpush1.bf16.msra.mxu1 %v1250_v21  ;;  %1221 = vmatprep.subr.bf16.mxu0 %v1220_v22  ;;  %v1028_v21 = vld [vmem:[%s2153_s0 + $0x6c0] sm:$0xff] }
  0x5c   :  { %1253 = vmatprep.subr.bf16.mxu1 %v1252_v26  ;;  %v1032_v22 = vld [vmem:[%s2153_s0 + $0x6e0] sm:$0xff]  ;;  %v1041_v26 = vld [vmem:[%s2153_s0 + $0x728] sm:$0xff] }
  0x5d   :  { %v1274_v29 = vpack.c.bf16 %v1032_v22, %v1028_v21  ;;  %v1276_v31 = vpack.c.bf16 %v1041_v26, %v1037_v25 }
  0x5e   :  { %1223 = vmatpush1.bf16.msra.mxu0 %v1222_v32  ;;  %v1036_v32 = vld [vmem:[%s2153_s0 + $0x700] sm:$0xff] }
  0x5f   :  { %1255 = vmatpush1.bf16.msra.mxu1 %v1254_v33  ;;  %1225 = vmatprep.subr.bf16.mxu0 %v1224_v34  ;;  %v1040_v33 = vld [vmem:[%s2153_s0 + $0x720] sm:$0xff]  ;;  %v1038_v34 = vld [vmem:[%s2153_s0 + $0x710] sm:$0xff] }
  0x60   :  { %1257 = vmatprep.subr.bf16.mxu1 %v1256_v38  ;;  %v1049_v38 = vld [vmem:[%s2153_s0 + $0x768] sm:$0xff]  ;;  %v1278_v41 = vpack.c.bf16 %v1040_v33, %v1036_v32  ;;  %v1310_v42 = vpack.c.bf16 %v1042_v36, %v1038_v34 }
  0x61   :  { %v1280_v43 = vpack.c.bf16 %v1049_v38, %v1045_v37 }
  0x62   :  { %1227 = vmatpush1.bf16.msra.mxu0 %v1226_v44  ;;  %v1044_v44 = vld [vmem:[%s2153_s0 + $0x740] sm:$0xff] }
  0x63   :  { %1259 = vmatpush1.bf16.msra.mxu1 %v1258_v45  ;;  %1261 = vmatprep.subr.bf16.mxu0 %v1260_v46  ;;  %v1048_v45 = vld [vmem:[%s2153_s0 + $0x760] sm:$0xff]  ;;  %v1046_v46 = vld [vmem:[%s2153_s0 + $0x750] sm:$0xff] }
  0x64   :  { %1293 = vmatprep.subr.bf16.mxu1 %v1292_v51  ;;  %v1057_v51 = vld [vmem:[%s2153_s0 + $0x7a8] sm:$0xff]  ;;  %v1282_v54 = vpack.c.bf16 %v1048_v45, %v1044_v44  ;;  %v1314_v55 = vpack.c.bf16 %v1050_v48, %v1046_v46 }
  0x65   :  { %562 = vmatmul.mubr.f32.vlgmr.msra.gmra.mrb[4].mxu0 %v1582_v49  ;;  %v1284_v56 = vpack.c.bf16 %v1057_v51, %v1053_v50 }
  0x66   :  { %633 = vmatmul.mubr.f32.vlgmr.msra.gmra.mrb[4].mxu1 %v1582_v49  ;;  %1263 = vmatpush1.bf16.msra.mxu0 %v1262_v57  ;;  %v1052_v57 = vld [vmem:[%s2153_s0 + $0x780] sm:$0xff] }
  0x67   :  { %1295 = vmatpush1.bf16.msra.mxu1 %v1294_v58  ;;  %1265 = vmatprep.subr.bf16.mxu0 %v1264_v59  ;;  %v1056_v58 = vld [vmem:[%s2153_s0 + $0x7a0] sm:$0xff]  ;;  %v1054_v59 = vld [vmem:[%s2153_s0 + $0x790] sm:$0xff] }
  0x68   :  { %1297 = vmatprep.subr.bf16.mxu1 %v1296_v63  ;;  %772 = vmatprep.mubr.f32.mxu0 %v1327_v3  ;;  %v1065_v63 = vld [vmem:[%s2153_s0 + $0x7e8] sm:$0xff]  ;;  %v1286_v2 = vpack.c.bf16 %v1056_v58, %v1052_v57  ;;  %v1318_v4 = vpack.c.bf16 %v1058_v61, %v1054_v59 }
  0x69   :  { %843 = vmatprep.mubr.f32.mxu1 %v1327_v3  ;;  %v1304_v3 = vpack.c.bf16 %v1035_v17, %v1031_v16  ;;  %v1288_v5 = vpack.c.bf16 %v1065_v63, %v1061_v62 }
  0x6a   :  { %1267 = vmatpush1.bf16.msra.mxu0 %v1266_v6  ;;  %v1060_v6 = vld [vmem:[%s2153_s0 + $0x7c0] sm:$0xff] }
  0x6b   :  { %1299 = vmatpush1.bf16.msra.mxu1 %v1298_v7  ;;  %1269 = vmatprep.subr.bf16.mxu0 %v1268_v8  ;;  %v1064_v7 = vld [vmem:[%s2153_s0 + $0x7e0] sm:$0xff]  ;;  %v1320_v8 = vpack.c.bf16 %v1067_v1, %v1063_v0 }
  0x6c   :  { %1301 = vmatprep.subr.bf16.mxu1 %v1300_v12  ;;  %v1290_v11 = vpack.c.bf16 %v1064_v7, %v1060_v6  ;;  %v1322_v12 = vpack.c.bf16 %v1066_v10, %v1062_v9 }
  0x6e   :  { %1271 = vmatpush1.bf16.msra.mxu0 %v1270_v18 }
  0x6f   :  { %1303 = vmatpush1.bf16.msra.mxu1 %v1302_v19  ;;  %1273 = vmatprep.subr.bf16.mxu0 %v1272_v20 }
  0x70   :  { %1305 = vmatprep.subr.bf16.mxu1 %v1304_v3 }
  0x72   :  { %1275 = vmatpush1.bf16.msra.mxu0 %v1274_v29 }
  0x73   :  { %1307 = vmatpush1.bf16.msra.mxu1 %v1306_v30  ;;  %1277 = vmatprep.subr.bf16.mxu0 %v1276_v31 }
  0x74   :  { %1309 = vmatprep.subr.bf16.mxu1 %v1308_v35 }
  0x76   :  { %1279 = vmatpush1.bf16.msra.mxu0 %v1278_v41 }
  0x77   :  { %1311 = vmatpush1.bf16.msra.mxu1 %v1310_v42  ;;  %1281 = vmatprep.subr.bf16.mxu0 %v1280_v43 }
  0x78   :  { %1313 = vmatprep.subr.bf16.mxu1 %v1312_v47 }
  0x7a   :  { %1283 = vmatpush1.bf16.msra.mxu0 %v1282_v54 }
  0x7b   :  { %1315 = vmatpush1.bf16.msra.mxu1 %v1314_v55  ;;  %1285 = vmatprep.subr.bf16.mxu0 %v1284_v56 }
  0x7c   :  { %1317 = vmatprep.subr.bf16.mxu1 %v1316_v60 }
  0x7e   :  { %1287 = vmatpush1.bf16.msra.mxu0 %v1286_v2 }
  0x7f   :  { %1319 = vmatpush1.bf16.msra.mxu1 %v1318_v4  ;;  %1289 = vmatprep.subr.bf16.mxu0 %v1288_v5 }
  0x80   :  { %1321 = vmatprep.subr.bf16.mxu1 %v1320_v8 }
  0x82   :  { %1291 = vmatpush1.bf16.msra.mxu0 %v1290_v11 }
  0x83   :  { %1323 = vmatpush1.bf16.msra.mxu1 %v1322_v12 }
  0x85   :  { %773 = vmatmul.mubr.f32.vlgmr.msra.gmra.mrb[6].mxu0 %v1582_v49 }
  0x86   :  { %844 = vmatmul.mubr.f32.vlgmr.msra.gmra.mrb[6].mxu1 %v1582_v49 }
  0xbb   :  { %v858_v32 = vpop.permute.xlu0 %857 }
  0xf8   :  { %v145_v13 = vpop.f32.mrb[0].mxu0 }
  0xf9   :  { %v216_v14 = vpop.f32.mrb[0].mxu1  ;;  %v147_v15 = vpop.f32.mrb[1].mxu0 }
  0xfa   :  { %v218_v16 = vpop.f32.mrb[1].mxu1 }
 0x118   :  { %v352_v17 = vpop.f32.mrb[2].mxu0 }
 0x119   :  { %v428_v18 = vmax.f32 %v145_v13, %v352_v17  ;;  %v423_v19 = vpop.f32.mrb[2].mxu1  ;;  %v354_v20 = vpop.f32.mrb[3].mxu0 }
 0x11a   :  { %v430_v21 = vmax.f32 %v216_v14, %v423_v19  ;;  %v429_v22 = vmax.f32 %v147_v15, %v354_v20  ;;  %v425_v23 = vpop.f32.mrb[3].mxu1 }
 0x11b   :  { %v431_v3 = vmax.f32 %v218_v16, %v425_v23 }
 0x138   :  { %v563_v24 = vpop.f32.mrb[4].mxu0 }
 0x139   :  { %v639_v25 = vmax.f32 %v428_v18, %v563_v24  ;;  %v634_v26 = vpop.f32.mrb[4].mxu1  ;;  %v565_v27 = vpop.f32.mrb[5].mxu0 }
 0x13a   :  { %v641_v28 = vmax.f32 %v430_v21, %v634_v26  ;;  %v640_v29 = vmax.f32 %v429_v22, %v565_v27  ;;  %v636_v30 = vpop.f32.mrb[5].mxu1 }
 0x13b   :  { %v642_v49 = vmax.f32 %v431_v3, %v636_v30 }
 0x158   :  { %v774_v31 = vpop.f32.mrb[6].mxu0 }
 0x159   :  { %v850_v33 = vmax.f32 %v639_v25, %v774_v31  ;;  %v845_v34 = vpop.f32.mrb[6].mxu1  ;;  %v776_v35 = vpop.f32.mrb[7].mxu0 }
 0x15a   :  { %v852_v36 = vmax.f32 %v641_v28, %v845_v34  ;;  %v851_v37 = vmax.f32 %v640_v29, %v776_v35  ;;  %v847_v38 = vpop.f32.mrb[7].mxu1 }
 0x15b   :  { %v853_v39 = vmax.f32 %v642_v49, %v847_v38  ;;  %v860_v40 = vadd.f32 %v858_v32, %v850_v33 }
 0x15c   :  { %v861_v41 = vadd.f32 %v858_v32, %v851_v37  ;;  %v862_v42 = vadd.f32 %v858_v32, %v852_v36 }
 0x15d   :  { %v863_v43 = vadd.f32 %v858_v32, %v853_v39  ;;  %v864_v44 = vmax.f32 %v860_v40, 0.0 }
 0x15e   :  { %v865_v45 = vmax.f32 %v861_v41, 0.0  ;;  %v866_v46 = vmax.f32 %v862_v42, 0.0 }
 0x15f   :  { %v867_v47 = vmax.f32 %v863_v43, 0.0  ;;  %868 = vst [vmem:[%s2156_s3] sm:$0xff] %v864_v44 }
 0x160   :  { %869 = vst [vmem:[%s2156_s3 + $0x8] sm:$0xff] %v865_v45  ;;  %870 = vst [vmem:[%s2156_s3 + $0x10] sm:$0xff] %v866_v46 }
 0x161   :  { %871 = vst [vmem:[%s2156_s3 + $0x18] sm:$0xff] %v867_v47 }

// kernel: net_forward.3
= control target key start
LH: loop header
LB: loop body
LE: loop exit
PB: predicated region body
PF: predicated region fallthrough
CT: control target
= control target key end

     0   :  { %vm17079_vm0 = vmmov 0   ;;  %vm669_vm1 = vcmask 130048   ;;  %s19956_s1 = inlined_call_operand.vmem [shape: f32[256,16], index: 1, kind: input, shape index: {}]   ;;  %s19957_s0 = inlined_call_operand.vmem [shape: f32[100,8,256], index: 0, kind: input, shape index: {}]   ;;  %s19958_s3 = inlined_call_operand.vmem [shape: f32[25,16,128], index: 3, kind: input, shape index: {}]   ;;  %s19959_s2 = inlined_call_operand.vmem [shape: f32[1,16], index: 2, kind: input, shape index: {}]   ;;  %s19960_s5 = inlined_call_operand.vmem [shape: f32[128,128], index: 5, kind: input, shape index: {}]   ;;  %s19961_s7 = inlined_call_operand.vmem [shape: f32[128,128], index: 7, kind: input, shape index: {}]   ;;  %s19962_s4 = inlined_call_operand.vmem [shape: f32[1,128], index: 4, kind: input, shape index: {}]   ;;  %s19963_s6 = inlined_call_operand.vmem [shape: f32[1,128], index: 6, kind: input, shape index: {}]   ;;  %s19964_s8 = inlined_call_operand.vmem [shape: f32[1,128], index: 8, kind: input, shape index: {}]   ;;  %s19965_s9 = inlined_call_operand.vmem [shape: f32[8,128], index: 9, kind: output, shape index: {}]  }
   0x1   :  { %v48_v0 = vld [vmem:[%s19956_s1 + $0x80] sm:$0xff]  ;;  %v49_v1 = vld [vmem:[%s19956_s1 + $0x88] sm:$0xff]  ;;  %v50_v5 = vld [vmem:[%s19956_s1 + $0x90] sm:$0xff] }
   0x2   :  { %v32_v2 = vld [vmem:[%s19956_s1] sm:$0xff]  ;;  %v17140_v3 = vpack.c.bf16 %v49_v1, %v48_v0  ;;  %v33_v4 = vld [vmem:[%s19956_s1 + $0x8] sm:$0xff]  ;;  %v51_v6 = vld [vmem:[%s19956_s1 + $0x98] sm:$0xff] }
   0x3   :  { %v17151_v7 = vpack.c.bf16 %v33_v4, %v32_v2  ;;  %v17153_v8 = vpack.c.bf16 %v51_v6, %v50_v5  ;;  %v34_v9 = vld [vmem:[%s19956_s1 + $0x10] sm:$0xff]  ;;  %v35_v10 = vld [vmem:[%s19956_s1 + $0x18] sm:$0xff]  ;;  %v52_v11 = vld [vmem:[%s19956_s1 + $0xa0] sm:$0xff]  ;;  %v17078_v4 = vmov 0.0|0.0   ;;  %v17080_v5 = vmov 0.0  }
   0x4   :  { %13749 = vmatprep.subr.bf16.mxu0 %v17140_v3  ;;  %13781 = vmatprep.subr.bf16.mxu1 %v17140_v3  ;;  %v53_v12 = vld [vmem:[%s19956_s1 + $0xa8] sm:$0xff]  ;;  %v17171_v13 = vpack.c.bf16 %v35_v10, %v34_v9  ;;  %v36_v15 = vld [vmem:[%s19956_s1 + $0x20] sm:$0xff]  ;;  %v54_v17 = vld [vmem:[%s19956_s1 + $0xb0] sm:$0xff] }
   0x5   :  { %13751 = vmatpush3.bf16.msra.mxu0 %v17151_v7  ;;  %13783 = vmatpush3.bf16.msra.mxu1 %v17151_v7  ;;  %v17175_v14 = vpack.c.bf16 %v53_v12, %v52_v11  ;;  %v37_v16 = vld [vmem:[%s19956_s1 + $0x28] sm:$0xff]  ;;  %v55_v18 = vld [vmem:[%s19956_s1 + $0xb8] sm:$0xff]  ;;  %v38_v21 = vld [vmem:[%s19956_s1 + $0x30] sm:$0xff] }
   0x6   :  { %13753 = vmatprep.subr.bf16.mxu0 %v17153_v8  ;;  %13785 = vmatprep.subr.bf16.mxu1 %v17153_v8  ;;  %v17191_v19 = vpack.c.bf16 %v37_v16, %v36_v15  ;;  %v17195_v20 = vpack.c.bf16 %v55_v18, %v54_v17  ;;  %v39_v22 = vld [vmem:[%s19956_s1 + $0x38] sm:$0xff]  ;;  %v56_v23 = vld [vmem:[%s19956_s1 + $0xc0] sm:$0xff]  ;;  %v57_v24 = vld [vmem:[%s19956_s1 + $0xc8] sm:$0xff] }
   0x7   :  { %v66_v25 = vld [vmem:[%s19957_s0 + $0x8] sm:$0xff]  ;;  %v9620_v26 = vld [vmem:[%s19957_s0 + $0x198] sm:$0xff]  ;;  %v17217_v27 = vpack.c.bf16 %v39_v22, %v38_v21  ;;  %v17221_v28 = vpack.c.bf16 %v57_v24, %v56_v23  ;;  %v40_v29 = vld [vmem:[%s19956_s1 + $0x40] sm:$0xff] }
   0x8   :  { %131 = vmatprep.mubr.f32.mxu0 %v66_v25  ;;  %v41_v30 = vld [vmem:[%s19956_s1 + $0x48] sm:$0xff]  ;;  %v58_v31 = vld [vmem:[%s19956_s1 + $0xd0] sm:$0xff]  ;;  %v59_v32 = vld [vmem:[%s19956_s1 + $0xd8] sm:$0xff]  ;;  %204 = vmatprep.mubr.f32.mxu1 %v9620_v26 }
   0x9   :  { %13755 = vmatpush3.bf16.msra.mxu0 %v17171_v13  ;;  %13787 = vmatpush3.bf16.msra.mxu1 %v17171_v13  ;;  %v17237_v33 = vpack.c.bf16 %v41_v30, %v40_v29  ;;  %v17241_v34 = vpack.c.bf16 %v59_v32, %v58_v31  ;;  %v42_v35 = vld [vmem:[%s19956_s1 + $0x50] sm:$0xff]  ;;  %v43_v36 = vld [vmem:[%s19956_s1 + $0x58] sm:$0xff]  ;;  %v60_v37 = vld [vmem:[%s19956_s1 + $0xe0] sm:$0xff] }
   0xa   :  { %13757 = vmatprep.subr.bf16.mxu0 %v17175_v14  ;;  %13789 = vmatprep.subr.bf16.mxu1 %v17175_v14  ;;  %v61_v38 = vld [vmem:[%s19956_s1 + $0xe8] sm:$0xff]  ;;  %v17257_v39 = vpack.c.bf16 %v43_v36, %v42_v35  ;;  %v44_v41 = vld [vmem:[%s19956_s1 + $0x60] sm:$0xff]  ;;  %v62_v43 = vld [vmem:[%s19956_s1 + $0xf0] sm:$0xff] }
   0xb   :  { %v17261_v40 = vpack.c.bf16 %v61_v38, %v60_v37  ;;  %v45_v42 = vld [vmem:[%s19956_s1 + $0x68] sm:$0xff]  ;;  %v63_v44 = vld [vmem:[%s19956_s1 + $0xf8] sm:$0xff]  ;;  %v46_v47 = vld [vmem:[%s19956_s1 + $0x70] sm:$0xff] }
   0xc   :  { %v17277_v45 = vpack.c.bf16 %v45_v42, %v44_v41  ;;  %v17281_v46 = vpack.c.bf16 %v63_v44, %v62_v43  ;;  %v47_v48 = vld [vmem:[%s19956_s1 + $0x78] sm:$0xff]  ;;  %v65_v50 = vld [vmem:[%s19957_s0] sm:$0xff]  ;;  %v9619_v51 = vld [vmem:[%s19957_s0 + $0x190] sm:$0xff] }
   0xd   :  { %13759 = vmatpush3.bf16.msra.mxu0 %v17191_v19  ;;  %13791 = vmatpush3.bf16.msra.mxu1 %v17191_v19  ;;  %v17291_v49 = vpack.c.bf16 %v47_v48, %v46_v47  ;;  %v9622_v52 = vld [vmem:[%s19957_s0 + $0x328] sm:$0xff]  ;;  %v9624_v53 = vld [vmem:[%s19957_s0 + $0x4b8] sm:$0xff]  ;;  %v9621_v54 = vld [vmem:[%s19957_s0 + $0x320] sm:$0xff] }
   0xe   :  { %13761 = vmatprep.subr.bf16.mxu0 %v17195_v20  ;;  %13793 = vmatprep.subr.bf16.mxu1 %v17195_v20  ;;  %v9623_v55 = vld [vmem:[%s19957_s0 + $0x4b0] sm:$0xff]  ;;  %v9627_v56 = vld [vmem:[%s19957_s0 + $0x18] sm:$0xff]  ;;  %v9629_v57 = vld [vmem:[%s19957_s0 + $0x1a8] sm:$0xff] }
   0xf   :  { %v9626_v58 = vld [vmem:[%s19957_s0 + $0x10] sm:$0xff]  ;;  %v9628_v59 = vld [vmem:[%s19957_s0 + $0x1a0] sm:$0xff]  ;;  %v9631_v60 = vld [vmem:[%s19957_s0 + $0x338] sm:$0xff] }
  0x10   :  { %v9633_v61 = vld [vmem:[%s19957_s0 + $0x4c8] sm:$0xff]  ;;  %v9630_v62 = vld [vmem:[%s19957_s0 + $0x330] sm:$0xff]  ;;  %v9632_v63 = vld [vmem:[%s19957_s0 + $0x4c0] sm:$0xff] }
  0x11   :  { %13763 = vmatpush3.bf16.msra.mxu0 %v17217_v27  ;;  %13795 = vmatpush3.bf16.msra.mxu1 %v17217_v27  ;;  %v367_v0 = vld [vmem:[%s19958_s3] sm:$0xff]  ;;  %v368_v1 = vld [vmem:[%s19958_s3 + $0x8] sm:$0xff]  ;;  %v9634_v6 = vld [vmem:[%s19958_s3 + $0x10] sm:$0xff] }
  0x12   :  { %13765 = vmatprep.subr.bf16.mxu0 %v17221_v28  ;;  %13797 = vmatprep.subr.bf16.mxu1 %v17221_v28  ;;  %v14008_v2 = vpack.c.bf16 %v368_v1, %v367_v0  ;;  %v9635_v9 = vld [vmem:[%s19958_s3 + $0x18] sm:$0xff]  ;;  %v17458_v31 = vld [vmem:[%s19959_s2] ss:$0 sm:$0xff]  ;;  %v9643_v1 = vld [vmem:[%s19957_s0 + $0x348] sm:$0xff] }
  0x13   :  { %v14005_v10 = vpack.c.bf16 %v9635_v9, %v9634_v6  ;;  %v9641_v37 = vld [vmem:[%s19957_s0 + $0x1b8] sm:$0xff]  ;;  %v9638_v0 = vld [vmem:[%s19957_s0 + $0x20] sm:$0xff] }
  0x15   :  { %13767 = vmatpush3.bf16.msra.mxu0 %v17237_v33  ;;  %13799 = vmatpush3.bf16.msra.mxu1 %v17237_v33 }
  0x16   :  { %13769 = vmatprep.subr.bf16.mxu0 %v17241_v34  ;;  %13801 = vmatprep.subr.bf16.mxu1 %v17241_v34 }
  0x19   :  { %13771 = vmatpush3.bf16.msra.mxu0 %v17257_v39  ;;  %13803 = vmatpush3.bf16.msra.mxu1 %v17257_v39 }
  0x1a   :  { %13773 = vmatprep.subr.bf16.mxu0 %v17261_v40  ;;  %13805 = vmatprep.subr.bf16.mxu1 %v17261_v40 }
  0x1d   :  { %13775 = vmatpush3.bf16.msra.mxu0 %v17277_v45  ;;  %13807 = vmatpush3.bf16.msra.mxu1 %v17277_v45 }
  0x1e   :  { %13777 = vmatprep.subr.bf16.mxu0 %v17281_v46  ;;  %13809 = vmatprep.subr.bf16.mxu1 %v17281_v46 }
  0x21   :  { %13779 = vmatpush3.bf16.msra.mxu0 %v17291_v49  ;;  %13811 = vmatpush3.bf16.msra.mxu1 %v17291_v49 }
  0x22   :  { %13813 = vmatprep.subr.bf16.mxu0 %v17140_v3  ;;  %13845 = vmatprep.subr.bf16.mxu1 %v17140_v3 }
  0x24   :  { %132 = vmatmul.mubr.f32.vlgmr.msra.gmra.mrb[0].mxu0 %v65_v50  ;;  %205 = vmatmul.mubr.f32.vlgmr.msra.gmra.mrb[0].mxu1 %v9619_v51  ;;  %v9640_v50 = vld [vmem:[%s19957_s0 + $0x1b0] sm:$0xff]  ;;  %v9645_v51 = vld [vmem:[%s19957_s0 + $0x4d8] sm:$0xff] }
  0x25   :  { %13815 = vmatpush3.bf16.msra.mxu0 %v17151_v7  ;;  %13847 = vmatpush3.bf16.msra.mxu1 %v17151_v7 }
  0x26   :  { %13817 = vmatprep.subr.bf16.mxu0 %v17153_v8  ;;  %13849 = vmatprep.subr.bf16.mxu1 %v17153_v8 }
  0x27   :  { %278 = vmatprep.mubr.f32.mxu0 %v9622_v52  ;;  %352 = vmatprep.mubr.f32.mxu1 %v9624_v53 }
  0x29   :  { %13819 = vmatpush3.bf16.msra.mxu0 %v17171_v13  ;;  %13851 = vmatpush3.bf16.msra.mxu1 %v17171_v13 }
  0x2a   :  { %13821 = vmatprep.subr.bf16.mxu0 %v17175_v14  ;;  %13853 = vmatprep.subr.bf16.mxu1 %v17175_v14 }
  0x2d   :  { %13823 = vmatpush3.bf16.msra.mxu0 %v17191_v19  ;;  %13855 = vmatpush3.bf16.msra.mxu1 %v17191_v19 }
  0x2e   :  { %13825 = vmatprep.subr.bf16.mxu0 %v17195_v20  ;;  %13857 = vmatprep.subr.bf16.mxu1 %v17195_v20 }
  0x31   :  { %13827 = vmatpush3.bf16.msra.mxu0 %v17217_v27  ;;  %13859 = vmatpush3.bf16.msra.mxu1 %v17217_v27 }
  0x32   :  { %13829 = vmatprep.subr.bf16.mxu0 %v17221_v28  ;;  %13861 = vmatprep.subr.bf16.mxu1 %v17221_v28 }
  0x35   :  { %13831 = vmatpush3.bf16.msra.mxu0 %v17237_v33  ;;  %13863 = vmatpush3.bf16.msra.mxu1 %v17237_v33 }
  0x36   :  { %13833 = vmatprep.subr.bf16.mxu0 %v17241_v34  ;;  %13865 = vmatprep.subr.bf16.mxu1 %v17241_v34 }
  0x39   :  { %13835 = vmatpush3.bf16.msra.mxu0 %v17257_v39  ;;  %13867 = vmatpush3.bf16.msra.mxu1 %v17257_v39 }
  0x3a   :  { %13837 = vmatprep.subr.bf16.mxu0 %v17261_v40  ;;  %13869 = vmatprep.subr.bf16.mxu1 %v17261_v40 }
  0x3d   :  { %13839 = vmatpush3.bf16.msra.mxu0 %v17277_v45  ;;  %13871 = vmatpush3.bf16.msra.mxu1 %v17277_v45 }
  0x3e   :  { %13841 = vmatprep.subr.bf16.mxu0 %v17281_v46  ;;  %13873 = vmatprep.subr.bf16.mxu1 %v17281_v46 }
  0x41   :  { %13843 = vmatpush3.bf16.msra.mxu0 %v17291_v49  ;;  %13875 = vmatpush3.bf16.msra.mxu1 %v17291_v49 }
  0x42   :  { %13877 = vmatprep.subr.bf16.mxu0 %v17140_v3  ;;  %13909 = vmatprep.subr.bf16.mxu1 %v17140_v3 }
  0x44   :  { %279 = vmatmul.mubr.f32.vlgmr.msra.gmra.mrb[2].mxu0 %v9621_v54  ;;  %353 = vmatmul.mubr.f32.vlgmr.msra.gmra.mrb[2].mxu1 %v9623_v55 }
  0x45   :  { %13879 = vmatpush3.bf16.msra.mxu0 %v17151_v7  ;;  %13911 = vmatpush3.bf16.msra.mxu1 %v17151_v7 }
  0x46   :  { %13881 = vmatprep.subr.bf16.mxu0 %v17153_v8  ;;  %13913 = vmatprep.subr.bf16.mxu1 %v17153_v8 }
  0x47   :  { %436 = vmatprep.mubr.f32.mxu0 %v9627_v56  ;;  %509 = vmatprep.mubr.f32.mxu1 %v9629_v57 }
  0x49   :  { %13883 = vmatpush3.bf16.msra.mxu0 %v17171_v13  ;;  %13915 = vmatpush3.bf16.msra.mxu1 %v17171_v13 }
  0x4a   :  { %13885 = vmatprep.subr.bf16.mxu0 %v17175_v14  ;;  %13917 = vmatprep.subr.bf16.mxu1 %v17175_v14 }
  0x4d   :  { %13887 = vmatpush3.bf16.msra.mxu0 %v17191_v19  ;;  %13919 = vmatpush3.bf16.msra.mxu1 %v17191_v19 }
  0x4e   :  { %13889 = vmatprep.subr.bf16.mxu0 %v17195_v20  ;;  %13921 = vmatprep.subr.bf16.mxu1 %v17195_v20 }
  0x51   :  { %13891 = vmatpush3.bf16.msra.mxu0 %v17217_v27  ;;  %13923 = vmatpush3.bf16.msra.mxu1 %v17217_v27 }
  0x52   :  { %13893 = vmatprep.subr.bf16.mxu0 %v17221_v28  ;;  %13925 = vmatprep.subr.bf16.mxu1 %v17221_v28 }
  0x55   :  { %13895 = vmatpush3.bf16.msra.mxu0 %v17237_v33  ;;  %13927 = vmatpush3.bf16.msra.mxu1 %v17237_v33 }
  0x56   :  { %13897 = vmatprep.subr.bf16.mxu0 %v17241_v34  ;;  %13929 = vmatprep.subr.bf16.mxu1 %v17241_v34 }
  0x59   :  { %13899 = vmatpush3.bf16.msra.mxu0 %v17257_v39  ;;  %13931 = vmatpush3.bf16.msra.mxu1 %v17257_v39 }
  0x5a   :  { %13901 = vmatprep.subr.bf16.mxu0 %v17261_v40  ;;  %13933 = vmatprep.subr.bf16.mxu1 %v17261_v40 }
  0x5d   :  { %13903 = vmatpush3.bf16.msra.mxu0 %v17277_v45  ;;  %13935 = vmatpush3.bf16.msra.mxu1 %v17277_v45 }
  0x5e   :  { %13905 = vmatprep.subr.bf16.mxu0 %v17281_v46  ;;  %13937 = vmatprep.subr.bf16.mxu1 %v17281_v46 }
  0x61   :  { %13907 = vmatpush3.bf16.msra.mxu0 %v17291_v49  ;;  %13939 = vmatpush3.bf16.msra.mxu1 %v17291_v49 }
  0x62   :  { %13941 = vmatprep.subr.bf16.mxu0 %v17140_v3  ;;  %13973 = vmatprep.subr.bf16.mxu1 %v17140_v3 }
  0x64   :  { %437 = vmatmul.mubr.f32.vlgmr.msra.gmra.mrb[4].mxu0 %v9626_v58  ;;  %510 = vmatmul.mubr.f32.vlgmr.msra.gmra.mrb[4].mxu1 %v9628_v59 }
  0x65   :  { %13943 = vmatpush3.bf16.msra.mxu0 %v17151_v7  ;;  %13975 = vmatpush3.bf16.msra.mxu1 %v17151_v7 }
  0x66   :  { %13945 = vmatprep.subr.bf16.mxu0 %v17153_v8  ;;  %13977 = vmatprep.subr.bf16.mxu1 %v17153_v8 }
  0x67   :  { %583 = vmatprep.mubr.f32.mxu0 %v9631_v60  ;;  %657 = vmatprep.mubr.f32.mxu1 %v9633_v61  ;;  %v9644_v61 = vld [vmem:[%s19957_s0 + $0x4d0] sm:$0xff] }
  0x69   :  { %13947 = vmatpush3.bf16.msra.mxu0 %v17171_v13  ;;  %13979 = vmatpush3.bf16.msra.mxu1 %v17171_v13 }
  0x6a   :  { %13949 = vmatprep.subr.bf16.mxu0 %v17175_v14  ;;  %13981 = vmatprep.subr.bf16.mxu1 %v17175_v14 }
  0x6d   :  { %13951 = vmatpush3.bf16.msra.mxu0 %v17191_v19  ;;  %13983 = vmatpush3.bf16.msra.mxu1 %v17191_v19 }
  0x6e   :  { %13953 = vmatprep.subr.bf16.mxu0 %v17195_v20  ;;  %13985 = vmatprep.subr.bf16.mxu1 %v17195_v20 }
  0x71   :  { %13955 = vmatpush3.bf16.msra.mxu0 %v17217_v27  ;;  %13987 = vmatpush3.bf16.msra.mxu1 %v17217_v27 }
  0x72   :  { %13957 = vmatprep.subr.bf16.mxu0 %v17221_v28  ;;  %13989 = vmatprep.subr.bf16.mxu1 %v17221_v28 }
  0x75   :  { %13959 = vmatpush3.bf16.msra.mxu0 %v17237_v33  ;;  %13991 = vmatpush3.bf16.msra.mxu1 %v17237_v33 }
  0x76   :  { %13961 = vmatprep.subr.bf16.mxu0 %v17241_v34  ;;  %13993 = vmatprep.subr.bf16.mxu1 %v17241_v34 }
  0x79   :  { %13963 = vmatpush3.bf16.msra.mxu0 %v17257_v39  ;;  %13995 = vmatpush3.bf16.msra.mxu1 %v17257_v39 }
  0x7a   :  { %13965 = vmatprep.subr.bf16.mxu0 %v17261_v40  ;;  %13997 = vmatprep.subr.bf16.mxu1 %v17261_v40 }
  0x7d   :  { %13967 = vmatpush3.bf16.msra.mxu0 %v17277_v45  ;;  %13999 = vmatpush3.bf16.msra.mxu1 %v17277_v45 }
  0x7e   :  { %13969 = vmatprep.subr.bf16.mxu0 %v17281_v46  ;;  %14001 = vmatprep.subr.bf16.mxu1 %v17281_v46 }
  0x81   :  { %13971 = vmatpush3.bf16.msra.mxu0 %v17291_v49  ;;  %14003 = vmatpush3.bf16.msra.mxu1 %v17291_v49 }
  0x82   :  { %14007 = vmatprep.subr.bf16.mxu1 %v17078_v4  ;;  %14004 = vmatprep.subr.bf16.mxu0 %v17078_v4 }
  0x84   :  { %584 = vmatmul.mubr.f32.vlgmr.msra.gmra.mrb[6].mxu0 %v9630_v62  ;;  %658 = vmatmul.mubr.f32.vlgmr.msra.gmra.mrb[6].mxu1 %v9632_v63  ;;  %v9639_v63 = vld [vmem:[%s19957_s0 + $0x28] sm:$0xff] }
  0x85   :  { %14009 = vmatpush3.bf16.msra.mxu1 %v14008_v2  ;;  %13514 = vmatprep.mubr.msk.f32.mxu1 %vm17079_vm0, %v17080_v5  ;;  %v9642_v2 = vld [vmem:[%s19957_s0 + $0x340] sm:$0xff] }
  0x86   :  { %14043 = vmatprep.subr.bf16.mxu1 %v17140_v3  ;;  %13507 = vmatprep.mubr.msk.f32.mxu0 %vm17079_vm0, %v17080_v5 }
  0x87   :  { %14006 = vmatpush3.bf16.msra.mxu0 %v14005_v10  ;;  %v9646_v10 = vld [vmem:[%s19958_s3 + $0x20] sm:$0xff] }
  0x88   :  { %14011 = vmatprep.subr.bf16.mxu0 %v17140_v3 }
  0xf7   :  { %v9926_v11 = vpop.f32.mrb[0].mxu0  ;;  %v9961_v12 = vpop.f32.mrb[0].mxu1 }
  0xf8   :  { %v9927_v15 = vpop.f32.mrb[1].mxu0  ;;  %v9962_v16 = vpop.f32.mrb[1].mxu1 }
  0xf9   :  { %v9928_v17 = vadd.f32 %v9927_v15, %v9926_v11  ;;  %v9963_v18 = vadd.f32 %v9962_v16, %v9961_v12  ;;  %v9647_v11 = vld [vmem:[%s19958_s3 + $0x28] sm:$0xff]  ;;  %v9650_v15 = vld [vmem:[%s19957_s0 + $0x38] sm:$0xff]  ;;  %v9649_v16 = vld [vmem:[%s19957_s0 + $0x30] sm:$0xff] }
  0xfa   :  { %v14139_v12 = vpack.c.bf16 %v9647_v11, %v9646_v10 }
  0xfb   :  { %v210_v21 = vmax.f32 %v9928_v17, %v9963_v18 }
 0x117   :  { %v9996_v22 = vpop.f32.mrb[2].mxu0  ;;  %v10031_v23 = vpop.f32.mrb[2].mxu1 }
 0x118   :  { %v9997_v24 = vpop.f32.mrb[3].mxu0  ;;  %v10032_v25 = vpop.f32.mrb[3].mxu1 }
 0x119   :  { %v9998_v26 = vadd.f32 %v9997_v24, %v9996_v22  ;;  %v10033_v29 = vadd.f32 %v10032_v25, %v10031_v23  ;;  %v9654_v22 = vld [vmem:[%s19957_s0 + $0x358] sm:$0xff]  ;;  %v9653_v23 = vld [vmem:[%s19957_s0 + $0x350] sm:$0xff] }
 0x11b   :  { %v284_v30 = vmax.f32 %v210_v21, %v9998_v26 }
 0x11d   :  { %v358_v32 = vmax.f32 %v284_v30, %v10033_v29 }
 0x11f   :  { %v365_v35 = vadd.f32 %v17458_v31, %v358_v32 }
 0x121   :  { %v366_v36 = vmax.f32 %v365_v35, 0.0 }
 0x123   :  { %13515 = vmatmul.mubr.msk.f32.vlgmr.msra.gmra.mrb[8].mxu1 %vm669_vm1, %v366_v36 }
 0x124   :  { %14045 = vmatpush3.bf16.msra.mxu1 %v17151_v7  ;;  %956 = vmatprep.mubr.f32.mxu1 %v9641_v37 }
 0x125   :  { %14047 = vmatprep.subr.bf16.mxu1 %v17153_v8 }
 0x128   :  { %14049 = vmatpush3.bf16.msra.mxu1 %v17171_v13 }
 0x129   :  { %14051 = vmatprep.subr.bf16.mxu1 %v17175_v14 }
 0x12c   :  { %14053 = vmatpush3.bf16.msra.mxu1 %v17191_v19 }
 0x12d   :  { %14055 = vmatprep.subr.bf16.mxu1 %v17195_v20 }
 0x130   :  { %14057 = vmatpush3.bf16.msra.mxu1 %v17217_v27 }
 0x131   :  { %14059 = vmatprep.subr.bf16.mxu1 %v17221_v28 }
 0x134   :  { %14061 = vmatpush3.bf16.msra.mxu1 %v17237_v33 }
 0x135   :  { %14063 = vmatprep.subr.bf16.mxu1 %v17241_v34 }
 0x137   :  { %v10066_v38 = vpop.f32.mrb[4].mxu0  ;;  %v10101_v41 = vpop.f32.mrb[4].mxu1 }
 0x138   :  { %v10067_v42 = vpop.f32.mrb[5].mxu0  ;;  %v10102_v43 = vpop.f32.mrb[5].mxu1  ;;  %14065 = vmatpush3.bf16.msra.mxu1 %v17257_v39 }
 0x139   :  { %v10068_v44 = vadd.f32 %v10067_v42, %v10066_v38  ;;  %v10103_v47 = vadd.f32 %v10102_v43, %v10101_v41  ;;  %14067 = vmatprep.subr.bf16.mxu1 %v17261_v40 }
 0x13b   :  { %v515_v48 = vmax.f32 %v10068_v44, %v10103_v47 }
 0x13c   :  { %14069 = vmatpush3.bf16.msra.mxu1 %v17277_v45 }
 0x13d   :  { %14071 = vmatprep.subr.bf16.mxu1 %v17281_v46 }
 0x140   :  { %14073 = vmatpush3.bf16.msra.mxu1 %v17291_v49 }
 0x141   :  { %14107 = vmatprep.subr.bf16.mxu1 %v17140_v3 }
 0x143   :  { %957 = vmatmul.mubr.f32.vlgmr.msra.gmra.mrb[10].mxu1 %v9640_v50 }
 0x144   :  { %14109 = vmatpush3.bf16.msra.mxu1 %v17151_v7  ;;  %1104 = vmatprep.mubr.f32.mxu1 %v9645_v51  ;;  %v9652_v51 = vld [vmem:[%s19957_s0 + $0x1c8] sm:$0xff] }
 0x145   :  { %14111 = vmatprep.subr.bf16.mxu1 %v17153_v8 }
 0x148   :  { %14113 = vmatpush3.bf16.msra.mxu1 %v17171_v13 }
 0x149   :  { %14115 = vmatprep.subr.bf16.mxu1 %v17175_v14 }
 0x14c   :  { %14117 = vmatpush3.bf16.msra.mxu1 %v17191_v19 }
 0x14d   :  { %14119 = vmatprep.subr.bf16.mxu1 %v17195_v20 }
 0x150   :  { %14121 = vmatpush3.bf16.msra.mxu1 %v17217_v27 }
 0x151   :  { %14123 = vmatprep.subr.bf16.mxu1 %v17221_v28 }
 0x154   :  { %14125 = vmatpush3.bf16.msra.mxu1 %v17237_v33 }
 0x155   :  { %14127 = vmatprep.subr.bf16.mxu1 %v17241_v34 }
 0x157   :  { %v10136_v52 = vpop.f32.mrb[6].mxu0  ;;  %v10171_v53 = vpop.f32.mrb[6].mxu1 }
 0x158   :  { %v10137_v54 = vpop.f32.mrb[7].mxu0  ;;  %v10172_v55 = vpop.f32.mrb[7].mxu1  ;;  %14129 = vmatpush3.bf16.msra.mxu1 %v17257_v39 }
 0x159   :  { %v10138_v56 = vadd.f32 %v10137_v54, %v10136_v52  ;;  %v10173_v57 = vadd.f32 %v10172_v55, %v10171_v53  ;;  %14131 = vmatprep.subr.bf16.mxu1 %v17261_v40  ;;  %v9651_v52 = vld [vmem:[%s19957_s0 + $0x1c0] sm:$0xff]  ;;  %v9656_v53 = vld [vmem:[%s19957_s0 + $0x4e8] sm:$0xff] }
 0x15a   :  { %v9655_v54 = vld [vmem:[%s19957_s0 + $0x4e0] sm:$0xff] }
 0x15b   :  { %v589_v58 = vmax.f32 %v515_v48, %v10138_v56 }
 0x15c   :  { %14133 = vmatpush3.bf16.msra.mxu1 %v17277_v45 }
 0x15d   :  { %v663_v59 = vmax.f32 %v589_v58, %v10173_v57  ;;  %14135 = vmatprep.subr.bf16.mxu1 %v17281_v46 }
 0x15f   :  { %v664_v60 = vadd.f32 %v17458_v31, %v663_v59 }
 0x160   :  { %14137 = vmatpush3.bf16.msra.mxu1 %v17291_v49 }
 0x161   :  { %v665_v62 = vmax.f32 %v664_v60, 0.0  ;;  %14142 = vmatprep.subr.bf16.mxu1 %v17140_v3 }
 0x163   :  { %13508 = vmatmul.mubr.msk.f32.vlgmr.msra.gmra.mrb[8].mxu0 %vm669_vm1, %v665_v62  ;;  %1105 = vmatmul.mubr.f32.vlgmr.msra.gmra.mrb[12].mxu1 %v9644_v61  ;;  %v9657_v61 = vld [vmem:[%s19958_s3 + $0x30] sm:$0xff]  ;;  %v9658_v62 = vld [vmem:[%s19958_s3 + $0x38] sm:$0xff] }
 0x164   :  { %14013 = vmatpush3.bf16.msra.mxu0 %v17151_v7  ;;  %883 = vmatprep.mubr.f32.mxu0 %v9639_v63  ;;  %v14270_v63 = vpack.c.bf16 %v9658_v62, %v9657_v61 }
 0x165   :  { %14015 = vmatprep.subr.bf16.mxu0 %v17153_v8  ;;  %14144 = vmatpush3.bf16.msra.mxu1 %v17151_v7 }
 0x166   :  { %14146 = vmatprep.subr.bf16.mxu1 %v17153_v8  ;;  %1257 = vmatprep.mubr.f32.mxu1 %v9650_v15 }
 0x168   :  { %14017 = vmatpush3.bf16.msra.mxu0 %v17171_v13 }
 0x169   :  { %14019 = vmatprep.subr.bf16.mxu0 %v17175_v14  ;;  %14148 = vmatpush3.bf16.msra.mxu1 %v17171_v13 }
 0x16a   :  { %14150 = vmatprep.subr.bf16.mxu1 %v17175_v14 }
 0x16c   :  { %14021 = vmatpush3.bf16.msra.mxu0 %v17191_v19 }
 0x16d   :  { %14023 = vmatprep.subr.bf16.mxu0 %v17195_v20  ;;  %14152 = vmatpush3.bf16.msra.mxu1 %v17191_v19 }
 0x16e   :  { %14154 = vmatprep.subr.bf16.mxu1 %v17195_v20 }
 0x170   :  { %14025 = vmatpush3.bf16.msra.mxu0 %v17217_v27 }
 0x171   :  { %14027 = vmatprep.subr.bf16.mxu0 %v17221_v28  ;;  %14156 = vmatpush3.bf16.msra.mxu1 %v17217_v27 }
 0x172   :  { %14158 = vmatprep.subr.bf16.mxu1 %v17221_v28 }
 0x174   :  { %14029 = vmatpush3.bf16.msra.mxu0 %v17237_v33 }
 0x175   :  { %14031 = vmatprep.subr.bf16.mxu0 %v17241_v34  ;;  %14160 = vmatpush3.bf16.msra.mxu1 %v17237_v33 }
 0x176   :  { %14162 = vmatprep.subr.bf16.mxu1 %v17241_v34 }
 0x178   :  { %14033 = vmatpush3.bf16.msra.mxu0 %v17257_v39 }
 0x179   :  { %14035 = vmatprep.subr.bf16.mxu0 %v17261_v40  ;;  %14164 = vmatpush3.bf16.msra.mxu1 %v17257_v39 }
 0x17a   :  { %14166 = vmatprep.subr.bf16.mxu1 %v17261_v40 }
 0x17c   :  { %14037 = vmatpush3.bf16.msra.mxu0 %v17277_v45 }
 0x17d   :  { %14039 = vmatprep.subr.bf16.mxu0 %v17281_v46  ;;  %14168 = vmatpush3.bf16.msra.mxu1 %v17277_v45 }
 0x17e   :  { %14170 = vmatprep.subr.bf16.mxu1 %v17281_v46 }
 0x180   :  { %14041 = vmatpush3.bf16.msra.mxu0 %v17291_v49 }
 0x181   :  { %14075 = vmatprep.subr.bf16.mxu0 %v17140_v3  ;;  %14172 = vmatpush3.bf16.msra.mxu1 %v17291_v49 }
 0x182   :  { %14206 = vmatprep.subr.bf16.mxu1 %v17140_v3 }
 0x183   :  { %884 = vmatmul.mubr.f32.vlgmr.msra.gmra.mrb[10].mxu0 %v9638_v0  ;;  %v9661_v0 = vld [vmem:[%s19957_s0 + $0x48] sm:$0xff] }
 0x184   :  { %14077 = vmatpush3.bf16.msra.mxu0 %v17151_v7  ;;  %1030 = vmatprep.mubr.f32.mxu0 %v9643_v1  ;;  %v9660_v1 = vld [vmem:[%s19957_s0 + $0x40] sm:$0xff] }
 0x185   :  { %14079 = vmatprep.subr.bf16.mxu0 %v17153_v8  ;;  %1258 = vmatmul.mubr.f32.vlgmr.msra.gmra.mrb[14].mxu1 %v9649_v16 }
 0x186   :  { %14208 = vmatpush3.bf16.msra.mxu1 %v17151_v7  ;;  %1404 = vmatprep.mubr.f32.mxu1 %v9654_v22 }
 0x187   :  { %14210 = vmatprep.subr.bf16.mxu1 %v17153_v8 }
 0x188   :  { %14081 = vmatpush3.bf16.msra.mxu0 %v17171_v13 }
 0x189   :  { %14083 = vmatprep.subr.bf16.mxu0 %v17175_v14 }
 0x18a   :  { %14212 = vmatpush3.bf16.msra.mxu1 %v17171_v13 }
 0x18b   :  { %14214 = vmatprep.subr.bf16.mxu1 %v17175_v14 }
 0x18c   :  { %14085 = vmatpush3.bf16.msra.mxu0 %v17191_v19 }
 0x18d   :  { %14087 = vmatprep.subr.bf16.mxu0 %v17195_v20 }
 0x18e   :  { %14216 = vmatpush3.bf16.msra.mxu1 %v17191_v19 }
 0x18f   :  { %14218 = vmatprep.subr.bf16.mxu1 %v17195_v20 }
 0x190   :  { %14089 = vmatpush3.bf16.msra.mxu0 %v17217_v27 }
 0x191   :  { %14091 = vmatprep.subr.bf16.mxu0 %v17221_v28 }
 0x192   :  { %14220 = vmatpush3.bf16.msra.mxu1 %v17217_v27 }
 0x193   :  { %14222 = vmatprep.subr.bf16.mxu1 %v17221_v28 }
 0x194   :  { %14093 = vmatpush3.bf16.msra.mxu0 %v17237_v33 }
 0x195   :  { %14095 = vmatprep.subr.bf16.mxu0 %v17241_v34 }
 0x196   :  { %14224 = vmatpush3.bf16.msra.mxu1 %v17237_v33 }
 0x197   :  { %14226 = vmatprep.subr.bf16.mxu1 %v17241_v34 }
 0x198   :  { %14097 = vmatpush3.bf16.msra.mxu0 %v17257_v39 }
 0x199   :  { %14099 = vmatprep.subr.bf16.mxu0 %v17261_v40 }
 0x19a   :  { %14228 = vmatpush3.bf16.msra.mxu1 %v17257_v39 }
 0x19b   :  { %14230 = vmatprep.subr.bf16.mxu1 %v17261_v40 }
 0x19c   :  { %14101 = vmatpush3.bf16.msra.mxu0 %v17277_v45 }
 0x19d   :  { %14103 = vmatprep.subr.bf16.mxu0 %v17281_v46 }
 0x19e   :  { %14232 = vmatpush3.bf16.msra.mxu1 %v17277_v45 }
 0x19f   :  { %14234 = vmatprep.subr.bf16.mxu1 %v17281_v46 }
 0x1a0   :  { %14105 = vmatpush3.bf16.msra.mxu0 %v17291_v49 }
 0x1a1   :  { %14138 = vmatprep.subr.bf16.mxu0 %v17078_v4 }
 0x1a2   :  { %14236 = vmatpush3.bf16.msra.mxu1 %v17291_v49 }
 0x1a3   :  { %1031 = vmatmul.mubr.f32.vlgmr.msra.gmra.mrb[12].mxu0 %v9642_v2  ;;  %14269 = vmatprep.subr.bf16.mxu1 %v17078_v4  ;;  %v9665_v2 = vld [vmem:[%s19957_s0 + $0x368] sm:$0xff] }
 0x1a4   :  { %13521 = vmatprep.mubr.msk.f32.mxu0 %vm17079_vm0, %v17080_v5  ;;  %14140 = vmatpush3.bf16.msra.mxu0 %v14139_v12 }
 0x1a5   :  { %14174 = vmatprep.subr.bf16.mxu0 %v17140_v3  ;;  %1405 = vmatmul.mubr.f32.vlgmr.msra.gmra.mrb[16].mxu1 %v9653_v23 }
 0x1a6   :  { %13528 = vmatprep.mubr.msk.f32.mxu1 %vm17079_vm0, %v17080_v5  ;;  %14271 = vmatpush3.bf16.msra.mxu1 %v14270_v63 }
 0x1a7   :  { %14305 = vmatprep.subr.bf16.mxu1 %v17140_v3 }
 0x1f6   :  { %v812_v6 = vpop.f32.mrb[8].mxu1 }
 0x1f7   :  { %v13516_v9 = vpop.f32.mrb[9].mxu1 }
 0x216   :  { %v10247_v17 = vpop.f32.mrb[10].mxu1 }
 0x217   :  { %v10248_v18 = vpop.f32.mrb[11].mxu1 }
 0x218   :  { %v10249_v21 = vadd.f32 %v10248_v18, %v10247_v17 }
 0x236   :  { %v739_v24 = vpop.f32.mrb[8].mxu0  ;;  %v10317_v25 = vpop.f32.mrb[12].mxu1 }
 0x237   :  { %v17607_v26 = vadd.f32 %v812_v6, %v739_v24  ;;  %v13509_v29 = vpop.f32.mrb[9].mxu0  ;;  %v10318_v30 = vpop.f32.mrb[13].mxu1  ;;  %v9664_v6 = vld [vmem:[%s19957_s0 + $0x360] sm:$0xff] }
 0x238   :  { %v10319_v32 = vadd.f32 %v10318_v30, %v10317_v25  ;;  %v9663_v30 = vld [vmem:[%s19957_s0 + $0x1d8] sm:$0xff] }
 0x256   :  { %v10212_v35 = vpop.f32.mrb[10].mxu0 }
 0x257   :  { %v10213_v36 = vpop.f32.mrb[11].mxu0 }
 0x258   :  { %v10214_v37 = vadd.f32 %v10213_v36, %v10212_v35  ;;  %v10355_v55 = vpop.f32.mrb[14].mxu1  ;;  %v9666_v35 = vld [vmem:[%s19957_s0 + $0x4f0] sm:$0xff] }
 0x259   :  { %v10356_v56 = vpop.f32.mrb[15].mxu1 }
 0x25a   :  { %v962_v38 = vmax.f32 %v10214_v37, %v10249_v21  ;;  %v10357_v57 = vadd.f32 %v10356_v56, %v10355_v55 }
 0x276   :  { %v10282_v41 = vpop.f32.mrb[12].mxu0 }
 0x277   :  { %v10283_v42 = vpop.f32.mrb[13].mxu0 }
 0x278   :  { %v10284_v43 = vadd.f32 %v10283_v42, %v10282_v41  ;;  %v10425_v58 = vpop.f32.mrb[16].mxu1 }
 0x279   :  { %v10426_v59 = vpop.f32.mrb[17].mxu1 }
 0x27a   :  { %v1036_v44 = vmax.f32 %v962_v38, %v10284_v43  ;;  %v10427_v60 = vadd.f32 %v10426_v59, %v10425_v58 }
 0x27c   :  { %v1110_v47 = vmax.f32 %v1036_v44, %v10319_v32  ;;  %v9667_v32 = vld [vmem:[%s19957_s0 + $0x4f8] sm:$0xff]  ;;  %v9668_v44 = vld [vmem:[%s19958_s3 + $0x40] sm:$0xff] }
 0x27e   :  { %v1111_v48 = vadd.f32 %v17458_v31, %v1110_v47  ;;  %v9669_v47 = vld [vmem:[%s19958_s3 + $0x48] sm:$0xff] }
 0x280   :  { %v1112_v50 = vmax.f32 %v1111_v48, 0.0  ;;  %v14401_v48 = vpack.c.bf16 %v9669_v47, %v9668_v44 }
 0x282   :  { %13522 = vmatmul.mubr.msk.f32.vlgmr.msra.gmra.mrb[14].mxu0 %vm669_vm1, %v1112_v50  ;;  %v9672_v50 = vld [vmem:[%s19957_s0 + $0x58] sm:$0xff] }
 0x283   :  { %14176 = vmatpush3.bf16.msra.mxu0 %v17151_v7  ;;  %1330 = vmatprep.mubr.f32.mxu0 %v9652_v51  ;;  %v9671_v51 = vld [vmem:[%s19957_s0 + $0x50] sm:$0xff] }
 0x284   :  { %14178 = vmatprep.subr.bf16.mxu0 %v17153_v8 }
 0x287   :  { %14180 = vmatpush3.bf16.msra.mxu0 %v17171_v13 }
 0x288   :  { %14182 = vmatprep.subr.bf16.mxu0 %v17175_v14 }
 0x28b   :  { %14184 = vmatpush3.bf16.msra.mxu0 %v17191_v19 }
 0x28c   :  { %14186 = vmatprep.subr.bf16.mxu0 %v17195_v20 }
 0x28f   :  { %14188 = vmatpush3.bf16.msra.mxu0 %v17217_v27 }
 0x290   :  { %14190 = vmatprep.subr.bf16.mxu0 %v17221_v28 }
 0x293   :  { %14192 = vmatpush3.bf16.msra.mxu0 %v17237_v33 }
 0x294   :  { %14194 = vmatprep.subr.bf16.mxu0 %v17241_v34 }
 0x297   :  { %14196 = vmatpush3.bf16.msra.mxu0 %v17257_v39 }
 0x298   :  { %14198 = vmatprep.subr.bf16.mxu0 %v17261_v40 }
 0x29b   :  { %14200 = vmatpush3.bf16.msra.mxu0 %v17277_v45 }
 0x29c   :  { %14202 = vmatprep.subr.bf16.mxu0 %v17281_v46 }
 0x29f   :  { %14204 = vmatpush3.bf16.msra.mxu0 %v17291_v49 }
 0x2a0   :  { %14238 = vmatprep.subr.bf16.mxu0 %v17140_v3 }
 0x2a2   :  { %1331 = vmatmul.mubr.f32.vlgmr.msra.gmra.mrb[16].mxu0 %v9651_v52  ;;  %v9676_v52 = vld [vmem:[%s19957_s0 + $0x378] sm:$0xff] }
 0x2a3   :  { %14240 = vmatpush3.bf16.msra.mxu0 %v17151_v7  ;;  %1478 = vmatprep.mubr.f32.mxu0 %v9656_v53  ;;  %v9675_v53 = vld [vmem:[%s19957_s0 + $0x370] sm:$0xff] }
 0x2a4   :  { %14242 = vmatprep.subr.bf16.mxu0 %v17153_v8 }
 0x2a7   :  { %14244 = vmatpush3.bf16.msra.mxu0 %v17171_v13 }
 0x2a8   :  { %14246 = vmatprep.subr.bf16.mxu0 %v17175_v14 }
 0x2ab   :  { %14248 = vmatpush3.bf16.msra.mxu0 %v17191_v19 }
 0x2ac   :  { %14250 = vmatprep.subr.bf16.mxu0 %v17195_v20 }
 0x2af   :  { %14252 = vmatpush3.bf16.msra.mxu0 %v17217_v27 }
 0x2b0   :  { %14254 = vmatprep.subr.bf16.mxu0 %v17221_v28 }
 0x2b3   :  { %14256 = vmatpush3.bf16.msra.mxu0 %v17237_v33 }
 0x2b4   :  { %14258 = vmatprep.subr.bf16.mxu0 %v17241_v34 }
 0x2b7   :  { %14260 = vmatpush3.bf16.msra.mxu0 %v17257_v39 }
 0x2b8   :  { %14262 = vmatprep.subr.bf16.mxu0 %v17261_v40 }
 0x2bb   :  { %14264 = vmatpush3.bf16.msra.mxu0 %v17277_v45 }
 0x2bc   :  { %14266 = vmatprep.subr.bf16.mxu0 %v17281_v46 }
 0x2bf   :  { %14268 = vmatpush3.bf16.msra.mxu0 %v17291_v49 }
 0x2c0   :  { %14273 = vmatprep.subr.bf16.mxu0 %v17140_v3 }
 0x2c2   :  { %1479 = vmatmul.mubr.f32.vlgmr.msra.gmra.mrb[18].mxu0 %v9655_v54 }
 0x2c3   :  { %14275 = vmatpush3.bf16.msra.mxu0 %v17151_v7  ;;  %1631 = vmatprep.mubr.f32.mxu0 %v9661_v0 }
 0x2c4   :  { %14277 = vmatprep.subr.bf16.mxu0 %v17153_v8 }
 0x2c7   :  { %14279 = vmatpush3.bf16.msra.mxu0 %v17171_v13 }
 0x2c8   :  { %14281 = vmatprep.subr.bf16.mxu0 %v17175_v14 }
 0x2cb   :  { %14283 = vmatpush3.bf16.msra.mxu0 %v17191_v19 }
 0x2cc   :  { %14285 = vmatprep.subr.bf16.mxu0 %v17195_v20 }
 0x2cf   :  { %14287 = vmatpush3.bf16.msra.mxu0 %v17217_v27 }
 0x2d0   :  { %14289 = vmatprep.subr.bf16.mxu0 %v17221_v28 }
 0x2d3   :  { %14291 = vmatpush3.bf16.msra.mxu0 %v17237_v33 }
 0x2d4   :  { %14293 = vmatprep.subr.bf16.mxu0 %v17241_v34 }
 0x2d7   :  { %14295 = vmatpush3.bf16.msra.mxu0 %v17257_v39 }
 0x2d8   :  { %14297 = vmatprep.subr.bf16.mxu0 %v17261_v40 }
 0x2db   :  { %14299 = vmatpush3.bf16.msra.mxu0 %v17277_v45 }
 0x2dc   :  { %14301 = vmatprep.subr.bf16.mxu0 %v17281_v46 }
 0x2df   :  { %14303 = vmatpush3.bf16.msra.mxu0 %v17291_v49 }
 0x2e0   :  { %14337 = vmatprep.subr.bf16.mxu0 %v17140_v3 }
 0x2e2   :  { %1632 = vmatmul.mubr.f32.vlgmr.msra.gmra.mrb[20].mxu0 %v9660_v1 }
 0x2e3   :  { %14339 = vmatpush3.bf16.msra.mxu0 %v17151_v7  ;;  %1778 = vmatprep.mubr.f32.mxu0 %v9665_v2 }
 0x2e4   :  { %14341 = vmatprep.subr.bf16.mxu0 %v17153_v8 }
 0x2e7   :  { %14343 = vmatpush3.bf16.msra.mxu0 %v17171_v13 }
 0x2e8   :  { %14345 = vmatprep.subr.bf16.mxu0 %v17175_v14 }
 0x2eb   :  { %14347 = vmatpush3.bf16.msra.mxu0 %v17191_v19 }
 0x2ec   :  { %14349 = vmatprep.subr.bf16.mxu0 %v17195_v20 }
 0x2ef   :  { %14351 = vmatpush3.bf16.msra.mxu0 %v17217_v27 }
 0x2f0   :  { %14353 = vmatprep.subr.bf16.mxu0 %v17221_v28 }
 0x2f3   :  { %14355 = vmatpush3.bf16.msra.mxu0 %v17237_v33 }
 0x2f4   :  { %14357 = vmatprep.subr.bf16.mxu0 %v17241_v34 }
 0x2f7   :  { %14359 = vmatpush3.bf16.msra.mxu0 %v17257_v39 }
 0x2f8   :  { %14361 = vmatprep.subr.bf16.mxu0 %v17261_v40 }
 0x2fb   :  { %14363 = vmatpush3.bf16.msra.mxu0 %v17277_v45 }
 0x2fc   :  { %14365 = vmatprep.subr.bf16.mxu0 %v17281_v46 }
 0x2ff   :  { %14367 = vmatpush3.bf16.msra.mxu0 %v17291_v49 }
 0x300   :  { %14400 = vmatprep.subr.bf16.mxu0 %v17078_v4 }
 0x302   :  { %1779 = vmatmul.mubr.f32.vlgmr.msra.gmra.mrb[22].mxu0 %v9664_v6 }
 0x303   :  { %13535 = vmatprep.mubr.msk.f32.mxu0 %vm17079_vm0, %v17080_v5  ;;  %14402 = vmatpush3.bf16.msra.mxu0 %v14401_v48 }
 0x304   :  { %14436 = vmatprep.subr.bf16.mxu0 %v17140_v3 }
 0x355   :  { %v1185_v9 = vpop.f32.mrb[14].mxu0 }
 0x356   :  { %v17709_v10 = vadd.f32 %v1185_v9, %v17607_v26  ;;  %v13523_v11 = vpop.f32.mrb[15].mxu0  ;;  %v9662_v26 = vld [vmem:[%s19957_s0 + $0x1d0] sm:$0xff]  ;;  %v9674_v9 = vld [vmem:[%s19957_s0 + $0x1e8] sm:$0xff] }
 0x357   :  { %v9678_v11 = vld [vmem:[%s19957_s0 + $0x508] sm:$0xff] }
 0x375   :  { %v10390_v12 = vpop.f32.mrb[16].mxu0 }
 0x376   :  { %v10391_v15 = vpop.f32.mrb[17].mxu0 }
 0x377   :  { %v10392_v16 = vadd.f32 %v10391_v15, %v10390_v12  ;;  %v9677_v12 = vld [vmem:[%s19957_s0 + $0x500] sm:$0xff] }
 0x379   :  { %v1336_v17 = vmax.f32 %v10357_v57, %v10392_v16 }
 0x37b   :  { %v1410_v18 = vmax.f32 %v1336_v17, %v10427_v60 }
 0x395   :  { %v10460_v21 = vpop.f32.mrb[18].mxu0 }
 0x396   :  { %v10461_v22 = vpop.f32.mrb[19].mxu0 }
 0x397   :  { %v10462_v23 = vadd.f32 %v10461_v22, %v10460_v21 }
 0x399   :  { %v1484_v24 = vmax.f32 %v1410_v18, %v10462_v23  ;;  %v9679_v23 = vld [vmem:[%s19958_s3 + $0x50] sm:$0xff] }
 0x39b   :  { %v1485_v25 = vadd.f32 %v17458_v31, %v1484_v24  ;;  %v9680_v24 = vld [vmem:[%s19958_s3 + $0x58] sm:$0xff] }
 0x39d   :  { %v1486_v29 = vmax.f32 %v1485_v25, 0.0  ;;  %v14532_v25 = vpack.c.bf16 %v9680_v24, %v9679_v23 }
 0x39f   :  { %13529 = vmatmul.mubr.msk.f32.vlgmr.msra.gmra.mrb[18].mxu1 %vm669_vm1, %v1486_v29  ;;  %v9683_v29 = vld [vmem:[%s19957_s0 + $0x68] sm:$0xff] }
 0x3a0   :  { %14307 = vmatpush3.bf16.msra.mxu1 %v17151_v7  ;;  %1704 = vmatprep.mubr.f32.mxu1 %v9663_v30  ;;  %v9682_v30 = vld [vmem:[%s19957_s0 + $0x60] sm:$0xff] }
 0x3a1   :  { %14309 = vmatprep.subr.bf16.mxu1 %v17153_v8 }
 0x3a4   :  { %14311 = vmatpush3.bf16.msra.mxu1 %v17171_v13 }
 0x3a5   :  { %14313 = vmatprep.subr.bf16.mxu1 %v17175_v14 }
 0x3a8   :  { %14315 = vmatpush3.bf16.msra.mxu1 %v17191_v19 }
 0x3a9   :  { %14317 = vmatprep.subr.bf16.mxu1 %v17195_v20 }
 0x3ac   :  { %14319 = vmatpush3.bf16.msra.mxu1 %v17217_v27 }
 0x3ad   :  { %14321 = vmatprep.subr.bf16.mxu1 %v17221_v28 }
 0x3b0   :  { %14323 = vmatpush3.bf16.msra.mxu1 %v17237_v33 }
 0x3b1   :  { %14325 = vmatprep.subr.bf16.mxu1 %v17241_v34 }
 0x3b4   :  { %14327 = vmatpush3.bf16.msra.mxu1 %v17257_v39 }
 0x3b5   :  { %14329 = vmatprep.subr.bf16.mxu1 %v17261_v40  ;;  %v10498_v36 = vpop.f32.mrb[20].mxu0 }
 0x3b6   :  { %v10499_v37 = vpop.f32.mrb[21].mxu0 }
 0x3b7   :  { %v10500_v38 = vadd.f32 %v10499_v37, %v10498_v36 }
 0x3b8   :  { %14331 = vmatpush3.bf16.msra.mxu1 %v17277_v45 }
 0x3b9   :  { %14333 = vmatprep.subr.bf16.mxu1 %v17281_v46 }
 0x3bc   :  { %14335 = vmatpush3.bf16.msra.mxu1 %v17291_v49 }
 0x3bd   :  { %14369 = vmatprep.subr.bf16.mxu1 %v17140_v3 }
 0x3bf   :  { %1705 = vmatmul.mubr.f32.vlgmr.msra.gmra.mrb[20].mxu1 %v9662_v26  ;;  %v9687_v26 = vld [vmem:[%s19957_s0 + $0x388] sm:$0xff] }
 0x3c0   :  { %14371 = vmatpush3.bf16.msra.mxu1 %v17151_v7  ;;  %1852 = vmatprep.mubr.f32.mxu1 %v9667_v32  ;;  %v9686_v32 = vld [vmem:[%s19957_s0 + $0x380] sm:$0xff] }
 0x3c1   :  { %14373 = vmatprep.subr.bf16.mxu1 %v17153_v8 }
 0x3c4   :  { %14375 = vmatpush3.bf16.msra.mxu1 %v17171_v13 }
 0x3c5   :  { %14377 = vmatprep.subr.bf16.mxu1 %v17175_v14 }
 0x3c8   :  { %14379 = vmatpush3.bf16.msra.mxu1 %v17191_v19 }
 0x3c9   :  { %14381 = vmatprep.subr.bf16.mxu1 %v17195_v20 }
 0x3cc   :  { %14383 = vmatpush3.bf16.msra.mxu1 %v17217_v27 }
 0x3cd   :  { %14385 = vmatprep.subr.bf16.mxu1 %v17221_v28 }
 0x3d0   :  { %14387 = vmatpush3.bf16.msra.mxu1 %v17237_v33 }
 0x3d1   :  { %14389 = vmatprep.subr.bf16.mxu1 %v17241_v34 }
 0x3d4   :  { %14391 = vmatpush3.bf16.msra.mxu1 %v17257_v39 }
 0x3d5   :  { %14393 = vmatprep.subr.bf16.mxu1 %v17261_v40  ;;  %v10568_v41 = vpop.f32.mrb[22].mxu0 }
 0x3d6   :  { %v10569_v42 = vpop.f32.mrb[23].mxu0 }
 0x3d7   :  { %v10570_v43 = vadd.f32 %v10569_v42, %v10568_v41 }
 0x3d8   :  { %14395 = vmatpush3.bf16.msra.mxu1 %v17277_v45 }
 0x3d9   :  { %14397 = vmatprep.subr.bf16.mxu1 %v17281_v46 }
 0x3dc   :  { %14399 = vmatpush3.bf16.msra.mxu1 %v17291_v49 }
 0x3dd   :  { %14404 = vmatprep.subr.bf16.mxu1 %v17140_v3 }
 0x3df   :  { %1853 = vmatmul.mubr.f32.vlgmr.msra.gmra.mrb[22].mxu1 %v9666_v35 }
 0x3e0   :  { %14406 = vmatpush3.bf16.msra.mxu1 %v17151_v7  ;;  %2005 = vmatprep.mubr.f32.mxu1 %v9672_v50 }
 0x3e1   :  { %14408 = vmatprep.subr.bf16.mxu1 %v17153_v8 }
 0x3e4   :  { %14410 = vmatpush3.bf16.msra.mxu1 %v17171_v13 }
 0x3e5   :  { %14412 = vmatprep.subr.bf16.mxu1 %v17175_v14 }
 0x3e8   :  { %14414 = vmatpush3.bf16.msra.mxu1 %v17191_v19 }
 0x3e9   :  { %14416 = vmatprep.subr.bf16.mxu1 %v17195_v20 }
 0x3ec   :  { %14418 = vmatpush3.bf16.msra.mxu1 %v17217_v27 }
 0x3ed   :  { %14420 = vmatprep.subr.bf16.mxu1 %v17221_v28 }
 0x3f0   :  { %14422 = vmatpush3.bf16.msra.mxu1 %v17237_v33 }
 0x3f1   :  { %14424 = vmatprep.subr.bf16.mxu1 %v17241_v34 }
 0x3f4   :  { %14426 = vmatpush3.bf16.msra.mxu1 %v17257_v39 }
 0x3f5   :  { %14428 = vmatprep.subr.bf16.mxu1 %v17261_v40 }
 0x3f8   :  { %14430 = vmatpush3.bf16.msra.mxu1 %v17277_v45 }
 0x3f9   :  { %14432 = vmatprep.subr.bf16.mxu1 %v17281_v46 }
 0x3fc   :  { %14434 = vmatpush3.bf16.msra.mxu1 %v17291_v49 }
 0x3fd   :  { %14468 = vmatprep.subr.bf16.mxu1 %v17140_v3 }
 0x3ff   :  { %2006 = vmatmul.mubr.f32.vlgmr.msra.gmra.mrb[24].mxu1 %v9671_v51 }
 0x400   :  { %14470 = vmatpush3.bf16.msra.mxu1 %v17151_v7  ;;  %2152 = vmatprep.mubr.f32.mxu1 %v9676_v52 }
 0x401   :  { %14472 = vmatprep.subr.bf16.mxu1 %v17153_v8 }
 0x404   :  { %14474 = vmatpush3.bf16.msra.mxu1 %v17171_v13 }
 0x405   :  { %14476 = vmatprep.subr.bf16.mxu1 %v17175_v14 }
 0x408   :  { %14478 = vmatpush3.bf16.msra.mxu1 %v17191_v19 }
 0x409   :  { %14480 = vmatprep.subr.bf16.mxu1 %v17195_v20 }
 0x40c   :  { %14482 = vmatpush3.bf16.msra.mxu1 %v17217_v27 }
 0x40d   :  { %14484 = vmatprep.subr.bf16.mxu1 %v17221_v28 }
 0x410   :  { %14486 = vmatpush3.bf16.msra.mxu1 %v17237_v33 }
 0x411   :  { %14488 = vmatprep.subr.bf16.mxu1 %v17241_v34 }
 0x414   :  { %14490 = vmatpush3.bf16.msra.mxu1 %v17257_v39 }
 0x415   :  { %14492 = vmatprep.subr.bf16.mxu1 %v17261_v40 }
 0x418   :  { %14494 = vmatpush3.bf16.msra.mxu1 %v17277_v45 }
 0x419   :  { %14496 = vmatprep.subr.bf16.mxu1 %v17281_v46 }
 0x41c   :  { %14498 = vmatpush3.bf16.msra.mxu1 %v17291_v49 }
 0x41d   :  { %14531 = vmatprep.subr.bf16.mxu1 %v17078_v4 }
 0x41f   :  { %2153 = vmatmul.mubr.f32.vlgmr.msra.gmra.mrb[26].mxu1 %v9675_v53 }
 0x420   :  { %13542 = vmatprep.mubr.msk.f32.mxu1 %vm17079_vm0, %v17080_v5  ;;  %14533 = vmatpush3.bf16.msra.mxu1 %v14532_v25 }
 0x421   :  { %14567 = vmatprep.subr.bf16.mxu1 %v17140_v3 }
 0x472   :  { %v1559_v54 = vpop.f32.mrb[18].mxu1 }
 0x473   :  { %v17811_v55 = vadd.f32 %v1559_v54, %v17709_v10  ;;  %v13530_v56 = vpop.f32.mrb[19].mxu1  ;;  %v9673_v10 = vld [vmem:[%s19957_s0 + $0x1e0] sm:$0xff]  ;;  %v9685_v54 = vld [vmem:[%s19957_s0 + $0x1f8] sm:$0xff] }
 0x474   :  { %v9688_v56 = vld [vmem:[%s19957_s0 + $0x510] sm:$0xff] }
 0x492   :  { %v10533_v57 = vpop.f32.mrb[20].mxu1 }
 0x493   :  { %v10534_v58 = vpop.f32.mrb[21].mxu1 }
 0x494   :  { %v10535_v59 = vadd.f32 %v10534_v58, %v10533_v57 }
 0x496   :  { %v1710_v60 = vmax.f32 %v10500_v38, %v10535_v59 }
 0x498   :  { %v1784_v61 = vmax.f32 %v1710_v60, %v10570_v43 }
 0x4b2   :  { %v10603_v62 = vpop.f32.mrb[22].mxu1 }
 0x4b3   :  { %v10604_v63 = vpop.f32.mrb[23].mxu1 }
 0x4b4   :  { %v10605_v0 = vadd.f32 %v10604_v63, %v10603_v62  ;;  %v9690_v63 = vld [vmem:[%s19958_s3 + $0x60] sm:$0xff] }
 0x4b6   :  { %v1858_v1 = vmax.f32 %v1784_v61, %v10605_v0  ;;  %v9691_v0 = vld [vmem:[%s19958_s3 + $0x68] sm:$0xff] }
 0x4b8   :  { %v1859_v2 = vadd.f32 %v17458_v31, %v1858_v1  ;;  %v14663_v1 = vpack.c.bf16 %v9691_v0, %v9690_v63 }
 0x4ba   :  { %v1860_v6 = vmax.f32 %v1859_v2, 0.0  ;;  %v9694_v2 = vld [vmem:[%s19957_s0 + $0x78] sm:$0xff] }
 0x4bc   :  { %13536 = vmatmul.mubr.msk.f32.vlgmr.msra.gmra.mrb[24].mxu0 %vm669_vm1, %v1860_v6  ;;  %v9693_v6 = vld [vmem:[%s19957_s0 + $0x70] sm:$0xff] }
 0x4bd   :  { %14438 = vmatpush3.bf16.msra.mxu0 %v17151_v7  ;;  %2078 = vmatprep.mubr.f32.mxu0 %v9674_v9  ;;  %v9698_v9 = vld [vmem:[%s19957_s0 + $0x398] sm:$0xff] }
 0x4be   :  { %14440 = vmatprep.subr.bf16.mxu0 %v17153_v8 }
 0x4c1   :  { %14442 = vmatpush3.bf16.msra.mxu0 %v17171_v13 }
 0x4c2   :  { %14444 = vmatprep.subr.bf16.mxu0 %v17175_v14 }
 0x4c5   :  { %14446 = vmatpush3.bf16.msra.mxu0 %v17191_v19 }
 0x4c6   :  { %14448 = vmatprep.subr.bf16.mxu0 %v17195_v20 }
 0x4c9   :  { %14450 = vmatpush3.bf16.msra.mxu0 %v17217_v27 }
 0x4ca   :  { %14452 = vmatprep.subr.bf16.mxu0 %v17221_v28 }
 0x4cd   :  { %14454 = vmatpush3.bf16.msra.mxu0 %v17237_v33 }
 0x4ce   :  { %14456 = vmatprep.subr.bf16.mxu0 %v17241_v34 }
 0x4d1   :  { %14458 = vmatpush3.bf16.msra.mxu0 %v17257_v39 }
 0x4d2   :  { %14460 = vmatprep.subr.bf16.mxu0 %v17261_v40  ;;  %v10641_v15 = vpop.f32.mrb[24].mxu1 }
 0x4d3   :  { %v10642_v16 = vpop.f32.mrb[25].mxu1 }
 0x4d4   :  { %v10643_v17 = vadd.f32 %v10642_v16, %v10641_v15 }
 0x4d5   :  { %14462 = vmatpush3.bf16.msra.mxu0 %v17277_v45 }
 0x4d6   :  { %14464 = vmatprep.subr.bf16.mxu0 %v17281_v46 }
 0x4d9   :  { %14466 = vmatpush3.bf16.msra.mxu0 %v17291_v49 }
 0x4da   :  { %14500 = vmatprep.subr.bf16.mxu0 %v17140_v3 }
 0x4dc   :  { %2079 = vmatmul.mubr.f32.vlgmr.msra.gmra.mrb[26].mxu0 %v9673_v10  ;;  %v9697_v10 = vld [vmem:[%s19957_s0 + $0x390] sm:$0xff] }
 0x4dd   :  { %14502 = vmatpush3.bf16.msra.mxu0 %v17151_v7  ;;  %2226 = vmatprep.mubr.f32.mxu0 %v9678_v11 }
 0x4de   :  { %14504 = vmatprep.subr.bf16.mxu0 %v17153_v8 }
 0x4e1   :  { %14506 = vmatpush3.bf16.msra.mxu0 %v17171_v13 }
 0x4e2   :  { %14508 = vmatprep.subr.bf16.mxu0 %v17175_v14 }
 0x4e5   :  { %14510 = vmatpush3.bf16.msra.mxu0 %v17191_v19 }
 0x4e6   :  { %14512 = vmatprep.subr.bf16.mxu0 %v17195_v20 }
 0x4e9   :  { %14514 = vmatpush3.bf16.msra.mxu0 %v17217_v27 }
 0x4ea   :  { %14516 = vmatprep.subr.bf16.mxu0 %v17221_v28 }
 0x4ed   :  { %14518 = vmatpush3.bf16.msra.mxu0 %v17237_v33 }
 0x4ee   :  { %14520 = vmatprep.subr.bf16.mxu0 %v17241_v34 }
 0x4f1   :  { %14522 = vmatpush3.bf16.msra.mxu0 %v17257_v39 }
 0x4f2   :  { %14524 = vmatprep.subr.bf16.mxu0 %v17261_v40  ;;  %v10711_v18 = vpop.f32.mrb[26].mxu1 }
 0x4f3   :  { %v10712_v21 = vpop.f32.mrb[27].mxu1 }
 0x4f4   :  { %v10713_v22 = vadd.f32 %v10712_v21, %v10711_v18 }
 0x4f5   :  { %14526 = vmatpush3.bf16.msra.mxu0 %v17277_v45 }
 0x4f6   :  { %14528 = vmatprep.subr.bf16.mxu0 %v17281_v46 }
 0x4f9   :  { %14530 = vmatpush3.bf16.msra.mxu0 %v17291_v49 }
 0x4fa   :  { %14535 = vmatprep.subr.bf16.mxu0 %v17140_v3 }
 0x4fc   :  { %2227 = vmatmul.mubr.f32.vlgmr.msra.gmra.mrb[28].mxu0 %v9677_v12 }
 0x4fd   :  { %14537 = vmatpush3.bf16.msra.mxu0 %v17151_v7  ;;  %2379 = vmatprep.mubr.f32.mxu0 %v9683_v29 }
 0x4fe   :  { %14539 = vmatprep.subr.bf16.mxu0 %v17153_v8 }
 0x501   :  { %14541 = vmatpush3.bf16.msra.mxu0 %v17171_v13 }
 0x502   :  { %14543 = vmatprep.subr.bf16.mxu0 %v17175_v14 }
 0x505   :  { %14545 = vmatpush3.bf16.msra.mxu0 %v17191_v19 }
 0x506   :  { %14547 = vmatprep.subr.bf16.mxu0 %v17195_v20 }
 0x509   :  { %14549 = vmatpush3.bf16.msra.mxu0 %v17217_v27 }
 0x50a   :  { %14551 = vmatprep.subr.bf16.mxu0 %v17221_v28 }
 0x50d   :  { %14553 = vmatpush3.bf16.msra.mxu0 %v17237_v33 }
 0x50e   :  { %14555 = vmatprep.subr.bf16.mxu0 %v17241_v34 }
 0x511   :  { %14557 = vmatpush3.bf16.msra.mxu0 %v17257_v39 }
 0x512   :  { %14559 = vmatprep.subr.bf16.mxu0 %v17261_v40 }
 0x515   :  { %14561 = vmatpush3.bf16.msra.mxu0 %v17277_v45 }
 0x516   :  { %14563 = vmatprep.subr.bf16.mxu0 %v17281_v46 }
 0x519   :  { %14565 = vmatpush3.bf16.msra.mxu0 %v17291_v49 }
 0x51a   :  { %14599 = vmatprep.subr.bf16.mxu0 %v17140_v3 }
 0x51c   :  { %2380 = vmatmul.mubr.f32.vlgmr.msra.gmra.mrb[30].mxu0 %v9682_v30  ;;  %v18020_v30 = vld [vmem:[%s19959_s2] ss:$0 sm:$0xff] }
 0x51d   :  { %14601 = vmatpush3.bf16.msra.mxu0 %v17151_v7  ;;  %2526 = vmatprep.mubr.f32.mxu0 %v9687_v26 }
 0x51e   :  { %14603 = vmatprep.subr.bf16.mxu0 %v17153_v8 }
 0x521   :  { %14605 = vmatpush3.bf16.msra.mxu0 %v17171_v13 }
 0x522   :  { %14607 = vmatprep.subr.bf16.mxu0 %v17175_v14 }
 0x525   :  { %14609 = vmatpush3.bf16.msra.mxu0 %v17191_v19 }
 0x526   :  { %14611 = vmatprep.subr.bf16.mxu0 %v17195_v20 }
 0x529   :  { %14613 = vmatpush3.bf16.msra.mxu0 %v17217_v27 }
 0x52a   :  { %14615 = vmatprep.subr.bf16.mxu0 %v17221_v28 }
 0x52d   :  { %14617 = vmatpush3.bf16.msra.mxu0 %v17237_v33 }
 0x52e   :  { %14619 = vmatprep.subr.bf16.mxu0 %v17241_v34 }
 0x531   :  { %14621 = vmatpush3.bf16.msra.mxu0 %v17257_v39 }
 0x532   :  { %14623 = vmatprep.subr.bf16.mxu0 %v17261_v40 }
 0x535   :  { %14625 = vmatpush3.bf16.msra.mxu0 %v17277_v45 }
 0x536   :  { %14627 = vmatprep.subr.bf16.mxu0 %v17281_v46 }
 0x539   :  { %14629 = vmatpush3.bf16.msra.mxu0 %v17291_v49 }
 0x53a   :  { %14662 = vmatprep.subr.bf16.mxu0 %v17078_v4 }
 0x53c   :  { %2527 = vmatmul.mubr.f32.vlgmr.msra.gmra.mrb[32].mxu0 %v9686_v32 }
 0x53d   :  { %13549 = vmatprep.mubr.msk.f32.mxu0 %vm17079_vm0, %v17080_v5  ;;  %14664 = vmatpush3.bf16.msra.mxu0 %v14663_v1 }
 0x53e   :  { %14698 = vmatprep.subr.bf16.mxu0 %v17140_v3 }
 0x58f   :  { %v1933_v35 = vpop.f32.mrb[24].mxu0 }
 0x590   :  { %v17913_v36 = vadd.f32 %v1933_v35, %v17811_v55  ;;  %v13537_v37 = vpop.f32.mrb[25].mxu0  ;;  %v9689_v55 = vld [vmem:[%s19957_s0 + $0x518] sm:$0xff]  ;;  %v9696_v35 = vld [vmem:[%s19957_s0 + $0x208] sm:$0xff] }
 0x591   :  { %v9700_v37 = vld [vmem:[%s19957_s0 + $0x528] sm:$0xff] }
 0x5af   :  { %v10676_v38 = vpop.f32.mrb[26].mxu0 }
 0x5b0   :  { %v10677_v41 = vpop.f32.mrb[27].mxu0 }
 0x5b1   :  { %v10678_v42 = vadd.f32 %v10677_v41, %v10676_v38  ;;  %v9699_v38 = vld [vmem:[%s19957_s0 + $0x520] sm:$0xff] }
 0x5b3   :  { %v2084_v43 = vmax.f32 %v10643_v17, %v10678_v42 }
 0x5b5   :  { %v2158_v44 = vmax.f32 %v2084_v43, %v10713_v22 }
 0x5cf   :  { %v10746_v47 = vpop.f32.mrb[28].mxu0 }
 0x5d0   :  { %v10747_v48 = vpop.f32.mrb[29].mxu0 }
 0x5d1   :  { %v10748_v50 = vadd.f32 %v10747_v48, %v10746_v47 }
 0x5d3   :  { %v2232_v51 = vmax.f32 %v2158_v44, %v10748_v50  ;;  %v9701_v50 = vld [vmem:[%s19958_s3 + $0x70] sm:$0xff] }
 0x5d5   :  { %v2233_v52 = vadd.f32 %v17458_v31, %v2232_v51  ;;  %v9684_v31 = vld [vmem:[%s19957_s0 + $0x1f0] sm:$0xff]  ;;  %v9702_v51 = vld [vmem:[%s19958_s3 + $0x78] sm:$0xff] }
 0x5d7   :  { %v2234_v53 = vmax.f32 %v2233_v52, 0.0  ;;  %v14794_v52 = vpack.c.bf16 %v9702_v51, %v9701_v50 }
 0x5d9   :  { %13543 = vmatmul.mubr.msk.f32.vlgmr.msra.gmra.mrb[28].mxu1 %vm669_vm1, %v2234_v53  ;;  %v9705_v53 = vld [vmem:[%s19957_s0 + $0x88] sm:$0xff] }
 0x5da   :  { %14569 = vmatpush3.bf16.msra.mxu1 %v17151_v7  ;;  %2452 = vmatprep.mubr.f32.mxu1 %v9685_v54  ;;  %v9704_v54 = vld [vmem:[%s19957_s0 + $0x80] sm:$0xff] }
 0x5db   :  { %14571 = vmatprep.subr.bf16.mxu1 %v17153_v8 }
 0x5de   :  { %14573 = vmatpush3.bf16.msra.mxu1 %v17171_v13 }
 0x5df   :  { %14575 = vmatprep.subr.bf16.mxu1 %v17175_v14 }
 0x5e2   :  { %14577 = vmatpush3.bf16.msra.mxu1 %v17191_v19 }
 0x5e3   :  { %14579 = vmatprep.subr.bf16.mxu1 %v17195_v20 }
 0x5e6   :  { %14581 = vmatpush3.bf16.msra.mxu1 %v17217_v27 }
 0x5e7   :  { %14583 = vmatprep.subr.bf16.mxu1 %v17221_v28 }
 0x5ea   :  { %14585 = vmatpush3.bf16.msra.mxu1 %v17237_v33 }
 0x5eb   :  { %14587 = vmatprep.subr.bf16.mxu1 %v17241_v34 }
 0x5ee   :  { %14589 = vmatpush3.bf16.msra.mxu1 %v17257_v39 }
 0x5ef   :  { %14591 = vmatprep.subr.bf16.mxu1 %v17261_v40  ;;  %v10784_v57 = vpop.f32.mrb[30].mxu0 }
 0x5f0   :  { %v10785_v58 = vpop.f32.mrb[31].mxu0 }
 0x5f1   :  { %v10786_v59 = vadd.f32 %v10785_v58, %v10784_v57 }
 0x5f2   :  { %14593 = vmatpush3.bf16.msra.mxu1 %v17277_v45 }
 0x5f3   :  { %14595 = vmatprep.subr.bf16.mxu1 %v17281_v46 }
 0x5f6   :  { %14597 = vmatpush3.bf16.msra.mxu1 %v17291_v49 }
 0x5f7   :  { %14631 = vmatprep.subr.bf16.mxu1 %v17140_v3 }
 0x5f9   :  { %2453 = vmatmul.mubr.f32.vlgmr.msra.gmra.mrb[30].mxu1 %v9684_v31  ;;  %v9709_v31 = vld [vmem:[%s19957_s0 + $0x3a8] sm:$0xff] }
 0x5fa   :  { %14633 = vmatpush3.bf16.msra.mxu1 %v17151_v7  ;;  %2600 = vmatprep.mubr.f32.mxu1 %v9689_v55  ;;  %v9708_v55 = vld [vmem:[%s19957_s0 + $0x3a0] sm:$0xff] }
 0x5fb   :  { %14635 = vmatprep.subr.bf16.mxu1 %v17153_v8 }
 0x5fe   :  { %14637 = vmatpush3.bf16.msra.mxu1 %v17171_v13 }
 0x5ff   :  { %14639 = vmatprep.subr.bf16.mxu1 %v17175_v14 }
 0x602   :  { %14641 = vmatpush3.bf16.msra.mxu1 %v17191_v19 }
 0x603   :  { %14643 = vmatprep.subr.bf16.mxu1 %v17195_v20 }
 0x606   :  { %14645 = vmatpush3.bf16.msra.mxu1 %v17217_v27 }
 0x607   :  { %14647 = vmatprep.subr.bf16.mxu1 %v17221_v28 }
 0x60a   :  { %14649 = vmatpush3.bf16.msra.mxu1 %v17237_v33 }
 0x60b   :  { %14651 = vmatprep.subr.bf16.mxu1 %v17241_v34 }
 0x60e   :  { %14653 = vmatpush3.bf16.msra.mxu1 %v17257_v39 }
 0x60f   :  { %14655 = vmatprep.subr.bf16.mxu1 %v17261_v40  ;;  %v10854_v60 = vpop.f32.mrb[32].mxu0 }
 0x610   :  { %v10855_v61 = vpop.f32.mrb[33].mxu0 }
 0x611   :  { %v10856_v62 = vadd.f32 %v10855_v61, %v10854_v60 }
 0x612   :  { %14657 = vmatpush3.bf16.msra.mxu1 %v17277_v45 }
 0x613   :  { %14659 = vmatprep.subr.bf16.mxu1 %v17281_v46 }
 0x616   :  { %14661 = vmatpush3.bf16.msra.mxu1 %v17291_v49 }
 0x617   :  { %14666 = vmatprep.subr.bf16.mxu1 %v17140_v3 }
 0x619   :  { %2601 = vmatmul.mubr.f32.vlgmr.msra.gmra.mrb[32].mxu1 %v9688_v56 }
 0x61a   :  { %14668 = vmatpush3.bf16.msra.mxu1 %v17151_v7  ;;  %2753 = vmatprep.mubr.f32.mxu1 %v9694_v2 }
 0x61b   :  { %14670 = vmatprep.subr.bf16.mxu1 %v17153_v8 }
 0x61e   :  { %14672 = vmatpush3.bf16.msra.mxu1 %v17171_v13 }
 0x61f   :  { %14674 = vmatprep.subr.bf16.mxu1 %v17175_v14 }
 0x622   :  { %14676 = vmatpush3.bf16.msra.mxu1 %v17191_v19 }
 0x623   :  { %14678 = vmatprep.subr.bf16.mxu1 %v17195_v20 }
 0x626   :  { %14680 = vmatpush3.bf16.msra.mxu1 %v17217_v27 }
 0x627   :  { %14682 = vmatprep.subr.bf16.mxu1 %v17221_v28 }
 0x62a   :  { %14684 = vmatpush3.bf16.msra.mxu1 %v17237_v33 }
 0x62b   :  { %14686 = vmatprep.subr.bf16.mxu1 %v17241_v34 }
 0x62e   :  { %14688 = vmatpush3.bf16.msra.mxu1 %v17257_v39 }
 0x62f   :  { %14690 = vmatprep.subr.bf16.mxu1 %v17261_v40 }
 0x632   :  { %14692 = vmatpush3.bf16.msra.mxu1 %v17277_v45 }
 0x633   :  { %14694 = vmatprep.subr.bf16.mxu1 %v17281_v46 }
 0x636   :  { %14696 = vmatpush3.bf16.msra.mxu1 %v17291_v49 }
 0x637   :  { %14730 = vmatprep.subr.bf16.mxu1 %v17140_v3 }
 0x639   :  { %2754 = vmatmul.mubr.f32.vlgmr.msra.gmra.mrb[34].mxu1 %v9693_v6 }
 0x63a   :  { %14732 = vmatpush3.bf16.msra.mxu1 %v17151_v7  ;;  %2900 = vmatprep.mubr.f32.mxu1 %v9698_v9 }
 0x63b   :  { %14734 = vmatprep.subr.bf16.mxu1 %v17153_v8 }
 0x63e   :  { %14736 = vmatpush3.bf16.msra.mxu1 %v17171_v13 }
 0x63f   :  { %14738 = vmatprep.subr.bf16.mxu1 %v17175_v14 }
 0x642   :  { %14740 = vmatpush3.bf16.msra.mxu1 %v17191_v19 }
 0x643   :  { %14742 = vmatprep.subr.bf16.mxu1 %v17195_v20 }
 0x646   :  { %14744 = vmatpush3.bf16.msra.mxu1 %v17217_v27 }
 0x647   :  { %14746 = vmatprep.subr.bf16.mxu1 %v17221_v28 }
 0x64a   :  { %14748 = vmatpush3.bf16.msra.mxu1 %v17237_v33 }
 0x64b   :  { %14750 = vmatprep.subr.bf16.mxu1 %v17241_v34 }
 0x64e   :  { %14752 = vmatpush3.bf16.msra.mxu1 %v17257_v39 }
 0x64f   :  { %14754 = vmatprep.subr.bf16.mxu1 %v17261_v40 }
 0x652   :  { %14756 = vmatpush3.bf16.msra.mxu1 %v17277_v45 }
 0x653   :  { %14758 = vmatprep.subr.bf16.mxu1 %v17281_v46 }
 0x656   :  { %14760 = vmatpush3.bf16.msra.mxu1 %v17291_v49 }
 0x657   :  { %14793 = vmatprep.subr.bf16.mxu1 %v17078_v4 }
 0x659   :  { %2901 = vmatmul.mubr.f32.vlgmr.msra.gmra.mrb[36].mxu1 %v9697_v10 }
 0x65a   :  { %13556 = vmatprep.mubr.msk.f32.mxu1 %vm17079_vm0, %v17080_v5  ;;  %14795 = vmatpush3.bf16.msra.mxu1 %v14794_v52 }
 0x65b   :  { %14829 = vmatprep.subr.bf16.mxu1 %v17140_v3 }
 0x6ac   :  { %v2307_v11 = vpop.f32.mrb[28].mxu1 }
 0x6ad   :  { %v18015_v12 = vadd.f32 %v2307_v11, %v17913_v36  ;;  %v13544_v15 = vpop.f32.mrb[29].mxu1  ;;  %v9695_v36 = vld [vmem:[%s19957_s0 + $0x200] sm:$0xff]  ;;  %v9707_v11 = vld [vmem:[%s19957_s0 + $0x218] sm:$0xff] }
 0x6ae   :  { %v9711_v15 = vld [vmem:[%s19957_s0 + $0x538] sm:$0xff] }
 0x6cc   :  { %v10819_v16 = vpop.f32.mrb[30].mxu1 }
 0x6cd   :  { %v10820_v17 = vpop.f32.mrb[31].mxu1 }
 0x6ce   :  { %v10821_v18 = vadd.f32 %v10820_v17, %v10819_v16  ;;  %v9710_v16 = vld [vmem:[%s19957_s0 + $0x530] sm:$0xff] }
 0x6d0   :  { %v2458_v21 = vmax.f32 %v10786_v59, %v10821_v18 }
 0x6d2   :  { %v2532_v22 = vmax.f32 %v2458_v21, %v10856_v62 }
 0x6ec   :  { %v10889_v23 = vpop.f32.mrb[32].mxu1 }
 0x6ed   :  { %v10890_v24 = vpop.f32.mrb[33].mxu1 }
 0x6ee   :  { %v10891_v25 = vadd.f32 %v10890_v24, %v10889_v23 }
 0x6f0   :  { %v2606_v29 = vmax.f32 %v2532_v22, %v10891_v25  ;;  %v9712_v25 = vld [vmem:[%s19958_s3 + $0x80] sm:$0xff] }
 0x6f2   :  { %v2607_v26 = vadd.f32 %v18020_v30, %v2606_v29  ;;  %v9713_v29 = vld [vmem:[%s19958_s3 + $0x88] sm:$0xff] }
 0x6f4   :  { %v2608_v32 = vmax.f32 %v2607_v26, 0.0  ;;  %v14925_v26 = vpack.c.bf16 %v9713_v29, %v9712_v25 }
 0x6f6   :  { %13550 = vmatmul.mubr.msk.f32.vlgmr.msra.gmra.mrb[34].mxu0 %vm669_vm1, %v2608_v32  ;;  %v9716_v32 = vld [vmem:[%s19957_s0 + $0x98] sm:$0xff] }
 0x6f7   :  { %14700 = vmatpush3.bf16.msra.mxu0 %v17151_v7  ;;  %2826 = vmatprep.mubr.f32.mxu0 %v9696_v35  ;;  %v9715_v35 = vld [vmem:[%s19957_s0 + $0x90] sm:$0xff] }
 0x6f8   :  { %14702 = vmatprep.subr.bf16.mxu0 %v17153_v8 }
 0x6fb   :  { %14704 = vmatpush3.bf16.msra.mxu0 %v17171_v13 }
 0x6fc   :  { %14706 = vmatprep.subr.bf16.mxu0 %v17175_v14 }
 0x6ff   :  { %14708 = vmatpush3.bf16.msra.mxu0 %v17191_v19 }
 0x700   :  { %14710 = vmatprep.subr.bf16.mxu0 %v17195_v20 }
 0x703   :  { %14712 = vmatpush3.bf16.msra.mxu0 %v17217_v27 }
 0x704   :  { %14714 = vmatprep.subr.bf16.mxu0 %v17221_v28 }
 0x707   :  { %14716 = vmatpush3.bf16.msra.mxu0 %v17237_v33 }
 0x708   :  { %14718 = vmatprep.subr.bf16.mxu0 %v17241_v34 }
 0x70b   :  { %14720 = vmatpush3.bf16.msra.mxu0 %v17257_v39 }
 0x70c   :  { %14722 = vmatprep.subr.bf16.mxu0 %v17261_v40  ;;  %v10927_v41 = vpop.f32.mrb[34].mxu1 }
 0x70d   :  { %v10928_v42 = vpop.f32.mrb[35].mxu1 }
 0x70e   :  { %v10929_v43 = vadd.f32 %v10928_v42, %v10927_v41 }
 0x70f   :  { %14724 = vmatpush3.bf16.msra.mxu0 %v17277_v45 }
 0x710   :  { %14726 = vmatprep.subr.bf16.mxu0 %v17281_v46 }
 0x713   :  { %14728 = vmatpush3.bf16.msra.mxu0 %v17291_v49 }
 0x714   :  { %14762 = vmatprep.subr.bf16.mxu0 %v17140_v3 }
 0x716   :  { %2827 = vmatmul.mubr.f32.vlgmr.msra.gmra.mrb[36].mxu0 %v9695_v36  ;;  %v9720_v36 = vld [vmem:[%s19957_s0 + $0x3b8] sm:$0xff] }
 0x717   :  { %14764 = vmatpush3.bf16.msra.mxu0 %v17151_v7  ;;  %2974 = vmatprep.mubr.f32.mxu0 %v9700_v37  ;;  %v9719_v37 = vld [vmem:[%s19957_s0 + $0x3b0] sm:$0xff] }
 0x718   :  { %14766 = vmatprep.subr.bf16.mxu0 %v17153_v8 }
 0x71b   :  { %14768 = vmatpush3.bf16.msra.mxu0 %v17171_v13 }
 0x71c   :  { %14770 = vmatprep.subr.bf16.mxu0 %v17175_v14 }
 0x71f   :  { %14772 = vmatpush3.bf16.msra.mxu0 %v17191_v19 }
 0x720   :  { %14774 = vmatprep.subr.bf16.mxu0 %v17195_v20 }
 0x723   :  { %14776 = vmatpush3.bf16.msra.mxu0 %v17217_v27 }
 0x724   :  { %14778 = vmatprep.subr.bf16.mxu0 %v17221_v28 }
 0x727   :  { %14780 = vmatpush3.bf16.msra.mxu0 %v17237_v33 }
 0x728   :  { %14782 = vmatprep.subr.bf16.mxu0 %v17241_v34 }
 0x72b   :  { %14784 = vmatpush3.bf16.msra.mxu0 %v17257_v39 }
 0x72c   :  { %14786 = vmatprep.subr.bf16.mxu0 %v17261_v40  ;;  %v10997_v44 = vpop.f32.mrb[36].mxu1 }
 0x72d   :  { %v10998_v47 = vpop.f32.mrb[37].mxu1 }
 0x72e   :  { %v10999_v48 = vadd.f32 %v10998_v47, %v10997_v44 }
 0x72f   :  { %14788 = vmatpush3.bf16.msra.mxu0 %v17277_v45 }
 0x730   :  { %14790 = vmatprep.subr.bf16.mxu0 %v17281_v46 }
 0x733   :  { %14792 = vmatpush3.bf16.msra.mxu0 %v17291_v49 }
 0x734   :  { %14797 = vmatprep.subr.bf16.mxu0 %v17140_v3 }
 0x736   :  { %2975 = vmatmul.mubr.f32.vlgmr.msra.gmra.mrb[38].mxu0 %v9699_v38 }
 0x737   :  { %14799 = vmatpush3.bf16.msra.mxu0 %v17151_v7  ;;  %3127 = vmatprep.mubr.f32.mxu0 %v9705_v53 }
 0x738   :  { %14801 = vmatprep.subr.bf16.mxu0 %v17153_v8 }
 0x73b   :  { %14803 = vmatpush3.bf16.msra.mxu0 %v17171_v13 }
 0x73c   :  { %14805 = vmatprep.subr.bf16.mxu0 %v17175_v14 }
 0x73f   :  { %14807 = vmatpush3.bf16.msra.mxu0 %v17191_v19 }
 0x740   :  { %14809 = vmatprep.subr.bf16.mxu0 %v17195_v20 }
 0x743   :  { %14811 = vmatpush3.bf16.msra.mxu0 %v17217_v27 }
 0x744   :  { %14813 = vmatprep.subr.bf16.mxu0 %v17221_v28 }
 0x747   :  { %14815 = vmatpush3.bf16.msra.mxu0 %v17237_v33 }
 0x748   :  { %14817 = vmatprep.subr.bf16.mxu0 %v17241_v34 }
 0x74b   :  { %14819 = vmatpush3.bf16.msra.mxu0 %v17257_v39 }
 0x74c   :  { %14821 = vmatprep.subr.bf16.mxu0 %v17261_v40 }
 0x74f   :  { %14823 = vmatpush3.bf16.msra.mxu0 %v17277_v45 }
 0x750   :  { %14825 = vmatprep.subr.bf16.mxu0 %v17281_v46 }
 0x753   :  { %14827 = vmatpush3.bf16.msra.mxu0 %v17291_v49 }
 0x754   :  { %14861 = vmatprep.subr.bf16.mxu0 %v17140_v3 }
 0x756   :  { %3128 = vmatmul.mubr.f32.vlgmr.msra.gmra.mrb[40].mxu0 %v9704_v54 }
 0x757   :  { %14863 = vmatpush3.bf16.msra.mxu0 %v17151_v7  ;;  %3274 = vmatprep.mubr.f32.mxu0 %v9709_v31 }
 0x758   :  { %14865 = vmatprep.subr.bf16.mxu0 %v17153_v8 }
 0x75b   :  { %14867 = vmatpush3.bf16.msra.mxu0 %v17171_v13 }
 0x75c   :  { %14869 = vmatprep.subr.bf16.mxu0 %v17175_v14 }
 0x75f   :  { %14871 = vmatpush3.bf16.msra.mxu0 %v17191_v19 }
 0x760   :  { %14873 = vmatprep.subr.bf16.mxu0 %v17195_v20 }
 0x763   :  { %14875 = vmatpush3.bf16.msra.mxu0 %v17217_v27 }
 0x764   :  { %14877 = vmatprep.subr.bf16.mxu0 %v17221_v28 }
 0x767   :  { %14879 = vmatpush3.bf16.msra.mxu0 %v17237_v33 }
 0x768   :  { %14881 = vmatprep.subr.bf16.mxu0 %v17241_v34 }
 0x76b   :  { %14883 = vmatpush3.bf16.msra.mxu0 %v17257_v39 }
 0x76c   :  { %14885 = vmatprep.subr.bf16.mxu0 %v17261_v40 }
 0x76f   :  { %14887 = vmatpush3.bf16.msra.mxu0 %v17277_v45 }
 0x770   :  { %14889 = vmatprep.subr.bf16.mxu0 %v17281_v46 }
 0x773   :  { %14891 = vmatpush3.bf16.msra.mxu0 %v17291_v49 }
 0x774   :  { %14924 = vmatprep.subr.bf16.mxu0 %v17078_v4 }
 0x776   :  { %3275 = vmatmul.mubr.f32.vlgmr.msra.gmra.mrb[42].mxu0 %v9708_v55 }
 0x777   :  { %13563 = vmatprep.mubr.msk.f32.mxu0 %vm17079_vm0, %v17080_v5  ;;  %14926 = vmatpush3.bf16.msra.mxu0 %v14925_v26 }
 0x778   :  { %14960 = vmatprep.subr.bf16.mxu0 %v17140_v3 }
 0x7c9   :  { %v2681_v56 = vpop.f32.mrb[34].mxu0 }
 0x7ca   :  { %v18122_v57 = vadd.f32 %v2681_v56, %v18015_v12  ;;  %v13551_v58 = vpop.f32.mrb[35].mxu0  ;;  %v9706_v12 = vld [vmem:[%s19957_s0 + $0x210] sm:$0xff]  ;;  %v9718_v56 = vld [vmem:[%s19957_s0 + $0x228] sm:$0xff] }
 0x7cb   :  { %v9722_v58 = vld [vmem:[%s19957_s0 + $0x548] sm:$0xff] }
 0x7e9   :  { %v10962_v59 = vpop.f32.mrb[36].mxu0 }
 0x7ea   :  { %v10963_v60 = vpop.f32.mrb[37].mxu0 }
 0x7eb   :  { %v10964_v61 = vadd.f32 %v10963_v60, %v10962_v59  ;;  %v9721_v59 = vld [vmem:[%s19957_s0 + $0x540] sm:$0xff] }
 0x7ed   :  { %v2832_v62 = vmax.f32 %v10929_v43, %v10964_v61 }
 0x7ef   :  { %v2906_v63 = vmax.f32 %v2832_v62, %v10999_v48 }
 0x809   :  { %v11032_v0 = vpop.f32.mrb[38].mxu0 }
 0x80a   :  { %v11033_v1 = vpop.f32.mrb[39].mxu0 }
 0x80b   :  { %v11034_v2 = vadd.f32 %v11033_v1, %v11032_v0 }
 0x80d   :  { %v2980_v6 = vmax.f32 %v2906_v63, %v11034_v2  ;;  %v9723_v2 = vld [vmem:[%s19958_s3 + $0x90] sm:$0xff] }
 0x80f   :  { %v2981_v9 = vadd.f32 %v18020_v30, %v2980_v6  ;;  %v9724_v6 = vld [vmem:[%s19958_s3 + $0x98] sm:$0xff] }
 0x811   :  { %v2982_v10 = vmax.f32 %v2981_v9, 0.0  ;;  %v15056_v9 = vpack.c.bf16 %v9724_v6, %v9723_v2 }
 0x813   :  { %13557 = vmatmul.mubr.msk.f32.vlgmr.msra.gmra.mrb[38].mxu1 %vm669_vm1, %v2982_v10  ;;  %v9727_v10 = vld [vmem:[%s19957_s0 + $0xa8] sm:$0xff] }
 0x814   :  { %14831 = vmatpush3.bf16.msra.mxu1 %v17151_v7  ;;  %3200 = vmatprep.mubr.f32.mxu1 %v9707_v11  ;;  %v9726_v11 = vld [vmem:[%s19957_s0 + $0xa0] sm:$0xff] }
 0x815   :  { %14833 = vmatprep.subr.bf16.mxu1 %v17153_v8 }
 0x818   :  { %14835 = vmatpush3.bf16.msra.mxu1 %v17171_v13 }
 0x819   :  { %14837 = vmatprep.subr.bf16.mxu1 %v17175_v14 }
 0x81c   :  { %14839 = vmatpush3.bf16.msra.mxu1 %v17191_v19 }
 0x81d   :  { %14841 = vmatprep.subr.bf16.mxu1 %v17195_v20 }
 0x820   :  { %14843 = vmatpush3.bf16.msra.mxu1 %v17217_v27 }
 0x821   :  { %14845 = vmatprep.subr.bf16.mxu1 %v17221_v28 }
 0x824   :  { %14847 = vmatpush3.bf16.msra.mxu1 %v17237_v33 }
 0x825   :  { %14849 = vmatprep.subr.bf16.mxu1 %v17241_v34 }
 0x828   :  { %14851 = vmatpush3.bf16.msra.mxu1 %v17257_v39 }
 0x829   :  { %14853 = vmatprep.subr.bf16.mxu1 %v17261_v40  ;;  %v11070_v17 = vpop.f32.mrb[40].mxu0 }
 0x82a   :  { %v11071_v18 = vpop.f32.mrb[41].mxu0 }
 0x82b   :  { %v11072_v21 = vadd.f32 %v11071_v18, %v11070_v17 }
 0x82c   :  { %14855 = vmatpush3.bf16.msra.mxu1 %v17277_v45 }
 0x82d   :  { %14857 = vmatprep.subr.bf16.mxu1 %v17281_v46 }
 0x830   :  { %14859 = vmatpush3.bf16.msra.mxu1 %v17291_v49 }
 0x831   :  { %14893 = vmatprep.subr.bf16.mxu1 %v17140_v3 }
 0x833   :  { %3201 = vmatmul.mubr.f32.vlgmr.msra.gmra.mrb[40].mxu1 %v9706_v12  ;;  %v9731_v12 = vld [vmem:[%s19957_s0 + $0x3c8] sm:$0xff] }
 0x834   :  { %14895 = vmatpush3.bf16.msra.mxu1 %v17151_v7  ;;  %3348 = vmatprep.mubr.f32.mxu1 %v9711_v15  ;;  %v9730_v15 = vld [vmem:[%s19957_s0 + $0x3c0] sm:$0xff] }
 0x835   :  { %14897 = vmatprep.subr.bf16.mxu1 %v17153_v8 }
 0x838   :  { %14899 = vmatpush3.bf16.msra.mxu1 %v17171_v13 }
 0x839   :  { %14901 = vmatprep.subr.bf16.mxu1 %v17175_v14 }
 0x83c   :  { %14903 = vmatpush3.bf16.msra.mxu1 %v17191_v19 }
 0x83d   :  { %14905 = vmatprep.subr.bf16.mxu1 %v17195_v20 }
 0x840   :  { %14907 = vmatpush3.bf16.msra.mxu1 %v17217_v27 }
 0x841   :  { %14909 = vmatprep.subr.bf16.mxu1 %v17221_v28 }
 0x844   :  { %14911 = vmatpush3.bf16.msra.mxu1 %v17237_v33 }
 0x845   :  { %14913 = vmatprep.subr.bf16.mxu1 %v17241_v34 }
 0x848   :  { %14915 = vmatpush3.bf16.msra.mxu1 %v17257_v39 }
 0x849   :  { %14917 = vmatprep.subr.bf16.mxu1 %v17261_v40  ;;  %v11140_v22 = vpop.f32.mrb[42].mxu0 }
 0x84a   :  { %v11141_v23 = vpop.f32.mrb[43].mxu0 }
 0x84b   :  { %v11142_v24 = vadd.f32 %v11141_v23, %v11140_v22 }
 0x84c   :  { %14919 = vmatpush3.bf16.msra.mxu1 %v17277_v45 }
 0x84d   :  { %14921 = vmatprep.subr.bf16.mxu1 %v17281_v46 }
 0x850   :  { %14923 = vmatpush3.bf16.msra.mxu1 %v17291_v49 }
 0x851   :  { %14928 = vmatprep.subr.bf16.mxu1 %v17140_v3 }
 0x853   :  { %3349 = vmatmul.mubr.f32.vlgmr.msra.gmra.mrb[42].mxu1 %v9710_v16 }
 0x854   :  { %14930 = vmatpush3.bf16.msra.mxu1 %v17151_v7  ;;  %3501 = vmatprep.mubr.f32.mxu1 %v9716_v32 }
 0x855   :  { %14932 = vmatprep.subr.bf16.mxu1 %v17153_v8 }
 0x858   :  { %14934 = vmatpush3.bf16.msra.mxu1 %v17171_v13 }
 0x859   :  { %14936 = vmatprep.subr.bf16.mxu1 %v17175_v14 }
 0x85c   :  { %14938 = vmatpush3.bf16.msra.mxu1 %v17191_v19 }
 0x85d   :  { %14940 = vmatprep.subr.bf16.mxu1 %v17195_v20 }
 0x860   :  { %14942 = vmatpush3.bf16.msra.mxu1 %v17217_v27 }
 0x861   :  { %14944 = vmatprep.subr.bf16.mxu1 %v17221_v28 }
 0x864   :  { %14946 = vmatpush3.bf16.msra.mxu1 %v17237_v33 }
 0x865   :  { %14948 = vmatprep.subr.bf16.mxu1 %v17241_v34 }
 0x868   :  { %14950 = vmatpush3.bf16.msra.mxu1 %v17257_v39 }
 0x869   :  { %14952 = vmatprep.subr.bf16.mxu1 %v17261_v40 }
 0x86c   :  { %14954 = vmatpush3.bf16.msra.mxu1 %v17277_v45 }
 0x86d   :  { %14956 = vmatprep.subr.bf16.mxu1 %v17281_v46 }
 0x870   :  { %14958 = vmatpush3.bf16.msra.mxu1 %v17291_v49 }
 0x871   :  { %14992 = vmatprep.subr.bf16.mxu1 %v17140_v3 }
 0x873   :  { %3502 = vmatmul.mubr.f32.vlgmr.msra.gmra.mrb[44].mxu1 %v9715_v35 }
 0x874   :  { %14994 = vmatpush3.bf16.msra.mxu1 %v17151_v7  ;;  %3648 = vmatprep.mubr.f32.mxu1 %v9720_v36 }
 0x875   :  { %14996 = vmatprep.subr.bf16.mxu1 %v17153_v8 }
 0x878   :  { %14998 = vmatpush3.bf16.msra.mxu1 %v17171_v13 }
 0x879   :  { %15000 = vmatprep.subr.bf16.mxu1 %v17175_v14 }
 0x87c   :  { %15002 = vmatpush3.bf16.msra.mxu1 %v17191_v19 }
 0x87d   :  { %15004 = vmatprep.subr.bf16.mxu1 %v17195_v20 }
 0x880   :  { %15006 = vmatpush3.bf16.msra.mxu1 %v17217_v27 }
 0x881   :  { %15008 = vmatprep.subr.bf16.mxu1 %v17221_v28 }
 0x884   :  { %15010 = vmatpush3.bf16.msra.mxu1 %v17237_v33 }
 0x885   :  { %15012 = vmatprep.subr.bf16.mxu1 %v17241_v34 }
 0x888   :  { %15014 = vmatpush3.bf16.msra.mxu1 %v17257_v39 }
 0x889   :  { %15016 = vmatprep.subr.bf16.mxu1 %v17261_v40 }
 0x88c   :  { %15018 = vmatpush3.bf16.msra.mxu1 %v17277_v45 }
 0x88d   :  { %15020 = vmatprep.subr.bf16.mxu1 %v17281_v46 }
 0x890   :  { %15022 = vmatpush3.bf16.msra.mxu1 %v17291_v49 }
 0x891   :  { %15055 = vmatprep.subr.bf16.mxu1 %v17078_v4 }
 0x893   :  { %3649 = vmatmul.mubr.f32.vlgmr.msra.gmra.mrb[46].mxu1 %v9719_v37 }
 0x894   :  { %13570 = vmatprep.mubr.msk.f32.mxu1 %vm17079_vm0, %v17080_v5  ;;  %15057 = vmatpush3.bf16.msra.mxu1 %v15056_v9 }
 0x895   :  { %15091 = vmatprep.subr.bf16.mxu1 %v17140_v3 }
 0x8e6   :  { %v3055_v38 = vpop.f32.mrb[38].mxu1 }
 0x8e7   :  { %v18224_v41 = vadd.f32 %v3055_v38, %v18122_v57  ;;  %v13558_v42 = vpop.f32.mrb[39].mxu1  ;;  %v9717_v57 = vld [vmem:[%s19957_s0 + $0x220] sm:$0xff]  ;;  %v9729_v38 = vld [vmem:[%s19957_s0 + $0x238] sm:$0xff] }
 0x8e8   :  { %v9733_v42 = vld [vmem:[%s19957_s0 + $0x558] sm:$0xff] }
 0x906   :  { %v11105_v43 = vpop.f32.mrb[40].mxu1 }
 0x907   :  { %v11106_v44 = vpop.f32.mrb[41].mxu1 }
 0x908   :  { %v11107_v47 = vadd.f32 %v11106_v44, %v11105_v43  ;;  %v9732_v43 = vld [vmem:[%s19957_s0 + $0x550] sm:$0xff] }
 0x90a   :  { %v3206_v48 = vmax.f32 %v11072_v21, %v11107_v47 }
 0x90c   :  { %v3280_v50 = vmax.f32 %v3206_v48, %v11142_v24 }
 0x926   :  { %v11175_v51 = vpop.f32.mrb[42].mxu1 }
 0x927   :  { %v11176_v52 = vpop.f32.mrb[43].mxu1 }
 0x928   :  { %v11177_v53 = vadd.f32 %v11176_v52, %v11175_v51 }
 0x92a   :  { %v3354_v54 = vmax.f32 %v3280_v50, %v11177_v53  ;;  %v9734_v53 = vld [vmem:[%s19958_s3 + $0xa0] sm:$0xff] }
 0x92c   :  { %v3355_v31 = vadd.f32 %v18020_v30, %v3354_v54  ;;  %v9735_v54 = vld [vmem:[%s19958_s3 + $0xa8] sm:$0xff] }
 0x92e   :  { %v3356_v55 = vmax.f32 %v3355_v31, 0.0  ;;  %v15187_v31 = vpack.c.bf16 %v9735_v54, %v9734_v53 }
 0x930   :  { %13564 = vmatmul.mubr.msk.f32.vlgmr.msra.gmra.mrb[44].mxu0 %vm669_vm1, %v3356_v55  ;;  %v9738_v55 = vld [vmem:[%s19957_s0 + $0xb8] sm:$0xff] }
 0x931   :  { %14962 = vmatpush3.bf16.msra.mxu0 %v17151_v7  ;;  %3574 = vmatprep.mubr.f32.mxu0 %v9718_v56  ;;  %v9737_v56 = vld [vmem:[%s19957_s0 + $0xb0] sm:$0xff] }
 0x932   :  { %14964 = vmatprep.subr.bf16.mxu0 %v17153_v8 }
 0x935   :  { %14966 = vmatpush3.bf16.msra.mxu0 %v17171_v13 }
 0x936   :  { %14968 = vmatprep.subr.bf16.mxu0 %v17175_v14 }
 0x939   :  { %14970 = vmatpush3.bf16.msra.mxu0 %v17191_v19 }
 0x93a   :  { %14972 = vmatprep.subr.bf16.mxu0 %v17195_v20 }
 0x93d   :  { %14974 = vmatpush3.bf16.msra.mxu0 %v17217_v27 }
 0x93e   :  { %14976 = vmatprep.subr.bf16.mxu0 %v17221_v28 }
 0x941   :  { %14978 = vmatpush3.bf16.msra.mxu0 %v17237_v33 }
 0x942   :  { %14980 = vmatprep.subr.bf16.mxu0 %v17241_v34 }
 0x945   :  { %14982 = vmatpush3.bf16.msra.mxu0 %v17257_v39 }
 0x946   :  { %14984 = vmatprep.subr.bf16.mxu0 %v17261_v40  ;;  %v11213_v60 = vpop.f32.mrb[44].mxu1 }
 0x947   :  { %v11214_v61 = vpop.f32.mrb[45].mxu1 }
 0x948   :  { %v11215_v62 = vadd.f32 %v11214_v61, %v11213_v60 }
 0x949   :  { %14986 = vmatpush3.bf16.msra.mxu0 %v17277_v45 }
 0x94a   :  { %14988 = vmatprep.subr.bf16.mxu0 %v17281_v46 }
 0x94d   :  { %14990 = vmatpush3.bf16.msra.mxu0 %v17291_v49 }
 0x94e   :  { %15024 = vmatprep.subr.bf16.mxu0 %v17140_v3 }
 0x950   :  { %3575 = vmatmul.mubr.f32.vlgmr.msra.gmra.mrb[46].mxu0 %v9717_v57  ;;  %v9742_v57 = vld [vmem:[%s19957_s0 + $0x3d8] sm:$0xff] }
 0x951   :  { %15026 = vmatpush3.bf16.msra.mxu0 %v17151_v7  ;;  %3722 = vmatprep.mubr.f32.mxu0 %v9722_v58  ;;  %v9741_v58 = vld [vmem:[%s19957_s0 + $0x3d0] sm:$0xff] }
 0x952   :  { %15028 = vmatprep.subr.bf16.mxu0 %v17153_v8 }
 0x955   :  { %15030 = vmatpush3.bf16.msra.mxu0 %v17171_v13 }
 0x956   :  { %15032 = vmatprep.subr.bf16.mxu0 %v17175_v14 }
 0x959   :  { %15034 = vmatpush3.bf16.msra.mxu0 %v17191_v19 }
 0x95a   :  { %15036 = vmatprep.subr.bf16.mxu0 %v17195_v20 }
 0x95d   :  { %15038 = vmatpush3.bf16.msra.mxu0 %v17217_v27 }
 0x95e   :  { %15040 = vmatprep.subr.bf16.mxu0 %v17221_v28 }
 0x961   :  { %15042 = vmatpush3.bf16.msra.mxu0 %v17237_v33 }
 0x962   :  { %15044 = vmatprep.subr.bf16.mxu0 %v17241_v34 }
 0x965   :  { %15046 = vmatpush3.bf16.msra.mxu0 %v17257_v39 }
 0x966   :  { %15048 = vmatprep.subr.bf16.mxu0 %v17261_v40  ;;  %v11283_v63 = vpop.f32.mrb[46].mxu1 }
 0x967   :  { %v11284_v0 = vpop.f32.mrb[47].mxu1 }
 0x968   :  { %v11285_v1 = vadd.f32 %v11284_v0, %v11283_v63 }
 0x969   :  { %15050 = vmatpush3.bf16.msra.mxu0 %v17277_v45 }
 0x96a   :  { %15052 = vmatprep.subr.bf16.mxu0 %v17281_v46 }
 0x96d   :  { %15054 = vmatpush3.bf16.msra.mxu0 %v17291_v49 }
 0x96e   :  { %15059 = vmatprep.subr.bf16.mxu0 %v17140_v3 }
 0x970   :  { %3723 = vmatmul.mubr.f32.vlgmr.msra.gmra.mrb[48].mxu0 %v9721_v59 }
 0x971   :  { %15061 = vmatpush3.bf16.msra.mxu0 %v17151_v7  ;;  %3875 = vmatprep.mubr.f32.mxu0 %v9727_v10 }
 0x972   :  { %15063 = vmatprep.subr.bf16.mxu0 %v17153_v8 }
 0x975   :  { %15065 = vmatpush3.bf16.msra.mxu0 %v17171_v13 }
 0x976   :  { %15067 = vmatprep.subr.bf16.mxu0 %v17175_v14 }
 0x979   :  { %15069 = vmatpush3.bf16.msra.mxu0 %v17191_v19 }
 0x97a   :  { %15071 = vmatprep.subr.bf16.mxu0 %v17195_v20 }
 0x97d   :  { %15073 = vmatpush3.bf16.msra.mxu0 %v17217_v27 }
 0x97e   :  { %15075 = vmatprep.subr.bf16.mxu0 %v17221_v28 }
 0x981   :  { %15077 = vmatpush3.bf16.msra.mxu0 %v17237_v33 }
 0x982   :  { %15079 = vmatprep.subr.bf16.mxu0 %v17241_v34 }
 0x985   :  { %15081 = vmatpush3.bf16.msra.mxu0 %v17257_v39 }
 0x986   :  { %15083 = vmatprep.subr.bf16.mxu0 %v17261_v40 }
 0x989   :  { %15085 = vmatpush3.bf16.msra.mxu0 %v17277_v45 }
 0x98a   :  { %15087 = vmatprep.subr.bf16.mxu0 %v17281_v46 }
 0x98d   :  { %15089 = vmatpush3.bf16.msra.mxu0 %v17291_v49 }
 0x98e   :  { %15123 = vmatprep.subr.bf16.mxu0 %v17140_v3 }
 0x990   :  { %3876 = vmatmul.mubr.f32.vlgmr.msra.gmra.mrb[50].mxu0 %v9726_v11 }
 0x991   :  { %15125 = vmatpush3.bf16.msra.mxu0 %v17151_v7  ;;  %4022 = vmatprep.mubr.f32.mxu0 %v9731_v12 }
 0x992   :  { %15127 = vmatprep.subr.bf16.mxu0 %v17153_v8 }
 0x995   :  { %15129 = vmatpush3.bf16.msra.mxu0 %v17171_v13 }
 0x996   :  { %15131 = vmatprep.subr.bf16.mxu0 %v17175_v14 }
 0x999   :  { %15133 = vmatpush3.bf16.msra.mxu0 %v17191_v19 }
 0x99a   :  { %15135 = vmatprep.subr.bf16.mxu0 %v17195_v20 }
 0x99d   :  { %15137 = vmatpush3.bf16.msra.mxu0 %v17217_v27 }
 0x99e   :  { %15139 = vmatprep.subr.bf16.mxu0 %v17221_v28 }
 0x9a1   :  { %15141 = vmatpush3.bf16.msra.mxu0 %v17237_v33 }
 0x9a2   :  { %15143 = vmatprep.subr.bf16.mxu0 %v17241_v34 }
 0x9a5   :  { %15145 = vmatpush3.bf16.msra.mxu0 %v17257_v39 }
 0x9a6   :  { %15147 = vmatprep.subr.bf16.mxu0 %v17261_v40 }
 0x9a9   :  { %15149 = vmatpush3.bf16.msra.mxu0 %v17277_v45 }
 0x9aa   :  { %15151 = vmatprep.subr.bf16.mxu0 %v17281_v46 }
 0x9ad   :  { %15153 = vmatpush3.bf16.msra.mxu0 %v17291_v49 }
 0x9ae   :  { %15186 = vmatprep.subr.bf16.mxu0 %v17078_v4 }
 0x9b0   :  { %4023 = vmatmul.mubr.f32.vlgmr.msra.gmra.mrb[52].mxu0 %v9730_v15 }
 0x9b1   :  { %13577 = vmatprep.mubr.msk.f32.mxu0 %vm17079_vm0, %v17080_v5  ;;  %15188 = vmatpush3.bf16.msra.mxu0 %v15187_v31 }
 0x9b2   :  { %15222 = vmatprep.subr.bf16.mxu0 %v17140_v3 }
 0xa03   :  { %v3429_v16 = vpop.f32.mrb[44].mxu0 }
 0xa04   :  { %v18326_v17 = vadd.f32 %v3429_v16, %v18224_v41  ;;  %v13565_v18 = vpop.f32.mrb[45].mxu0  ;;  %v9728_v41 = vld [vmem:[%s19957_s0 + $0x230] sm:$0xff]  ;;  %v9740_v16 = vld [vmem:[%s19957_s0 + $0x248] sm:$0xff] }
 0xa05   :  { %v9743_v18 = vld [vmem:[%s19957_s0 + $0x560] sm:$0xff] }
 0xa23   :  { %v11248_v21 = vpop.f32.mrb[46].mxu0 }
 0xa24   :  { %v11249_v22 = vpop.f32.mrb[47].mxu0 }
 0xa25   :  { %v11250_v23 = vadd.f32 %v11249_v22, %v11248_v21 }
 0xa27   :  { %v3580_v24 = vmax.f32 %v11215_v62, %v11250_v23 }
 0xa29   :  { %v3654_v25 = vmax.f32 %v3580_v24, %v11285_v1 }
 0xa43   :  { %v11318_v29 = vpop.f32.mrb[48].mxu0 }
 0xa44   :  { %v11319_v26 = vpop.f32.mrb[49].mxu0 }
 0xa45   :  { %v11320_v32 = vadd.f32 %v11319_v26, %v11318_v29  ;;  %v9745_v26 = vld [vmem:[%s19958_s3 + $0xb0] sm:$0xff] }
 0xa47   :  { %v3728_v35 = vmax.f32 %v3654_v25, %v11320_v32  ;;  %v9746_v32 = vld [vmem:[%s19958_s3 + $0xb8] sm:$0xff] }
 0xa49   :  { %v3729_v36 = vadd.f32 %v18020_v30, %v3728_v35  ;;  %v15318_v35 = vpack.c.bf16 %v9746_v32, %v9745_v26 }
 0xa4b   :  { %v3730_v37 = vmax.f32 %v3729_v36, 0.0  ;;  %v9749_v36 = vld [vmem:[%s19957_s0 + $0xc8] sm:$0xff] }
 0xa4d   :  { %13571 = vmatmul.mubr.msk.f32.vlgmr.msra.gmra.mrb[48].mxu1 %vm669_vm1, %v3730_v37  ;;  %v9748_v37 = vld [vmem:[%s19957_s0 + $0xc0] sm:$0xff] }
 0xa4e   :  { %15093 = vmatpush3.bf16.msra.mxu1 %v17151_v7  ;;  %3948 = vmatprep.mubr.f32.mxu1 %v9729_v38  ;;  %v9753_v38 = vld [vmem:[%s19957_s0 + $0x3e8] sm:$0xff] }
 0xa4f   :  { %15095 = vmatprep.subr.bf16.mxu1 %v17153_v8 }
 0xa52   :  { %15097 = vmatpush3.bf16.msra.mxu1 %v17171_v13 }
 0xa53   :  { %15099 = vmatprep.subr.bf16.mxu1 %v17175_v14 }
 0xa56   :  { %15101 = vmatpush3.bf16.msra.mxu1 %v17191_v19 }
 0xa57   :  { %15103 = vmatprep.subr.bf16.mxu1 %v17195_v20 }
 0xa5a   :  { %15105 = vmatpush3.bf16.msra.mxu1 %v17217_v27 }
 0xa5b   :  { %15107 = vmatprep.subr.bf16.mxu1 %v17221_v28 }
 0xa5e   :  { %15109 = vmatpush3.bf16.msra.mxu1 %v17237_v33 }
 0xa5f   :  { %15111 = vmatprep.subr.bf16.mxu1 %v17241_v34 }
 0xa62   :  { %15113 = vmatpush3.bf16.msra.mxu1 %v17257_v39 }
 0xa63   :  { %15115 = vmatprep.subr.bf16.mxu1 %v17261_v40  ;;  %v11356_v44 = vpop.f32.mrb[50].mxu0 }
 0xa64   :  { %v11357_v47 = vpop.f32.mrb[51].mxu0 }
 0xa65   :  { %v11358_v48 = vadd.f32 %v11357_v47, %v11356_v44 }
 0xa66   :  { %15117 = vmatpush3.bf16.msra.mxu1 %v17277_v45 }
 0xa67   :  { %15119 = vmatprep.subr.bf16.mxu1 %v17281_v46 }
 0xa6a   :  { %15121 = vmatpush3.bf16.msra.mxu1 %v17291_v49 }
 0xa6b   :  { %15155 = vmatprep.subr.bf16.mxu1 %v17140_v3 }
 0xa6d   :  { %3949 = vmatmul.mubr.f32.vlgmr.msra.gmra.mrb[50].mxu1 %v9728_v41  ;;  %v9752_v41 = vld [vmem:[%s19957_s0 + $0x3e0] sm:$0xff] }
 0xa6e   :  { %15157 = vmatpush3.bf16.msra.mxu1 %v17151_v7  ;;  %4096 = vmatprep.mubr.f32.mxu1 %v9733_v42 }
 0xa6f   :  { %15159 = vmatprep.subr.bf16.mxu1 %v17153_v8 }
 0xa72   :  { %15161 = vmatpush3.bf16.msra.mxu1 %v17171_v13 }
 0xa73   :  { %15163 = vmatprep.subr.bf16.mxu1 %v17175_v14 }
 0xa76   :  { %15165 = vmatpush3.bf16.msra.mxu1 %v17191_v19 }
 0xa77   :  { %15167 = vmatprep.subr.bf16.mxu1 %v17195_v20 }
 0xa7a   :  { %15169 = vmatpush3.bf16.msra.mxu1 %v17217_v27 }
 0xa7b   :  { %15171 = vmatprep.subr.bf16.mxu1 %v17221_v28 }
 0xa7e   :  { %15173 = vmatpush3.bf16.msra.mxu1 %v17237_v33 }
 0xa7f   :  { %15175 = vmatprep.subr.bf16.mxu1 %v17241_v34 }
 0xa82   :  { %15177 = vmatpush3.bf16.msra.mxu1 %v17257_v39 }
 0xa83   :  { %15179 = vmatprep.subr.bf16.mxu1 %v17261_v40  ;;  %v11426_v50 = vpop.f32.mrb[52].mxu0 }
 0xa84   :  { %v11427_v51 = vpop.f32.mrb[53].mxu0 }
 0xa85   :  { %v11428_v52 = vadd.f32 %v11427_v51, %v11426_v50 }
 0xa86   :  { %15181 = vmatpush3.bf16.msra.mxu1 %v17277_v45 }
 0xa87   :  { %15183 = vmatprep.subr.bf16.mxu1 %v17281_v46 }
 0xa8a   :  { %15185 = vmatpush3.bf16.msra.mxu1 %v17291_v49 }
 0xa8b   :  { %15190 = vmatprep.subr.bf16.mxu1 %v17140_v3 }
 0xa8d   :  { %4097 = vmatmul.mubr.f32.vlgmr.msra.gmra.mrb[52].mxu1 %v9732_v43 }
 0xa8e   :  { %15192 = vmatpush3.bf16.msra.mxu1 %v17151_v7  ;;  %4249 = vmatprep.mubr.f32.mxu1 %v9738_v55 }
 0xa8f   :  { %15194 = vmatprep.subr.bf16.mxu1 %v17153_v8 }
 0xa92   :  { %15196 = vmatpush3.bf16.msra.mxu1 %v17171_v13 }
 0xa93   :  { %15198 = vmatprep.subr.bf16.mxu1 %v17175_v14 }
 0xa96   :  { %15200 = vmatpush3.bf16.msra.mxu1 %v17191_v19 }
 0xa97   :  { %15202 = vmatprep.subr.bf16.mxu1 %v17195_v20 }
 0xa9a   :  { %15204 = vmatpush3.bf16.msra.mxu1 %v17217_v27 }
 0xa9b   :  { %15206 = vmatprep.subr.bf16.mxu1 %v17221_v28 }
 0xa9e   :  { %15208 = vmatpush3.bf16.msra.mxu1 %v17237_v33 }
 0xa9f   :  { %15210 = vmatprep.subr.bf16.mxu1 %v17241_v34 }
 0xaa2   :  { %15212 = vmatpush3.bf16.msra.mxu1 %v17257_v39 }
 0xaa3   :  { %15214 = vmatprep.subr.bf16.mxu1 %v17261_v40 }
 0xaa6   :  { %15216 = vmatpush3.bf16.msra.mxu1 %v17277_v45 }
 0xaa7   :  { %15218 = vmatprep.subr.bf16.mxu1 %v17281_v46 }
 0xaaa   :  { %15220 = vmatpush3.bf16.msra.mxu1 %v17291_v49 }
 0xaab   :  { %15254 = vmatprep.subr.bf16.mxu1 %v17140_v3 }
 0xaad   :  { %4250 = vmatmul.mubr.f32.vlgmr.msra.gmra.mrb[54].mxu1 %v9737_v56  ;;  %v18535_v56 = vld [vmem:[%s19959_s2] ss:$0 sm:$0xff] }
 0xaae   :  { %15256 = vmatpush3.bf16.msra.mxu1 %v17151_v7  ;;  %4396 = vmatprep.mubr.f32.mxu1 %v9742_v57 }
 0xaaf   :  { %15258 = vmatprep.subr.bf16.mxu1 %v17153_v8 }
 0xab2   :  { %15260 = vmatpush3.bf16.msra.mxu1 %v17171_v13 }
 0xab3   :  { %15262 = vmatprep.subr.bf16.mxu1 %v17175_v14 }
 0xab6   :  { %15264 = vmatpush3.bf16.msra.mxu1 %v17191_v19 }
 0xab7   :  { %15266 = vmatprep.subr.bf16.mxu1 %v17195_v20 }
 0xaba   :  { %15268 = vmatpush3.bf16.msra.mxu1 %v17217_v27 }
 0xabb   :  { %15270 = vmatprep.subr.bf16.mxu1 %v17221_v28 }
 0xabe   :  { %15272 = vmatpush3.bf16.msra.mxu1 %v17237_v33 }
 0xabf   :  { %15274 = vmatprep.subr.bf16.mxu1 %v17241_v34 }
 0xac2   :  { %15276 = vmatpush3.bf16.msra.mxu1 %v17257_v39 }
 0xac3   :  { %15278 = vmatprep.subr.bf16.mxu1 %v17261_v40 }
 0xac6   :  { %15280 = vmatpush3.bf16.msra.mxu1 %v17277_v45 }
 0xac7   :  { %15282 = vmatprep.subr.bf16.mxu1 %v17281_v46 }
 0xaca   :  { %15284 = vmatpush3.bf16.msra.mxu1 %v17291_v49 }
 0xacb   :  { %15317 = vmatprep.subr.bf16.mxu1 %v17078_v4 }
 0xacd   :  { %4397 = vmatmul.mubr.f32.vlgmr.msra.gmra.mrb[56].mxu1 %v9741_v58 }
 0xace   :  { %13584 = vmatprep.mubr.msk.f32.mxu1 %vm17079_vm0, %v17080_v5  ;;  %15319 = vmatpush3.bf16.msra.mxu1 %v15318_v35 }
 0xacf   :  { %15353 = vmatprep.subr.bf16.mxu1 %v17140_v3 }
 0xb20   :  { %v3803_v59 = vpop.f32.mrb[48].mxu1 }
 0xb21   :  { %v18428_v60 = vadd.f32 %v3803_v59, %v18326_v17  ;;  %v13572_v61 = vpop.f32.mrb[49].mxu1  ;;  %v9744_v17 = vld [vmem:[%s19957_s0 + $0x568] sm:$0xff]  ;;  %v9751_v59 = vld [vmem:[%s19957_s0 + $0x258] sm:$0xff] }
 0xb22   :  { %v9755_v61 = vld [vmem:[%s19957_s0 + $0x578] sm:$0xff] }
 0xb40   :  { %v11391_v62 = vpop.f32.mrb[50].mxu1 }
 0xb41   :  { %v11392_v63 = vpop.f32.mrb[51].mxu1 }
 0xb42   :  { %v11393_v0 = vadd.f32 %v11392_v63, %v11391_v62  ;;  %v9754_v62 = vld [vmem:[%s19957_s0 + $0x570] sm:$0xff] }
 0xb44   :  { %v3954_v1 = vmax.f32 %v11358_v48, %v11393_v0 }
 0xb46   :  { %v4028_v2 = vmax.f32 %v3954_v1, %v11428_v52 }
 0xb60   :  { %v11461_v6 = vpop.f32.mrb[52].mxu1 }
 0xb61   :  { %v11462_v9 = vpop.f32.mrb[53].mxu1 }
 0xb62   :  { %v11463_v10 = vadd.f32 %v11462_v9, %v11461_v6 }
 0xb64   :  { %v4102_v11 = vmax.f32 %v4028_v2, %v11463_v10  ;;  %v9756_v10 = vld [vmem:[%s19958_s3 + $0xc0] sm:$0xff] }
 0xb66   :  { %v4103_v12 = vadd.f32 %v18020_v30, %v4102_v11  ;;  %v9739_v30 = vld [vmem:[%s19957_s0 + $0x240] sm:$0xff]  ;;  %v9757_v11 = vld [vmem:[%s19958_s3 + $0xc8] sm:$0xff] }
 0xb68   :  { %v4104_v15 = vmax.f32 %v4103_v12, 0.0  ;;  %v15449_v12 = vpack.c.bf16 %v9757_v11, %v9756_v10 }
 0xb6a   :  { %13578 = vmatmul.mubr.msk.f32.vlgmr.msra.gmra.mrb[54].mxu0 %vm669_vm1, %v4104_v15  ;;  %v9760_v15 = vld [vmem:[%s19957_s0 + $0xd8] sm:$0xff] }
 0xb6b   :  { %15224 = vmatpush3.bf16.msra.mxu0 %v17151_v7  ;;  %4322 = vmatprep.mubr.f32.mxu0 %v9740_v16  ;;  %v9759_v16 = vld [vmem:[%s19957_s0 + $0xd0] sm:$0xff] }
 0xb6c   :  { %15226 = vmatprep.subr.bf16.mxu0 %v17153_v8 }
 0xb6f   :  { %15228 = vmatpush3.bf16.msra.mxu0 %v17171_v13 }
 0xb70   :  { %15230 = vmatprep.subr.bf16.mxu0 %v17175_v14 }
 0xb73   :  { %15232 = vmatpush3.bf16.msra.mxu0 %v17191_v19 }
 0xb74   :  { %15234 = vmatprep.subr.bf16.mxu0 %v17195_v20 }
 0xb77   :  { %15236 = vmatpush3.bf16.msra.mxu0 %v17217_v27 }
 0xb78   :  { %15238 = vmatprep.subr.bf16.mxu0 %v17221_v28 }
 0xb7b   :  { %15240 = vmatpush3.bf16.msra.mxu0 %v17237_v33 }
 0xb7c   :  { %15242 = vmatprep.subr.bf16.mxu0 %v17241_v34 }
 0xb7f   :  { %15244 = vmatpush3.bf16.msra.mxu0 %v17257_v39 }
 0xb80   :  { %15246 = vmatprep.subr.bf16.mxu0 %v17261_v40  ;;  %v11499_v21 = vpop.f32.mrb[54].mxu1 }
 0xb81   :  { %v11500_v22 = vpop.f32.mrb[55].mxu1 }
 0xb82   :  { %v11501_v23 = vadd.f32 %v11500_v22, %v11499_v21 }
 0xb83   :  { %15248 = vmatpush3.bf16.msra.mxu0 %v17277_v45 }
 0xb84   :  { %15250 = vmatprep.subr.bf16.mxu0 %v17281_v46 }
 0xb87   :  { %15252 = vmatpush3.bf16.msra.mxu0 %v17291_v49 }
 0xb88   :  { %15286 = vmatprep.subr.bf16.mxu0 %v17140_v3 }
 0xb8a   :  { %4323 = vmatmul.mubr.f32.vlgmr.msra.gmra.mrb[56].mxu0 %v9739_v30  ;;  %v9764_v30 = vld [vmem:[%s19957_s0 + $0x3f8] sm:$0xff] }
 0xb8b   :  { %15288 = vmatpush3.bf16.msra.mxu0 %v17151_v7  ;;  %4470 = vmatprep.mubr.f32.mxu0 %v9744_v17  ;;  %v9763_v17 = vld [vmem:[%s19957_s0 + $0x3f0] sm:$0xff] }
 0xb8c   :  { %15290 = vmatprep.subr.bf16.mxu0 %v17153_v8 }
 0xb8f   :  { %15292 = vmatpush3.bf16.msra.mxu0 %v17171_v13 }
 0xb90   :  { %15294 = vmatprep.subr.bf16.mxu0 %v17175_v14 }
 0xb93   :  { %15296 = vmatpush3.bf16.msra.mxu0 %v17191_v19 }
 0xb94   :  { %15298 = vmatprep.subr.bf16.mxu0 %v17195_v20 }
 0xb97   :  { %15300 = vmatpush3.bf16.msra.mxu0 %v17217_v27 }
 0xb98   :  { %15302 = vmatprep.subr.bf16.mxu0 %v17221_v28 }
 0xb9b   :  { %15304 = vmatpush3.bf16.msra.mxu0 %v17237_v33 }
 0xb9c   :  { %15306 = vmatprep.subr.bf16.mxu0 %v17241_v34 }
 0xb9f   :  { %15308 = vmatpush3.bf16.msra.mxu0 %v17257_v39 }
 0xba0   :  { %15310 = vmatprep.subr.bf16.mxu0 %v17261_v40  ;;  %v11569_v24 = vpop.f32.mrb[56].mxu1 }
 0xba1   :  { %v11570_v25 = vpop.f32.mrb[57].mxu1 }
 0xba2   :  { %v11571_v29 = vadd.f32 %v11570_v25, %v11569_v24 }
 0xba3   :  { %15312 = vmatpush3.bf16.msra.mxu0 %v17277_v45 }
 0xba4   :  { %15314 = vmatprep.subr.bf16.mxu0 %v17281_v46 }
 0xba7   :  { %15316 = vmatpush3.bf16.msra.mxu0 %v17291_v49 }
 0xba8   :  { %15321 = vmatprep.subr.bf16.mxu0 %v17140_v3 }
 0xbaa   :  { %4471 = vmatmul.mubr.f32.vlgmr.msra.gmra.mrb[58].mxu0 %v9743_v18 }
 0xbab   :  { %15323 = vmatpush3.bf16.msra.mxu0 %v17151_v7  ;;  %4623 = vmatprep.mubr.f32.mxu0 %v9749_v36 }
 0xbac   :  { %15325 = vmatprep.subr.bf16.mxu0 %v17153_v8 }
 0xbaf   :  { %15327 = vmatpush3.bf16.msra.mxu0 %v17171_v13 }
 0xbb0   :  { %15329 = vmatprep.subr.bf16.mxu0 %v17175_v14 }
 0xbb3   :  { %15331 = vmatpush3.bf16.msra.mxu0 %v17191_v19 }
 0xbb4   :  { %15333 = vmatprep.subr.bf16.mxu0 %v17195_v20 }
 0xbb7   :  { %15335 = vmatpush3.bf16.msra.mxu0 %v17217_v27 }
 0xbb8   :  { %15337 = vmatprep.subr.bf16.mxu0 %v17221_v28 }
 0xbbb   :  { %15339 = vmatpush3.bf16.msra.mxu0 %v17237_v33 }
 0xbbc   :  { %15341 = vmatprep.subr.bf16.mxu0 %v17241_v34 }
 0xbbf   :  { %15343 = vmatpush3.bf16.msra.mxu0 %v17257_v39 }
 0xbc0   :  { %15345 = vmatprep.subr.bf16.mxu0 %v17261_v40 }
 0xbc3   :  { %15347 = vmatpush3.bf16.msra.mxu0 %v17277_v45 }
 0xbc4   :  { %15349 = vmatprep.subr.bf16.mxu0 %v17281_v46 }
 0xbc7   :  { %15351 = vmatpush3.bf16.msra.mxu0 %v17291_v49 }
 0xbc8   :  { %15385 = vmatprep.subr.bf16.mxu0 %v17140_v3 }
 0xbca   :  { %4624 = vmatmul.mubr.f32.vlgmr.msra.gmra.mrb[60].mxu0 %v9748_v37 }
 0xbcb   :  { %15387 = vmatpush3.bf16.msra.mxu0 %v17151_v7  ;;  %4770 = vmatprep.mubr.f32.mxu0 %v9753_v38 }
 0xbcc   :  { %15389 = vmatprep.subr.bf16.mxu0 %v17153_v8 }
 0xbcf   :  { %15391 = vmatpush3.bf16.msra.mxu0 %v17171_v13 }
 0xbd0   :  { %15393 = vmatprep.subr.bf16.mxu0 %v17175_v14 }
 0xbd3   :  { %15395 = vmatpush3.bf16.msra.mxu0 %v17191_v19 }
 0xbd4   :  { %15397 = vmatprep.subr.bf16.mxu0 %v17195_v20 }
 0xbd7   :  { %15399 = vmatpush3.bf16.msra.mxu0 %v17217_v27 }
 0xbd8   :  { %15401 = vmatprep.subr.bf16.mxu0 %v17221_v28 }
 0xbdb   :  { %15403 = vmatpush3.bf16.msra.mxu0 %v17237_v33 }
 0xbdc   :  { %15405 = vmatprep.subr.bf16.mxu0 %v17241_v34 }
 0xbdf   :  { %15407 = vmatpush3.bf16.msra.mxu0 %v17257_v39 }
 0xbe0   :  { %15409 = vmatprep.subr.bf16.mxu0 %v17261_v40 }
 0xbe3   :  { %15411 = vmatpush3.bf16.msra.mxu0 %v17277_v45 }
 0xbe4   :  { %15413 = vmatprep.subr.bf16.mxu0 %v17281_v46 }
 0xbe7   :  { %15415 = vmatpush3.bf16.msra.mxu0 %v17291_v49 }
 0xbe8   :  { %15448 = vmatprep.subr.bf16.mxu0 %v17078_v4 }
 0xbea   :  { %4771 = vmatmul.mubr.f32.vlgmr.msra.gmra.mrb[62].mxu0 %v9752_v41 }
 0xbeb   :  { %13591 = vmatprep.mubr.msk.f32.mxu0 %vm17079_vm0, %v17080_v5  ;;  %15450 = vmatpush3.bf16.msra.mxu0 %v15449_v12 }
 0xbec   :  { %15484 = vmatprep.subr.bf16.mxu0 %v17140_v3 }
 0xc3d   :  { %v4177_v42 = vpop.f32.mrb[54].mxu0 }
 0xc3e   :  { %v18530_v43 = vadd.f32 %v4177_v42, %v18428_v60  ;;  %v13579_v44 = vpop.f32.mrb[55].mxu0  ;;  %v9750_v60 = vld [vmem:[%s19957_s0 + $0x250] sm:$0xff]  ;;  %v9762_v42 = vld [vmem:[%s19957_s0 + $0x268] sm:$0xff] }
 0xc3f   :  { %v9766_v44 = vld [vmem:[%s19957_s0 + $0x588] sm:$0xff] }
 0xc5d   :  { %v11534_v47 = vpop.f32.mrb[56].mxu0 }
 0xc5e   :  { %v11535_v48 = vpop.f32.mrb[57].mxu0 }
 0xc5f   :  { %v11536_v50 = vadd.f32 %v11535_v48, %v11534_v47  ;;  %v9765_v47 = vld [vmem:[%s19957_s0 + $0x580] sm:$0xff] }
 0xc61   :  { %v4328_v51 = vmax.f32 %v11501_v23, %v11536_v50 }
 0xc63   :  { %v4402_v52 = vmax.f32 %v4328_v51, %v11571_v29 }
 0xc7d   :  { %v11604_v53 = vpop.f32.mrb[58].mxu0 }
 0xc7e   :  { %v11605_v54 = vpop.f32.mrb[59].mxu0 }
 0xc7f   :  { %v11606_v31 = vadd.f32 %v11605_v54, %v11604_v53 }
 0xc81   :  { %v4476_v55 = vmax.f32 %v4402_v52, %v11606_v31  ;;  %v9767_v31 = vld [vmem:[%s19958_s3 + $0xd0] sm:$0xff] }
 0xc83   :  { %v4477_v57 = vadd.f32 %v18535_v56, %v4476_v55  ;;  %v9768_v55 = vld [vmem:[%s19958_s3 + $0xd8] sm:$0xff] }
 0xc85   :  { %v4478_v58 = vmax.f32 %v4477_v57, 0.0  ;;  %v15580_v57 = vpack.c.bf16 %v9768_v55, %v9767_v31 }
 0xc87   :  { %13585 = vmatmul.mubr.msk.f32.vlgmr.msra.gmra.mrb[58].mxu1 %vm669_vm1, %v4478_v58  ;;  %v9771_v58 = vld [vmem:[%s19957_s0 + $0xe8] sm:$0xff] }
 0xc88   :  { %15355 = vmatpush3.bf16.msra.mxu1 %v17151_v7  ;;  %4696 = vmatprep.mubr.f32.mxu1 %v9751_v59  ;;  %v9770_v59 = vld [vmem:[%s19957_s0 + $0xe0] sm:$0xff] }
 0xc89   :  { %15357 = vmatprep.subr.bf16.mxu1 %v17153_v8 }
 0xc8c   :  { %15359 = vmatpush3.bf16.msra.mxu1 %v17171_v13 }
 0xc8d   :  { %15361 = vmatprep.subr.bf16.mxu1 %v17175_v14 }
 0xc90   :  { %15363 = vmatpush3.bf16.msra.mxu1 %v17191_v19 }
 0xc91   :  { %15365 = vmatprep.subr.bf16.mxu1 %v17195_v20 }
 0xc94   :  { %15367 = vmatpush3.bf16.msra.mxu1 %v17217_v27 }
 0xc95   :  { %15369 = vmatprep.subr.bf16.mxu1 %v17221_v28 }
 0xc98   :  { %15371 = vmatpush3.bf16.msra.mxu1 %v17237_v33 }
 0xc99   :  { %15373 = vmatprep.subr.bf16.mxu1 %v17241_v34 }
 0xc9c   :  { %15375 = vmatpush3.bf16.msra.mxu1 %v17257_v39 }
 0xc9d   :  { %15377 = vmatprep.subr.bf16.mxu1 %v17261_v40  ;;  %v11642_v63 = vpop.f32.mrb[60].mxu0 }
 0xc9e   :  { %v11643_v0 = vpop.f32.mrb[61].mxu0 }
 0xc9f   :  { %v11644_v1 = vadd.f32 %v11643_v0, %v11642_v63 }
 0xca0   :  { %15379 = vmatpush3.bf16.msra.mxu1 %v17277_v45 }
 0xca1   :  { %15381 = vmatprep.subr.bf16.mxu1 %v17281_v46 }
 0xca4   :  { %15383 = vmatpush3.bf16.msra.mxu1 %v17291_v49 }
 0xca5   :  { %15417 = vmatprep.subr.bf16.mxu1 %v17140_v3 }
 0xca7   :  { %4697 = vmatmul.mubr.f32.vlgmr.msra.gmra.mrb[60].mxu1 %v9750_v60  ;;  %v9775_v60 = vld [vmem:[%s19957_s0 + $0x408] sm:$0xff] }
 0xca8   :  { %15419 = vmatpush3.bf16.msra.mxu1 %v17151_v7  ;;  %4844 = vmatprep.mubr.f32.mxu1 %v9755_v61  ;;  %v9774_v61 = vld [vmem:[%s19957_s0 + $0x400] sm:$0xff] }
 0xca9   :  { %15421 = vmatprep.subr.bf16.mxu1 %v17153_v8 }
 0xcac   :  { %15423 = vmatpush3.bf16.msra.mxu1 %v17171_v13 }
 0xcad   :  { %15425 = vmatprep.subr.bf16.mxu1 %v17175_v14 }
 0xcb0   :  { %15427 = vmatpush3.bf16.msra.mxu1 %v17191_v19 }
 0xcb1   :  { %15429 = vmatprep.subr.bf16.mxu1 %v17195_v20 }
 0xcb4   :  { %15431 = vmatpush3.bf16.msra.mxu1 %v17217_v27 }
 0xcb5   :  { %15433 = vmatprep.subr.bf16.mxu1 %v17221_v28 }
 0xcb8   :  { %15435 = vmatpush3.bf16.msra.mxu1 %v17237_v33 }
 0xcb9   :  { %15437 = vmatprep.subr.bf16.mxu1 %v17241_v34 }
 0xcbc   :  { %15439 = vmatpush3.bf16.msra.mxu1 %v17257_v39 }
 0xcbd   :  { %15441 = vmatprep.subr.bf16.mxu1 %v17261_v40  ;;  %v11712_v2 = vpop.f32.mrb[62].mxu0 }
 0xcbe   :  { %v11713_v6 = vpop.f32.mrb[63].mxu0 }
 0xcbf   :  { %v11714_v9 = vadd.f32 %v11713_v6, %v11712_v2 }
 0xcc0   :  { %15443 = vmatpush3.bf16.msra.mxu1 %v17277_v45 }
 0xcc1   :  { %15445 = vmatprep.subr.bf16.mxu1 %v17281_v46 }
 0xcc4   :  { %15447 = vmatpush3.bf16.msra.mxu1 %v17291_v49 }
 0xcc5   :  { %15452 = vmatprep.subr.bf16.mxu1 %v17140_v3 }
 0xcc7   :  { %4845 = vmatmul.mubr.f32.vlgmr.msra.gmra.mrb[62].mxu1 %v9754_v62 }
 0xcc8   :  { %15454 = vmatpush3.bf16.msra.mxu1 %v17151_v7  ;;  %4997 = vmatprep.mubr.f32.mxu1 %v9760_v15 }
 0xcc9   :  { %15456 = vmatprep.subr.bf16.mxu1 %v17153_v8 }
 0xccc   :  { %15458 = vmatpush3.bf16.msra.mxu1 %v17171_v13 }
 0xccd   :  { %15460 = vmatprep.subr.bf16.mxu1 %v17175_v14 }
 0xcd0   :  { %15462 = vmatpush3.bf16.msra.mxu1 %v17191_v19 }
 0xcd1   :  { %15464 = vmatprep.subr.bf16.mxu1 %v17195_v20 }
 0xcd4   :  { %15466 = vmatpush3.bf16.msra.mxu1 %v17217_v27 }
 0xcd5   :  { %15468 = vmatprep.subr.bf16.mxu1 %v17221_v28 }
 0xcd8   :  { %15470 = vmatpush3.bf16.msra.mxu1 %v17237_v33 }
 0xcd9   :  { %15472 = vmatprep.subr.bf16.mxu1 %v17241_v34 }
 0xcdc   :  { %15474 = vmatpush3.bf16.msra.mxu1 %v17257_v39 }
 0xcdd   :  { %15476 = vmatprep.subr.bf16.mxu1 %v17261_v40 }
 0xce0   :  { %15478 = vmatpush3.bf16.msra.mxu1 %v17277_v45 }
 0xce1   :  { %15480 = vmatprep.subr.bf16.mxu1 %v17281_v46 }
 0xce4   :  { %15482 = vmatpush3.bf16.msra.mxu1 %v17291_v49 }
 0xce5   :  { %15516 = vmatprep.subr.bf16.mxu1 %v17140_v3 }
 0xce7   :  { %4998 = vmatmul.mubr.f32.vlgmr.msra.gmra.mrb[64].mxu1 %v9759_v16 }
 0xce8   :  { %15518 = vmatpush3.bf16.msra.mxu1 %v17151_v7  ;;  %5144 = vmatprep.mubr.f32.mxu1 %v9764_v30 }
 0xce9   :  { %15520 = vmatprep.subr.bf16.mxu1 %v17153_v8 }
 0xcec   :  { %15522 = vmatpush3.bf16.msra.mxu1 %v17171_v13 }
 0xced   :  { %15524 = vmatprep.subr.bf16.mxu1 %v17175_v14 }
 0xcf0   :  { %15526 = vmatpush3.bf16.msra.mxu1 %v17191_v19 }
 0xcf1   :  { %15528 = vmatprep.subr.bf16.mxu1 %v17195_v20 }
 0xcf4   :  { %15530 = vmatpush3.bf16.msra.mxu1 %v17217_v27 }
 0xcf5   :  { %15532 = vmatprep.subr.bf16.mxu1 %v17221_v28 }
 0xcf8   :  { %15534 = vmatpush3.bf16.msra.mxu1 %v17237_v33 }
 0xcf9   :  { %15536 = vmatprep.subr.bf16.mxu1 %v17241_v34 }
 0xcfc   :  { %15538 = vmatpush3.bf16.msra.mxu1 %v17257_v39 }
 0xcfd   :  { %15540 = vmatprep.subr.bf16.mxu1 %v17261_v40 }
 0xd00   :  { %15542 = vmatpush3.bf16.msra.mxu1 %v17277_v45 }
 0xd01   :  { %15544 = vmatprep.subr.bf16.mxu1 %v17281_v46 }
 0xd04   :  { %15546 = vmatpush3.bf16.msra.mxu1 %v17291_v49 }
 0xd05   :  { %15579 = vmatprep.subr.bf16.mxu1 %v17078_v4 }
 0xd07   :  { %5145 = vmatmul.mubr.f32.vlgmr.msra.gmra.mrb[66].mxu1 %v9763_v17 }
 0xd08   :  { %13598 = vmatprep.mubr.msk.f32.mxu1 %vm17079_vm0, %v17080_v5  ;;  %15581 = vmatpush3.bf16.msra.mxu1 %v15580_v57 }
 0xd09   :  { %15615 = vmatprep.subr.bf16.mxu1 %v17140_v3 }
 0xd5a   :  { %v4551_v18 = vpop.f32.mrb[58].mxu1 }
 0xd5b   :  { %v18637_v21 = vadd.f32 %v4551_v18, %v18530_v43  ;;  %v13586_v22 = vpop.f32.mrb[59].mxu1  ;;  %v9761_v43 = vld [vmem:[%s19957_s0 + $0x260] sm:$0xff]  ;;  %v9773_v18 = vld [vmem:[%s19957_s0 + $0x278] sm:$0xff] }
 0xd5c   :  { %v9777_v22 = vld [vmem:[%s19957_s0 + $0x598] sm:$0xff] }
 0xd7a   :  { %v11677_v23 = vpop.f32.mrb[60].mxu1 }
 0xd7b   :  { %v11678_v24 = vpop.f32.mrb[61].mxu1 }
 0xd7c   :  { %v11679_v25 = vadd.f32 %v11678_v24, %v11677_v23  ;;  %v9776_v23 = vld [vmem:[%s19957_s0 + $0x590] sm:$0xff] }
 0xd7e   :  { %v4702_v29 = vmax.f32 %v11644_v1, %v11679_v25 }
 0xd80   :  { %v4776_v26 = vmax.f32 %v4702_v29, %v11714_v9 }
 0xd9a   :  { %v11747_v32 = vpop.f32.mrb[62].mxu1 }
 0xd9b   :  { %v11748_v35 = vpop.f32.mrb[63].mxu1 }
 0xd9c   :  { %v11749_v36 = vadd.f32 %v11748_v35, %v11747_v32 }
 0xd9e   :  { %v4850_v37 = vmax.f32 %v4776_v26, %v11749_v36  ;;  %v9778_v36 = vld [vmem:[%s19958_s3 + $0xe0] sm:$0xff] }
 0xda0   :  { %v4851_v38 = vadd.f32 %v18535_v56, %v4850_v37  ;;  %v9779_v37 = vld [vmem:[%s19958_s3 + $0xe8] sm:$0xff] }
 0xda2   :  { %v4852_v41 = vmax.f32 %v4851_v38, 0.0  ;;  %v15711_v38 = vpack.c.bf16 %v9779_v37, %v9778_v36 }
 0xda4   :  { %13592 = vmatmul.mubr.msk.f32.vlgmr.msra.gmra.mrb[64].mxu0 %vm669_vm1, %v4852_v41  ;;  %v9782_v41 = vld [vmem:[%s19957_s0 + $0xf8] sm:$0xff] }
 0xda5   :  { %15486 = vmatpush3.bf16.msra.mxu0 %v17151_v7  ;;  %5070 = vmatprep.mubr.f32.mxu0 %v9762_v42  ;;  %v9781_v42 = vld [vmem:[%s19957_s0 + $0xf0] sm:$0xff] }
 0xda6   :  { %15488 = vmatprep.subr.bf16.mxu0 %v17153_v8 }
 0xda9   :  { %15490 = vmatpush3.bf16.msra.mxu0 %v17171_v13 }
 0xdaa   :  { %15492 = vmatprep.subr.bf16.mxu0 %v17175_v14 }
 0xdad   :  { %15494 = vmatpush3.bf16.msra.mxu0 %v17191_v19 }
 0xdae   :  { %15496 = vmatprep.subr.bf16.mxu0 %v17195_v20 }
 0xdb1   :  { %15498 = vmatpush3.bf16.msra.mxu0 %v17217_v27 }
 0xdb2   :  { %15500 = vmatprep.subr.bf16.mxu0 %v17221_v28 }
 0xdb5   :  { %15502 = vmatpush3.bf16.msra.mxu0 %v17237_v33 }
 0xdb6   :  { %15504 = vmatprep.subr.bf16.mxu0 %v17241_v34 }
 0xdb9   :  { %15506 = vmatpush3.bf16.msra.mxu0 %v17257_v39 }
 0xdba   :  { %15508 = vmatprep.subr.bf16.mxu0 %v17261_v40  ;;  %v11785_v48 = vpop.f32.mrb[64].mxu1 }
 0xdbb   :  { %v11786_v50 = vpop.f32.mrb[65].mxu1 }
 0xdbc   :  { %v11787_v51 = vadd.f32 %v11786_v50, %v11785_v48 }
 0xdbd   :  { %15510 = vmatpush3.bf16.msra.mxu0 %v17277_v45 }
 0xdbe   :  { %15512 = vmatprep.subr.bf16.mxu0 %v17281_v46 }
 0xdc1   :  { %15514 = vmatpush3.bf16.msra.mxu0 %v17291_v49 }
 0xdc2   :  { %15548 = vmatprep.subr.bf16.mxu0 %v17140_v3 }
 0xdc4   :  { %5071 = vmatmul.mubr.f32.vlgmr.msra.gmra.mrb[66].mxu0 %v9761_v43  ;;  %v9786_v43 = vld [vmem:[%s19957_s0 + $0x418] sm:$0xff] }
 0xdc5   :  { %15550 = vmatpush3.bf16.msra.mxu0 %v17151_v7  ;;  %5218 = vmatprep.mubr.f32.mxu0 %v9766_v44  ;;  %v9785_v44 = vld [vmem:[%s19957_s0 + $0x410] sm:$0xff] }
 0xdc6   :  { %15552 = vmatprep.subr.bf16.mxu0 %v17153_v8 }
 0xdc9   :  { %15554 = vmatpush3.bf16.msra.mxu0 %v17171_v13 }
 0xdca   :  { %15556 = vmatprep.subr.bf16.mxu0 %v17175_v14 }
 0xdcd   :  { %15558 = vmatpush3.bf16.msra.mxu0 %v17191_v19 }
 0xdce   :  { %15560 = vmatprep.subr.bf16.mxu0 %v17195_v20 }
 0xdd1   :  { %15562 = vmatpush3.bf16.msra.mxu0 %v17217_v27 }
 0xdd2   :  { %15564 = vmatprep.subr.bf16.mxu0 %v17221_v28 }
 0xdd5   :  { %15566 = vmatpush3.bf16.msra.mxu0 %v17237_v33 }
 0xdd6   :  { %15568 = vmatprep.subr.bf16.mxu0 %v17241_v34 }
 0xdd9   :  { %15570 = vmatpush3.bf16.msra.mxu0 %v17257_v39 }
 0xdda   :  { %15572 = vmatprep.subr.bf16.mxu0 %v17261_v40  ;;  %v11855_v52 = vpop.f32.mrb[66].mxu1 }
 0xddb   :  { %v11856_v53 = vpop.f32.mrb[67].mxu1 }
 0xddc   :  { %v11857_v54 = vadd.f32 %v11856_v53, %v11855_v52 }
 0xddd   :  { %15574 = vmatpush3.bf16.msra.mxu0 %v17277_v45 }
 0xdde   :  { %15576 = vmatprep.subr.bf16.mxu0 %v17281_v46 }
 0xde1   :  { %15578 = vmatpush3.bf16.msra.mxu0 %v17291_v49 }
 0xde2   :  { %15583 = vmatprep.subr.bf16.mxu0 %v17140_v3 }
 0xde4   :  { %5219 = vmatmul.mubr.f32.vlgmr.msra.gmra.mrb[68].mxu0 %v9765_v47 }
 0xde5   :  { %15585 = vmatpush3.bf16.msra.mxu0 %v17151_v7  ;;  %5371 = vmatprep.mubr.f32.mxu0 %v9771_v58 }
 0xde6   :  { %15587 = vmatprep.subr.bf16.mxu0 %v17153_v8 }
 0xde9   :  { %15589 = vmatpush3.bf16.msra.mxu0 %v17171_v13 }
 0xdea   :  { %15591 = vmatprep.subr.bf16.mxu0 %v17175_v14 }
 0xded   :  { %15593 = vmatpush3.bf16.msra.mxu0 %v17191_v19 }
 0xdee   :  { %15595 = vmatprep.subr.bf16.mxu0 %v17195_v20 }
 0xdf1   :  { %15597 = vmatpush3.bf16.msra.mxu0 %v17217_v27 }
 0xdf2   :  { %15599 = vmatprep.subr.bf16.mxu0 %v17221_v28 }
 0xdf5   :  { %15601 = vmatpush3.bf16.msra.mxu0 %v17237_v33 }
 0xdf6   :  { %15603 = vmatprep.subr.bf16.mxu0 %v17241_v34 }
 0xdf9   :  { %15605 = vmatpush3.bf16.msra.mxu0 %v17257_v39 }
 0xdfa   :  { %15607 = vmatprep.subr.bf16.mxu0 %v17261_v40 }
 0xdfd   :  { %15609 = vmatpush3.bf16.msra.mxu0 %v17277_v45 }
 0xdfe   :  { %15611 = vmatprep.subr.bf16.mxu0 %v17281_v46 }
 0xe01   :  { %15613 = vmatpush3.bf16.msra.mxu0 %v17291_v49 }
 0xe02   :  { %15647 = vmatprep.subr.bf16.mxu0 %v17140_v3 }
 0xe04   :  { %5372 = vmatmul.mubr.f32.vlgmr.msra.gmra.mrb[70].mxu0 %v9770_v59 }
 0xe05   :  { %15649 = vmatpush3.bf16.msra.mxu0 %v17151_v7  ;;  %5518 = vmatprep.mubr.f32.mxu0 %v9775_v60 }
 0xe06   :  { %15651 = vmatprep.subr.bf16.mxu0 %v17153_v8 }
 0xe09   :  { %15653 = vmatpush3.bf16.msra.mxu0 %v17171_v13 }
 0xe0a   :  { %15655 = vmatprep.subr.bf16.mxu0 %v17175_v14 }
 0xe0d   :  { %15657 = vmatpush3.bf16.msra.mxu0 %v17191_v19 }
 0xe0e   :  { %15659 = vmatprep.subr.bf16.mxu0 %v17195_v20 }
 0xe11   :  { %15661 = vmatpush3.bf16.msra.mxu0 %v17217_v27 }
 0xe12   :  { %15663 = vmatprep.subr.bf16.mxu0 %v17221_v28 }
 0xe15   :  { %15665 = vmatpush3.bf16.msra.mxu0 %v17237_v33 }
 0xe16   :  { %15667 = vmatprep.subr.bf16.mxu0 %v17241_v34 }
 0xe19   :  { %15669 = vmatpush3.bf16.msra.mxu0 %v17257_v39 }
 0xe1a   :  { %15671 = vmatprep.subr.bf16.mxu0 %v17261_v40 }
 0xe1d   :  { %15673 = vmatpush3.bf16.msra.mxu0 %v17277_v45 }
 0xe1e   :  { %15675 = vmatprep.subr.bf16.mxu0 %v17281_v46 }
 0xe21   :  { %15677 = vmatpush3.bf16.msra.mxu0 %v17291_v49 }
 0xe22   :  { %15710 = vmatprep.subr.bf16.mxu0 %v17078_v4 }
 0xe24   :  { %5519 = vmatmul.mubr.f32.vlgmr.msra.gmra.mrb[72].mxu0 %v9774_v61 }
 0xe25   :  { %13605 = vmatprep.mubr.msk.f32.mxu0 %vm17079_vm0, %v17080_v5  ;;  %15712 = vmatpush3.bf16.msra.mxu0 %v15711_v38 }
 0xe26   :  { %15746 = vmatprep.subr.bf16.mxu0 %v17140_v3 }
 0xe77   :  { %v4925_v62 = vpop.f32.mrb[64].mxu0 }
 0xe78   :  { %v18739_v63 = vadd.f32 %v4925_v62, %v18637_v21  ;;  %v13593_v0 = vpop.f32.mrb[65].mxu0  ;;  %v9772_v21 = vld [vmem:[%s19957_s0 + $0x270] sm:$0xff]  ;;  %v9784_v62 = vld [vmem:[%s19957_s0 + $0x288] sm:$0xff] }
 0xe79   :  { %v9788_v0 = vld [vmem:[%s19957_s0 + $0x5a8] sm:$0xff] }
 0xe97   :  { %v11820_v1 = vpop.f32.mrb[66].mxu0 }
 0xe98   :  { %v11821_v2 = vpop.f32.mrb[67].mxu0 }
 0xe99   :  { %v11822_v6 = vadd.f32 %v11821_v2, %v11820_v1  ;;  %v9787_v1 = vld [vmem:[%s19957_s0 + $0x5a0] sm:$0xff] }
 0xe9b   :  { %v5076_v9 = vmax.f32 %v11787_v51, %v11822_v6 }
 0xe9d   :  { %v5150_v10 = vmax.f32 %v5076_v9, %v11857_v54 }
 0xeb7   :  { %v11890_v11 = vpop.f32.mrb[68].mxu0 }
 0xeb8   :  { %v11891_v12 = vpop.f32.mrb[69].mxu0 }
 0xeb9   :  { %v11892_v15 = vadd.f32 %v11891_v12, %v11890_v11 }
 0xebb   :  { %v5224_v16 = vmax.f32 %v5150_v10, %v11892_v15  ;;  %v9789_v15 = vld [vmem:[%s19958_s3 + $0xf0] sm:$0xff] }
 0xebd   :  { %v5225_v30 = vadd.f32 %v18535_v56, %v5224_v16  ;;  %v9790_v16 = vld [vmem:[%s19958_s3 + $0xf8] sm:$0xff] }
 0xebf   :  { %v5226_v17 = vmax.f32 %v5225_v30, 0.0  ;;  %v15842_v30 = vpack.c.bf16 %v9790_v16, %v9789_v15 }
 0xec1   :  { %13599 = vmatmul.mubr.msk.f32.vlgmr.msra.gmra.mrb[68].mxu1 %vm669_vm1, %v5226_v17  ;;  %v9793_v17 = vld [vmem:[%s19957_s0 + $0x108] sm:$0xff] }
 0xec2   :  { %15617 = vmatpush3.bf16.msra.mxu1 %v17151_v7  ;;  %5444 = vmatprep.mubr.f32.mxu1 %v9773_v18  ;;  %v9792_v18 = vld [vmem:[%s19957_s0 + $0x100] sm:$0xff] }
 0xec3   :  { %15619 = vmatprep.subr.bf16.mxu1 %v17153_v8 }
 0xec6   :  { %15621 = vmatpush3.bf16.msra.mxu1 %v17171_v13 }
 0xec7   :  { %15623 = vmatprep.subr.bf16.mxu1 %v17175_v14 }
 0xeca   :  { %15625 = vmatpush3.bf16.msra.mxu1 %v17191_v19 }
 0xecb   :  { %15627 = vmatprep.subr.bf16.mxu1 %v17195_v20 }
 0xece   :  { %15629 = vmatpush3.bf16.msra.mxu1 %v17217_v27 }
 0xecf   :  { %15631 = vmatprep.subr.bf16.mxu1 %v17221_v28 }
 0xed2   :  { %15633 = vmatpush3.bf16.msra.mxu1 %v17237_v33 }
 0xed3   :  { %15635 = vmatprep.subr.bf16.mxu1 %v17241_v34 }
 0xed6   :  { %15637 = vmatpush3.bf16.msra.mxu1 %v17257_v39 }
 0xed7   :  { %15639 = vmatprep.subr.bf16.mxu1 %v17261_v40  ;;  %v11928_v24 = vpop.f32.mrb[70].mxu0 }
 0xed8   :  { %v11929_v25 = vpop.f32.mrb[71].mxu0 }
 0xed9   :  { %v11930_v29 = vadd.f32 %v11929_v25, %v11928_v24 }
 0xeda   :  { %15641 = vmatpush3.bf16.msra.mxu1 %v17277_v45 }
 0xedb   :  { %15643 = vmatprep.subr.bf16.mxu1 %v17281_v46 }
 0xede   :  { %15645 = vmatpush3.bf16.msra.mxu1 %v17291_v49 }
 0xedf   :  { %15679 = vmatprep.subr.bf16.mxu1 %v17140_v3 }
 0xee1   :  { %5445 = vmatmul.mubr.f32.vlgmr.msra.gmra.mrb[70].mxu1 %v9772_v21  ;;  %v9797_v21 = vld [vmem:[%s19957_s0 + $0x428] sm:$0xff] }
 0xee2   :  { %15681 = vmatpush3.bf16.msra.mxu1 %v17151_v7  ;;  %5592 = vmatprep.mubr.f32.mxu1 %v9777_v22  ;;  %v9796_v22 = vld [vmem:[%s19957_s0 + $0x420] sm:$0xff] }
 0xee3   :  { %15683 = vmatprep.subr.bf16.mxu1 %v17153_v8 }
 0xee6   :  { %15685 = vmatpush3.bf16.msra.mxu1 %v17171_v13 }
 0xee7   :  { %15687 = vmatprep.subr.bf16.mxu1 %v17175_v14 }
 0xeea   :  { %15689 = vmatpush3.bf16.msra.mxu1 %v17191_v19 }
 0xeeb   :  { %15691 = vmatprep.subr.bf16.mxu1 %v17195_v20 }
 0xeee   :  { %15693 = vmatpush3.bf16.msra.mxu1 %v17217_v27 }
 0xeef   :  { %15695 = vmatprep.subr.bf16.mxu1 %v17221_v28 }
 0xef2   :  { %15697 = vmatpush3.bf16.msra.mxu1 %v17237_v33 }
 0xef3   :  { %15699 = vmatprep.subr.bf16.mxu1 %v17241_v34 }
 0xef6   :  { %15701 = vmatpush3.bf16.msra.mxu1 %v17257_v39 }
 0xef7   :  { %15703 = vmatprep.subr.bf16.mxu1 %v17261_v40  ;;  %v11998_v26 = vpop.f32.mrb[72].mxu0 }
 0xef8   :  { %v11999_v32 = vpop.f32.mrb[73].mxu0 }
 0xef9   :  { %v12000_v35 = vadd.f32 %v11999_v32, %v11998_v26 }
 0xefa   :  { %15705 = vmatpush3.bf16.msra.mxu1 %v17277_v45 }
 0xefb   :  { %15707 = vmatprep.subr.bf16.mxu1 %v17281_v46 }
 0xefe   :  { %15709 = vmatpush3.bf16.msra.mxu1 %v17291_v49 }
 0xeff   :  { %15714 = vmatprep.subr.bf16.mxu1 %v17140_v3 }
 0xf01   :  { %5593 = vmatmul.mubr.f32.vlgmr.msra.gmra.mrb[72].mxu1 %v9776_v23 }
 0xf02   :  { %15716 = vmatpush3.bf16.msra.mxu1 %v17151_v7  ;;  %5745 = vmatprep.mubr.f32.mxu1 %v9782_v41 }
 0xf03   :  { %15718 = vmatprep.subr.bf16.mxu1 %v17153_v8 }
 0xf06   :  { %15720 = vmatpush3.bf16.msra.mxu1 %v17171_v13 }
 0xf07   :  { %15722 = vmatprep.subr.bf16.mxu1 %v17175_v14 }
 0xf0a   :  { %15724 = vmatpush3.bf16.msra.mxu1 %v17191_v19 }
 0xf0b   :  { %15726 = vmatprep.subr.bf16.mxu1 %v17195_v20 }
 0xf0e   :  { %15728 = vmatpush3.bf16.msra.mxu1 %v17217_v27 }
 0xf0f   :  { %15730 = vmatprep.subr.bf16.mxu1 %v17221_v28 }
 0xf12   :  { %15732 = vmatpush3.bf16.msra.mxu1 %v17237_v33 }
 0xf13   :  { %15734 = vmatprep.subr.bf16.mxu1 %v17241_v34 }
 0xf16   :  { %15736 = vmatpush3.bf16.msra.mxu1 %v17257_v39 }
 0xf17   :  { %15738 = vmatprep.subr.bf16.mxu1 %v17261_v40 }
 0xf1a   :  { %15740 = vmatpush3.bf16.msra.mxu1 %v17277_v45 }
 0xf1b   :  { %15742 = vmatprep.subr.bf16.mxu1 %v17281_v46 }
 0xf1e   :  { %15744 = vmatpush3.bf16.msra.mxu1 %v17291_v49 }
 0xf1f   :  { %15778 = vmatprep.subr.bf16.mxu1 %v17140_v3 }
 0xf21   :  { %5746 = vmatmul.mubr.f32.vlgmr.msra.gmra.mrb[74].mxu1 %v9781_v42 }
 0xf22   :  { %15780 = vmatpush3.bf16.msra.mxu1 %v17151_v7  ;;  %5892 = vmatprep.mubr.f32.mxu1 %v9786_v43 }
 0xf23   :  { %15782 = vmatprep.subr.bf16.mxu1 %v17153_v8 }
 0xf26   :  { %15784 = vmatpush3.bf16.msra.mxu1 %v17171_v13 }
 0xf27   :  { %15786 = vmatprep.subr.bf16.mxu1 %v17175_v14 }
 0xf2a   :  { %15788 = vmatpush3.bf16.msra.mxu1 %v17191_v19 }
 0xf2b   :  { %15790 = vmatprep.subr.bf16.mxu1 %v17195_v20 }
 0xf2e   :  { %15792 = vmatpush3.bf16.msra.mxu1 %v17217_v27 }
 0xf2f   :  { %15794 = vmatprep.subr.bf16.mxu1 %v17221_v28 }
 0xf32   :  { %15796 = vmatpush3.bf16.msra.mxu1 %v17237_v33 }
 0xf33   :  { %15798 = vmatprep.subr.bf16.mxu1 %v17241_v34 }
 0xf36   :  { %15800 = vmatpush3.bf16.msra.mxu1 %v17257_v39 }
 0xf37   :  { %15802 = vmatprep.subr.bf16.mxu1 %v17261_v40 }
 0xf3a   :  { %15804 = vmatpush3.bf16.msra.mxu1 %v17277_v45 }
 0xf3b   :  { %15806 = vmatprep.subr.bf16.mxu1 %v17281_v46 }
 0xf3e   :  { %15808 = vmatpush3.bf16.msra.mxu1 %v17291_v49 }
 0xf3f   :  { %15841 = vmatprep.subr.bf16.mxu1 %v17078_v4 }
 0xf41   :  { %5893 = vmatmul.mubr.f32.vlgmr.msra.gmra.mrb[76].mxu1 %v9785_v44 }
 0xf42   :  { %13612 = vmatprep.mubr.msk.f32.mxu1 %vm17079_vm0, %v17080_v5  ;;  %15843 = vmatpush3.bf16.msra.mxu1 %v15842_v30 }
 0xf43   :  { %15877 = vmatprep.subr.bf16.mxu1 %v17140_v3 }
 0xf94   :  { %v5299_v47 = vpop.f32.mrb[68].mxu1 }
 0xf95   :  { %v18841_v48 = vadd.f32 %v5299_v47, %v18739_v63  ;;  %v13600_v50 = vpop.f32.mrb[69].mxu1  ;;  %v9783_v63 = vld [vmem:[%s19957_s0 + $0x280] sm:$0xff]  ;;  %v9795_v47 = vld [vmem:[%s19957_s0 + $0x298] sm:$0xff] }
 0xf96   :  { %v9798_v50 = vld [vmem:[%s19957_s0 + $0x5b0] sm:$0xff] }
 0xfb4   :  { %v11963_v51 = vpop.f32.mrb[70].mxu1 }
 0xfb5   :  { %v11964_v52 = vpop.f32.mrb[71].mxu1 }
 0xfb6   :  { %v11965_v53 = vadd.f32 %v11964_v52, %v11963_v51 }
 0xfb8   :  { %v5450_v54 = vmax.f32 %v11930_v29, %v11965_v53 }
 0xfba   :  { %v5524_v31 = vmax.f32 %v5450_v54, %v12000_v35 }
 0xfd4   :  { %v12033_v55 = vpop.f32.mrb[72].mxu1 }
 0xfd5   :  { %v12034_v57 = vpop.f32.mrb[73].mxu1 }
 0xfd6   :  { %v12035_v58 = vadd.f32 %v12034_v57, %v12033_v55  ;;  %v9800_v57 = vld [vmem:[%s19958_s3 + $0x100] sm:$0xff] }
 0xfd8   :  { %v5598_v59 = vmax.f32 %v5524_v31, %v12035_v58  ;;  %v9801_v58 = vld [vmem:[%s19958_s3 + $0x108] sm:$0xff] }
 0xfda   :  { %v5599_v60 = vadd.f32 %v18535_v56, %v5598_v59  ;;  %v15973_v59 = vpack.c.bf16 %v9801_v58, %v9800_v57 }
 0xfdc   :  { %v5600_v61 = vmax.f32 %v5599_v60, 0.0  ;;  %v9804_v60 = vld [vmem:[%s19957_s0 + $0x118] sm:$0xff] }
 0xfde   :  { %13606 = vmatmul.mubr.msk.f32.vlgmr.msra.gmra.mrb[74].mxu0 %vm669_vm1, %v5600_v61  ;;  %v9803_v61 = vld [vmem:[%s19957_s0 + $0x110] sm:$0xff] }
 0xfdf   :  { %15748 = vmatpush3.bf16.msra.mxu0 %v17151_v7  ;;  %5818 = vmatprep.mubr.f32.mxu0 %v9784_v62  ;;  %v9808_v62 = vld [vmem:[%s19957_s0 + $0x438] sm:$0xff] }
 0xfe0   :  { %15750 = vmatprep.subr.bf16.mxu0 %v17153_v8 }
 0xfe3   :  { %15752 = vmatpush3.bf16.msra.mxu0 %v17171_v13 }
 0xfe4   :  { %15754 = vmatprep.subr.bf16.mxu0 %v17175_v14 }
 0xfe7   :  { %15756 = vmatpush3.bf16.msra.mxu0 %v17191_v19 }
 0xfe8   :  { %15758 = vmatprep.subr.bf16.mxu0 %v17195_v20 }
 0xfeb   :  { %15760 = vmatpush3.bf16.msra.mxu0 %v17217_v27 }
 0xfec   :  { %15762 = vmatprep.subr.bf16.mxu0 %v17221_v28 }
 0xfef   :  { %15764 = vmatpush3.bf16.msra.mxu0 %v17237_v33 }
 0xff0   :  { %15766 = vmatprep.subr.bf16.mxu0 %v17241_v34 }
 0xff3   :  { %15768 = vmatpush3.bf16.msra.mxu0 %v17257_v39 }
 0xff4   :  { %15770 = vmatprep.subr.bf16.mxu0 %v17261_v40  ;;  %v12071_v2 = vpop.f32.mrb[74].mxu1 }
 0xff5   :  { %v12072_v6 = vpop.f32.mrb[75].mxu1 }
 0xff6   :  { %v12073_v9 = vadd.f32 %v12072_v6, %v12071_v2 }
 0xff7   :  { %15772 = vmatpush3.bf16.msra.mxu0 %v17277_v45 }
 0xff8   :  { %15774 = vmatprep.subr.bf16.mxu0 %v17281_v46 }
 0xffb   :  { %15776 = vmatpush3.bf16.msra.mxu0 %v17291_v49 }
 0xffc   :  { %15810 = vmatprep.subr.bf16.mxu0 %v17140_v3 }
 0xffe   :  { %5819 = vmatmul.mubr.f32.vlgmr.msra.gmra.mrb[76].mxu0 %v9783_v63  ;;  %v9807_v63 = vld [vmem:[%s19957_s0 + $0x430] sm:$0xff] }
 0xfff   :  { %15812 = vmatpush3.bf16.msra.mxu0 %v17151_v7  ;;  %5966 = vmatprep.mubr.f32.mxu0 %v9788_v0 }
0x1000   :  { %15814 = vmatprep.subr.bf16.mxu0 %v17153_v8 }
0x1003   :  { %15816 = vmatpush3.bf16.msra.mxu0 %v17171_v13 }
0x1004   :  { %15818 = vmatprep.subr.bf16.mxu0 %v17175_v14 }
0x1007   :  { %15820 = vmatpush3.bf16.msra.mxu0 %v17191_v19 }
0x1008   :  { %15822 = vmatprep.subr.bf16.mxu0 %v17195_v20 }
0x100b   :  { %15824 = vmatpush3.bf16.msra.mxu0 %v17217_v27 }
0x100c   :  { %15826 = vmatprep.subr.bf16.mxu0 %v17221_v28 }
0x100f   :  { %15828 = vmatpush3.bf16.msra.mxu0 %v17237_v33 }
0x1010   :  { %15830 = vmatprep.subr.bf16.mxu0 %v17241_v34 }
0x1013   :  { %15832 = vmatpush3.bf16.msra.mxu0 %v17257_v39 }
0x1014   :  { %15834 = vmatprep.subr.bf16.mxu0 %v17261_v40  ;;  %v12141_v10 = vpop.f32.mrb[76].mxu1 }
0x1015   :  { %v12142_v11 = vpop.f32.mrb[77].mxu1 }
0x1016   :  { %v12143_v12 = vadd.f32 %v12142_v11, %v12141_v10 }
0x1017   :  { %15836 = vmatpush3.bf16.msra.mxu0 %v17277_v45 }
0x1018   :  { %15838 = vmatprep.subr.bf16.mxu0 %v17281_v46 }
0x101b   :  { %15840 = vmatpush3.bf16.msra.mxu0 %v17291_v49 }
0x101c   :  { %15845 = vmatprep.subr.bf16.mxu0 %v17140_v3 }
0x101e   :  { %5967 = vmatmul.mubr.f32.vlgmr.msra.gmra.mrb[78].mxu0 %v9787_v1 }
0x101f   :  { %15847 = vmatpush3.bf16.msra.mxu0 %v17151_v7  ;;  %6119 = vmatprep.mubr.f32.mxu0 %v9793_v17 }
0x1020   :  { %15849 = vmatprep.subr.bf16.mxu0 %v17153_v8 }
0x1023   :  { %15851 = vmatpush3.bf16.msra.mxu0 %v17171_v13 }
0x1024   :  { %15853 = vmatprep.subr.bf16.mxu0 %v17175_v14 }
0x1027   :  { %15855 = vmatpush3.bf16.msra.mxu0 %v17191_v19 }
0x1028   :  { %15857 = vmatprep.subr.bf16.mxu0 %v17195_v20 }
0x102b   :  { %15859 = vmatpush3.bf16.msra.mxu0 %v17217_v27 }
0x102c   :  { %15861 = vmatprep.subr.bf16.mxu0 %v17221_v28 }
0x102f   :  { %15863 = vmatpush3.bf16.msra.mxu0 %v17237_v33 }
0x1030   :  { %15865 = vmatprep.subr.bf16.mxu0 %v17241_v34 }
0x1033   :  { %15867 = vmatpush3.bf16.msra.mxu0 %v17257_v39 }
0x1034   :  { %15869 = vmatprep.subr.bf16.mxu0 %v17261_v40 }
0x1037   :  { %15871 = vmatpush3.bf16.msra.mxu0 %v17277_v45 }
0x1038   :  { %15873 = vmatprep.subr.bf16.mxu0 %v17281_v46 }
0x103b   :  { %15875 = vmatpush3.bf16.msra.mxu0 %v17291_v49 }
0x103c   :  { %15909 = vmatprep.subr.bf16.mxu0 %v17140_v3 }
0x103e   :  { %6120 = vmatmul.mubr.f32.vlgmr.msra.gmra.mrb[80].mxu0 %v9792_v18  ;;  %v19050_v18 = vld [vmem:[%s19959_s2] ss:$0 sm:$0xff] }
0x103f   :  { %15911 = vmatpush3.bf16.msra.mxu0 %v17151_v7  ;;  %6266 = vmatprep.mubr.f32.mxu0 %v9797_v21 }
0x1040   :  { %15913 = vmatprep.subr.bf16.mxu0 %v17153_v8 }
0x1043   :  { %15915 = vmatpush3.bf16.msra.mxu0 %v17171_v13 }
0x1044   :  { %15917 = vmatprep.subr.bf16.mxu0 %v17175_v14 }
0x1047   :  { %15919 = vmatpush3.bf16.msra.mxu0 %v17191_v19 }
0x1048   :  { %15921 = vmatprep.subr.bf16.mxu0 %v17195_v20 }
0x104b   :  { %15923 = vmatpush3.bf16.msra.mxu0 %v17217_v27 }
0x104c   :  { %15925 = vmatprep.subr.bf16.mxu0 %v17221_v28 }
0x104f   :  { %15927 = vmatpush3.bf16.msra.mxu0 %v17237_v33 }
0x1050   :  { %15929 = vmatprep.subr.bf16.mxu0 %v17241_v34 }
0x1053   :  { %15931 = vmatpush3.bf16.msra.mxu0 %v17257_v39 }
0x1054   :  { %15933 = vmatprep.subr.bf16.mxu0 %v17261_v40 }
0x1057   :  { %15935 = vmatpush3.bf16.msra.mxu0 %v17277_v45 }
0x1058   :  { %15937 = vmatprep.subr.bf16.mxu0 %v17281_v46 }
0x105b   :  { %15939 = vmatpush3.bf16.msra.mxu0 %v17291_v49 }
0x105c   :  { %15972 = vmatprep.subr.bf16.mxu0 %v17078_v4 }
0x105e   :  { %6267 = vmatmul.mubr.f32.vlgmr.msra.gmra.mrb[82].mxu0 %v9796_v22 }
0x105f   :  { %13619 = vmatprep.mubr.msk.f32.mxu0 %vm17079_vm0, %v17080_v5  ;;  %15974 = vmatpush3.bf16.msra.mxu0 %v15973_v59 }
0x1060   :  { %16008 = vmatprep.subr.bf16.mxu0 %v17140_v3 }
0x10b1   :  { %v5673_v23 = vpop.f32.mrb[74].mxu0 }
0x10b2   :  { %v18943_v24 = vadd.f32 %v5673_v23, %v18841_v48  ;;  %v13607_v25 = vpop.f32.mrb[75].mxu0  ;;  %v9799_v48 = vld [vmem:[%s19957_s0 + $0x5b8] sm:$0xff]  ;;  %v9806_v23 = vld [vmem:[%s19957_s0 + $0x2a8] sm:$0xff] }
0x10b3   :  { %v9810_v25 = vld [vmem:[%s19957_s0 + $0x5c8] sm:$0xff] }
0x10d1   :  { %v12106_v29 = vpop.f32.mrb[76].mxu0 }
0x10d2   :  { %v12107_v26 = vpop.f32.mrb[77].mxu0 }
0x10d3   :  { %v12108_v32 = vadd.f32 %v12107_v26, %v12106_v29  ;;  %v9809_v29 = vld [vmem:[%s19957_s0 + $0x5c0] sm:$0xff] }
0x10d5   :  { %v5824_v35 = vmax.f32 %v12073_v9, %v12108_v32 }
0x10d7   :  { %v5898_v36 = vmax.f32 %v5824_v35, %v12143_v12 }
0x10f1   :  { %v12176_v37 = vpop.f32.mrb[78].mxu0 }
0x10f2   :  { %v12177_v38 = vpop.f32.mrb[79].mxu0 }
0x10f3   :  { %v12178_v41 = vadd.f32 %v12177_v38, %v12176_v37 }
0x10f5   :  { %v5972_v42 = vmax.f32 %v5898_v36, %v12178_v41  ;;  %v9811_v41 = vld [vmem:[%s19958_s3 + $0x110] sm:$0xff] }
0x10f7   :  { %v5973_v43 = vadd.f32 %v18535_v56, %v5972_v42  ;;  %v9794_v56 = vld [vmem:[%s19957_s0 + $0x290] sm:$0xff]  ;;  %v9812_v42 = vld [vmem:[%s19958_s3 + $0x118] sm:$0xff] }
0x10f9   :  { %v5974_v44 = vmax.f32 %v5973_v43, 0.0  ;;  %v16104_v43 = vpack.c.bf16 %v9812_v42, %v9811_v41 }
0x10fb   :  { %13613 = vmatmul.mubr.msk.f32.vlgmr.msra.gmra.mrb[78].mxu1 %vm669_vm1, %v5974_v44  ;;  %v9815_v44 = vld [vmem:[%s19957_s0 + $0x128] sm:$0xff] }
0x10fc   :  { %15879 = vmatpush3.bf16.msra.mxu1 %v17151_v7  ;;  %6192 = vmatprep.mubr.f32.mxu1 %v9795_v47  ;;  %v9814_v47 = vld [vmem:[%s19957_s0 + $0x120] sm:$0xff] }
0x10fd   :  { %15881 = vmatprep.subr.bf16.mxu1 %v17153_v8 }
0x1100   :  { %15883 = vmatpush3.bf16.msra.mxu1 %v17171_v13 }
0x1101   :  { %15885 = vmatprep.subr.bf16.mxu1 %v17175_v14 }
0x1104   :  { %15887 = vmatpush3.bf16.msra.mxu1 %v17191_v19 }
0x1105   :  { %15889 = vmatprep.subr.bf16.mxu1 %v17195_v20 }
0x1108   :  { %15891 = vmatpush3.bf16.msra.mxu1 %v17217_v27 }
0x1109   :  { %15893 = vmatprep.subr.bf16.mxu1 %v17221_v28 }
0x110c   :  { %15895 = vmatpush3.bf16.msra.mxu1 %v17237_v33 }
0x110d   :  { %15897 = vmatprep.subr.bf16.mxu1 %v17241_v34 }
0x1110   :  { %15899 = vmatpush3.bf16.msra.mxu1 %v17257_v39 }
0x1111   :  { %15901 = vmatprep.subr.bf16.mxu1 %v17261_v40  ;;  %v12214_v51 = vpop.f32.mrb[80].mxu0 }
0x1112   :  { %v12215_v52 = vpop.f32.mrb[81].mxu0 }
0x1113   :  { %v12216_v53 = vadd.f32 %v12215_v52, %v12214_v51 }
0x1114   :  { %15903 = vmatpush3.bf16.msra.mxu1 %v17277_v45 }
0x1115   :  { %15905 = vmatprep.subr.bf16.mxu1 %v17281_v46 }
0x1118   :  { %15907 = vmatpush3.bf16.msra.mxu1 %v17291_v49 }
0x1119   :  { %15941 = vmatprep.subr.bf16.mxu1 %v17140_v3 }
0x111b   :  { %6193 = vmatmul.mubr.f32.vlgmr.msra.gmra.mrb[80].mxu1 %v9794_v56  ;;  %v9819_v56 = vld [vmem:[%s19957_s0 + $0x448] sm:$0xff] }
0x111c   :  { %15943 = vmatpush3.bf16.msra.mxu1 %v17151_v7  ;;  %6340 = vmatprep.mubr.f32.mxu1 %v9799_v48  ;;  %v9818_v48 = vld [vmem:[%s19957_s0 + $0x440] sm:$0xff] }
0x111d   :  { %15945 = vmatprep.subr.bf16.mxu1 %v17153_v8 }
0x1120   :  { %15947 = vmatpush3.bf16.msra.mxu1 %v17171_v13 }
0x1121   :  { %15949 = vmatprep.subr.bf16.mxu1 %v17175_v14 }
0x1124   :  { %15951 = vmatpush3.bf16.msra.mxu1 %v17191_v19 }
0x1125   :  { %15953 = vmatprep.subr.bf16.mxu1 %v17195_v20 }
0x1128   :  { %15955 = vmatpush3.bf16.msra.mxu1 %v17217_v27 }
0x1129   :  { %15957 = vmatprep.subr.bf16.mxu1 %v17221_v28 }
0x112c   :  { %15959 = vmatpush3.bf16.msra.mxu1 %v17237_v33 }
0x112d   :  { %15961 = vmatprep.subr.bf16.mxu1 %v17241_v34 }
0x1130   :  { %15963 = vmatpush3.bf16.msra.mxu1 %v17257_v39 }
0x1131   :  { %15965 = vmatprep.subr.bf16.mxu1 %v17261_v40  ;;  %v12284_v54 = vpop.f32.mrb[82].mxu0 }
0x1132   :  { %v12285_v31 = vpop.f32.mrb[83].mxu0 }
0x1133   :  { %v12286_v55 = vadd.f32 %v12285_v31, %v12284_v54 }
0x1134   :  { %15967 = vmatpush3.bf16.msra.mxu1 %v17277_v45 }
0x1135   :  { %15969 = vmatprep.subr.bf16.mxu1 %v17281_v46 }
0x1138   :  { %15971 = vmatpush3.bf16.msra.mxu1 %v17291_v49 }
0x1139   :  { %15976 = vmatprep.subr.bf16.mxu1 %v17140_v3 }
0x113b   :  { %6341 = vmatmul.mubr.f32.vlgmr.msra.gmra.mrb[82].mxu1 %v9798_v50 }
0x113c   :  { %15978 = vmatpush3.bf16.msra.mxu1 %v17151_v7  ;;  %6493 = vmatprep.mubr.f32.mxu1 %v9804_v60 }
0x113d   :  { %15980 = vmatprep.subr.bf16.mxu1 %v17153_v8 }
0x1140   :  { %15982 = vmatpush3.bf16.msra.mxu1 %v17171_v13 }
0x1141   :  { %15984 = vmatprep.subr.bf16.mxu1 %v17175_v14 }
0x1144   :  { %15986 = vmatpush3.bf16.msra.mxu1 %v17191_v19 }
0x1145   :  { %15988 = vmatprep.subr.bf16.mxu1 %v17195_v20 }
0x1148   :  { %15990 = vmatpush3.bf16.msra.mxu1 %v17217_v27 }
0x1149   :  { %15992 = vmatprep.subr.bf16.mxu1 %v17221_v28 }
0x114c   :  { %15994 = vmatpush3.bf16.msra.mxu1 %v17237_v33 }
0x114d   :  { %15996 = vmatprep.subr.bf16.mxu1 %v17241_v34 }
0x1150   :  { %15998 = vmatpush3.bf16.msra.mxu1 %v17257_v39 }
0x1151   :  { %16000 = vmatprep.subr.bf16.mxu1 %v17261_v40 }
0x1154   :  { %16002 = vmatpush3.bf16.msra.mxu1 %v17277_v45 }
0x1155   :  { %16004 = vmatprep.subr.bf16.mxu1 %v17281_v46 }
0x1158   :  { %16006 = vmatpush3.bf16.msra.mxu1 %v17291_v49 }
0x1159   :  { %16040 = vmatprep.subr.bf16.mxu1 %v17140_v3 }
0x115b   :  { %6494 = vmatmul.mubr.f32.vlgmr.msra.gmra.mrb[84].mxu1 %v9803_v61 }
0x115c   :  { %16042 = vmatpush3.bf16.msra.mxu1 %v17151_v7  ;;  %6640 = vmatprep.mubr.f32.mxu1 %v9808_v62 }
0x115d   :  { %16044 = vmatprep.subr.bf16.mxu1 %v17153_v8 }
0x1160   :  { %16046 = vmatpush3.bf16.msra.mxu1 %v17171_v13 }
0x1161   :  { %16048 = vmatprep.subr.bf16.mxu1 %v17175_v14 }
0x1164   :  { %16050 = vmatpush3.bf16.msra.mxu1 %v17191_v19 }
0x1165   :  { %16052 = vmatprep.subr.bf16.mxu1 %v17195_v20 }
0x1168   :  { %16054 = vmatpush3.bf16.msra.mxu1 %v17217_v27 }
0x1169   :  { %16056 = vmatprep.subr.bf16.mxu1 %v17221_v28 }
0x116c   :  { %16058 = vmatpush3.bf16.msra.mxu1 %v17237_v33 }
0x116d   :  { %16060 = vmatprep.subr.bf16.mxu1 %v17241_v34 }
0x1170   :  { %16062 = vmatpush3.bf16.msra.mxu1 %v17257_v39 }
0x1171   :  { %16064 = vmatprep.subr.bf16.mxu1 %v17261_v40 }
0x1174   :  { %16066 = vmatpush3.bf16.msra.mxu1 %v17277_v45 }
0x1175   :  { %16068 = vmatprep.subr.bf16.mxu1 %v17281_v46 }
0x1178   :  { %16070 = vmatpush3.bf16.msra.mxu1 %v17291_v49 }
0x1179   :  { %16103 = vmatprep.subr.bf16.mxu1 %v17078_v4 }
0x117b   :  { %6641 = vmatmul.mubr.f32.vlgmr.msra.gmra.mrb[86].mxu1 %v9807_v63 }
0x117c   :  { %13626 = vmatprep.mubr.msk.f32.mxu1 %vm17079_vm0, %v17080_v5  ;;  %16105 = vmatpush3.bf16.msra.mxu1 %v16104_v43 }
0x117d   :  { %16139 = vmatprep.subr.bf16.mxu1 %v17140_v3 }
0x11ce   :  { %v6047_v0 = vpop.f32.mrb[78].mxu1 }
0x11cf   :  { %v19045_v1 = vadd.f32 %v6047_v0, %v18943_v24  ;;  %v13614_v2 = vpop.f32.mrb[79].mxu1  ;;  %v9805_v24 = vld [vmem:[%s19957_s0 + $0x2a0] sm:$0xff]  ;;  %v9817_v0 = vld [vmem:[%s19957_s0 + $0x2b8] sm:$0xff] }
0x11d0   :  { %v9821_v2 = vld [vmem:[%s19957_s0 + $0x5d8] sm:$0xff] }
0x11ee   :  { %v12249_v6 = vpop.f32.mrb[80].mxu1 }
0x11ef   :  { %v12250_v9 = vpop.f32.mrb[81].mxu1 }
0x11f0   :  { %v12251_v10 = vadd.f32 %v12250_v9, %v12249_v6  ;;  %v9820_v6 = vld [vmem:[%s19957_s0 + $0x5d0] sm:$0xff] }
0x11f2   :  { %v6198_v11 = vmax.f32 %v12216_v53, %v12251_v10 }
0x11f4   :  { %v6272_v12 = vmax.f32 %v6198_v11, %v12286_v55 }
0x120e   :  { %v12319_v15 = vpop.f32.mrb[82].mxu1 }
0x120f   :  { %v12320_v16 = vpop.f32.mrb[83].mxu1 }
0x1210   :  { %v12321_v30 = vadd.f32 %v12320_v16, %v12319_v15 }
0x1212   :  { %v6346_v17 = vmax.f32 %v6272_v12, %v12321_v30  ;;  %v9822_v30 = vld [vmem:[%s19958_s3 + $0x120] sm:$0xff] }
0x1214   :  { %v6347_v21 = vadd.f32 %v19050_v18, %v6346_v17  ;;  %v9823_v17 = vld [vmem:[%s19958_s3 + $0x128] sm:$0xff] }
0x1216   :  { %v6348_v22 = vmax.f32 %v6347_v21, 0.0  ;;  %v16235_v21 = vpack.c.bf16 %v9823_v17, %v9822_v30 }
0x1218   :  { %13620 = vmatmul.mubr.msk.f32.vlgmr.msra.gmra.mrb[84].mxu0 %vm669_vm1, %v6348_v22  ;;  %v9826_v22 = vld [vmem:[%s19957_s0 + $0x138] sm:$0xff] }
0x1219   :  { %16010 = vmatpush3.bf16.msra.mxu0 %v17151_v7  ;;  %6566 = vmatprep.mubr.f32.mxu0 %v9806_v23  ;;  %v9825_v23 = vld [vmem:[%s19957_s0 + $0x130] sm:$0xff] }
0x121a   :  { %16012 = vmatprep.subr.bf16.mxu0 %v17153_v8 }
0x121d   :  { %16014 = vmatpush3.bf16.msra.mxu0 %v17171_v13 }
0x121e   :  { %16016 = vmatprep.subr.bf16.mxu0 %v17175_v14 }
0x1221   :  { %16018 = vmatpush3.bf16.msra.mxu0 %v17191_v19 }
0x1222   :  { %16020 = vmatprep.subr.bf16.mxu0 %v17195_v20 }
0x1225   :  { %16022 = vmatpush3.bf16.msra.mxu0 %v17217_v27 }
0x1226   :  { %16024 = vmatprep.subr.bf16.mxu0 %v17221_v28 }
0x1229   :  { %16026 = vmatpush3.bf16.msra.mxu0 %v17237_v33 }
0x122a   :  { %16028 = vmatprep.subr.bf16.mxu0 %v17241_v34 }
0x122d   :  { %16030 = vmatpush3.bf16.msra.mxu0 %v17257_v39 }
0x122e   :  { %16032 = vmatprep.subr.bf16.mxu0 %v17261_v40  ;;  %v12357_v26 = vpop.f32.mrb[84].mxu1 }
0x122f   :  { %v12358_v32 = vpop.f32.mrb[85].mxu1 }
0x1230   :  { %v12359_v35 = vadd.f32 %v12358_v32, %v12357_v26 }
0x1231   :  { %16034 = vmatpush3.bf16.msra.mxu0 %v17277_v45 }
0x1232   :  { %16036 = vmatprep.subr.bf16.mxu0 %v17281_v46 }
0x1235   :  { %16038 = vmatpush3.bf16.msra.mxu0 %v17291_v49 }
0x1236   :  { %16072 = vmatprep.subr.bf16.mxu0 %v17140_v3 }
0x1238   :  { %6567 = vmatmul.mubr.f32.vlgmr.msra.gmra.mrb[86].mxu0 %v9805_v24  ;;  %v9830_v24 = vld [vmem:[%s19957_s0 + $0x458] sm:$0xff] }
0x1239   :  { %16074 = vmatpush3.bf16.msra.mxu0 %v17151_v7  ;;  %6714 = vmatprep.mubr.f32.mxu0 %v9810_v25  ;;  %v9829_v25 = vld [vmem:[%s19957_s0 + $0x450] sm:$0xff] }
0x123a   :  { %16076 = vmatprep.subr.bf16.mxu0 %v17153_v8 }
0x123d   :  { %16078 = vmatpush3.bf16.msra.mxu0 %v17171_v13 }
0x123e   :  { %16080 = vmatprep.subr.bf16.mxu0 %v17175_v14 }
0x1241   :  { %16082 = vmatpush3.bf16.msra.mxu0 %v17191_v19 }
0x1242   :  { %16084 = vmatprep.subr.bf16.mxu0 %v17195_v20 }
0x1245   :  { %16086 = vmatpush3.bf16.msra.mxu0 %v17217_v27 }
0x1246   :  { %16088 = vmatprep.subr.bf16.mxu0 %v17221_v28 }
0x1249   :  { %16090 = vmatpush3.bf16.msra.mxu0 %v17237_v33 }
0x124a   :  { %16092 = vmatprep.subr.bf16.mxu0 %v17241_v34 }
0x124d   :  { %16094 = vmatpush3.bf16.msra.mxu0 %v17257_v39 }
0x124e   :  { %16096 = vmatprep.subr.bf16.mxu0 %v17261_v40  ;;  %v12427_v36 = vpop.f32.mrb[86].mxu1 }
0x124f   :  { %v12428_v37 = vpop.f32.mrb[87].mxu1 }
0x1250   :  { %v12429_v38 = vadd.f32 %v12428_v37, %v12427_v36 }
0x1251   :  { %16098 = vmatpush3.bf16.msra.mxu0 %v17277_v45 }
0x1252   :  { %16100 = vmatprep.subr.bf16.mxu0 %v17281_v46 }
0x1255   :  { %16102 = vmatpush3.bf16.msra.mxu0 %v17291_v49 }
0x1256   :  { %16107 = vmatprep.subr.bf16.mxu0 %v17140_v3 }
0x1258   :  { %6715 = vmatmul.mubr.f32.vlgmr.msra.gmra.mrb[88].mxu0 %v9809_v29 }
0x1259   :  { %16109 = vmatpush3.bf16.msra.mxu0 %v17151_v7  ;;  %6867 = vmatprep.mubr.f32.mxu0 %v9815_v44 }
0x125a   :  { %16111 = vmatprep.subr.bf16.mxu0 %v17153_v8 }
0x125d   :  { %16113 = vmatpush3.bf16.msra.mxu0 %v17171_v13 }
0x125e   :  { %16115 = vmatprep.subr.bf16.mxu0 %v17175_v14 }
0x1261   :  { %16117 = vmatpush3.bf16.msra.mxu0 %v17191_v19 }
0x1262   :  { %16119 = vmatprep.subr.bf16.mxu0 %v17195_v20 }
0x1265   :  { %16121 = vmatpush3.bf16.msra.mxu0 %v17217_v27 }
0x1266   :  { %16123 = vmatprep.subr.bf16.mxu0 %v17221_v28 }
0x1269   :  { %16125 = vmatpush3.bf16.msra.mxu0 %v17237_v33 }
0x126a   :  { %16127 = vmatprep.subr.bf16.mxu0 %v17241_v34 }
0x126d   :  { %16129 = vmatpush3.bf16.msra.mxu0 %v17257_v39 }
0x126e   :  { %16131 = vmatprep.subr.bf16.mxu0 %v17261_v40 }
0x1271   :  { %16133 = vmatpush3.bf16.msra.mxu0 %v17277_v45 }
0x1272   :  { %16135 = vmatprep.subr.bf16.mxu0 %v17281_v46 }
0x1275   :  { %16137 = vmatpush3.bf16.msra.mxu0 %v17291_v49 }
0x1276   :  { %16171 = vmatprep.subr.bf16.mxu0 %v17140_v3 }
0x1278   :  { %6868 = vmatmul.mubr.f32.vlgmr.msra.gmra.mrb[90].mxu0 %v9814_v47 }
0x1279   :  { %16173 = vmatpush3.bf16.msra.mxu0 %v17151_v7  ;;  %7014 = vmatprep.mubr.f32.mxu0 %v9819_v56 }
0x127a   :  { %16175 = vmatprep.subr.bf16.mxu0 %v17153_v8 }
0x127d   :  { %16177 = vmatpush3.bf16.msra.mxu0 %v17171_v13 }
0x127e   :  { %16179 = vmatprep.subr.bf16.mxu0 %v17175_v14 }
0x1281   :  { %16181 = vmatpush3.bf16.msra.mxu0 %v17191_v19 }
0x1282   :  { %16183 = vmatprep.subr.bf16.mxu0 %v17195_v20 }
0x1285   :  { %16185 = vmatpush3.bf16.msra.mxu0 %v17217_v27 }
0x1286   :  { %16187 = vmatprep.subr.bf16.mxu0 %v17221_v28 }
0x1289   :  { %16189 = vmatpush3.bf16.msra.mxu0 %v17237_v33 }
0x128a   :  { %16191 = vmatprep.subr.bf16.mxu0 %v17241_v34 }
0x128d   :  { %16193 = vmatpush3.bf16.msra.mxu0 %v17257_v39 }
0x128e   :  { %16195 = vmatprep.subr.bf16.mxu0 %v17261_v40 }
0x1291   :  { %16197 = vmatpush3.bf16.msra.mxu0 %v17277_v45 }
0x1292   :  { %16199 = vmatprep.subr.bf16.mxu0 %v17281_v46 }
0x1295   :  { %16201 = vmatpush3.bf16.msra.mxu0 %v17291_v49 }
0x1296   :  { %16234 = vmatprep.subr.bf16.mxu0 %v17078_v4 }
0x1298   :  { %7015 = vmatmul.mubr.f32.vlgmr.msra.gmra.mrb[92].mxu0 %v9818_v48 }
0x1299   :  { %13633 = vmatprep.mubr.msk.f32.mxu0 %vm17079_vm0, %v17080_v5  ;;  %16236 = vmatpush3.bf16.msra.mxu0 %v16235_v21 }
0x129a   :  { %16270 = vmatprep.subr.bf16.mxu0 %v17140_v3 }
0x12eb   :  { %v6421_v50 = vpop.f32.mrb[84].mxu0 }
0x12ec   :  { %v19152_v51 = vadd.f32 %v6421_v50, %v19045_v1  ;;  %v13621_v52 = vpop.f32.mrb[85].mxu0  ;;  %v9816_v1 = vld [vmem:[%s19957_s0 + $0x2b0] sm:$0xff]  ;;  %v9828_v50 = vld [vmem:[%s19957_s0 + $0x2c8] sm:$0xff] }
0x12ed   :  { %v9832_v52 = vld [vmem:[%s19957_s0 + $0x5e8] sm:$0xff] }
0x130b   :  { %v12392_v53 = vpop.f32.mrb[86].mxu0 }
0x130c   :  { %v12393_v54 = vpop.f32.mrb[87].mxu0 }
0x130d   :  { %v12394_v31 = vadd.f32 %v12393_v54, %v12392_v53  ;;  %v9831_v53 = vld [vmem:[%s19957_s0 + $0x5e0] sm:$0xff] }
0x130f   :  { %v6572_v55 = vmax.f32 %v12359_v35, %v12394_v31 }
0x1311   :  { %v6646_v57 = vmax.f32 %v6572_v55, %v12429_v38 }
0x132b   :  { %v12462_v58 = vpop.f32.mrb[88].mxu0 }
0x132c   :  { %v12463_v59 = vpop.f32.mrb[89].mxu0 }
0x132d   :  { %v12464_v60 = vadd.f32 %v12463_v59, %v12462_v58 }
0x132f   :  { %v6720_v61 = vmax.f32 %v6646_v57, %v12464_v60  ;;  %v9833_v60 = vld [vmem:[%s19958_s3 + $0x130] sm:$0xff] }
0x1331   :  { %v6721_v62 = vadd.f32 %v19050_v18, %v6720_v61  ;;  %v9834_v61 = vld [vmem:[%s19958_s3 + $0x138] sm:$0xff] }
0x1333   :  { %v6722_v63 = vmax.f32 %v6721_v62, 0.0  ;;  %v16366_v62 = vpack.c.bf16 %v9834_v61, %v9833_v60 }
0x1335   :  { %13627 = vmatmul.mubr.msk.f32.vlgmr.msra.gmra.mrb[88].mxu1 %vm669_vm1, %v6722_v63  ;;  %v9837_v63 = vld [vmem:[%s19957_s0 + $0x148] sm:$0xff] }
0x1336   :  { %16141 = vmatpush3.bf16.msra.mxu1 %v17151_v7  ;;  %6940 = vmatprep.mubr.f32.mxu1 %v9817_v0  ;;  %v9836_v0 = vld [vmem:[%s19957_s0 + $0x140] sm:$0xff] }
0x1337   :  { %16143 = vmatprep.subr.bf16.mxu1 %v17153_v8 }
0x133a   :  { %16145 = vmatpush3.bf16.msra.mxu1 %v17171_v13 }
0x133b   :  { %16147 = vmatprep.subr.bf16.mxu1 %v17175_v14 }
0x133e   :  { %16149 = vmatpush3.bf16.msra.mxu1 %v17191_v19 }
0x133f   :  { %16151 = vmatprep.subr.bf16.mxu1 %v17195_v20 }
0x1342   :  { %16153 = vmatpush3.bf16.msra.mxu1 %v17217_v27 }
0x1343   :  { %16155 = vmatprep.subr.bf16.mxu1 %v17221_v28 }
0x1346   :  { %16157 = vmatpush3.bf16.msra.mxu1 %v17237_v33 }
0x1347   :  { %16159 = vmatprep.subr.bf16.mxu1 %v17241_v34 }
0x134a   :  { %16161 = vmatpush3.bf16.msra.mxu1 %v17257_v39 }
0x134b   :  { %16163 = vmatprep.subr.bf16.mxu1 %v17261_v40  ;;  %v12500_v9 = vpop.f32.mrb[90].mxu0 }
0x134c   :  { %v12501_v10 = vpop.f32.mrb[91].mxu0 }
0x134d   :  { %v12502_v11 = vadd.f32 %v12501_v10, %v12500_v9 }
0x134e   :  { %16165 = vmatpush3.bf16.msra.mxu1 %v17277_v45 }
0x134f   :  { %16167 = vmatprep.subr.bf16.mxu1 %v17281_v46 }
0x1352   :  { %16169 = vmatpush3.bf16.msra.mxu1 %v17291_v49 }
0x1353   :  { %16203 = vmatprep.subr.bf16.mxu1 %v17140_v3 }
0x1355   :  { %6941 = vmatmul.mubr.f32.vlgmr.msra.gmra.mrb[90].mxu1 %v9816_v1  ;;  %v9841_v1 = vld [vmem:[%s19957_s0 + $0x468] sm:$0xff] }
0x1356   :  { %16205 = vmatpush3.bf16.msra.mxu1 %v17151_v7  ;;  %7088 = vmatprep.mubr.f32.mxu1 %v9821_v2  ;;  %v9840_v2 = vld [vmem:[%s19957_s0 + $0x460] sm:$0xff] }
0x1357   :  { %16207 = vmatprep.subr.bf16.mxu1 %v17153_v8 }
0x135a   :  { %16209 = vmatpush3.bf16.msra.mxu1 %v17171_v13 }
0x135b   :  { %16211 = vmatprep.subr.bf16.mxu1 %v17175_v14 }
0x135e   :  { %16213 = vmatpush3.bf16.msra.mxu1 %v17191_v19 }
0x135f   :  { %16215 = vmatprep.subr.bf16.mxu1 %v17195_v20 }
0x1362   :  { %16217 = vmatpush3.bf16.msra.mxu1 %v17217_v27 }
0x1363   :  { %16219 = vmatprep.subr.bf16.mxu1 %v17221_v28 }
0x1366   :  { %16221 = vmatpush3.bf16.msra.mxu1 %v17237_v33 }
0x1367   :  { %16223 = vmatprep.subr.bf16.mxu1 %v17241_v34 }
0x136a   :  { %16225 = vmatpush3.bf16.msra.mxu1 %v17257_v39 }
0x136b   :  { %16227 = vmatprep.subr.bf16.mxu1 %v17261_v40  ;;  %v12570_v12 = vpop.f32.mrb[92].mxu0 }
0x136c   :  { %v12571_v15 = vpop.f32.mrb[93].mxu0 }
0x136d   :  { %v12572_v16 = vadd.f32 %v12571_v15, %v12570_v12 }
0x136e   :  { %16229 = vmatpush3.bf16.msra.mxu1 %v17277_v45 }
0x136f   :  { %16231 = vmatprep.subr.bf16.mxu1 %v17281_v46 }
0x1372   :  { %16233 = vmatpush3.bf16.msra.mxu1 %v17291_v49 }
0x1373   :  { %16238 = vmatprep.subr.bf16.mxu1 %v17140_v3 }
0x1375   :  { %7089 = vmatmul.mubr.f32.vlgmr.msra.gmra.mrb[92].mxu1 %v9820_v6 }
0x1376   :  { %16240 = vmatpush3.bf16.msra.mxu1 %v17151_v7  ;;  %7241 = vmatprep.mubr.f32.mxu1 %v9826_v22 }
0x1377   :  { %16242 = vmatprep.subr.bf16.mxu1 %v17153_v8 }
0x137a   :  { %16244 = vmatpush3.bf16.msra.mxu1 %v17171_v13 }
0x137b   :  { %16246 = vmatprep.subr.bf16.mxu1 %v17175_v14 }
0x137e   :  { %16248 = vmatpush3.bf16.msra.mxu1 %v17191_v19 }
0x137f   :  { %16250 = vmatprep.subr.bf16.mxu1 %v17195_v20 }
0x1382   :  { %16252 = vmatpush3.bf16.msra.mxu1 %v17217_v27 }
0x1383   :  { %16254 = vmatprep.subr.bf16.mxu1 %v17221_v28 }
0x1386   :  { %16256 = vmatpush3.bf16.msra.mxu1 %v17237_v33 }
0x1387   :  { %16258 = vmatprep.subr.bf16.mxu1 %v17241_v34 }
0x138a   :  { %16260 = vmatpush3.bf16.msra.mxu1 %v17257_v39 }
0x138b   :  { %16262 = vmatprep.subr.bf16.mxu1 %v17261_v40 }
0x138e   :  { %16264 = vmatpush3.bf16.msra.mxu1 %v17277_v45 }
0x138f   :  { %16266 = vmatprep.subr.bf16.mxu1 %v17281_v46 }
0x1392   :  { %16268 = vmatpush3.bf16.msra.mxu1 %v17291_v49 }
0x1393   :  { %16302 = vmatprep.subr.bf16.mxu1 %v17140_v3 }
0x1395   :  { %7242 = vmatmul.mubr.f32.vlgmr.msra.gmra.mrb[94].mxu1 %v9825_v23 }
0x1396   :  { %16304 = vmatpush3.bf16.msra.mxu1 %v17151_v7  ;;  %7388 = vmatprep.mubr.f32.mxu1 %v9830_v24 }
0x1397   :  { %16306 = vmatprep.subr.bf16.mxu1 %v17153_v8 }
0x139a   :  { %16308 = vmatpush3.bf16.msra.mxu1 %v17171_v13 }
0x139b   :  { %16310 = vmatprep.subr.bf16.mxu1 %v17175_v14 }
0x139e   :  { %16312 = vmatpush3.bf16.msra.mxu1 %v17191_v19 }
0x139f   :  { %16314 = vmatprep.subr.bf16.mxu1 %v17195_v20 }
0x13a2   :  { %16316 = vmatpush3.bf16.msra.mxu1 %v17217_v27 }
0x13a3   :  { %16318 = vmatprep.subr.bf16.mxu1 %v17221_v28 }
0x13a6   :  { %16320 = vmatpush3.bf16.msra.mxu1 %v17237_v33 }
0x13a7   :  { %16322 = vmatprep.subr.bf16.mxu1 %v17241_v34 }
0x13aa   :  { %16324 = vmatpush3.bf16.msra.mxu1 %v17257_v39 }
0x13ab   :  { %16326 = vmatprep.subr.bf16.mxu1 %v17261_v40 }
0x13ae   :  { %16328 = vmatpush3.bf16.msra.mxu1 %v17277_v45 }
0x13af   :  { %16330 = vmatprep.subr.bf16.mxu1 %v17281_v46 }
0x13b2   :  { %16332 = vmatpush3.bf16.msra.mxu1 %v17291_v49 }
0x13b3   :  { %16365 = vmatprep.subr.bf16.mxu1 %v17078_v4 }
0x13b5   :  { %7389 = vmatmul.mubr.f32.vlgmr.msra.gmra.mrb[96].mxu1 %v9829_v25 }
0x13b6   :  { %13640 = vmatprep.mubr.msk.f32.mxu1 %vm17079_vm0, %v17080_v5  ;;  %16367 = vmatpush3.bf16.msra.mxu1 %v16366_v62 }
0x13b7   :  { %16401 = vmatprep.subr.bf16.mxu1 %v17140_v3 }
0x1408   :  { %v6795_v29 = vpop.f32.mrb[88].mxu1 }
0x1409   :  { %v19254_v26 = vadd.f32 %v6795_v29, %v19152_v51  ;;  %v13628_v32 = vpop.f32.mrb[89].mxu1  ;;  %v9827_v51 = vld [vmem:[%s19957_s0 + $0x2c0] sm:$0xff]  ;;  %v9839_v29 = vld [vmem:[%s19957_s0 + $0x2d8] sm:$0xff] }
0x140a   :  { %v9843_v32 = vld [vmem:[%s19957_s0 + $0x5f8] sm:$0xff] }
0x1428   :  { %v12535_v35 = vpop.f32.mrb[90].mxu1 }
0x1429   :  { %v12536_v36 = vpop.f32.mrb[91].mxu1 }
0x142a   :  { %v12537_v37 = vadd.f32 %v12536_v36, %v12535_v35  ;;  %v9842_v35 = vld [vmem:[%s19957_s0 + $0x5f0] sm:$0xff] }
0x142c   :  { %v6946_v38 = vmax.f32 %v12502_v11, %v12537_v37 }
0x142e   :  { %v7020_v41 = vmax.f32 %v6946_v38, %v12572_v16 }
0x1448   :  { %v12605_v42 = vpop.f32.mrb[92].mxu1 }
0x1449   :  { %v12606_v43 = vpop.f32.mrb[93].mxu1 }
0x144a   :  { %v12607_v44 = vadd.f32 %v12606_v43, %v12605_v42 }
0x144c   :  { %v7094_v47 = vmax.f32 %v7020_v41, %v12607_v44  ;;  %v9844_v44 = vld [vmem:[%s19958_s3 + $0x140] sm:$0xff] }
0x144e   :  { %v7095_v56 = vadd.f32 %v19050_v18, %v7094_v47  ;;  %v9845_v47 = vld [vmem:[%s19958_s3 + $0x148] sm:$0xff] }
0x1450   :  { %v7096_v48 = vmax.f32 %v7095_v56, 0.0  ;;  %v16497_v56 = vpack.c.bf16 %v9845_v47, %v9844_v44 }
0x1452   :  { %13634 = vmatmul.mubr.msk.f32.vlgmr.msra.gmra.mrb[94].mxu0 %vm669_vm1, %v7096_v48  ;;  %v9848_v48 = vld [vmem:[%s19957_s0 + $0x158] sm:$0xff] }
0x1453   :  { %16272 = vmatpush3.bf16.msra.mxu0 %v17151_v7  ;;  %7314 = vmatprep.mubr.f32.mxu0 %v9828_v50  ;;  %v9847_v50 = vld [vmem:[%s19957_s0 + $0x150] sm:$0xff] }
0x1454   :  { %16274 = vmatprep.subr.bf16.mxu0 %v17153_v8 }
0x1457   :  { %16276 = vmatpush3.bf16.msra.mxu0 %v17171_v13 }
0x1458   :  { %16278 = vmatprep.subr.bf16.mxu0 %v17175_v14 }
0x145b   :  { %16280 = vmatpush3.bf16.msra.mxu0 %v17191_v19 }
0x145c   :  { %16282 = vmatprep.subr.bf16.mxu0 %v17195_v20 }
0x145f   :  { %16284 = vmatpush3.bf16.msra.mxu0 %v17217_v27 }
0x1460   :  { %16286 = vmatprep.subr.bf16.mxu0 %v17221_v28 }
0x1463   :  { %16288 = vmatpush3.bf16.msra.mxu0 %v17237_v33 }
0x1464   :  { %16290 = vmatprep.subr.bf16.mxu0 %v17241_v34 }
0x1467   :  { %16292 = vmatpush3.bf16.msra.mxu0 %v17257_v39 }
0x1468   :  { %16294 = vmatprep.subr.bf16.mxu0 %v17261_v40  ;;  %v12643_v54 = vpop.f32.mrb[94].mxu1 }
0x1469   :  { %v12644_v31 = vpop.f32.mrb[95].mxu1 }
0x146a   :  { %v12645_v55 = vadd.f32 %v12644_v31, %v12643_v54 }
0x146b   :  { %16296 = vmatpush3.bf16.msra.mxu0 %v17277_v45 }
0x146c   :  { %16298 = vmatprep.subr.bf16.mxu0 %v17281_v46 }
0x146f   :  { %16300 = vmatpush3.bf16.msra.mxu0 %v17291_v49 }
0x1470   :  { %16334 = vmatprep.subr.bf16.mxu0 %v17140_v3 }
0x1472   :  { %7315 = vmatmul.mubr.f32.vlgmr.msra.gmra.mrb[96].mxu0 %v9827_v51  ;;  %v9852_v51 = vld [vmem:[%s19957_s0 + $0x478] sm:$0xff] }
0x1473   :  { %16336 = vmatpush3.bf16.msra.mxu0 %v17151_v7  ;;  %7462 = vmatprep.mubr.f32.mxu0 %v9832_v52  ;;  %v9851_v52 = vld [vmem:[%s19957_s0 + $0x470] sm:$0xff] }
0x1474   :  { %16338 = vmatprep.subr.bf16.mxu0 %v17153_v8 }
0x1477   :  { %16340 = vmatpush3.bf16.msra.mxu0 %v17171_v13 }
0x1478   :  { %16342 = vmatprep.subr.bf16.mxu0 %v17175_v14 }
0x147b   :  { %16344 = vmatpush3.bf16.msra.mxu0 %v17191_v19 }
0x147c   :  { %16346 = vmatprep.subr.bf16.mxu0 %v17195_v20 }
0x147f   :  { %16348 = vmatpush3.bf16.msra.mxu0 %v17217_v27 }
0x1480   :  { %16350 = vmatprep.subr.bf16.mxu0 %v17221_v28 }
0x1483   :  { %16352 = vmatpush3.bf16.msra.mxu0 %v17237_v33 }
0x1484   :  { %16354 = vmatprep.subr.bf16.mxu0 %v17241_v34 }
0x1487   :  { %16356 = vmatpush3.bf16.msra.mxu0 %v17257_v39 }
0x1488   :  { %16358 = vmatprep.subr.bf16.mxu0 %v17261_v40  ;;  %v12713_v57 = vpop.f32.mrb[96].mxu1 }
0x1489   :  { %v12714_v58 = vpop.f32.mrb[97].mxu1 }
0x148a   :  { %v12715_v59 = vadd.f32 %v12714_v58, %v12713_v57 }
0x148b   :  { %16360 = vmatpush3.bf16.msra.mxu0 %v17277_v45 }
0x148c   :  { %16362 = vmatprep.subr.bf16.mxu0 %v17281_v46 }
0x148f   :  { %16364 = vmatpush3.bf16.msra.mxu0 %v17291_v49 }
0x1490   :  { %16369 = vmatprep.subr.bf16.mxu0 %v17140_v3 }
0x1492   :  { %7463 = vmatmul.mubr.f32.vlgmr.msra.gmra.mrb[98].mxu0 %v9831_v53 }
0x1493   :  { %16371 = vmatpush3.bf16.msra.mxu0 %v17151_v7  ;;  %7615 = vmatprep.mubr.f32.mxu0 %v9837_v63 }
0x1494   :  { %16373 = vmatprep.subr.bf16.mxu0 %v17153_v8 }
0x1497   :  { %16375 = vmatpush3.bf16.msra.mxu0 %v17171_v13 }
0x1498   :  { %16377 = vmatprep.subr.bf16.mxu0 %v17175_v14 }
0x149b   :  { %16379 = vmatpush3.bf16.msra.mxu0 %v17191_v19 }
0x149c   :  { %16381 = vmatprep.subr.bf16.mxu0 %v17195_v20 }
0x149f   :  { %16383 = vmatpush3.bf16.msra.mxu0 %v17217_v27 }
0x14a0   :  { %16385 = vmatprep.subr.bf16.mxu0 %v17221_v28 }
0x14a3   :  { %16387 = vmatpush3.bf16.msra.mxu0 %v17237_v33 }
0x14a4   :  { %16389 = vmatprep.subr.bf16.mxu0 %v17241_v34 }
0x14a7   :  { %16391 = vmatpush3.bf16.msra.mxu0 %v17257_v39 }
0x14a8   :  { %16393 = vmatprep.subr.bf16.mxu0 %v17261_v40 }
0x14ab   :  { %16395 = vmatpush3.bf16.msra.mxu0 %v17277_v45 }
0x14ac   :  { %16397 = vmatprep.subr.bf16.mxu0 %v17281_v46 }
0x14af   :  { %16399 = vmatpush3.bf16.msra.mxu0 %v17291_v49 }
0x14b0   :  { %16433 = vmatprep.subr.bf16.mxu0 %v17140_v3 }
0x14b2   :  { %7616 = vmatmul.mubr.f32.vlgmr.msra.gmra.mrb[100].mxu0 %v9836_v0 }
0x14b3   :  { %16435 = vmatpush3.bf16.msra.mxu0 %v17151_v7  ;;  %7762 = vmatprep.mubr.f32.mxu0 %v9841_v1 }
0x14b4   :  { %16437 = vmatprep.subr.bf16.mxu0 %v17153_v8 }
0x14b7   :  { %16439 = vmatpush3.bf16.msra.mxu0 %v17171_v13 }
0x14b8   :  { %16441 = vmatprep.subr.bf16.mxu0 %v17175_v14 }
0x14bb   :  { %16443 = vmatpush3.bf16.msra.mxu0 %v17191_v19 }
0x14bc   :  { %16445 = vmatprep.subr.bf16.mxu0 %v17195_v20 }
0x14bf   :  { %16447 = vmatpush3.bf16.msra.mxu0 %v17217_v27 }
0x14c0   :  { %16449 = vmatprep.subr.bf16.mxu0 %v17221_v28 }
0x14c3   :  { %16451 = vmatpush3.bf16.msra.mxu0 %v17237_v33 }
0x14c4   :  { %16453 = vmatprep.subr.bf16.mxu0 %v17241_v34 }
0x14c7   :  { %16455 = vmatpush3.bf16.msra.mxu0 %v17257_v39 }
0x14c8   :  { %16457 = vmatprep.subr.bf16.mxu0 %v17261_v40 }
0x14cb   :  { %16459 = vmatpush3.bf16.msra.mxu0 %v17277_v45 }
0x14cc   :  { %16461 = vmatprep.subr.bf16.mxu0 %v17281_v46 }
0x14cf   :  { %16463 = vmatpush3.bf16.msra.mxu0 %v17291_v49 }
0x14d0   :  { %16496 = vmatprep.subr.bf16.mxu0 %v17078_v4 }
0x14d2   :  { %7763 = vmatmul.mubr.f32.vlgmr.msra.gmra.mrb[102].mxu0 %v9840_v2 }
0x14d3   :  { %13647 = vmatprep.mubr.msk.f32.mxu0 %vm17079_vm0, %v17080_v5  ;;  %16498 = vmatpush3.bf16.msra.mxu0 %v16497_v56 }
0x14d4   :  { %16532 = vmatprep.subr.bf16.mxu0 %v17140_v3 }
0x1525   :  { %v7169_v6 = vpop.f32.mrb[94].mxu0 }
0x1526   :  { %v19356_v9 = vadd.f32 %v7169_v6, %v19254_v26  ;;  %v13635_v10 = vpop.f32.mrb[95].mxu0  ;;  %v9838_v26 = vld [vmem:[%s19957_s0 + $0x2d0] sm:$0xff]  ;;  %v9850_v6 = vld [vmem:[%s19957_s0 + $0x2e8] sm:$0xff] }
0x1527   :  { %v9853_v10 = vld [vmem:[%s19957_s0 + $0x600] sm:$0xff] }
0x1545   :  { %v12678_v11 = vpop.f32.mrb[96].mxu0 }
0x1546   :  { %v12679_v12 = vpop.f32.mrb[97].mxu0 }
0x1547   :  { %v12680_v15 = vadd.f32 %v12679_v12, %v12678_v11 }
0x1549   :  { %v7320_v16 = vmax.f32 %v12645_v55, %v12680_v15 }
0x154b   :  { %v7394_v30 = vmax.f32 %v7320_v16, %v12715_v59 }
0x1565   :  { %v12748_v17 = vpop.f32.mrb[98].mxu0 }
0x1566   :  { %v12749_v21 = vpop.f32.mrb[99].mxu0 }
0x1567   :  { %v12750_v22 = vadd.f32 %v12749_v21, %v12748_v17  ;;  %v9855_v21 = vld [vmem:[%s19958_s3 + $0x150] sm:$0xff] }
0x1569   :  { %v7468_v23 = vmax.f32 %v7394_v30, %v12750_v22  ;;  %v9856_v22 = vld [vmem:[%s19958_s3 + $0x158] sm:$0xff] }
0x156b   :  { %v7469_v24 = vadd.f32 %v19050_v18, %v7468_v23  ;;  %v16628_v23 = vpack.c.bf16 %v9856_v22, %v9855_v21 }
0x156d   :  { %v7470_v25 = vmax.f32 %v7469_v24, 0.0  ;;  %v9859_v24 = vld [vmem:[%s19957_s0 + $0x168] sm:$0xff] }
0x156f   :  { %13641 = vmatmul.mubr.msk.f32.vlgmr.msra.gmra.mrb[98].mxu1 %vm669_vm1, %v7470_v25  ;;  %v9858_v25 = vld [vmem:[%s19957_s0 + $0x160] sm:$0xff] }
0x1570   :  { %16403 = vmatpush3.bf16.msra.mxu1 %v17151_v7  ;;  %7688 = vmatprep.mubr.f32.mxu1 %v9839_v29  ;;  %v9863_v29 = vld [vmem:[%s19957_s0 + $0x488] sm:$0xff] }
0x1571   :  { %16405 = vmatprep.subr.bf16.mxu1 %v17153_v8 }
0x1574   :  { %16407 = vmatpush3.bf16.msra.mxu1 %v17171_v13 }
0x1575   :  { %16409 = vmatprep.subr.bf16.mxu1 %v17175_v14 }
0x1578   :  { %16411 = vmatpush3.bf16.msra.mxu1 %v17191_v19 }
0x1579   :  { %16413 = vmatprep.subr.bf16.mxu1 %v17195_v20 }
0x157c   :  { %16415 = vmatpush3.bf16.msra.mxu1 %v17217_v27 }
0x157d   :  { %16417 = vmatprep.subr.bf16.mxu1 %v17221_v28 }
0x1580   :  { %16419 = vmatpush3.bf16.msra.mxu1 %v17237_v33 }
0x1581   :  { %16421 = vmatprep.subr.bf16.mxu1 %v17241_v34 }
0x1584   :  { %16423 = vmatpush3.bf16.msra.mxu1 %v17257_v39 }
0x1585   :  { %16425 = vmatprep.subr.bf16.mxu1 %v17261_v40  ;;  %v12786_v36 = vpop.f32.mrb[100].mxu0 }
0x1586   :  { %v12787_v37 = vpop.f32.mrb[101].mxu0 }
0x1587   :  { %v12788_v38 = vadd.f32 %v12787_v37, %v12786_v36 }
0x1588   :  { %16427 = vmatpush3.bf16.msra.mxu1 %v17277_v45 }
0x1589   :  { %16429 = vmatprep.subr.bf16.mxu1 %v17281_v46 }
0x158c   :  { %16431 = vmatpush3.bf16.msra.mxu1 %v17291_v49 }
0x158d   :  { %16465 = vmatprep.subr.bf16.mxu1 %v17140_v3 }
0x158f   :  { %7689 = vmatmul.mubr.f32.vlgmr.msra.gmra.mrb[100].mxu1 %v9838_v26  ;;  %v9862_v26 = vld [vmem:[%s19957_s0 + $0x480] sm:$0xff] }
0x1590   :  { %16467 = vmatpush3.bf16.msra.mxu1 %v17151_v7  ;;  %7836 = vmatprep.mubr.f32.mxu1 %v9843_v32 }
0x1591   :  { %16469 = vmatprep.subr.bf16.mxu1 %v17153_v8 }
0x1594   :  { %16471 = vmatpush3.bf16.msra.mxu1 %v17171_v13 }
0x1595   :  { %16473 = vmatprep.subr.bf16.mxu1 %v17175_v14 }
0x1598   :  { %16475 = vmatpush3.bf16.msra.mxu1 %v17191_v19 }
0x1599   :  { %16477 = vmatprep.subr.bf16.mxu1 %v17195_v20 }
0x159c   :  { %16479 = vmatpush3.bf16.msra.mxu1 %v17217_v27 }
0x159d   :  { %16481 = vmatprep.subr.bf16.mxu1 %v17221_v28 }
0x15a0   :  { %16483 = vmatpush3.bf16.msra.mxu1 %v17237_v33 }
0x15a1   :  { %16485 = vmatprep.subr.bf16.mxu1 %v17241_v34 }
0x15a4   :  { %16487 = vmatpush3.bf16.msra.mxu1 %v17257_v39 }
0x15a5   :  { %16489 = vmatprep.subr.bf16.mxu1 %v17261_v40  ;;  %v12856_v41 = vpop.f32.mrb[102].mxu0 }
0x15a6   :  { %v12857_v42 = vpop.f32.mrb[103].mxu0 }
0x15a7   :  { %v12858_v43 = vadd.f32 %v12857_v42, %v12856_v41 }
0x15a8   :  { %16491 = vmatpush3.bf16.msra.mxu1 %v17277_v45 }
0x15a9   :  { %16493 = vmatprep.subr.bf16.mxu1 %v17281_v46 }
0x15ac   :  { %16495 = vmatpush3.bf16.msra.mxu1 %v17291_v49 }
0x15ad   :  { %16500 = vmatprep.subr.bf16.mxu1 %v17140_v3 }
0x15af   :  { %7837 = vmatmul.mubr.f32.vlgmr.msra.gmra.mrb[102].mxu1 %v9842_v35 }
0x15b0   :  { %16502 = vmatpush3.bf16.msra.mxu1 %v17151_v7  ;;  %7989 = vmatprep.mubr.f32.mxu1 %v9848_v48 }
0x15b1   :  { %16504 = vmatprep.subr.bf16.mxu1 %v17153_v8 }
0x15b4   :  { %16506 = vmatpush3.bf16.msra.mxu1 %v17171_v13 }
0x15b5   :  { %16508 = vmatprep.subr.bf16.mxu1 %v17175_v14 }
0x15b8   :  { %16510 = vmatpush3.bf16.msra.mxu1 %v17191_v19 }
0x15b9   :  { %16512 = vmatprep.subr.bf16.mxu1 %v17195_v20 }
0x15bc   :  { %16514 = vmatpush3.bf16.msra.mxu1 %v17217_v27 }
0x15bd   :  { %16516 = vmatprep.subr.bf16.mxu1 %v17221_v28 }
0x15c0   :  { %16518 = vmatpush3.bf16.msra.mxu1 %v17237_v33 }
0x15c1   :  { %16520 = vmatprep.subr.bf16.mxu1 %v17241_v34 }
0x15c4   :  { %16522 = vmatpush3.bf16.msra.mxu1 %v17257_v39 }
0x15c5   :  { %16524 = vmatprep.subr.bf16.mxu1 %v17261_v40 }
0x15c8   :  { %16526 = vmatpush3.bf16.msra.mxu1 %v17277_v45 }
0x15c9   :  { %16528 = vmatprep.subr.bf16.mxu1 %v17281_v46 }
0x15cc   :  { %16530 = vmatpush3.bf16.msra.mxu1 %v17291_v49 }
0x15cd   :  { %16564 = vmatprep.subr.bf16.mxu1 %v17140_v3 }
0x15cf   :  { %7990 = vmatmul.mubr.f32.vlgmr.msra.gmra.mrb[104].mxu1 %v9847_v50  ;;  %v19565_v50 = vld [vmem:[%s19959_s2] ss:$0 sm:$0xff] }
0x15d0   :  { %16566 = vmatpush3.bf16.msra.mxu1 %v17151_v7  ;;  %8136 = vmatprep.mubr.f32.mxu1 %v9852_v51 }
0x15d1   :  { %16568 = vmatprep.subr.bf16.mxu1 %v17153_v8 }
0x15d4   :  { %16570 = vmatpush3.bf16.msra.mxu1 %v17171_v13 }
0x15d5   :  { %16572 = vmatprep.subr.bf16.mxu1 %v17175_v14 }
0x15d8   :  { %16574 = vmatpush3.bf16.msra.mxu1 %v17191_v19 }
0x15d9   :  { %16576 = vmatprep.subr.bf16.mxu1 %v17195_v20 }
0x15dc   :  { %16578 = vmatpush3.bf16.msra.mxu1 %v17217_v27 }
0x15dd   :  { %16580 = vmatprep.subr.bf16.mxu1 %v17221_v28 }
0x15e0   :  { %16582 = vmatpush3.bf16.msra.mxu1 %v17237_v33 }
0x15e1   :  { %16584 = vmatprep.subr.bf16.mxu1 %v17241_v34 }
0x15e4   :  { %16586 = vmatpush3.bf16.msra.mxu1 %v17257_v39 }
0x15e5   :  { %16588 = vmatprep.subr.bf16.mxu1 %v17261_v40 }
0x15e8   :  { %16590 = vmatpush3.bf16.msra.mxu1 %v17277_v45 }
0x15e9   :  { %16592 = vmatprep.subr.bf16.mxu1 %v17281_v46 }
0x15ec   :  { %16594 = vmatpush3.bf16.msra.mxu1 %v17291_v49 }
0x15ed   :  { %16627 = vmatprep.subr.bf16.mxu1 %v17078_v4 }
0x15ef   :  { %8137 = vmatmul.mubr.f32.vlgmr.msra.gmra.mrb[106].mxu1 %v9851_v52 }
0x15f0   :  { %13654 = vmatprep.mubr.msk.f32.mxu1 %vm17079_vm0, %v17080_v5  ;;  %16629 = vmatpush3.bf16.msra.mxu1 %v16628_v23 }
0x15f1   :  { %16663 = vmatprep.subr.bf16.mxu1 %v17140_v3 }
0x1642   :  { %v7543_v53 = vpop.f32.mrb[98].mxu1 }
0x1643   :  { %v19458_v54 = vadd.f32 %v7543_v53, %v19356_v9  ;;  %v13642_v31 = vpop.f32.mrb[99].mxu1  ;;  %v9854_v9 = vld [vmem:[%s19957_s0 + $0x608] sm:$0xff]  ;;  %v9861_v53 = vld [vmem:[%s19957_s0 + $0x2f8] sm:$0xff] }
0x1644   :  { %v9865_v31 = vld [vmem:[%s19957_s0 + $0x618] sm:$0xff] }
0x1662   :  { %v12821_v55 = vpop.f32.mrb[100].mxu1 }
0x1663   :  { %v12822_v57 = vpop.f32.mrb[101].mxu1 }
0x1664   :  { %v12823_v58 = vadd.f32 %v12822_v57, %v12821_v55  ;;  %v9864_v55 = vld [vmem:[%s19957_s0 + $0x610] sm:$0xff] }
0x1666   :  { %v7694_v59 = vmax.f32 %v12788_v38, %v12823_v58 }
0x1668   :  { %v7768_v60 = vmax.f32 %v7694_v59, %v12858_v43 }
0x1682   :  { %v12891_v61 = vpop.f32.mrb[102].mxu1 }
0x1683   :  { %v12892_v62 = vpop.f32.mrb[103].mxu1 }
0x1684   :  { %v12893_v63 = vadd.f32 %v12892_v62, %v12891_v61 }
0x1686   :  { %v7842_v0 = vmax.f32 %v7768_v60, %v12893_v63  ;;  %v9866_v63 = vld [vmem:[%s19958_s3 + $0x160] sm:$0xff] }
0x1688   :  { %v7843_v1 = vadd.f32 %v19050_v18, %v7842_v0  ;;  %v9849_v18 = vld [vmem:[%s19957_s0 + $0x2e0] sm:$0xff]  ;;  %v9867_v0 = vld [vmem:[%s19958_s3 + $0x168] sm:$0xff] }
0x168a   :  { %v7844_v2 = vmax.f32 %v7843_v1, 0.0  ;;  %v16759_v1 = vpack.c.bf16 %v9867_v0, %v9866_v63 }
0x168c   :  { %13648 = vmatmul.mubr.msk.f32.vlgmr.msra.gmra.mrb[104].mxu0 %vm669_vm1, %v7844_v2  ;;  %v9870_v2 = vld [vmem:[%s19957_s0 + $0x178] sm:$0xff] }
0x168d   :  { %16534 = vmatpush3.bf16.msra.mxu0 %v17151_v7  ;;  %8062 = vmatprep.mubr.f32.mxu0 %v9850_v6  ;;  %v9869_v6 = vld [vmem:[%s19957_s0 + $0x170] sm:$0xff] }
0x168e   :  { %16536 = vmatprep.subr.bf16.mxu0 %v17153_v8 }
0x1691   :  { %16538 = vmatpush3.bf16.msra.mxu0 %v17171_v13 }
0x1692   :  { %16540 = vmatprep.subr.bf16.mxu0 %v17175_v14 }
0x1695   :  { %16542 = vmatpush3.bf16.msra.mxu0 %v17191_v19 }
0x1696   :  { %16544 = vmatprep.subr.bf16.mxu0 %v17195_v20 }
0x1699   :  { %16546 = vmatpush3.bf16.msra.mxu0 %v17217_v27 }
0x169a   :  { %16548 = vmatprep.subr.bf16.mxu0 %v17221_v28 }
0x169d   :  { %16550 = vmatpush3.bf16.msra.mxu0 %v17237_v33 }
0x169e   :  { %16552 = vmatprep.subr.bf16.mxu0 %v17241_v34 }
0x16a1   :  { %16554 = vmatpush3.bf16.msra.mxu0 %v17257_v39 }
0x16a2   :  { %16556 = vmatprep.subr.bf16.mxu0 %v17261_v40  ;;  %v12929_v11 = vpop.f32.mrb[104].mxu1 }
0x16a3   :  { %v12930_v12 = vpop.f32.mrb[105].mxu1 }
0x16a4   :  { %v12931_v15 = vadd.f32 %v12930_v12, %v12929_v11 }
0x16a5   :  { %16558 = vmatpush3.bf16.msra.mxu0 %v17277_v45 }
0x16a6   :  { %16560 = vmatprep.subr.bf16.mxu0 %v17281_v46 }
0x16a9   :  { %16562 = vmatpush3.bf16.msra.mxu0 %v17291_v49 }
0x16aa   :  { %16596 = vmatprep.subr.bf16.mxu0 %v17140_v3 }
0x16ac   :  { %8063 = vmatmul.mubr.f32.vlgmr.msra.gmra.mrb[106].mxu0 %v9849_v18  ;;  %v9874_v18 = vld [vmem:[%s19957_s0 + $0x498] sm:$0xff] }
0x16ad   :  { %16598 = vmatpush3.bf16.msra.mxu0 %v17151_v7  ;;  %8210 = vmatprep.mubr.f32.mxu0 %v9854_v9  ;;  %v9873_v9 = vld [vmem:[%s19957_s0 + $0x490] sm:$0xff] }
0x16ae   :  { %16600 = vmatprep.subr.bf16.mxu0 %v17153_v8 }
0x16b1   :  { %16602 = vmatpush3.bf16.msra.mxu0 %v17171_v13 }
0x16b2   :  { %16604 = vmatprep.subr.bf16.mxu0 %v17175_v14 }
0x16b5   :  { %16606 = vmatpush3.bf16.msra.mxu0 %v17191_v19 }
0x16b6   :  { %16608 = vmatprep.subr.bf16.mxu0 %v17195_v20 }
0x16b9   :  { %16610 = vmatpush3.bf16.msra.mxu0 %v17217_v27 }
0x16ba   :  { %16612 = vmatprep.subr.bf16.mxu0 %v17221_v28 }
0x16bd   :  { %16614 = vmatpush3.bf16.msra.mxu0 %v17237_v33 }
0x16be   :  { %16616 = vmatprep.subr.bf16.mxu0 %v17241_v34 }
0x16c1   :  { %16618 = vmatpush3.bf16.msra.mxu0 %v17257_v39 }
0x16c2   :  { %16620 = vmatprep.subr.bf16.mxu0 %v17261_v40  ;;  %v12999_v16 = vpop.f32.mrb[106].mxu1 }
0x16c3   :  { %v13000_v30 = vpop.f32.mrb[107].mxu1 }
0x16c4   :  { %v13001_v17 = vadd.f32 %v13000_v30, %v12999_v16 }
0x16c5   :  { %16622 = vmatpush3.bf16.msra.mxu0 %v17277_v45 }
0x16c6   :  { %16624 = vmatprep.subr.bf16.mxu0 %v17281_v46 }
0x16c9   :  { %16626 = vmatpush3.bf16.msra.mxu0 %v17291_v49 }
0x16ca   :  { %16631 = vmatprep.subr.bf16.mxu0 %v17140_v3 }
0x16cc   :  { %8211 = vmatmul.mubr.f32.vlgmr.msra.gmra.mrb[108].mxu0 %v9853_v10 }
0x16cd   :  { %16633 = vmatpush3.bf16.msra.mxu0 %v17151_v7  ;;  %8363 = vmatprep.mubr.f32.mxu0 %v9859_v24 }
0x16ce   :  { %16635 = vmatprep.subr.bf16.mxu0 %v17153_v8 }
0x16d1   :  { %16637 = vmatpush3.bf16.msra.mxu0 %v17171_v13 }
0x16d2   :  { %16639 = vmatprep.subr.bf16.mxu0 %v17175_v14 }
0x16d5   :  { %16641 = vmatpush3.bf16.msra.mxu0 %v17191_v19 }
0x16d6   :  { %16643 = vmatprep.subr.bf16.mxu0 %v17195_v20 }
0x16d9   :  { %16645 = vmatpush3.bf16.msra.mxu0 %v17217_v27 }
0x16da   :  { %16647 = vmatprep.subr.bf16.mxu0 %v17221_v28 }
0x16dd   :  { %16649 = vmatpush3.bf16.msra.mxu0 %v17237_v33 }
0x16de   :  { %16651 = vmatprep.subr.bf16.mxu0 %v17241_v34 }
0x16e1   :  { %16653 = vmatpush3.bf16.msra.mxu0 %v17257_v39 }
0x16e2   :  { %16655 = vmatprep.subr.bf16.mxu0 %v17261_v40 }
0x16e5   :  { %16657 = vmatpush3.bf16.msra.mxu0 %v17277_v45 }
0x16e6   :  { %16659 = vmatprep.subr.bf16.mxu0 %v17281_v46 }
0x16e9   :  { %16661 = vmatpush3.bf16.msra.mxu0 %v17291_v49 }
0x16ea   :  { %16695 = vmatprep.subr.bf16.mxu0 %v17140_v3 }
0x16ec   :  { %8364 = vmatmul.mubr.f32.vlgmr.msra.gmra.mrb[110].mxu0 %v9858_v25 }
0x16ed   :  { %16697 = vmatpush3.bf16.msra.mxu0 %v17151_v7  ;;  %8510 = vmatprep.mubr.f32.mxu0 %v9863_v29 }
0x16ee   :  { %16699 = vmatprep.subr.bf16.mxu0 %v17153_v8 }
0x16f1   :  { %16701 = vmatpush3.bf16.msra.mxu0 %v17171_v13 }
0x16f2   :  { %16703 = vmatprep.subr.bf16.mxu0 %v17175_v14 }
0x16f5   :  { %16705 = vmatpush3.bf16.msra.mxu0 %v17191_v19 }
0x16f6   :  { %16707 = vmatprep.subr.bf16.mxu0 %v17195_v20 }
0x16f9   :  { %16709 = vmatpush3.bf16.msra.mxu0 %v17217_v27 }
0x16fa   :  { %16711 = vmatprep.subr.bf16.mxu0 %v17221_v28 }
0x16fd   :  { %16713 = vmatpush3.bf16.msra.mxu0 %v17237_v33 }
0x16fe   :  { %16715 = vmatprep.subr.bf16.mxu0 %v17241_v34 }
0x1701   :  { %16717 = vmatpush3.bf16.msra.mxu0 %v17257_v39 }
0x1702   :  { %16719 = vmatprep.subr.bf16.mxu0 %v17261_v40 }
0x1705   :  { %16721 = vmatpush3.bf16.msra.mxu0 %v17277_v45 }
0x1706   :  { %16723 = vmatprep.subr.bf16.mxu0 %v17281_v46 }
0x1709   :  { %16725 = vmatpush3.bf16.msra.mxu0 %v17291_v49 }
0x170a   :  { %16758 = vmatprep.subr.bf16.mxu0 %v17078_v4 }
0x170c   :  { %8511 = vmatmul.mubr.f32.vlgmr.msra.gmra.mrb[112].mxu0 %v9862_v26 }
0x170d   :  { %13661 = vmatprep.mubr.msk.f32.mxu0 %vm17079_vm0, %v17080_v5  ;;  %16760 = vmatpush3.bf16.msra.mxu0 %v16759_v1 }
0x170e   :  { %16794 = vmatprep.subr.bf16.mxu0 %v17140_v3 }
0x175f   :  { %v7917_v32 = vpop.f32.mrb[104].mxu0 }
0x1760   :  { %v19560_v35 = vadd.f32 %v7917_v32, %v19458_v54  ;;  %v13649_v36 = vpop.f32.mrb[105].mxu0  ;;  %v9860_v54 = vld [vmem:[%s19957_s0 + $0x2f0] sm:$0xff]  ;;  %v9872_v32 = vld [vmem:[%s19957_s0 + $0x308] sm:$0xff] }
0x1761   :  { %v9876_v36 = vld [vmem:[%s19957_s0 + $0x628] sm:$0xff] }
0x177f   :  { %v12964_v37 = vpop.f32.mrb[106].mxu0 }
0x1780   :  { %v12965_v38 = vpop.f32.mrb[107].mxu0 }
0x1781   :  { %v12966_v41 = vadd.f32 %v12965_v38, %v12964_v37  ;;  %v9875_v37 = vld [vmem:[%s19957_s0 + $0x620] sm:$0xff] }
0x1783   :  { %v8068_v42 = vmax.f32 %v12931_v15, %v12966_v41 }
0x1785   :  { %v8142_v43 = vmax.f32 %v8068_v42, %v13001_v17 }
0x179f   :  { %v13034_v44 = vpop.f32.mrb[108].mxu0 }
0x17a0   :  { %v13035_v47 = vpop.f32.mrb[109].mxu0 }
0x17a1   :  { %v13036_v56 = vadd.f32 %v13035_v47, %v13034_v44 }
0x17a3   :  { %v8216_v48 = vmax.f32 %v8142_v43, %v13036_v56  ;;  %v9877_v56 = vld [vmem:[%s19958_s3 + $0x170] sm:$0xff] }
0x17a5   :  { %v8217_v51 = vadd.f32 %v19565_v50, %v8216_v48  ;;  %v9878_v48 = vld [vmem:[%s19958_s3 + $0x178] sm:$0xff] }
0x17a7   :  { %v8218_v52 = vmax.f32 %v8217_v51, 0.0  ;;  %v16890_v51 = vpack.c.bf16 %v9878_v48, %v9877_v56 }
0x17a9   :  { %13655 = vmatmul.mubr.msk.f32.vlgmr.msra.gmra.mrb[108].mxu1 %vm669_vm1, %v8218_v52  ;;  %v9881_v52 = vld [vmem:[%s19957_s0 + $0x188] sm:$0xff] }
0x17aa   :  { %16665 = vmatpush3.bf16.msra.mxu1 %v17151_v7  ;;  %8436 = vmatprep.mubr.f32.mxu1 %v9861_v53  ;;  %v9880_v53 = vld [vmem:[%s19957_s0 + $0x180] sm:$0xff] }
0x17ab   :  { %16667 = vmatprep.subr.bf16.mxu1 %v17153_v8 }
0x17ae   :  { %16669 = vmatpush3.bf16.msra.mxu1 %v17171_v13 }
0x17af   :  { %16671 = vmatprep.subr.bf16.mxu1 %v17175_v14 }
0x17b2   :  { %16673 = vmatpush3.bf16.msra.mxu1 %v17191_v19 }
0x17b3   :  { %16675 = vmatprep.subr.bf16.mxu1 %v17195_v20 }
0x17b6   :  { %16677 = vmatpush3.bf16.msra.mxu1 %v17217_v27 }
0x17b7   :  { %16679 = vmatprep.subr.bf16.mxu1 %v17221_v28 }
0x17ba   :  { %16681 = vmatpush3.bf16.msra.mxu1 %v17237_v33 }
0x17bb   :  { %16683 = vmatprep.subr.bf16.mxu1 %v17241_v34 }
0x17be   :  { %16685 = vmatpush3.bf16.msra.mxu1 %v17257_v39 }
0x17bf   :  { %16687 = vmatprep.subr.bf16.mxu1 %v17261_v40  ;;  %v13072_v57 = vpop.f32.mrb[110].mxu0 }
0x17c0   :  { %v13073_v58 = vpop.f32.mrb[111].mxu0 }
0x17c1   :  { %v13074_v59 = vadd.f32 %v13073_v58, %v13072_v57 }
0x17c2   :  { %16689 = vmatpush3.bf16.msra.mxu1 %v17277_v45 }
0x17c3   :  { %16691 = vmatprep.subr.bf16.mxu1 %v17281_v46 }
0x17c6   :  { %16693 = vmatpush3.bf16.msra.mxu1 %v17291_v49 }
0x17c7   :  { %16727 = vmatprep.subr.bf16.mxu1 %v17140_v3 }
0x17c9   :  { %8437 = vmatmul.mubr.f32.vlgmr.msra.gmra.mrb[110].mxu1 %v9860_v54  ;;  %v9885_v54 = vld [vmem:[%s19957_s0 + $0x4a8] sm:$0xff] }
0x17ca   :  { %16729 = vmatpush3.bf16.msra.mxu1 %v17151_v7  ;;  %8584 = vmatprep.mubr.f32.mxu1 %v9865_v31  ;;  %v9884_v31 = vld [vmem:[%s19957_s0 + $0x4a0] sm:$0xff] }
0x17cb   :  { %16731 = vmatprep.subr.bf16.mxu1 %v17153_v8 }
0x17ce   :  { %16733 = vmatpush3.bf16.msra.mxu1 %v17171_v13 }
0x17cf   :  { %16735 = vmatprep.subr.bf16.mxu1 %v17175_v14 }
0x17d2   :  { %16737 = vmatpush3.bf16.msra.mxu1 %v17191_v19 }
0x17d3   :  { %16739 = vmatprep.subr.bf16.mxu1 %v17195_v20 }
0x17d6   :  { %16741 = vmatpush3.bf16.msra.mxu1 %v17217_v27 }
0x17d7   :  { %16743 = vmatprep.subr.bf16.mxu1 %v17221_v28 }
0x17da   :  { %16745 = vmatpush3.bf16.msra.mxu1 %v17237_v33 }
0x17db   :  { %16747 = vmatprep.subr.bf16.mxu1 %v17241_v34 }
0x17de   :  { %16749 = vmatpush3.bf16.msra.mxu1 %v17257_v39 }
0x17df   :  { %16751 = vmatprep.subr.bf16.mxu1 %v17261_v40  ;;  %v13142_v60 = vpop.f32.mrb[112].mxu0 }
0x17e0   :  { %v13143_v61 = vpop.f32.mrb[113].mxu0 }
0x17e1   :  { %v13144_v62 = vadd.f32 %v13143_v61, %v13142_v60 }
0x17e2   :  { %16753 = vmatpush3.bf16.msra.mxu1 %v17277_v45 }
0x17e3   :  { %16755 = vmatprep.subr.bf16.mxu1 %v17281_v46 }
0x17e6   :  { %16757 = vmatpush3.bf16.msra.mxu1 %v17291_v49 }
0x17e7   :  { %16762 = vmatprep.subr.bf16.mxu1 %v17140_v3 }
0x17e9   :  { %8585 = vmatmul.mubr.f32.vlgmr.msra.gmra.mrb[112].mxu1 %v9864_v55 }
0x17ea   :  { %16764 = vmatpush3.bf16.msra.mxu1 %v17151_v7  ;;  %8737 = vmatprep.mubr.f32.mxu1 %v9870_v2 }
0x17eb   :  { %16766 = vmatprep.subr.bf16.mxu1 %v17153_v8 }
0x17ee   :  { %16768 = vmatpush3.bf16.msra.mxu1 %v17171_v13 }
0x17ef   :  { %16770 = vmatprep.subr.bf16.mxu1 %v17175_v14 }
0x17f2   :  { %16772 = vmatpush3.bf16.msra.mxu1 %v17191_v19 }
0x17f3   :  { %16774 = vmatprep.subr.bf16.mxu1 %v17195_v20 }
0x17f6   :  { %16776 = vmatpush3.bf16.msra.mxu1 %v17217_v27 }
0x17f7   :  { %16778 = vmatprep.subr.bf16.mxu1 %v17221_v28 }
0x17fa   :  { %16780 = vmatpush3.bf16.msra.mxu1 %v17237_v33 }
0x17fb   :  { %16782 = vmatprep.subr.bf16.mxu1 %v17241_v34 }
0x17fe   :  { %16784 = vmatpush3.bf16.msra.mxu1 %v17257_v39 }
0x17ff   :  { %16786 = vmatprep.subr.bf16.mxu1 %v17261_v40 }
0x1802   :  { %16788 = vmatpush3.bf16.msra.mxu1 %v17277_v45 }
0x1803   :  { %16790 = vmatprep.subr.bf16.mxu1 %v17281_v46 }
0x1806   :  { %16792 = vmatpush3.bf16.msra.mxu1 %v17291_v49 }
0x1807   :  { %16826 = vmatprep.subr.bf16.mxu1 %v17140_v3 }
0x1809   :  { %8738 = vmatmul.mubr.f32.vlgmr.msra.gmra.mrb[114].mxu1 %v9869_v6 }
0x180a   :  { %16828 = vmatpush3.bf16.msra.mxu1 %v17151_v7  ;;  %8884 = vmatprep.mubr.f32.mxu1 %v9874_v18 }
0x180b   :  { %16830 = vmatprep.subr.bf16.mxu1 %v17153_v8 }
0x180e   :  { %16832 = vmatpush3.bf16.msra.mxu1 %v17171_v13 }
0x180f   :  { %16834 = vmatprep.subr.bf16.mxu1 %v17175_v14 }
0x1812   :  { %16836 = vmatpush3.bf16.msra.mxu1 %v17191_v19 }
0x1813   :  { %16838 = vmatprep.subr.bf16.mxu1 %v17195_v20 }
0x1816   :  { %16840 = vmatpush3.bf16.msra.mxu1 %v17217_v27 }
0x1817   :  { %16842 = vmatprep.subr.bf16.mxu1 %v17221_v28 }
0x181a   :  { %16844 = vmatpush3.bf16.msra.mxu1 %v17237_v33 }
0x181b   :  { %16846 = vmatprep.subr.bf16.mxu1 %v17241_v34 }
0x181e   :  { %16848 = vmatpush3.bf16.msra.mxu1 %v17257_v39 }
0x181f   :  { %16850 = vmatprep.subr.bf16.mxu1 %v17261_v40 }
0x1822   :  { %16852 = vmatpush3.bf16.msra.mxu1 %v17277_v45 }
0x1823   :  { %16854 = vmatprep.subr.bf16.mxu1 %v17281_v46 }
0x1826   :  { %16856 = vmatpush3.bf16.msra.mxu1 %v17291_v49 }
0x1827   :  { %16889 = vmatprep.subr.bf16.mxu1 %v17078_v4 }
0x1829   :  { %8885 = vmatmul.mubr.f32.vlgmr.msra.gmra.mrb[116].mxu1 %v9873_v9 }
0x182a   :  { %13668 = vmatprep.mubr.msk.f32.mxu1 %vm17079_vm0, %v17080_v5  ;;  %16891 = vmatpush3.bf16.msra.mxu1 %v16890_v51 }
0x182b   :  { %16925 = vmatprep.subr.bf16.mxu1 %v17140_v3 }
0x187c   :  { %v8291_v10 = vpop.f32.mrb[108].mxu1 }
0x187d   :  { %v19667_v11 = vadd.f32 %v8291_v10, %v19560_v35  ;;  %v13656_v12 = vpop.f32.mrb[109].mxu1  ;;  %v9871_v35 = vld [vmem:[%s19957_s0 + $0x300] sm:$0xff]  ;;  %v9883_v10 = vld [vmem:[%s19957_s0 + $0x318] sm:$0xff] }
0x187e   :  { %v9887_v12 = vld [vmem:[%s19957_s0 + $0x638] sm:$0xff] }
0x189c   :  { %v13107_v15 = vpop.f32.mrb[110].mxu1 }
0x189d   :  { %v13108_v16 = vpop.f32.mrb[111].mxu1 }
0x189e   :  { %v13109_v30 = vadd.f32 %v13108_v16, %v13107_v15  ;;  %v9431_v15 = vld [vmem:[%s19960_s5 + $0x20] sm:$0xff]  ;;  %v9432_v16 = vld [vmem:[%s19960_s5 + $0x28] sm:$0xff] }
0x18a0   :  { %v8442_v17 = vmax.f32 %v13074_v59, %v13109_v30  ;;  %v17030_v30 = vpack.c.bf16 %v9432_v16, %v9431_v15 }
0x18a2   :  { %v8516_v21 = vmax.f32 %v8442_v17, %v13144_v62  ;;  %v9433_v17 = vld [vmem:[%s19960_s5 + $0x30] sm:$0xff] }
0x18bc   :  { %v13177_v22 = vpop.f32.mrb[112].mxu1 }
0x18bd   :  { %v13178_v23 = vpop.f32.mrb[113].mxu1 }
0x18be   :  { %v13179_v24 = vadd.f32 %v13178_v23, %v13177_v22  ;;  %v9435_v23 = vld [vmem:[%s19960_s5 + $0x40] sm:$0xff] }
0x18c0   :  { %v8590_v25 = vmax.f32 %v8516_v21, %v13179_v24  ;;  %v9434_v21 = vld [vmem:[%s19960_s5 + $0x38] sm:$0xff]  ;;  %v9436_v24 = vld [vmem:[%s19960_s5 + $0x48] sm:$0xff] }
0x18c1   :  { %v17033_v22 = vpack.c.bf16 %v9434_v21, %v9433_v17  ;;  %v9893_v17 = vld [vmem:[%s19964_s8] ss:$0 sm:$0xff] }
0x18c2   :  { %v8591_v29 = vadd.f32 %v19565_v50, %v8590_v25  ;;  %v17036_v25 = vpack.c.bf16 %v9436_v24, %v9435_v23 }
0x18c4   :  { %v8592_v26 = vmax.f32 %v8591_v29, 0.0  ;;  %v9437_v29 = vld [vmem:[%s19960_s5 + $0x50] sm:$0xff] }
0x18c6   :  { %13662 = vmatmul.mubr.msk.f32.vlgmr.msra.gmra.mrb[114].mxu0 %vm669_vm1, %v8592_v26  ;;  %v9438_v26 = vld [vmem:[%s19960_s5 + $0x58] sm:$0xff] }
0x18c7   :  { %16796 = vmatpush3.bf16.msra.mxu0 %v17151_v7  ;;  %8810 = vmatprep.mubr.f32.mxu0 %v9872_v32  ;;  %v17039_v32 = vpack.c.bf16 %v9438_v26, %v9437_v29 }
0x18c8   :  { %16798 = vmatprep.subr.bf16.mxu0 %v17153_v8 }
0x18cb   :  { %16800 = vmatpush3.bf16.msra.mxu0 %v17171_v13 }
0x18cc   :  { %16802 = vmatprep.subr.bf16.mxu0 %v17175_v14 }
0x18cf   :  { %16804 = vmatpush3.bf16.msra.mxu0 %v17191_v19 }
0x18d0   :  { %16806 = vmatprep.subr.bf16.mxu0 %v17195_v20 }
0x18d3   :  { %16808 = vmatpush3.bf16.msra.mxu0 %v17217_v27 }
0x18d4   :  { %16810 = vmatprep.subr.bf16.mxu0 %v17221_v28 }
0x18d7   :  { %16812 = vmatpush3.bf16.msra.mxu0 %v17237_v33 }
0x18d8   :  { %16814 = vmatprep.subr.bf16.mxu0 %v17241_v34 }
0x18db   :  { %16816 = vmatpush3.bf16.msra.mxu0 %v17257_v39 }
0x18dc   :  { %16818 = vmatprep.subr.bf16.mxu0 %v17261_v40  ;;  %v13215_v38 = vpop.f32.mrb[114].mxu1 }
0x18dd   :  { %v13216_v41 = vpop.f32.mrb[115].mxu1 }
0x18de   :  { %v13217_v42 = vadd.f32 %v13216_v41, %v13215_v38 }
0x18df   :  { %16820 = vmatpush3.bf16.msra.mxu0 %v17277_v45 }
0x18e0   :  { %16822 = vmatprep.subr.bf16.mxu0 %v17281_v46 }
0x18e3   :  { %16824 = vmatpush3.bf16.msra.mxu0 %v17291_v49 }
0x18e4   :  { %16858 = vmatprep.subr.bf16.mxu0 %v17140_v3 }
0x18e6   :  { %8811 = vmatmul.mubr.f32.vlgmr.msra.gmra.mrb[116].mxu0 %v9871_v35 }
0x18e7   :  { %16860 = vmatpush3.bf16.msra.mxu0 %v17151_v7  ;;  %8958 = vmatprep.mubr.f32.mxu0 %v9876_v36 }
0x18e8   :  { %16862 = vmatprep.subr.bf16.mxu0 %v17153_v8 }
0x18eb   :  { %16864 = vmatpush3.bf16.msra.mxu0 %v17171_v13 }
0x18ec   :  { %16866 = vmatprep.subr.bf16.mxu0 %v17175_v14 }
0x18ef   :  { %16868 = vmatpush3.bf16.msra.mxu0 %v17191_v19 }
0x18f0   :  { %16870 = vmatprep.subr.bf16.mxu0 %v17195_v20 }
0x18f3   :  { %16872 = vmatpush3.bf16.msra.mxu0 %v17217_v27 }
0x18f4   :  { %16874 = vmatprep.subr.bf16.mxu0 %v17221_v28 }
0x18f7   :  { %16876 = vmatpush3.bf16.msra.mxu0 %v17237_v33 }
0x18f8   :  { %16878 = vmatprep.subr.bf16.mxu0 %v17241_v34 }
0x18fb   :  { %16880 = vmatpush3.bf16.msra.mxu0 %v17257_v39 }
0x18fc   :  { %16882 = vmatprep.subr.bf16.mxu0 %v17261_v40  ;;  %v13285_v43 = vpop.f32.mrb[116].mxu1 }
0x18fd   :  { %v13286_v44 = vpop.f32.mrb[117].mxu1 }
0x18fe   :  { %v13287_v47 = vadd.f32 %v13286_v44, %v13285_v43 }
0x18ff   :  { %16884 = vmatpush3.bf16.msra.mxu0 %v17277_v45 }
0x1900   :  { %16886 = vmatprep.subr.bf16.mxu0 %v17281_v46 }
0x1903   :  { %16888 = vmatpush3.bf16.msra.mxu0 %v17291_v49 }
0x1904   :  { %16893 = vmatprep.subr.bf16.mxu0 %v17140_v3 }
0x1906   :  { %8959 = vmatmul.mubr.f32.vlgmr.msra.gmra.mrb[118].mxu0 %v9875_v37 }
0x1907   :  { %16895 = vmatpush3.bf16.msra.mxu0 %v17151_v7  ;;  %9111 = vmatprep.mubr.f32.mxu0 %v9881_v52 }
0x1908   :  { %16897 = vmatprep.subr.bf16.mxu0 %v17153_v8 }
0x190b   :  { %16899 = vmatpush3.bf16.msra.mxu0 %v17171_v13 }
0x190c   :  { %16901 = vmatprep.subr.bf16.mxu0 %v17175_v14 }
0x190f   :  { %16903 = vmatpush3.bf16.msra.mxu0 %v17191_v19 }
0x1910   :  { %16905 = vmatprep.subr.bf16.mxu0 %v17195_v20 }
0x1913   :  { %16907 = vmatpush3.bf16.msra.mxu0 %v17217_v27 }
0x1914   :  { %16909 = vmatprep.subr.bf16.mxu0 %v17221_v28 }
0x1917   :  { %16911 = vmatpush3.bf16.msra.mxu0 %v17237_v33 }
0x1918   :  { %16913 = vmatprep.subr.bf16.mxu0 %v17241_v34 }
0x191b   :  { %16915 = vmatpush3.bf16.msra.mxu0 %v17257_v39 }
0x191c   :  { %16917 = vmatprep.subr.bf16.mxu0 %v17261_v40 }
0x191f   :  { %16919 = vmatpush3.bf16.msra.mxu0 %v17277_v45 }
0x1920   :  { %16921 = vmatprep.subr.bf16.mxu0 %v17281_v46 }
0x1923   :  { %16923 = vmatpush3.bf16.msra.mxu0 %v17291_v49 }
0x1924   :  { %16957 = vmatprep.subr.bf16.mxu0 %v17140_v3 }
0x1926   :  { %9112 = vmatmul.mubr.f32.vlgmr.msra.gmra.mrb[120].mxu0 %v9880_v53 }
0x1927   :  { %16959 = vmatpush3.bf16.msra.mxu0 %v17151_v7  ;;  %9258 = vmatprep.mubr.f32.mxu0 %v9885_v54  ;;  %v9439_v54 = vld [vmem:[%s19960_s5 + $0x60] sm:$0xff] }
0x1928   :  { %16961 = vmatprep.subr.bf16.mxu0 %v17153_v8 }
0x192b   :  { %16963 = vmatpush3.bf16.msra.mxu0 %v17171_v13 }
0x192c   :  { %16965 = vmatprep.subr.bf16.mxu0 %v17175_v14 }
0x192f   :  { %16967 = vmatpush3.bf16.msra.mxu0 %v17191_v19 }
0x1930   :  { %16969 = vmatprep.subr.bf16.mxu0 %v17195_v20 }
0x1933   :  { %16971 = vmatpush3.bf16.msra.mxu0 %v17217_v27 }
0x1934   :  { %16973 = vmatprep.subr.bf16.mxu0 %v17221_v28 }
0x1937   :  { %16975 = vmatpush3.bf16.msra.mxu0 %v17237_v33 }
0x1938   :  { %16977 = vmatprep.subr.bf16.mxu0 %v17241_v34 }
0x193b   :  { %16979 = vmatpush3.bf16.msra.mxu0 %v17257_v39 }
0x193c   :  { %16981 = vmatprep.subr.bf16.mxu0 %v17261_v40 }
0x193f   :  { %16983 = vmatpush3.bf16.msra.mxu0 %v17277_v45 }
0x1940   :  { %16985 = vmatprep.subr.bf16.mxu0 %v17281_v46 }
0x1943   :  { %16987 = vmatpush3.bf16.msra.mxu0 %v17291_v49 }
0x1944   :  { %17020 = vmatprep.subr.bf16.mxu0 %v17078_v4 }
0x1946   :  { %9259 = vmatmul.mubr.f32.vlgmr.msra.gmra.mrb[122].mxu0 %v9884_v31  ;;  %v9440_v31 = vld [vmem:[%s19960_s5 + $0x68] sm:$0xff] }
0x1947   :  { %13675 = vmatprep.mubr.msk.f32.mxu0 %vm17079_vm0, %v17080_v5 }
0x1999   :  { %v8665_v55 = vpop.f32.mrb[114].mxu0 }
0x199a   :  { %v19769_v57 = vadd.f32 %v8665_v55, %v19667_v11  ;;  %v13663_v58 = vpop.f32.mrb[115].mxu0  ;;  %v9882_v11 = vld [vmem:[%s19957_s0 + $0x310] sm:$0xff]  ;;  %v17042_v55 = vpack.c.bf16 %v9440_v31, %v9439_v54 }
0x199b   :  { %v9521_v58 = vld [vmem:[%s19961_s7] sm:$0xff] }
0x19b9   :  { %v13250_v59 = vpop.f32.mrb[116].mxu0 }
0x19ba   :  { %v13251_v60 = vpop.f32.mrb[117].mxu0 }
0x19bb   :  { %v13252_v61 = vadd.f32 %v13251_v60, %v13250_v59  ;;  %v9522_v59 = vld [vmem:[%s19961_s7 + $0x8] sm:$0xff]  ;;  %v9523_v60 = vld [vmem:[%s19961_s7 + $0x10] sm:$0xff] }
0x19bd   :  { %v8816_v62 = vmax.f32 %v13217_v42, %v13252_v61  ;;  %v17048_v61 = vpack.c.bf16 %v9522_v59, %v9521_v58 }
0x19bf   :  { %v8890_v63 = vmax.f32 %v8816_v62, %v13287_v47  ;;  %v9524_v62 = vld [vmem:[%s19961_s7 + $0x18] sm:$0xff] }
0x19d9   :  { %v13320_v0 = vpop.f32.mrb[118].mxu0 }
0x19da   :  { %v13321_v1 = vpop.f32.mrb[119].mxu0 }
0x19db   :  { %v13322_v2 = vadd.f32 %v13321_v1, %v13320_v0  ;;  %v9525_v0 = vld [vmem:[%s19961_s7 + $0x20] sm:$0xff]  ;;  %v9526_v1 = vld [vmem:[%s19961_s7 + $0x28] sm:$0xff] }
0x19dd   :  { %v8964_v6 = vmax.f32 %v8890_v63, %v13322_v2  ;;  %v17051_v63 = vpack.c.bf16 %v9524_v62, %v9523_v60  ;;  %v17054_v2 = vpack.c.bf16 %v9526_v1, %v9525_v0 }
0x19df   :  { %v8965_v18 = vadd.f32 %v19565_v50, %v8964_v6  ;;  %v9527_v6 = vld [vmem:[%s19961_s7 + $0x30] sm:$0xff] }
0x19e1   :  { %v8966_v9 = vmax.f32 %v8965_v18, 0.0  ;;  %v9528_v18 = vld [vmem:[%s19961_s7 + $0x38] sm:$0xff] }
0x19e3   :  { %13669 = vmatmul.mubr.msk.f32.vlgmr.msra.gmra.mrb[118].mxu1 %vm669_vm1, %v8966_v9  ;;  %v17057_v9 = vpack.c.bf16 %v9528_v18, %v9527_v6 }
0x19e4   :  { %16927 = vmatpush3.bf16.msra.mxu1 %v17151_v7  ;;  %9184 = vmatprep.mubr.f32.mxu1 %v9883_v10  ;;  %v9529_v10 = vld [vmem:[%s19961_s7 + $0x40] sm:$0xff] }
0x19e5   :  { %16929 = vmatprep.subr.bf16.mxu1 %v17153_v8 }
0x19e8   :  { %16931 = vmatpush3.bf16.msra.mxu1 %v17171_v13 }
0x19e9   :  { %16933 = vmatprep.subr.bf16.mxu1 %v17175_v14 }
0x19ec   :  { %16935 = vmatpush3.bf16.msra.mxu1 %v17191_v19 }
0x19ed   :  { %16937 = vmatprep.subr.bf16.mxu1 %v17195_v20 }
0x19f0   :  { %16939 = vmatpush3.bf16.msra.mxu1 %v17217_v27 }
0x19f1   :  { %16941 = vmatprep.subr.bf16.mxu1 %v17221_v28 }
0x19f4   :  { %16943 = vmatpush3.bf16.msra.mxu1 %v17237_v33 }
0x19f5   :  { %16945 = vmatprep.subr.bf16.mxu1 %v17241_v34 }
0x19f8   :  { %16947 = vmatpush3.bf16.msra.mxu1 %v17257_v39 }
0x19f9   :  { %16949 = vmatprep.subr.bf16.mxu1 %v17261_v40 }
0x19fc   :  { %16951 = vmatpush3.bf16.msra.mxu1 %v17277_v45 }
0x19fd   :  { %16953 = vmatprep.subr.bf16.mxu1 %v17281_v46 }
0x1a00   :  { %16955 = vmatpush3.bf16.msra.mxu1 %v17291_v49 }
0x1a01   :  { %16989 = vmatprep.subr.bf16.mxu1 %v17140_v3  ;;  %v9886_v3 = vld [vmem:[%s19957_s0 + $0x630] sm:$0xff] }
0x1a03   :  { %9185 = vmatmul.mubr.f32.vlgmr.msra.gmra.mrb[120].mxu1 %v9882_v11  ;;  %v9530_v11 = vld [vmem:[%s19961_s7 + $0x48] sm:$0xff] }
0x1a04   :  { %16991 = vmatpush3.bf16.msra.mxu1 %v17151_v7  ;;  %9332 = vmatprep.mubr.f32.mxu1 %v9887_v12  ;;  %v13358_v7 = vpop.f32.mrb[120].mxu0  ;;  %v17060_v12 = vpack.c.bf16 %v9530_v11, %v9529_v10 }
0x1a05   :  { %16993 = vmatprep.subr.bf16.mxu1 %v17153_v8  ;;  %v13359_v8 = vpop.f32.mrb[121].mxu0 }
0x1a08   :  { %16995 = vmatpush3.bf16.msra.mxu1 %v17171_v13  ;;  %v13360_v13 = vadd.f32 %v13359_v8, %v13358_v7  ;;  %v9532_v7 = vld [vmem:[%s19961_s7 + $0x58] sm:$0xff] }
0x1a09   :  { %16997 = vmatprep.subr.bf16.mxu1 %v17175_v14 }
0x1a0c   :  { %16999 = vmatpush3.bf16.msra.mxu1 %v17191_v19 }
0x1a0d   :  { %17001 = vmatprep.subr.bf16.mxu1 %v17195_v20 }
0x1a10   :  { %17003 = vmatpush3.bf16.msra.mxu1 %v17217_v27  ;;  %v9888_v27 = vld [vmem:[%s19958_s3 + $0x180] sm:$0xff] }
0x1a11   :  { %17005 = vmatprep.subr.bf16.mxu1 %v17221_v28  ;;  %v9889_v28 = vld [vmem:[%s19958_s3 + $0x188] sm:$0xff] }
0x1a14   :  { %17007 = vmatpush3.bf16.msra.mxu1 %v17237_v33  ;;  %v17021_v33 = vpack.c.bf16 %v9889_v28, %v9888_v27  ;;  %v9891_v27 = vld [vmem:[%s19962_s4] ss:$0 sm:$0xff] }
0x1a15   :  { %17009 = vmatprep.subr.bf16.mxu1 %v17241_v34  ;;  %v9427_v34 = vld [vmem:[%s19960_s5] sm:$0xff] }
0x1a16   :  { %17022 = vmatpush3.bf16.msra.mxu0 %v17021_v33 }
0x1a17   :  { %17047 = vmatprep.subr.bf16.mxu0 %v17078_v4 }
0x1a18   :  { %17011 = vmatpush3.bf16.msra.mxu1 %v17257_v39  ;;  %v9428_v39 = vld [vmem:[%s19960_s5 + $0x8] sm:$0xff] }
0x1a19   :  { %17013 = vmatprep.subr.bf16.mxu1 %v17261_v40  ;;  %v13428_v14 = vpop.f32.mrb[122].mxu0  ;;  %v9429_v40 = vld [vmem:[%s19960_s5 + $0x10] sm:$0xff] }
0x1a1a   :  { %v13429_v19 = vpop.f32.mrb[123].mxu0 }
0x1a1b   :  { %v13430_v20 = vadd.f32 %v13429_v19, %v13428_v14  ;;  %v9534_v14 = vld [vmem:[%s19961_s7 + $0x68] sm:$0xff] }
0x1a1c   :  { %17015 = vmatpush3.bf16.msra.mxu1 %v17277_v45  ;;  %v17024_v45 = vpack.c.bf16 %v9428_v39, %v9427_v34 }
0x1a1d   :  { %17017 = vmatprep.subr.bf16.mxu1 %v17281_v46  ;;  %v9430_v46 = vld [vmem:[%s19960_s5 + $0x18] sm:$0xff] }
0x1a20   :  { %17019 = vmatpush3.bf16.msra.mxu1 %v17291_v49  ;;  %v17027_v49 = vpack.c.bf16 %v9430_v46, %v9429_v40  ;;  %v9535_v40 = vld [vmem:[%s19961_s7 + $0x70] sm:$0xff]  ;;  %v9892_v46 = vld [vmem:[%s19963_s6] ss:$0 sm:$0xff] }
0x1a21   :  { %17023 = vmatprep.subr.bf16.mxu1 %v17078_v4 }
0x1a23   :  { %9333 = vmatmul.mubr.f32.vlgmr.msra.gmra.mrb[122].mxu1 %v9886_v3  ;;  %v9531_v3 = vld [vmem:[%s19961_s7 + $0x50] sm:$0xff] }
0x1a24   :  { %13710 = vmatprep.mubr.msk.f32.mxu1 %vm17079_vm0, %v17080_v5  ;;  %17025 = vmatpush3.bf16.msra.mxu1 %v17024_v45  ;;  %v17063_v8 = vpack.c.bf16 %v9532_v7, %v9531_v3  ;;  %v9536_v45 = vld [vmem:[%s19961_s7 + $0x78] sm:$0xff] }
0x1a25   :  { %17026 = vmatprep.subr.bf16.mxu1 %v17078_v4 }
0x1a28   :  { %17028 = vmatpush3.bf16.msra.mxu1 %v17027_v49 }
0x1a29   :  { %17029 = vmatprep.subr.bf16.mxu1 %v17078_v4 }
0x1a2c   :  { %17031 = vmatpush3.bf16.msra.mxu1 %v17030_v30 }
0x1a2d   :  { %17032 = vmatprep.subr.bf16.mxu1 %v17078_v4 }
0x1a30   :  { %17034 = vmatpush3.bf16.msra.mxu1 %v17033_v22 }
0x1a31   :  { %17035 = vmatprep.subr.bf16.mxu1 %v17078_v4 }
0x1a34   :  { %17037 = vmatpush3.bf16.msra.mxu1 %v17036_v25 }
0x1a35   :  { %17038 = vmatprep.subr.bf16.mxu1 %v17078_v4 }
0x1a38   :  { %17040 = vmatpush3.bf16.msra.mxu1 %v17039_v32 }
0x1a39   :  { %17041 = vmatprep.subr.bf16.mxu1 %v17078_v4 }
0x1a3c   :  { %17043 = vmatpush3.bf16.msra.mxu1 %v17042_v55 }
0x1a3d   :  { %17044 = vmatprep.subr.bf16.mxu1 %v17078_v4 }
0x1ab6   :  { %v9039_v35 = vpop.f32.mrb[118].mxu1 }
0x1ab7   :  { %v19869_v36 = vadd.f32 %v9039_v35, %v19769_v57  ;;  %v13670_v37 = vpop.f32.mrb[119].mxu1 }
0x1ad6   :  { %v13393_v38 = vpop.f32.mrb[120].mxu1 }
0x1ad7   :  { %v13394_v41 = vpop.f32.mrb[121].mxu1 }
0x1ad8   :  { %v13395_v42 = vadd.f32 %v13394_v41, %v13393_v38 }
0x1ada   :  { %v9190_v43 = vmax.f32 %v13360_v13, %v13395_v42  ;;  %v9533_v13 = vld [vmem:[%s19961_s7 + $0x60] sm:$0xff] }
0x1adb   :  { %v17066_v19 = vpack.c.bf16 %v9534_v14, %v9533_v13 }
0x1adc   :  { %v9264_v44 = vmax.f32 %v9190_v43, %v13430_v20 }
0x1af6   :  { %v13463_v47 = vpop.f32.mrb[122].mxu1 }
0x1af7   :  { %v13464_v56 = vpop.f32.mrb[123].mxu1 }
0x1af8   :  { %v13465_v48 = vadd.f32 %v13464_v56, %v13463_v47 }
0x1afa   :  { %v9338_v51 = vmax.f32 %v9264_v44, %v13465_v48 }
0x1afc   :  { %v9339_v52 = vadd.f32 %v19565_v50, %v9338_v51  ;;  %v9441_v50 = vld [vmem:[%s19960_s5 + $0x70] sm:$0xff] }
0x1afe   :  { %v9340_v53 = vmax.f32 %v9339_v52, 0.0 }
0x1b00   :  { %13676 = vmatmul.mubr.msk.f32.vlgmr.msra.gmra.mrb[124].mxu0 %vm669_vm1, %v9340_v53 }
0x1b01   :  { %13745 = vmatprep.mubr.msk.f32.mxu0 %vm17079_vm0, %v17080_v5  ;;  %v9442_v5 = vld [vmem:[%s19960_s5 + $0x78] sm:$0xff]  ;;  %17049 = vmatpush3.bf16.msra.mxu0 %v17048_v61 }
0x1b02   :  { %v17045_v57 = vpack.c.bf16 %v9442_v5, %v9441_v50  ;;  %17050 = vmatprep.subr.bf16.mxu0 %v17078_v4 }
0x1b04   :  { %17046 = vmatpush3.bf16.msra.mxu1 %v17045_v57 }
0x1b05   :  { %17052 = vmatpush3.bf16.msra.mxu0 %v17051_v63 }
0x1b06   :  { %17053 = vmatprep.subr.bf16.mxu0 %v17078_v4 }
0x1b09   :  { %17055 = vmatpush3.bf16.msra.mxu0 %v17054_v2 }
0x1b0a   :  { %17056 = vmatprep.subr.bf16.mxu0 %v17078_v4 }
0x1b0d   :  { %17058 = vmatpush3.bf16.msra.mxu0 %v17057_v9 }
0x1b0e   :  { %17059 = vmatprep.subr.bf16.mxu0 %v17078_v4 }
0x1b11   :  { %17061 = vmatpush3.bf16.msra.mxu0 %v17060_v12 }
0x1b12   :  { %17062 = vmatprep.subr.bf16.mxu0 %v17078_v4 }
0x1b15   :  { %17064 = vmatpush3.bf16.msra.mxu0 %v17063_v8 }
0x1b16   :  { %17065 = vmatprep.subr.bf16.mxu0 %v17078_v4 }
0x1b19   :  { %17067 = vmatpush3.bf16.msra.mxu0 %v17066_v19 }
0x1b1a   :  { %17068 = vmatprep.subr.bf16.mxu0 %v17078_v4  ;;  %v17069_v4 = vpack.c.bf16 %v9536_v45, %v9535_v40 }
0x1b1d   :  { %17070 = vmatpush3.bf16.msra.mxu0 %v17069_v4 }
0x1bd3   :  { %v9413_v20 = vpop.f32.mrb[124].mxu0 }
0x1bd4   :  { %v9417_v28 = vadd.f32 %v9413_v20, %v19869_v36  ;;  %v13677_v33 = vpop.f32.mrb[125].mxu0 }
0x1bd6   :  { %v9425_v34 = vadd.f32 %v9891_v27, %v9417_v28 }
0x1bd8   :  { %v9426_v39 = vmax.f32 %v9425_v34, 0.0 }
0x1bda   :  { %13711 = vmatmul.mubr.f32.vlgmr.msra.gmra.mrb[124].mxu1 %v9426_v39 }
0x1cad   :  { %v9516_v49 = vpop.f32.mrb[124].mxu1 }
0x1cae   :  { %v9517_v15 = vadd.f32 %v9892_v46, %v9516_v49  ;;  %v13712_v16 = vpop.f32.mrb[125].mxu1 }
0x1cb0   :  { %v9520_v30 = vmax.f32 %v9517_v15, 0.0 }
0x1cb2   :  { %13746 = vmatmul.mubr.f32.vlgmr.msra.gmra.mrb[126].mxu0 %v9520_v30 }
0x1d85   :  { %v9610_v21 = vpop.f32.mrb[126].mxu0 }
0x1d86   :  { %v9611_v22 = vadd.f32 %v9893_v17, %v9610_v21  ;;  %v13747_v23 = vpop.f32.mrb[127].mxu0 }
0x1d88   :  { %9614 = vst [vmem:[%s19965_s9] sm:$0xff] %v9611_v22 }

</bundles_post_ra>
